<compile_context>
chip_gen: v7x
topology: tpu7x:2x2x1
jax: 0.10.0
libtpu: 0.0.40
codegen_flags: <defaults>
</compile_context>

<pallas_src>
import jax
import jax.numpy as jnp
from jax.experimental import pallas as pl
from jax.experimental.pallas import tpu as pltpu


# --------------------------------------------------------------------------
# In-kernel helpers
# --------------------------------------------------------------------------
def _pack_pairs(y, c):
    """(n, c) -> (n//2, 2c): concatenate consecutive token pairs along lanes."""
    n = y.shape[0]
    yr = y.reshape(n // 2, 2, c)
    return jnp.concatenate([yr[:, 0, :], yr[:, 1, :]], axis=-1)


def _stage_merged(ref, y, nb, rows, wcols, c):
    """Stage (nb*rows*wcols, c) activations into the column-pair-merged,
    zero-haloed scratch `ref` of shape (nb, rows+4, wcols//2 + 1, 2c).

    Aligned layout: merged col m (sublane m) holds original cols (2m, 2m+1),
    so the interior starts at sublane offset 0 and the store is aligned.
    Merged col wcols//2 is the right zero halo (written by the same store);
    only the 4 halo rows are zeroed separately each step.
    """
    mw = wcols // 2
    m = _pack_pairs(y, c).reshape(nb, rows, mw, 2 * c)
    m = jnp.concatenate(
        [m, jnp.zeros((nb, rows, 1, 2 * c), m.dtype)], axis=2)      # right halo
    ref[:, 2:2 + rows, :, :] = m
    zrow = jnp.zeros((nb, 2, mw + 1, 2 * c), jnp.float32)
    ref[:, 0:2, :, :] = zrow
    ref[:, rows + 2:rows + 4, :, :] = zrow


def _stage_padded(ref, y, nb, h, w, c):
    """Stage (nb*h*w, c) activations into the plain zero-padded scratch
    (nb, h+4, w+4, c) for stride-1 conv4 (interior at [2:2+h, 2:2+w]; the
    column halos are folded into the store, only 4 halo rows zeroed)."""
    zc = jnp.zeros((nb, h, 2, c), jnp.float32)
    body = jnp.concatenate([zc, y.reshape(nb, h, w, c), zc], axis=2)  # (nb,h,w+4,c)
    ref[:, 2:2 + h, :, :] = body
    zrow = jnp.zeros((nb, 2, w + 4, c), jnp.float32)
    ref[:, 0:2, :, :] = zrow
    ref[:, h + 2:h + 4, :, :] = zrow


def _conv5x5_s1(xp_ref, w_ref, b_ref, nb, h, w, c):
    """Stride-1 5x5 'same' conv + bias + ReLU, batched over nb images.

    xp_ref: (nb, h+4, w+4, c)   zero-padded input (VMEM scratch, f32)
    w_ref:  (5, 5*c, cout)      per-ky weight slabs, row index = kx*c + ci (bf16)
    b_ref:  (1, cout)           f32
    returns (nb*h*w, cout) float32
    """
    cout = w_ref.shape[2]
    acc = jnp.zeros((nb * h * w, cout), jnp.float32)
    # TODO(synk): lax.fori_loop(unroll=True) over ky would bound live ranges at
    # large resolutions; at res=16 the static unroll is fine.
    for ky in range(5):
        rows = xp_ref[:, ky:ky + h, :, :]                               # (nb,h,w+4,c)
        wide = jnp.concatenate(
            [rows[:, :, kx:kx + w, :] for kx in range(5)], axis=-1)     # (nb,h,w,5c)
        acc = acc + jnp.dot(
            wide.reshape(nb * h * w, 5 * c).astype(jnp.bfloat16),
            w_ref[ky], preferred_element_type=jnp.float32)
    return jnp.maximum(acc + b_ref[...], 0.0)


def _conv5x5_s2(pm_ref, w_ref, b_ref, nb, oh, ow, c):
    """Stride-2 5x5 conv + bias + ReLU over a column-pair-merged padded input.

    pm_ref: (nb, 2*oh+4, ow+1, 2c); merged col m holds original cols (2m, 2m+1)
            (interior at sublane offset 0); col `ow` and rows {0,1,2oh+2,2oh+3}
            are the zero halo.
    w_ref:  (5, 6*c, cout)  per-ky slabs, row index = kx*c + ci (kx==5 tap is 0)
    b_ref:  (1, cout)
    returns (nb*oh*ow, cout) float32
    """
    cout = w_ref.shape[2]
    acc = jnp.zeros((nb * oh * ow, cout), jnp.float32)
    zcol = jnp.zeros((nb * oh, 1, 2 * c), jnp.float32)      # hoisted out of ky loop
    for ky in range(5):
        a, par = divmod(ky, 2)                  # padded row = 2*(oy + a) + par
        blk = pm_ref[:, 2 * a:2 * a + 2 * oh, :, :]                   # (nb,2oh,ow+1,2c)
        rows = blk.reshape(nb * oh, 2, ow + 1, 2 * c)[:, par]         # (nb*oh,ow+1,2c)
        # taps kx=0,1 -> merged col ox-1 (zero for ox==0); kx=2,3 -> ox;
        # kx=4 (and the zero kx==5 tap) -> ox+1.
        left = jnp.concatenate([zcol, rows[:, :ow - 1, :]], axis=1)
        mid = rows[:, 0:ow, :]
        right = rows[:, 1:ow + 1, :]
        wide = jnp.concatenate([left, mid, right], axis=-1)           # (nb*oh,ow,6c)
        acc = acc + jnp.dot(
            wide.reshape(nb * oh * ow, 6 * c).astype(jnp.bfloat16),
            w_ref[ky], preferred_element_type=jnp.float32)
    return jnp.maximum(acc + b_ref[...], 0.0)


def _make_encoder_kernel(NB, H, W, C):
    h2, w2 = H // 2, W // 2
    h4, w4 = H // 4, W // 4
    hw4 = h4 * w4

    def kernel(xcol_ref, w1_ref, b1_ref, w2_ref, b2_ref, w3_ref, b3_ref,
               w4_ref, b4_ref, pos_ref, o_ref, p1m_ref, p2m_ref, p3_ref):
        kcin = w1_ref.shape[0]

        # ---- conv1: one fat im2col matmul over all NB images (M = NB*H*W) ---
        y1 = jnp.maximum(
            jnp.dot(xcol_ref[...].reshape(NB * H * W, kcin), w1_ref[...],
                    preferred_element_type=jnp.float32) + b1_ref[...], 0.0)
        _stage_merged(p1m_ref, y1, NB, H, W, C)

        # ---- conv2: stride 2, M = NB*h2*w2, K = 6C per ky slab ---------------
        y2 = _conv5x5_s2(p1m_ref, w2_ref, b2_ref, NB, h2, w2, C)
        _stage_merged(p2m_ref, y2, NB, h2, w2, C)

        # ---- conv3: stride 2, M = NB*h4*w4 -----------------------------------
        y3 = _conv5x5_s2(p2m_ref, w3_ref, b3_ref, NB, h4, w4, C)
        _stage_padded(p3_ref, y3, NB, h4, w4, C)

        # ---- conv4: stride 1, K = 5C per ky slab, + soft position embedding --
        y4 = _conv5x5_s1(p3_ref, w4_ref, b4_ref, NB, h4, w4, C)
        out = y4.reshape(NB, hw4, C) + pos_ref[...]

        # lane-dense output: two adjacent tokens per 128-lane row
        o_ref[...] = _pack_pairs(out.reshape(NB * hw4, C), C).reshape(
            NB, hw4 // 2, 2 * C)

    return kernel


# --------------------------------------------------------------------------
# Wrapper (XLA glue: layout, tiny im2col of the 3-channel input, pos map)
# --------------------------------------------------------------------------
def build_grid(resolution):
    ranges = [jnp.linspace(0.0, 1.0, num=r) for r in resolution]
    grid = jnp.stack(jnp.meshgrid(*ranges, sparse=False, indexing="ij"), axis=-1)
    grid = grid.reshape(resolution[0], resolution[1], -1)[None]
    return jnp.concatenate([grid, 1.0 - grid], axis=-1).astype(jnp.float32)


def _im2col_5x5(x_nhwc):
    """(B,H,W,Cin) -> (B, H*W, 25*Cin); taps ordered (ky, kx, ci).
    Only done for the tiny 3-channel network input.
    TODO(synk): at real CLEVR resolutions (>=64) drop this im2col and feed the
    raw padded NHWC input with per-ky K=5*cin slabs inside the kernel."""
    b, h, w, cin = x_nhwc.shape
    xp = jnp.pad(x_nhwc, ((0, 0), (2, 2), (2, 2), (0, 0)))
    cols = [xp[:, ky:ky + h, kx:kx + w, :] for ky in range(5) for kx in range(5)]
    return jnp.concatenate(cols, axis=-1).reshape(b, h * w, 25 * cin)


def _choose_batch_block(batch):
    """Fold as much of the batch as possible into the matmul M dimension while
    keeping >= 2 grid steps so both v7x TensorCores get work."""
    for nb in (8, 4, 2):
        if batch % nb == 0 and batch // nb >= 2:
            return nb
    return 1


def encoder_forward(x_nchw, p):
    x = jnp.transpose(x_nchw, (0, 2, 3, 1)).astype(jnp.float32)     # NCHW -> NHWC
    B, H, W, CIN = x.shape
    C = p["b1"].shape[-1]
    h2, w2, h4, w4 = H // 2, W // 2, H // 4, W // 4
    hw4 = h4 * w4
    kcin = 25 * CIN
    NB = _choose_batch_block(B)

    # bf16 im2col input halves its HBM traffic / VMEM block.
    xcol = _im2col_5x5(x).astype(jnp.bfloat16)                       # (B, H*W, 75)

    # batch-invariant soft position embedding: one 4xC matmul, done once (f32)
    pos = (build_grid((h4, w4)).reshape(hw4, 4) @ p["we_t"]
           + p["be"]).astype(jnp.float32)                            # (hw4, C)

    kernel = _make_encoder_kernel(NB, H, W, C)

    out_packed = pl.pallas_call(
        kernel,
        out_shape=jax.ShapeDtypeStruct((B, hw4 // 2, 2 * C), jnp.float32),
        grid=(B // NB,),
        in_specs=[
            pl.BlockSpec((NB, H * W, kcin), lambda b: (b, 0, 0)),    # im2col input
            pl.BlockSpec((kcin, C), lambda b: (0, 0)),               # w1 (im2col)
            pl.BlockSpec((1, C), lambda b: (0, 0)),                  # b1
            pl.BlockSpec((5, 6 * C, C), lambda b: (0, 0, 0)),        # w2 slabs
            pl.BlockSpec((1, C), lambda b: (0, 0)),                  # b2
            pl.BlockSpec((5, 6 * C, C), lambda b: (0, 0, 0)),        # w3 slabs
            pl.BlockSpec((1, C), lambda b: (0, 0)),                  # b3
            pl.BlockSpec((5, 5 * C, C), lambda b: (0, 0, 0)),        # w4 slabs
            pl.BlockSpec((1, C), lambda b: (0, 0)),                  # b4
            pl.BlockSpec((hw4, C), lambda b: (0, 0)),                # pos map
        ],
        out_specs=pl.BlockSpec((NB, hw4 // 2, 2 * C), lambda b: (b, 0, 0)),
        scratch_shapes=[
            pltpu.VMEM((NB, H + 4, W // 2 + 1, 2 * C), jnp.float32),    # merged conv1 out
            pltpu.VMEM((NB, h2 + 4, w2 // 2 + 1, 2 * C), jnp.float32),  # merged conv2 out
            pltpu.VMEM((NB, h4 + 4, w4 + 4, C), jnp.float32),           # padded conv3 out
        ],
        compiler_params=pltpu.CompilerParams(
            dimension_semantics=("parallel",)),
    )(xcol, p["w1c"], p["b1"], p["w2m"], p["b2"], p["w3m"], p["b3"],
      p["w4s"], p["b4"], pos)

    return out_packed.reshape(B, hw4, C)                             # free reshape


# --------------------------------------------------------------------------
# Weight packing (PyTorch OIHW -> kernel layouts, bf16 for MXU operands)
# --------------------------------------------------------------------------
def _pack_conv1_im2col(wt):        # (cout, cin, 5, 5) -> (25*cin, cout)
    cout, cin = wt.shape[:2]
    return jnp.transpose(wt, (2, 3, 1, 0)).reshape(25 * cin, cout)


def _pack_conv_s1(wt):             # -> (5, 5*cin, cout), row index = kx*cin + ci
    cout, cin = wt.shape[:2]
    return jnp.transpose(wt, (2, 3, 1, 0)).reshape(5, 5 * cin, cout)


def _pack_conv_s2(wt):             # -> (5, 6*cin, cout) with a zero kx==5 tap
    cout, cin = wt.shape[:2]
    w = jnp.transpose(wt, (2, 3, 1, 0))                              # (5,5,cin,cout)
    w = jnp.concatenate([w, jnp.zeros((5, 1, cin, cout), wt.dtype)], axis=1)
    return w.reshape(5, 6 * cin, cout)


def init_params(key, hid_dim=64, in_channels=3):
    ks = jax.random.split(key, 10)

    def w(k, shape, fan_in):
        return jax.random.normal(k, shape, jnp.float32) / jnp.sqrt(fan_in)

    tw = {
        "w1": w(ks[0], (hid_dim, in_channels, 5, 5), in_channels * 25),
        "b1": w(ks[1], (hid_dim,), 25.0),
        "w2": w(ks[2], (hid_dim, hid_dim, 5, 5), hid_dim * 25),
        "b2": w(ks[3], (hid_dim,), 25.0),
        "w3": w(ks[4], (hid_dim, hid_dim, 5, 5), hid_dim * 25),
        "b3": w(ks[5], (hid_dim,), 25.0),
        "w4": w(ks[6], (hid_dim, hid_dim, 5, 5), hid_dim * 25),
        "b4": w(ks[7], (hid_dim,), 25.0),
        "we": w(ks[8], (hid_dim, 4), 4.0),     # nn.Linear(4, 64) weight (out, in)
        "be": w(ks[9], (hid_dim,), 4.0),
    }
    kp = {
        "w1c": _pack_conv1_im2col(tw["w1"]).astype(jnp.bfloat16),
        "b1": tw["b1"].reshape(1, -1),
        "w2m": _pack_conv_s2(tw["w2"]).astype(jnp.bfloat16),
        "b2": tw["b2"].reshape(1, -1),
        "w3m": _pack_conv_s2(tw["w3"]).astype(jnp.bfloat16),
        "b3": tw["b3"].reshape(1, -1),
        "w4s": _pack_conv_s1(tw["w4"]).astype(jnp.bfloat16),
        "b4": tw["b4"].reshape(1, -1),
        "we_t": tw["we"].T,
        "be": tw["be"],
    }
    return tw, kp


# --------------------------------------------------------------------------
# Pure-JAX reference (mirrors the PyTorch module) for validation
# --------------------------------------------------------------------------
def encoder_reference(x_nchw, tw):
    def conv(x, w, b, s):
        y = jax.lax.conv_general_dilated(
            x, w, (s, s), ((2, 2), (2, 2)),
            dimension_numbers=("NCHW", "OIHW", "NCHW"))
        return jax.nn.relu(y + b[None, :, None, None])

    x = conv(x_nchw, tw["w1"], tw["b1"], 1)
    x = conv(x, tw["w2"], tw["b2"], 2)
    x = conv(x, tw["w3"], tw["b3"], 2)
    x = conv(x, tw["w4"], tw["b4"], 1)
    x = jnp.transpose(x, (0, 2, 3, 1))
    b, hf, wf, c = x.shape
    pos = build_grid((hf, wf)) @ tw["we"].T + tw["be"]
    return (x + pos).reshape(b, hf * wf, c)


# --------------------------------------------------------------------------
if __name__ == "__main__":
    key = jax.random.PRNGKey(0)
    k_x, k_p = jax.random.split(key)

    batch, in_channels, res, hid_dim = 4, 3, 16, 64
    x = jax.random.normal(k_x, (batch, in_channels, res, res), jnp.float32)

    tw, kp = init_params(k_p, hid_dim=hid_dim, in_channels=in_channels)

    fwd = jax.jit(encoder_forward)
    out = jax.block_until_ready(fwd(x, kp))

    ref = encoder_reference(x, tw)
    assert out.shape == (batch, (res // 4) * (res // 4), hid_dim), out.shape
    err = float(jnp.max(jnp.abs(out - ref)))
    # bf16 MXU operands with f32 accumulation: tolerance loosened vs f32-only.
    assert err < 5e-2, err

    print("KERNEL_OK")
</pallas_src>

<mosaic_0001>
module attributes {stable_mosaic.version = 11 : i64} {
  func.func @kernel(%arg0: i32, %arg1: memref<2x256x75xbf16, #tpu.memory_space<vmem>>, %arg2: memref<75x64xbf16, #tpu.memory_space<vmem>>, %arg3: memref<1x64xf32, #tpu.memory_space<vmem>>, %arg4: memref<5x384x64xbf16, #tpu.memory_space<vmem>>, %arg5: memref<1x64xf32, #tpu.memory_space<vmem>>, %arg6: memref<5x384x64xbf16, #tpu.memory_space<vmem>>, %arg7: memref<1x64xf32, #tpu.memory_space<vmem>>, %arg8: memref<5x320x64xbf16, #tpu.memory_space<vmem>>, %arg9: memref<1x64xf32, #tpu.memory_space<vmem>>, %arg10: memref<16x64xf32, #tpu.memory_space<vmem>>, %arg11: memref<2x8x128xf32, #tpu.memory_space<vmem>>, %arg12: memref<2x20x9x128xf32, #tpu.memory_space<vmem>>, %arg13: memref<2x12x5x128xf32, #tpu.memory_space<vmem>>, %arg14: memref<2x8x8x64xf32, #tpu.memory_space<vmem>>) attributes {dimension_semantics = [#tpu.dimension_semantics<parallel>], iteration_bounds = array<i64: 2>, scalar_prefetch = 0 : i64, scratch_operands = 3 : i64, tpu.core_type = #tpu.core_type<tc>, window_params = [{transform_indices = @transform_0, window_bounds = array<i64: 2, 256, 75>}, {pipeline_mode = #tpu.pipeline_mode<synchronous>, transform_indices = @transform_1, window_bounds = array<i64: 75, 64>}, {pipeline_mode = #tpu.pipeline_mode<synchronous>, transform_indices = @transform_2, window_bounds = array<i64: 1, 64>}, {pipeline_mode = #tpu.pipeline_mode<synchronous>, transform_indices = @transform_3, window_bounds = array<i64: 5, 384, 64>}, {pipeline_mode = #tpu.pipeline_mode<synchronous>, transform_indices = @transform_4, window_bounds = array<i64: 1, 64>}, {pipeline_mode = #tpu.pipeline_mode<synchronous>, transform_indices = @transform_5, window_bounds = array<i64: 5, 384, 64>}, {pipeline_mode = #tpu.pipeline_mode<synchronous>, transform_indices = @transform_6, window_bounds = array<i64: 1, 64>}, {pipeline_mode = #tpu.pipeline_mode<synchronous>, transform_indices = @transform_7, window_bounds = array<i64: 5, 320, 64>}, {pipeline_mode = #tpu.pipeline_mode<synchronous>, transform_indices = @transform_8, window_bounds = array<i64: 1, 64>}, {pipeline_mode = #tpu.pipeline_mode<synchronous>, transform_indices = @transform_9, window_bounds = array<i64: 16, 64>}, {transform_indices = @transform_10, window_bounds = array<i64: 2, 8, 128>}]} {
    %c0 = arith.constant 0 : index
    %c0_0 = arith.constant 0 : index
    %c0_1 = arith.constant 0 : index
    %0 = vector.load %arg1[%c0, %c0_0, %c0_1] : memref<2x256x75xbf16, #tpu.memory_space<vmem>>, vector<2x256x75xbf16>
    %1 = vector.shape_cast %0 : vector<2x256x75xbf16> to vector<512x75xbf16>
    %c0_2 = arith.constant 0 : index
    %c0_3 = arith.constant 0 : index
    %2 = vector.load %arg2[%c0_2, %c0_3] : memref<75x64xbf16, #tpu.memory_space<vmem>>, vector<75x64xbf16>
    %cst = arith.constant dense<0.000000e+00> : vector<512x64xf32>
    %3 = tpu.matmul %1, %2, %cst {dimension_numbers = #tpu.dot_dimension_numbers<[1], [0], [0], [1], [0, 0, 1, 1], [], []>} : vector<512x75xbf16>, vector<75x64xbf16>, vector<512x64xf32> -> vector<512x64xf32>
    %c0_4 = arith.constant 0 : index
    %c0_5 = arith.constant 0 : index
    %4 = vector.load %arg3[%c0_4, %c0_5] : memref<1x64xf32, #tpu.memory_space<vmem>>, vector<1x64xf32>
    %5 = vector.broadcast %4 : vector<1x64xf32> to vector<512x64xf32>
    %6 = arith.addf %3, %5 : vector<512x64xf32>
    %cst_6 = arith.constant 0.000000e+00 : f32
    %7 = vector.broadcast %cst_6 : f32 to vector<512x64xf32>
    %8 = arith.maximumf %6, %7 : vector<512x64xf32>
    %9 = vector.shape_cast %8 : vector<512x64xf32> to vector<256x2x64xf32>
    %10 = vector.extract_strided_slice %9 {offsets = [0, 0, 0], sizes = [256, 1, 64], strides = [1, 1, 1]} : vector<256x2x64xf32> to vector<256x1x64xf32>
    %11 = vector.shape_cast %10 : vector<256x1x64xf32> to vector<256x64xf32>
    %12 = vector.extract_strided_slice %9 {offsets = [0, 1, 0], sizes = [256, 1, 64], strides = [1, 1, 1]} : vector<256x2x64xf32> to vector<256x1x64xf32>
    %13 = vector.shape_cast %12 : vector<256x1x64xf32> to vector<256x64xf32>
    %14 = tpu.concatenate %11, %13 in 1 : vector<256x64xf32>, vector<256x64xf32> -> vector<256x128xf32>
    %15 = vector.shape_cast %14 : vector<256x128xf32> to vector<2x16x8x128xf32>
    %cst_7 = arith.constant 0.000000e+00 : f32
    %16 = vector.broadcast %cst_7 : f32 to vector<2x16x1x128xf32>
    %17 = tpu.concatenate %15, %16 in 2 : vector<2x16x8x128xf32>, vector<2x16x1x128xf32> -> vector<2x16x9x128xf32>
    %c0_8 = arith.constant 0 : index
    %c2 = arith.constant 2 : index
    %c0_9 = arith.constant 0 : index
    %c0_10 = arith.constant 0 : index
    %18 = vector.load %arg12[%c0_8, %c2, %c0_9, %c0_10] : memref<2x20x9x128xf32, #tpu.memory_space<vmem>>, vector<2x16x9x128xf32>
    tpu.vector_store %arg12[%c0_8, %c2, %c0_9, %c0_10], %17 {strides = array<i32>} : memref<2x20x9x128xf32, #tpu.memory_space<vmem>>, vector<2x16x9x128xf32>,
    %cst_11 = arith.constant 0.000000e+00 : f32
    %19 = vector.broadcast %cst_11 : f32 to vector<2x2x9x128xf32>
    %c0_12 = arith.constant 0 : index
    %c0_13 = arith.constant 0 : index
    %c0_14 = arith.constant 0 : index
    %c0_15 = arith.constant 0 : index
    %20 = vector.load %arg12[%c0_12, %c0_13, %c0_14, %c0_15] : memref<2x20x9x128xf32, #tpu.memory_space<vmem>>, vector<2x2x9x128xf32>
    tpu.vector_store %arg12[%c0_12, %c0_13, %c0_14, %c0_15], %19 {strides = array<i32>} : memref<2x20x9x128xf32, #tpu.memory_space<vmem>>, vector<2x2x9x128xf32>,
    %c0_16 = arith.constant 0 : index
    %c18 = arith.constant 18 : index
    %c0_17 = arith.constant 0 : index
    %c0_18 = arith.constant 0 : index
    %21 = vector.load %arg12[%c0_16, %c18, %c0_17, %c0_18] : memref<2x20x9x128xf32, #tpu.memory_space<vmem>>, vector<2x2x9x128xf32>
    tpu.vector_store %arg12[%c0_16, %c18, %c0_17, %c0_18], %19 {strides = array<i32>} : memref<2x20x9x128xf32, #tpu.memory_space<vmem>>, vector<2x2x9x128xf32>,
    %cst_19 = arith.constant 0.000000e+00 : f32
    %22 = vector.broadcast %cst_19 : f32 to vector<128x64xf32>
    %cst_20 = arith.constant 0.000000e+00 : f32
    %23 = vector.broadcast %cst_20 : f32 to vector<16x1x128xf32>
    %c0_21 = arith.constant 0 : index
    %c0_22 = arith.constant 0 : index
    %c0_23 = arith.constant 0 : index
    %c0_24 = arith.constant 0 : index
    %24 = vector.load %arg12[%c0_21, %c0_22, %c0_23, %c0_24] : memref<2x20x9x128xf32, #tpu.memory_space<vmem>>, vector<2x16x9x128xf32>
    %25 = vector.shape_cast %24 : vector<2x16x9x128xf32> to vector<16x2x9x128xf32>
    %26 = vector.extract_strided_slice %25 {offsets = [0, 0, 0, 0], sizes = [16, 1, 9, 128], strides = [1, 1, 1, 1]} : vector<16x2x9x128xf32> to vector<16x1x9x128xf32>
    %27 = vector.shape_cast %26 : vector<16x1x9x128xf32> to vector<16x9x128xf32>
    %28 = vector.extract_strided_slice %27 {offsets = [0, 0, 0], sizes = [16, 7, 128], strides = [1, 1, 1]} : vector<16x9x128xf32> to vector<16x7x128xf32>
    %29 = tpu.concatenate %23, %28 in 1 : vector<16x1x128xf32>, vector<16x7x128xf32> -> vector<16x8x128xf32>
    %30 = vector.extract_strided_slice %27 {offsets = [0, 0, 0], sizes = [16, 8, 128], strides = [1, 1, 1]} : vector<16x9x128xf32> to vector<16x8x128xf32>
    %31 = vector.extract_strided_slice %27 {offsets = [0, 1, 0], sizes = [16, 8, 128], strides = [1, 1, 1]} : vector<16x9x128xf32> to vector<16x8x128xf32>
    %32 = tpu.concatenate %29, %30, %31 in 2 : vector<16x8x128xf32>, vector<16x8x128xf32>, vector<16x8x128xf32> -> vector<16x8x384xf32>
    %33 = vector.shape_cast %32 : vector<16x8x384xf32> to vector<128x384xf32>
    %34 = arith.truncf %33 : vector<128x384xf32> to vector<128x384xbf16>
    %c0_25 = arith.constant 0 : index
    %c0_26 = arith.constant 0 : index
    %c0_27 = arith.constant 0 : index
    %35 = vector.load %arg4[%c0_25, %c0_26, %c0_27] : memref<5x384x64xbf16, #tpu.memory_space<vmem>>, vector<1x384x64xbf16>
    %36 = vector.shape_cast %35 : vector<1x384x64xbf16> to vector<384x64xbf16>
    %cst_28 = arith.constant dense<0.000000e+00> : vector<128x64xf32>
    %37 = tpu.matmul %34, %36, %cst_28 {dimension_numbers = #tpu.dot_dimension_numbers<[1], [0], [0], [1], [0, 0, 1, 1], [], []>} : vector<128x384xbf16>, vector<384x64xbf16>, vector<128x64xf32> -> vector<128x64xf32>
    %38 = arith.addf %22, %37 : vector<128x64xf32>
    %c0_29 = arith.constant 0 : index
    %c0_30 = arith.constant 0 : index
    %c0_31 = arith.constant 0 : index
    %c0_32 = arith.constant 0 : index
    %39 = vector.load %arg12[%c0_29, %c0_30, %c0_31, %c0_32] : memref<2x20x9x128xf32, #tpu.memory_space<vmem>>, vector<2x16x9x128xf32>
    %40 = vector.shape_cast %39 : vector<2x16x9x128xf32> to vector<16x2x9x128xf32>
    %41 = vector.extract_strided_slice %40 {offsets = [0, 1, 0, 0], sizes = [16, 1, 9, 128], strides = [1, 1, 1, 1]} : vector<16x2x9x128xf32> to vector<16x1x9x128xf32>
    %42 = vector.shape_cast %41 : vector<16x1x9x128xf32> to vector<16x9x128xf32>
    %43 = vector.extract_strided_slice %42 {offsets = [0, 0, 0], sizes = [16, 7, 128], strides = [1, 1, 1]} : vector<16x9x128xf32> to vector<16x7x128xf32>
    %44 = tpu.concatenate %23, %43 in 1 : vector<16x1x128xf32>, vector<16x7x128xf32> -> vector<16x8x128xf32>
    %45 = vector.extract_strided_slice %42 {offsets = [0, 0, 0], sizes = [16, 8, 128], strides = [1, 1, 1]} : vector<16x9x128xf32> to vector<16x8x128xf32>
    %46 = vector.extract_strided_slice %42 {offsets = [0, 1, 0], sizes = [16, 8, 128], strides = [1, 1, 1]} : vector<16x9x128xf32> to vector<16x8x128xf32>
    %47 = tpu.concatenate %44, %45, %46 in 2 : vector<16x8x128xf32>, vector<16x8x128xf32>, vector<16x8x128xf32> -> vector<16x8x384xf32>
    %48 = vector.shape_cast %47 : vector<16x8x384xf32> to vector<128x384xf32>
    %49 = arith.truncf %48 : vector<128x384xf32> to vector<128x384xbf16>
    %c1 = arith.constant 1 : index
    %c0_33 = arith.constant 0 : index
    %c0_34 = arith.constant 0 : index
    %50 = vector.load %arg4[%c1, %c0_33, %c0_34] : memref<5x384x64xbf16, #tpu.memory_space<vmem>>, vector<1x384x64xbf16>
    %51 = vector.shape_cast %50 : vector<1x384x64xbf16> to vector<384x64xbf16>
    %cst_35 = arith.constant dense<0.000000e+00> : vector<128x64xf32>
    %52 = tpu.matmul %49, %51, %cst_35 {dimension_numbers = #tpu.dot_dimension_numbers<[1], [0], [0], [1], [0, 0, 1, 1], [], []>} : vector<128x384xbf16>, vector<384x64xbf16>, vector<128x64xf32> -> vector<128x64xf32>
    %53 = arith.addf %38, %52 : vector<128x64xf32>
    %c0_36 = arith.constant 0 : index
    %c2_37 = arith.constant 2 : index
    %c0_38 = arith.constant 0 : index
    %c0_39 = arith.constant 0 : index
    %54 = vector.load %arg12[%c0_36, %c2_37, %c0_38, %c0_39] : memref<2x20x9x128xf32, #tpu.memory_space<vmem>>, vector<2x16x9x128xf32>
    %55 = vector.shape_cast %54 : vector<2x16x9x128xf32> to vector<16x2x9x128xf32>
    %56 = vector.extract_strided_slice %55 {offsets = [0, 0, 0, 0], sizes = [16, 1, 9, 128], strides = [1, 1, 1, 1]} : vector<16x2x9x128xf32> to vector<16x1x9x128xf32>
    %57 = vector.shape_cast %56 : vector<16x1x9x128xf32> to vector<16x9x128xf32>
    %58 = vector.extract_strided_slice %57 {offsets = [0, 0, 0], sizes = [16, 7, 128], strides = [1, 1, 1]} : vector<16x9x128xf32> to vector<16x7x128xf32>
    %59 = tpu.concatenate %23, %58 in 1 : vector<16x1x128xf32>, vector<16x7x128xf32> -> vector<16x8x128xf32>
    %60 = vector.extract_strided_slice %57 {offsets = [0, 0, 0], sizes = [16, 8, 128], strides = [1, 1, 1]} : vector<16x9x128xf32> to vector<16x8x128xf32>
    %61 = vector.extract_strided_slice %57 {offsets = [0, 1, 0], sizes = [16, 8, 128], strides = [1, 1, 1]} : vector<16x9x128xf32> to vector<16x8x128xf32>
    %62 = tpu.concatenate %59, %60, %61 in 2 : vector<16x8x128xf32>, vector<16x8x128xf32>, vector<16x8x128xf32> -> vector<16x8x384xf32>
    %63 = vector.shape_cast %62 : vector<16x8x384xf32> to vector<128x384xf32>
    %64 = arith.truncf %63 : vector<128x384xf32> to vector<128x384xbf16>
    %c2_40 = arith.constant 2 : index
    %c0_41 = arith.constant 0 : index
    %c0_42 = arith.constant 0 : index
    %65 = vector.load %arg4[%c2_40, %c0_41, %c0_42] : memref<5x384x64xbf16, #tpu.memory_space<vmem>>, vector<1x384x64xbf16>
    %66 = vector.shape_cast %65 : vector<1x384x64xbf16> to vector<384x64xbf16>
    %cst_43 = arith.constant dense<0.000000e+00> : vector<128x64xf32>
    %67 = tpu.matmul %64, %66, %cst_43 {dimension_numbers = #tpu.dot_dimension_numbers<[1], [0], [0], [1], [0, 0, 1, 1], [], []>} : vector<128x384xbf16>, vector<384x64xbf16>, vector<128x64xf32> -> vector<128x64xf32>
    %68 = arith.addf %53, %67 : vector<128x64xf32>
    %c0_44 = arith.constant 0 : index
    %c2_45 = arith.constant 2 : index
    %c0_46 = arith.constant 0 : index
    %c0_47 = arith.constant 0 : index
    %69 = vector.load %arg12[%c0_44, %c2_45, %c0_46, %c0_47] : memref<2x20x9x128xf32, #tpu.memory_space<vmem>>, vector<2x16x9x128xf32>
    %70 = vector.shape_cast %69 : vector<2x16x9x128xf32> to vector<16x2x9x128xf32>
    %71 = vector.extract_strided_slice %70 {offsets = [0, 1, 0, 0], sizes = [16, 1, 9, 128], strides = [1, 1, 1, 1]} : vector<16x2x9x128xf32> to vector<16x1x9x128xf32>
    %72 = vector.shape_cast %71 : vector<16x1x9x128xf32> to vector<16x9x128xf32>
    %73 = vector.extract_strided_slice %72 {offsets = [0, 0, 0], sizes = [16, 7, 128], strides = [1, 1, 1]} : vector<16x9x128xf32> to vector<16x7x128xf32>
    %74 = tpu.concatenate %23, %73 in 1 : vector<16x1x128xf32>, vector<16x7x128xf32> -> vector<16x8x128xf32>
    %75 = vector.extract_strided_slice %72 {offsets = [0, 0, 0], sizes = [16, 8, 128], strides = [1, 1, 1]} : vector<16x9x128xf32> to vector<16x8x128xf32>
    %76 = vector.extract_strided_slice %72 {offsets = [0, 1, 0], sizes = [16, 8, 128], strides = [1, 1, 1]} : vector<16x9x128xf32> to vector<16x8x128xf32>
    %77 = tpu.concatenate %74, %75, %76 in 2 : vector<16x8x128xf32>, vector<16x8x128xf32>, vector<16x8x128xf32> -> vector<16x8x384xf32>
    %78 = vector.shape_cast %77 : vector<16x8x384xf32> to vector<128x384xf32>
    %79 = arith.truncf %78 : vector<128x384xf32> to vector<128x384xbf16>
    %c3 = arith.constant 3 : index
    %c0_48 = arith.constant 0 : index
    %c0_49 = arith.constant 0 : index
    %80 = vector.load %arg4[%c3, %c0_48, %c0_49] : memref<5x384x64xbf16, #tpu.memory_space<vmem>>, vector<1x384x64xbf16>
    %81 = vector.shape_cast %80 : vector<1x384x64xbf16> to vector<384x64xbf16>
    %cst_50 = arith.constant dense<0.000000e+00> : vector<128x64xf32>
    %82 = tpu.matmul %79, %81, %cst_50 {dimension_numbers = #tpu.dot_dimension_numbers<[1], [0], [0], [1], [0, 0, 1, 1], [], []>} : vector<128x384xbf16>, vector<384x64xbf16>, vector<128x64xf32> -> vector<128x64xf32>
    %83 = arith.addf %68, %82 : vector<128x64xf32>
    %c0_51 = arith.constant 0 : index
    %c4 = arith.constant 4 : index
    %c0_52 = arith.constant 0 : index
    %c0_53 = arith.constant 0 : index
    %84 = vector.load %arg12[%c0_51, %c4, %c0_52, %c0_53] : memref<2x20x9x128xf32, #tpu.memory_space<vmem>>, vector<2x16x9x128xf32>
    %85 = vector.shape_cast %84 : vector<2x16x9x128xf32> to vector<16x2x9x128xf32>
    %86 = vector.extract_strided_slice %85 {offsets = [0, 0, 0, 0], sizes = [16, 1, 9, 128], strides = [1, 1, 1, 1]} : vector<16x2x9x128xf32> to vector<16x1x9x128xf32>
    %87 = vector.shape_cast %86 : vector<16x1x9x128xf32> to vector<16x9x128xf32>
    %88 = vector.extract_strided_slice %87 {offsets = [0, 0, 0], sizes = [16, 7, 128], strides = [1, 1, 1]} : vector<16x9x128xf32> to vector<16x7x128xf32>
    %89 = tpu.concatenate %23, %88 in 1 : vector<16x1x128xf32>, vector<16x7x128xf32> -> vector<16x8x128xf32>
    %90 = vector.extract_strided_slice %87 {offsets = [0, 0, 0], sizes = [16, 8, 128], strides = [1, 1, 1]} : vector<16x9x128xf32> to vector<16x8x128xf32>
    %91 = vector.extract_strided_slice %87 {offsets = [0, 1, 0], sizes = [16, 8, 128], strides = [1, 1, 1]} : vector<16x9x128xf32> to vector<16x8x128xf32>
    %92 = tpu.concatenate %89, %90, %91 in 2 : vector<16x8x128xf32>, vector<16x8x128xf32>, vector<16x8x128xf32> -> vector<16x8x384xf32>
    %93 = vector.shape_cast %92 : vector<16x8x384xf32> to vector<128x384xf32>
    %94 = arith.truncf %93 : vector<128x384xf32> to vector<128x384xbf16>
    %c4_54 = arith.constant 4 : index
    %c0_55 = arith.constant 0 : index
    %c0_56 = arith.constant 0 : index
    %95 = vector.load %arg4[%c4_54, %c0_55, %c0_56] : memref<5x384x64xbf16, #tpu.memory_space<vmem>>, vector<1x384x64xbf16>
    %96 = vector.shape_cast %95 : vector<1x384x64xbf16> to vector<384x64xbf16>
    %cst_57 = arith.constant dense<0.000000e+00> : vector<128x64xf32>
    %97 = tpu.matmul %94, %96, %cst_57 {dimension_numbers = #tpu.dot_dimension_numbers<[1], [0], [0], [1], [0, 0, 1, 1], [], []>} : vector<128x384xbf16>, vector<384x64xbf16>, vector<128x64xf32> -> vector<128x64xf32>
    %98 = arith.addf %83, %97 : vector<128x64xf32>
    %c0_58 = arith.constant 0 : index
    %c0_59 = arith.constant 0 : index
    %99 = vector.load %arg5[%c0_58, %c0_59] : memref<1x64xf32, #tpu.memory_space<vmem>>, vector<1x64xf32>
    %100 = vector.broadcast %99 : vector<1x64xf32> to vector<128x64xf32>
    %101 = arith.addf %98, %100 : vector<128x64xf32>
    %cst_60 = arith.constant 0.000000e+00 : f32
    %102 = vector.broadcast %cst_60 : f32 to vector<128x64xf32>
    %103 = arith.maximumf %101, %102 : vector<128x64xf32>
    %104 = vector.shape_cast %103 : vector<128x64xf32> to vector<64x2x64xf32>
    %105 = vector.extract_strided_slice %104 {offsets = [0, 0, 0], sizes = [64, 1, 64], strides = [1, 1, 1]} : vector<64x2x64xf32> to vector<64x1x64xf32>
    %106 = vector.shape_cast %105 : vector<64x1x64xf32> to vector<64x64xf32>
    %107 = vector.extract_strided_slice %104 {offsets = [0, 1, 0], sizes = [64, 1, 64], strides = [1, 1, 1]} : vector<64x2x64xf32> to vector<64x1x64xf32>
    %108 = vector.shape_cast %107 : vector<64x1x64xf32> to vector<64x64xf32>
    %109 = tpu.concatenate %106, %108 in 1 : vector<64x64xf32>, vector<64x64xf32> -> vector<64x128xf32>
    %110 = vector.shape_cast %109 : vector<64x128xf32> to vector<2x8x4x128xf32>
    %cst_61 = arith.constant 0.000000e+00 : f32
    %111 = vector.broadcast %cst_61 : f32 to vector<2x8x1x128xf32>
    %112 = tpu.concatenate %110, %111 in 2 : vector<2x8x4x128xf32>, vector<2x8x1x128xf32> -> vector<2x8x5x128xf32>
    %c0_62 = arith.constant 0 : index
    %c2_63 = arith.constant 2 : index
    %c0_64 = arith.constant 0 : index
    %c0_65 = arith.constant 0 : index
    %113 = vector.load %arg13[%c0_62, %c2_63, %c0_64, %c0_65] : memref<2x12x5x128xf32, #tpu.memory_space<vmem>>, vector<2x8x5x128xf32>
    tpu.vector_store %arg13[%c0_62, %c2_63, %c0_64, %c0_65], %112 {strides = array<i32>} : memref<2x12x5x128xf32, #tpu.memory_space<vmem>>, vector<2x8x5x128xf32>,
    %cst_66 = arith.constant 0.000000e+00 : f32
    %114 = vector.broadcast %cst_66 : f32 to vector<2x2x5x128xf32>
    %c0_67 = arith.constant 0 : index
    %c0_68 = arith.constant 0 : index
    %c0_69 = arith.constant 0 : index
    %c0_70 = arith.constant 0 : index
    %115 = vector.load %arg13[%c0_67, %c0_68, %c0_69, %c0_70] : memref<2x12x5x128xf32, #tpu.memory_space<vmem>>, vector<2x2x5x128xf32>
    tpu.vector_store %arg13[%c0_67, %c0_68, %c0_69, %c0_70], %114 {strides = array<i32>} : memref<2x12x5x128xf32, #tpu.memory_space<vmem>>, vector<2x2x5x128xf32>,
    %c0_71 = arith.constant 0 : index
    %c10 = arith.constant 10 : index
    %c0_72 = arith.constant 0 : index
    %c0_73 = arith.constant 0 : index
    %116 = vector.load %arg13[%c0_71, %c10, %c0_72, %c0_73] : memref<2x12x5x128xf32, #tpu.memory_space<vmem>>, vector<2x2x5x128xf32>
    tpu.vector_store %arg13[%c0_71, %c10, %c0_72, %c0_73], %114 {strides = array<i32>} : memref<2x12x5x128xf32, #tpu.memory_space<vmem>>, vector<2x2x5x128xf32>,
    %cst_74 = arith.constant 0.000000e+00 : f32
    %117 = vector.broadcast %cst_74 : f32 to vector<32x64xf32>
    %cst_75 = arith.constant 0.000000e+00 : f32
    %118 = vector.broadcast %cst_75 : f32 to vector<8x1x128xf32>
    %c0_76 = arith.constant 0 : index
    %c0_77 = arith.constant 0 : index
    %c0_78 = arith.constant 0 : index
    %c0_79 = arith.constant 0 : index
    %119 = vector.load %arg13[%c0_76, %c0_77, %c0_78, %c0_79] : memref<2x12x5x128xf32, #tpu.memory_space<vmem>>, vector<2x8x5x128xf32>
    %120 = vector.shape_cast %119 : vector<2x8x5x128xf32> to vector<8x2x5x128xf32>
    %121 = vector.extract_strided_slice %120 {offsets = [0, 0, 0, 0], sizes = [8, 1, 5, 128], strides = [1, 1, 1, 1]} : vector<8x2x5x128xf32> to vector<8x1x5x128xf32>
    %122 = vector.shape_cast %121 : vector<8x1x5x128xf32> to vector<8x5x128xf32>
    %123 = vector.extract_strided_slice %122 {offsets = [0, 0, 0], sizes = [8, 3, 128], strides = [1, 1, 1]} : vector<8x5x128xf32> to vector<8x3x128xf32>
    %124 = tpu.concatenate %118, %123 in 1 : vector<8x1x128xf32>, vector<8x3x128xf32> -> vector<8x4x128xf32>
    %125 = vector.extract_strided_slice %122 {offsets = [0, 0, 0], sizes = [8, 4, 128], strides = [1, 1, 1]} : vector<8x5x128xf32> to vector<8x4x128xf32>
    %126 = vector.extract_strided_slice %122 {offsets = [0, 1, 0], sizes = [8, 4, 128], strides = [1, 1, 1]} : vector<8x5x128xf32> to vector<8x4x128xf32>
    %127 = tpu.concatenate %124, %125, %126 in 2 : vector<8x4x128xf32>, vector<8x4x128xf32>, vector<8x4x128xf32> -> vector<8x4x384xf32>
    %128 = vector.shape_cast %127 : vector<8x4x384xf32> to vector<32x384xf32>
    %129 = arith.truncf %128 : vector<32x384xf32> to vector<32x384xbf16>
    %c0_80 = arith.constant 0 : index
    %c0_81 = arith.constant 0 : index
    %c0_82 = arith.constant 0 : index
    %130 = vector.load %arg6[%c0_80, %c0_81, %c0_82] : memref<5x384x64xbf16, #tpu.memory_space<vmem>>, vector<1x384x64xbf16>
    %131 = vector.shape_cast %130 : vector<1x384x64xbf16> to vector<384x64xbf16>
    %cst_83 = arith.constant dense<0.000000e+00> : vector<32x64xf32>
    %132 = tpu.matmul %129, %131, %cst_83 {dimension_numbers = #tpu.dot_dimension_numbers<[1], [0], [0], [1], [0, 0, 1, 1], [], []>} : vector<32x384xbf16>, vector<384x64xbf16>, vector<32x64xf32> -> vector<32x64xf32>
    %133 = arith.addf %117, %132 : vector<32x64xf32>
    %c0_84 = arith.constant 0 : index
    %c0_85 = arith.constant 0 : index
    %c0_86 = arith.constant 0 : index
    %c0_87 = arith.constant 0 : index
    %134 = vector.load %arg13[%c0_84, %c0_85, %c0_86, %c0_87] : memref<2x12x5x128xf32, #tpu.memory_space<vmem>>, vector<2x8x5x128xf32>
    %135 = vector.shape_cast %134 : vector<2x8x5x128xf32> to vector<8x2x5x128xf32>
    %136 = vector.extract_strided_slice %135 {offsets = [0, 1, 0, 0], sizes = [8, 1, 5, 128], strides = [1, 1, 1, 1]} : vector<8x2x5x128xf32> to vector<8x1x5x128xf32>
    %137 = vector.shape_cast %136 : vector<8x1x5x128xf32> to vector<8x5x128xf32>
    %138 = vector.extract_strided_slice %137 {offsets = [0, 0, 0], sizes = [8, 3, 128], strides = [1, 1, 1]} : vector<8x5x128xf32> to vector<8x3x128xf32>
    %139 = tpu.concatenate %118, %138 in 1 : vector<8x1x128xf32>, vector<8x3x128xf32> -> vector<8x4x128xf32>
    %140 = vector.extract_strided_slice %137 {offsets = [0, 0, 0], sizes = [8, 4, 128], strides = [1, 1, 1]} : vector<8x5x128xf32> to vector<8x4x128xf32>
    %141 = vector.extract_strided_slice %137 {offsets = [0, 1, 0], sizes = [8, 4, 128], strides = [1, 1, 1]} : vector<8x5x128xf32> to vector<8x4x128xf32>
    %142 = tpu.concatenate %139, %140, %141 in 2 : vector<8x4x128xf32>, vector<8x4x128xf32>, vector<8x4x128xf32> -> vector<8x4x384xf32>
    %143 = vector.shape_cast %142 : vector<8x4x384xf32> to vector<32x384xf32>
    %144 = arith.truncf %143 : vector<32x384xf32> to vector<32x384xbf16>
    %c1_88 = arith.constant 1 : index
    %c0_89 = arith.constant 0 : index
    %c0_90 = arith.constant 0 : index
    %145 = vector.load %arg6[%c1_88, %c0_89, %c0_90] : memref<5x384x64xbf16, #tpu.memory_space<vmem>>, vector<1x384x64xbf16>
    %146 = vector.shape_cast %145 : vector<1x384x64xbf16> to vector<384x64xbf16>
    %cst_91 = arith.constant dense<0.000000e+00> : vector<32x64xf32>
    %147 = tpu.matmul %144, %146, %cst_91 {dimension_numbers = #tpu.dot_dimension_numbers<[1], [0], [0], [1], [0, 0, 1, 1], [], []>} : vector<32x384xbf16>, vector<384x64xbf16>, vector<32x64xf32> -> vector<32x64xf32>
    %148 = arith.addf %133, %147 : vector<32x64xf32>
    %c0_92 = arith.constant 0 : index
    %c2_93 = arith.constant 2 : index
    %c0_94 = arith.constant 0 : index
    %c0_95 = arith.constant 0 : index
    %149 = vector.load %arg13[%c0_92, %c2_93, %c0_94, %c0_95] : memref<2x12x5x128xf32, #tpu.memory_space<vmem>>, vector<2x8x5x128xf32>
    %150 = vector.shape_cast %149 : vector<2x8x5x128xf32> to vector<8x2x5x128xf32>
    %151 = vector.extract_strided_slice %150 {offsets = [0, 0, 0, 0], sizes = [8, 1, 5, 128], strides = [1, 1, 1, 1]} : vector<8x2x5x128xf32> to vector<8x1x5x128xf32>
    %152 = vector.shape_cast %151 : vector<8x1x5x128xf32> to vector<8x5x128xf32>
    %153 = vector.extract_strided_slice %152 {offsets = [0, 0, 0], sizes = [8, 3, 128], strides = [1, 1, 1]} : vector<8x5x128xf32> to vector<8x3x128xf32>
    %154 = tpu.concatenate %118, %153 in 1 : vector<8x1x128xf32>, vector<8x3x128xf32> -> vector<8x4x128xf32>
    %155 = vector.extract_strided_slice %152 {offsets = [0, 0, 0], sizes = [8, 4, 128], strides = [1, 1, 1]} : vector<8x5x128xf32> to vector<8x4x128xf32>
    %156 = vector.extract_strided_slice %152 {offsets = [0, 1, 0], sizes = [8, 4, 128], strides = [1, 1, 1]} : vector<8x5x128xf32> to vector<8x4x128xf32>
    %157 = tpu.concatenate %154, %155, %156 in 2 : vector<8x4x128xf32>, vector<8x4x128xf32>, vector<8x4x128xf32> -> vector<8x4x384xf32>
    %158 = vector.shape_cast %157 : vector<8x4x384xf32> to vector<32x384xf32>
    %159 = arith.truncf %158 : vector<32x384xf32> to vector<32x384xbf16>
    %c2_96 = arith.constant 2 : index
    %c0_97 = arith.constant 0 : index
    %c0_98 = arith.constant 0 : index
    %160 = vector.load %arg6[%c2_96, %c0_97, %c0_98] : memref<5x384x64xbf16, #tpu.memory_space<vmem>>, vector<1x384x64xbf16>
    %161 = vector.shape_cast %160 : vector<1x384x64xbf16> to vector<384x64xbf16>
    %cst_99 = arith.constant dense<0.000000e+00> : vector<32x64xf32>
    %162 = tpu.matmul %159, %161, %cst_99 {dimension_numbers = #tpu.dot_dimension_numbers<[1], [0], [0], [1], [0, 0, 1, 1], [], []>} : vector<32x384xbf16>, vector<384x64xbf16>, vector<32x64xf32> -> vector<32x64xf32>
    %163 = arith.addf %148, %162 : vector<32x64xf32>
    %c0_100 = arith.constant 0 : index
    %c2_101 = arith.constant 2 : index
    %c0_102 = arith.constant 0 : index
    %c0_103 = arith.constant 0 : index
    %164 = vector.load %arg13[%c0_100, %c2_101, %c0_102, %c0_103] : memref<2x12x5x128xf32, #tpu.memory_space<vmem>>, vector<2x8x5x128xf32>
    %165 = vector.shape_cast %164 : vector<2x8x5x128xf32> to vector<8x2x5x128xf32>
    %166 = vector.extract_strided_slice %165 {offsets = [0, 1, 0, 0], sizes = [8, 1, 5, 128], strides = [1, 1, 1, 1]} : vector<8x2x5x128xf32> to vector<8x1x5x128xf32>
    %167 = vector.shape_cast %166 : vector<8x1x5x128xf32> to vector<8x5x128xf32>
    %168 = vector.extract_strided_slice %167 {offsets = [0, 0, 0], sizes = [8, 3, 128], strides = [1, 1, 1]} : vector<8x5x128xf32> to vector<8x3x128xf32>
    %169 = tpu.concatenate %118, %168 in 1 : vector<8x1x128xf32>, vector<8x3x128xf32> -> vector<8x4x128xf32>
    %170 = vector.extract_strided_slice %167 {offsets = [0, 0, 0], sizes = [8, 4, 128], strides = [1, 1, 1]} : vector<8x5x128xf32> to vector<8x4x128xf32>
    %171 = vector.extract_strided_slice %167 {offsets = [0, 1, 0], sizes = [8, 4, 128], strides = [1, 1, 1]} : vector<8x5x128xf32> to vector<8x4x128xf32>
    %172 = tpu.concatenate %169, %170, %171 in 2 : vector<8x4x128xf32>, vector<8x4x128xf32>, vector<8x4x128xf32> -> vector<8x4x384xf32>
    %173 = vector.shape_cast %172 : vector<8x4x384xf32> to vector<32x384xf32>
    %174 = arith.truncf %173 : vector<32x384xf32> to vector<32x384xbf16>
    %c3_104 = arith.constant 3 : index
    %c0_105 = arith.constant 0 : index
    %c0_106 = arith.constant 0 : index
    %175 = vector.load %arg6[%c3_104, %c0_105, %c0_106] : memref<5x384x64xbf16, #tpu.memory_space<vmem>>, vector<1x384x64xbf16>
    %176 = vector.shape_cast %175 : vector<1x384x64xbf16> to vector<384x64xbf16>
    %cst_107 = arith.constant dense<0.000000e+00> : vector<32x64xf32>
    %177 = tpu.matmul %174, %176, %cst_107 {dimension_numbers = #tpu.dot_dimension_numbers<[1], [0], [0], [1], [0, 0, 1, 1], [], []>} : vector<32x384xbf16>, vector<384x64xbf16>, vector<32x64xf32> -> vector<32x64xf32>
    %178 = arith.addf %163, %177 : vector<32x64xf32>
    %c0_108 = arith.constant 0 : index
    %c4_109 = arith.constant 4 : index
    %c0_110 = arith.constant 0 : index
    %c0_111 = arith.constant 0 : index
    %179 = vector.load %arg13[%c0_108, %c4_109, %c0_110, %c0_111] : memref<2x12x5x128xf32, #tpu.memory_space<vmem>>, vector<2x8x5x128xf32>
    %180 = vector.shape_cast %179 : vector<2x8x5x128xf32> to vector<8x2x5x128xf32>
    %181 = vector.extract_strided_slice %180 {offsets = [0, 0, 0, 0], sizes = [8, 1, 5, 128], strides = [1, 1, 1, 1]} : vector<8x2x5x128xf32> to vector<8x1x5x128xf32>
    %182 = vector.shape_cast %181 : vector<8x1x5x128xf32> to vector<8x5x128xf32>
    %183 = vector.extract_strided_slice %182 {offsets = [0, 0, 0], sizes = [8, 3, 128], strides = [1, 1, 1]} : vector<8x5x128xf32> to vector<8x3x128xf32>
    %184 = tpu.concatenate %118, %183 in 1 : vector<8x1x128xf32>, vector<8x3x128xf32> -> vector<8x4x128xf32>
    %185 = vector.extract_strided_slice %182 {offsets = [0, 0, 0], sizes = [8, 4, 128], strides = [1, 1, 1]} : vector<8x5x128xf32> to vector<8x4x128xf32>
    %186 = vector.extract_strided_slice %182 {offsets = [0, 1, 0], sizes = [8, 4, 128], strides = [1, 1, 1]} : vector<8x5x128xf32> to vector<8x4x128xf32>
    %187 = tpu.concatenate %184, %185, %186 in 2 : vector<8x4x128xf32>, vector<8x4x128xf32>, vector<8x4x128xf32> -> vector<8x4x384xf32>
    %188 = vector.shape_cast %187 : vector<8x4x384xf32> to vector<32x384xf32>
    %189 = arith.truncf %188 : vector<32x384xf32> to vector<32x384xbf16>
    %c4_112 = arith.constant 4 : index
    %c0_113 = arith.constant 0 : index
    %c0_114 = arith.constant 0 : index
    %190 = vector.load %arg6[%c4_112, %c0_113, %c0_114] : memref<5x384x64xbf16, #tpu.memory_space<vmem>>, vector<1x384x64xbf16>
    %191 = vector.shape_cast %190 : vector<1x384x64xbf16> to vector<384x64xbf16>
    %cst_115 = arith.constant dense<0.000000e+00> : vector<32x64xf32>
    %192 = tpu.matmul %189, %191, %cst_115 {dimension_numbers = #tpu.dot_dimension_numbers<[1], [0], [0], [1], [0, 0, 1, 1], [], []>} : vector<32x384xbf16>, vector<384x64xbf16>, vector<32x64xf32> -> vector<32x64xf32>
    %193 = arith.addf %178, %192 : vector<32x64xf32>
    %c0_116 = arith.constant 0 : index
    %c0_117 = arith.constant 0 : index
    %194 = vector.load %arg7[%c0_116, %c0_117] : memref<1x64xf32, #tpu.memory_space<vmem>>, vector<1x64xf32>
    %195 = vector.broadcast %194 : vector<1x64xf32> to vector<32x64xf32>
    %196 = arith.addf %193, %195 : vector<32x64xf32>
    %cst_118 = arith.constant 0.000000e+00 : f32
    %197 = vector.broadcast %cst_118 : f32 to vector<32x64xf32>
    %198 = arith.maximumf %196, %197 : vector<32x64xf32>
    %cst_119 = arith.constant 0.000000e+00 : f32
    %199 = vector.broadcast %cst_119 : f32 to vector<2x4x2x64xf32>
    %200 = vector.shape_cast %198 : vector<32x64xf32> to vector<2x4x4x64xf32>
    %201 = tpu.concatenate %199, %200, %199 in 2 : vector<2x4x2x64xf32>, vector<2x4x4x64xf32>, vector<2x4x2x64xf32> -> vector<2x4x8x64xf32>
    %c0_120 = arith.constant 0 : index
    %c2_121 = arith.constant 2 : index
    %c0_122 = arith.constant 0 : index
    %c0_123 = arith.constant 0 : index
    %202 = vector.load %arg14[%c0_120, %c2_121, %c0_122, %c0_123] : memref<2x8x8x64xf32, #tpu.memory_space<vmem>>, vector<2x4x8x64xf32>
    tpu.vector_store %arg14[%c0_120, %c2_121, %c0_122, %c0_123], %201 {strides = array<i32>} : memref<2x8x8x64xf32, #tpu.memory_space<vmem>>, vector<2x4x8x64xf32>,
    %cst_124 = arith.constant 0.000000e+00 : f32
    %203 = vector.broadcast %cst_124 : f32 to vector<2x2x8x64xf32>
    %c0_125 = arith.constant 0 : index
    %c0_126 = arith.constant 0 : index
    %c0_127 = arith.constant 0 : index
    %c0_128 = arith.constant 0 : index
    %204 = vector.load %arg14[%c0_125, %c0_126, %c0_127, %c0_128] : memref<2x8x8x64xf32, #tpu.memory_space<vmem>>, vector<2x2x8x64xf32>
    tpu.vector_store %arg14[%c0_125, %c0_126, %c0_127, %c0_128], %203 {strides = array<i32>} : memref<2x8x8x64xf32, #tpu.memory_space<vmem>>, vector<2x2x8x64xf32>,
    %c0_129 = arith.constant 0 : index
    %c6 = arith.constant 6 : index
    %c0_130 = arith.constant 0 : index
    %c0_131 = arith.constant 0 : index
    %205 = vector.load %arg14[%c0_129, %c6, %c0_130, %c0_131] : memref<2x8x8x64xf32, #tpu.memory_space<vmem>>, vector<2x2x8x64xf32>
    tpu.vector_store %arg14[%c0_129, %c6, %c0_130, %c0_131], %203 {strides = array<i32>} : memref<2x8x8x64xf32, #tpu.memory_space<vmem>>, vector<2x2x8x64xf32>,
    %cst_132 = arith.constant 0.000000e+00 : f32
    %206 = vector.broadcast %cst_132 : f32 to vector<32x64xf32>
    %c0_133 = arith.constant 0 : index
    %c0_134 = arith.constant 0 : index
    %c0_135 = arith.constant 0 : index
    %c0_136 = arith.constant 0 : index
    %207 = vector.load %arg14[%c0_133, %c0_134, %c0_135, %c0_136] : memref<2x8x8x64xf32, #tpu.memory_space<vmem>>, vector<2x4x8x64xf32>
    %208 = vector.extract_strided_slice %207 {offsets = [0, 0, 0, 0], sizes = [2, 4, 4, 64], strides = [1, 1, 1, 1]} : vector<2x4x8x64xf32> to vector<2x4x4x64xf32>
    %209 = vector.extract_strided_slice %207 {offsets = [0, 0, 1, 0], sizes = [2, 4, 4, 64], strides = [1, 1, 1, 1]} : vector<2x4x8x64xf32> to vector<2x4x4x64xf32>
    %210 = vector.extract_strided_slice %207 {offsets = [0, 0, 2, 0], sizes = [2, 4, 4, 64], strides = [1, 1, 1, 1]} : vector<2x4x8x64xf32> to vector<2x4x4x64xf32>
    %211 = vector.extract_strided_slice %207 {offsets = [0, 0, 3, 0], sizes = [2, 4, 4, 64], strides = [1, 1, 1, 1]} : vector<2x4x8x64xf32> to vector<2x4x4x64xf32>
    %212 = vector.extract_strided_slice %207 {offsets = [0, 0, 4, 0], sizes = [2, 4, 4, 64], strides = [1, 1, 1, 1]} : vector<2x4x8x64xf32> to vector<2x4x4x64xf32>
    %213 = tpu.concatenate %208, %209, %210, %211, %212 in 3 : vector<2x4x4x64xf32>, vector<2x4x4x64xf32>, vector<2x4x4x64xf32>, vector<2x4x4x64xf32>, vector<2x4x4x64xf32> -> vector<2x4x4x320xf32>
    %214 = vector.shape_cast %213 : vector<2x4x4x320xf32> to vector<32x320xf32>
    %215 = arith.truncf %214 : vector<32x320xf32> to vector<32x320xbf16>
    %c0_137 = arith.constant 0 : index
    %c0_138 = arith.constant 0 : index
    %c0_139 = arith.constant 0 : index
    %216 = vector.load %arg8[%c0_137, %c0_138, %c0_139] : memref<5x320x64xbf16, #tpu.memory_space<vmem>>, vector<1x320x64xbf16>
    %217 = vector.shape_cast %216 : vector<1x320x64xbf16> to vector<320x64xbf16>
    %cst_140 = arith.constant dense<0.000000e+00> : vector<32x64xf32>
    %218 = tpu.matmul %215, %217, %cst_140 {dimension_numbers = #tpu.dot_dimension_numbers<[1], [0], [0], [1], [0, 0, 1, 1], [], []>} : vector<32x320xbf16>, vector<320x64xbf16>, vector<32x64xf32> -> vector<32x64xf32>
    %219 = arith.addf %206, %218 : vector<32x64xf32>
    %c0_141 = arith.constant 0 : index
    %c1_142 = arith.constant 1 : index
    %c0_143 = arith.constant 0 : index
    %c0_144 = arith.constant 0 : index
    %220 = vector.load %arg14[%c0_141, %c1_142, %c0_143, %c0_144] : memref<2x8x8x64xf32, #tpu.memory_space<vmem>>, vector<2x4x8x64xf32>
    %221 = vector.extract_strided_slice %220 {offsets = [0, 0, 0, 0], sizes = [2, 4, 4, 64], strides = [1, 1, 1, 1]} : vector<2x4x8x64xf32> to vector<2x4x4x64xf32>
    %222 = vector.extract_strided_slice %220 {offsets = [0, 0, 1, 0], sizes = [2, 4, 4, 64], strides = [1, 1, 1, 1]} : vector<2x4x8x64xf32> to vector<2x4x4x64xf32>
    %223 = vector.extract_strided_slice %220 {offsets = [0, 0, 2, 0], sizes = [2, 4, 4, 64], strides = [1, 1, 1, 1]} : vector<2x4x8x64xf32> to vector<2x4x4x64xf32>
    %224 = vector.extract_strided_slice %220 {offsets = [0, 0, 3, 0], sizes = [2, 4, 4, 64], strides = [1, 1, 1, 1]} : vector<2x4x8x64xf32> to vector<2x4x4x64xf32>
    %225 = vector.extract_strided_slice %220 {offsets = [0, 0, 4, 0], sizes = [2, 4, 4, 64], strides = [1, 1, 1, 1]} : vector<2x4x8x64xf32> to vector<2x4x4x64xf32>
    %226 = tpu.concatenate %221, %222, %223, %224, %225 in 3 : vector<2x4x4x64xf32>, vector<2x4x4x64xf32>, vector<2x4x4x64xf32>, vector<2x4x4x64xf32>, vector<2x4x4x64xf32> -> vector<2x4x4x320xf32>
    %227 = vector.shape_cast %226 : vector<2x4x4x320xf32> to vector<32x320xf32>
    %228 = arith.truncf %227 : vector<32x320xf32> to vector<32x320xbf16>
    %c1_145 = arith.constant 1 : index
    %c0_146 = arith.constant 0 : index
    %c0_147 = arith.constant 0 : index
    %229 = vector.load %arg8[%c1_145, %c0_146, %c0_147] : memref<5x320x64xbf16, #tpu.memory_space<vmem>>, vector<1x320x64xbf16>
    %230 = vector.shape_cast %229 : vector<1x320x64xbf16> to vector<320x64xbf16>
    %cst_148 = arith.constant dense<0.000000e+00> : vector<32x64xf32>
    %231 = tpu.matmul %228, %230, %cst_148 {dimension_numbers = #tpu.dot_dimension_numbers<[1], [0], [0], [1], [0, 0, 1, 1], [], []>} : vector<32x320xbf16>, vector<320x64xbf16>, vector<32x64xf32> -> vector<32x64xf32>
    %232 = arith.addf %219, %231 : vector<32x64xf32>
    %c0_149 = arith.constant 0 : index
    %c2_150 = arith.constant 2 : index
    %c0_151 = arith.constant 0 : index
    %c0_152 = arith.constant 0 : index
    %233 = vector.load %arg14[%c0_149, %c2_150, %c0_151, %c0_152] : memref<2x8x8x64xf32, #tpu.memory_space<vmem>>, vector<2x4x8x64xf32>
    %234 = vector.extract_strided_slice %233 {offsets = [0, 0, 0, 0], sizes = [2, 4, 4, 64], strides = [1, 1, 1, 1]} : vector<2x4x8x64xf32> to vector<2x4x4x64xf32>
    %235 = vector.extract_strided_slice %233 {offsets = [0, 0, 1, 0], sizes = [2, 4, 4, 64], strides = [1, 1, 1, 1]} : vector<2x4x8x64xf32> to vector<2x4x4x64xf32>
    %236 = vector.extract_strided_slice %233 {offsets = [0, 0, 2, 0], sizes = [2, 4, 4, 64], strides = [1, 1, 1, 1]} : vector<2x4x8x64xf32> to vector<2x4x4x64xf32>
    %237 = vector.extract_strided_slice %233 {offsets = [0, 0, 3, 0], sizes = [2, 4, 4, 64], strides = [1, 1, 1, 1]} : vector<2x4x8x64xf32> to vector<2x4x4x64xf32>
    %238 = vector.extract_strided_slice %233 {offsets = [0, 0, 4, 0], sizes = [2, 4, 4, 64], strides = [1, 1, 1, 1]} : vector<2x4x8x64xf32> to vector<2x4x4x64xf32>
    %239 = tpu.concatenate %234, %235, %236, %237, %238 in 3 : vector<2x4x4x64xf32>, vector<2x4x4x64xf32>, vector<2x4x4x64xf32>, vector<2x4x4x64xf32>, vector<2x4x4x64xf32> -> vector<2x4x4x320xf32>
    %240 = vector.shape_cast %239 : vector<2x4x4x320xf32> to vector<32x320xf32>
    %241 = arith.truncf %240 : vector<32x320xf32> to vector<32x320xbf16>
    %c2_153 = arith.constant 2 : index
    %c0_154 = arith.constant 0 : index
    %c0_155 = arith.constant 0 : index
    %242 = vector.load %arg8[%c2_153, %c0_154, %c0_155] : memref<5x320x64xbf16, #tpu.memory_space<vmem>>, vector<1x320x64xbf16>
    %243 = vector.shape_cast %242 : vector<1x320x64xbf16> to vector<320x64xbf16>
    %cst_156 = arith.constant dense<0.000000e+00> : vector<32x64xf32>
    %244 = tpu.matmul %241, %243, %cst_156 {dimension_numbers = #tpu.dot_dimension_numbers<[1], [0], [0], [1], [0, 0, 1, 1], [], []>} : vector<32x320xbf16>, vector<320x64xbf16>, vector<32x64xf32> -> vector<32x64xf32>
    %245 = arith.addf %232, %244 : vector<32x64xf32>
    %c0_157 = arith.constant 0 : index
    %c3_158 = arith.constant 3 : index
    %c0_159 = arith.constant 0 : index
    %c0_160 = arith.constant 0 : index
    %246 = vector.load %arg14[%c0_157, %c3_158, %c0_159, %c0_160] : memref<2x8x8x64xf32, #tpu.memory_space<vmem>>, vector<2x4x8x64xf32>
    %247 = vector.extract_strided_slice %246 {offsets = [0, 0, 0, 0], sizes = [2, 4, 4, 64], strides = [1, 1, 1, 1]} : vector<2x4x8x64xf32> to vector<2x4x4x64xf32>
    %248 = vector.extract_strided_slice %246 {offsets = [0, 0, 1, 0], sizes = [2, 4, 4, 64], strides = [1, 1, 1, 1]} : vector<2x4x8x64xf32> to vector<2x4x4x64xf32>
    %249 = vector.extract_strided_slice %246 {offsets = [0, 0, 2, 0], sizes = [2, 4, 4, 64], strides = [1, 1, 1, 1]} : vector<2x4x8x64xf32> to vector<2x4x4x64xf32>
    %250 = vector.extract_strided_slice %246 {offsets = [0, 0, 3, 0], sizes = [2, 4, 4, 64], strides = [1, 1, 1, 1]} : vector<2x4x8x64xf32> to vector<2x4x4x64xf32>
    %251 = vector.extract_strided_slice %246 {offsets = [0, 0, 4, 0], sizes = [2, 4, 4, 64], strides = [1, 1, 1, 1]} : vector<2x4x8x64xf32> to vector<2x4x4x64xf32>
    %252 = tpu.concatenate %247, %248, %249, %250, %251 in 3 : vector<2x4x4x64xf32>, vector<2x4x4x64xf32>, vector<2x4x4x64xf32>, vector<2x4x4x64xf32>, vector<2x4x4x64xf32> -> vector<2x4x4x320xf32>
    %253 = vector.shape_cast %252 : vector<2x4x4x320xf32> to vector<32x320xf32>
    %254 = arith.truncf %253 : vector<32x320xf32> to vector<32x320xbf16>
    %c3_161 = arith.constant 3 : index
    %c0_162 = arith.constant 0 : index
    %c0_163 = arith.constant 0 : index
    %255 = vector.load %arg8[%c3_161, %c0_162, %c0_163] : memref<5x320x64xbf16, #tpu.memory_space<vmem>>, vector<1x320x64xbf16>
    %256 = vector.shape_cast %255 : vector<1x320x64xbf16> to vector<320x64xbf16>
    %cst_164 = arith.constant dense<0.000000e+00> : vector<32x64xf32>
    %257 = tpu.matmul %254, %256, %cst_164 {dimension_numbers = #tpu.dot_dimension_numbers<[1], [0], [0], [1], [0, 0, 1, 1], [], []>} : vector<32x320xbf16>, vector<320x64xbf16>, vector<32x64xf32> -> vector<32x64xf32>
    %258 = arith.addf %245, %257 : vector<32x64xf32>
    %c0_165 = arith.constant 0 : index
    %c4_166 = arith.constant 4 : index
    %c0_167 = arith.constant 0 : index
    %c0_168 = arith.constant 0 : index
    %259 = vector.load %arg14[%c0_165, %c4_166, %c0_167, %c0_168] : memref<2x8x8x64xf32, #tpu.memory_space<vmem>>, vector<2x4x8x64xf32>
    %260 = vector.extract_strided_slice %259 {offsets = [0, 0, 0, 0], sizes = [2, 4, 4, 64], strides = [1, 1, 1, 1]} : vector<2x4x8x64xf32> to vector<2x4x4x64xf32>
    %261 = vector.extract_strided_slice %259 {offsets = [0, 0, 1, 0], sizes = [2, 4, 4, 64], strides = [1, 1, 1, 1]} : vector<2x4x8x64xf32> to vector<2x4x4x64xf32>
    %262 = vector.extract_strided_slice %259 {offsets = [0, 0, 2, 0], sizes = [2, 4, 4, 64], strides = [1, 1, 1, 1]} : vector<2x4x8x64xf32> to vector<2x4x4x64xf32>
    %263 = vector.extract_strided_slice %259 {offsets = [0, 0, 3, 0], sizes = [2, 4, 4, 64], strides = [1, 1, 1, 1]} : vector<2x4x8x64xf32> to vector<2x4x4x64xf32>
    %264 = vector.extract_strided_slice %259 {offsets = [0, 0, 4, 0], sizes = [2, 4, 4, 64], strides = [1, 1, 1, 1]} : vector<2x4x8x64xf32> to vector<2x4x4x64xf32>
    %265 = tpu.concatenate %260, %261, %262, %263, %264 in 3 : vector<2x4x4x64xf32>, vector<2x4x4x64xf32>, vector<2x4x4x64xf32>, vector<2x4x4x64xf32>, vector<2x4x4x64xf32> -> vector<2x4x4x320xf32>
    %266 = vector.shape_cast %265 : vector<2x4x4x320xf32> to vector<32x320xf32>
    %267 = arith.truncf %266 : vector<32x320xf32> to vector<32x320xbf16>
    %c4_169 = arith.constant 4 : index
    %c0_170 = arith.constant 0 : index
    %c0_171 = arith.constant 0 : index
    %268 = vector.load %arg8[%c4_169, %c0_170, %c0_171] : memref<5x320x64xbf16, #tpu.memory_space<vmem>>, vector<1x320x64xbf16>
    %269 = vector.shape_cast %268 : vector<1x320x64xbf16> to vector<320x64xbf16>
    %cst_172 = arith.constant dense<0.000000e+00> : vector<32x64xf32>
    %270 = tpu.matmul %267, %269, %cst_172 {dimension_numbers = #tpu.dot_dimension_numbers<[1], [0], [0], [1], [0, 0, 1, 1], [], []>} : vector<32x320xbf16>, vector<320x64xbf16>, vector<32x64xf32> -> vector<32x64xf32>
    %271 = arith.addf %258, %270 : vector<32x64xf32>
    %c0_173 = arith.constant 0 : index
    %c0_174 = arith.constant 0 : index
    %272 = vector.load %arg9[%c0_173, %c0_174] : memref<1x64xf32, #tpu.memory_space<vmem>>, vector<1x64xf32>
    %273 = vector.broadcast %272 : vector<1x64xf32> to vector<32x64xf32>
    %274 = arith.addf %271, %273 : vector<32x64xf32>
    %cst_175 = arith.constant 0.000000e+00 : f32
    %275 = vector.broadcast %cst_175 : f32 to vector<32x64xf32>
    %276 = arith.maximumf %274, %275 : vector<32x64xf32>
    %277 = vector.shape_cast %276 : vector<32x64xf32> to vector<2x16x64xf32>
    %c0_176 = arith.constant 0 : index
    %c0_177 = arith.constant 0 : index
    %278 = vector.load %arg10[%c0_176, %c0_177] : memref<16x64xf32, #tpu.memory_space<vmem>>, vector<16x64xf32>
    %279 = vector.shape_cast %278 : vector<16x64xf32> to vector<1x16x64xf32>
    %280 = vector.broadcast %279 : vector<1x16x64xf32> to vector<2x16x64xf32>
    %281 = arith.addf %277, %280 : vector<2x16x64xf32>
    %282 = vector.shape_cast %281 : vector<2x16x64xf32> to vector<32x64xf32>
    %283 = vector.shape_cast %282 : vector<32x64xf32> to vector<16x2x64xf32>
    %284 = vector.extract_strided_slice %283 {offsets = [0, 0, 0], sizes = [16, 1, 64], strides = [1, 1, 1]} : vector<16x2x64xf32> to vector<16x1x64xf32>
    %285 = vector.shape_cast %284 : vector<16x1x64xf32> to vector<16x64xf32>
    %286 = vector.extract_strided_slice %283 {offsets = [0, 1, 0], sizes = [16, 1, 64], strides = [1, 1, 1]} : vector<16x2x64xf32> to vector<16x1x64xf32>
    %287 = vector.shape_cast %286 : vector<16x1x64xf32> to vector<16x64xf32>
    %288 = tpu.concatenate %285, %287 in 1 : vector<16x64xf32>, vector<16x64xf32> -> vector<16x128xf32>
    %289 = vector.shape_cast %288 : vector<16x128xf32> to vector<2x8x128xf32>
    %c0_178 = arith.constant 0 : index
    %c0_179 = arith.constant 0 : index
    %c0_180 = arith.constant 0 : index
    %290 = vector.load %arg11[%c0_178, %c0_179, %c0_180] : memref<2x8x128xf32, #tpu.memory_space<vmem>>, vector<2x8x128xf32>
    tpu.vector_store %arg11[%c0_178, %c0_179, %c0_180], %289 {strides = array<i32>} : memref<2x8x128xf32, #tpu.memory_space<vmem>>, vector<2x8x128xf32>,
    return
  }
  func.func @transform_0(%arg0: i32) -> (i32, i32, i32) {
    %c0_i32 = arith.constant 0 : i32
    %c0_i32_0 = arith.constant 0 : i32
    %c0_i32_1 = arith.constant 0 : i32
    return %arg0, %c0_i32, %c0_i32_0 : i32, i32, i32
  }
  func.func @transform_1(%arg0: i32) -> (i32, i32) {
    %c0_i32 = arith.constant 0 : i32
    %c0_i32_0 = arith.constant 0 : i32
    %c0_i32_1 = arith.constant 0 : i32
    return %c0_i32, %c0_i32_0 : i32, i32
  }
  func.func @transform_2(%arg0: i32) -> (i32, i32) {
    %c0_i32 = arith.constant 0 : i32
    %c0_i32_0 = arith.constant 0 : i32
    %c0_i32_1 = arith.constant 0 : i32
    return %c0_i32, %c0_i32_0 : i32, i32
  }
  func.func @transform_3(%arg0: i32) -> (i32, i32, i32) {
    %c0_i32 = arith.constant 0 : i32
    %c0_i32_0 = arith.constant 0 : i32
    %c0_i32_1 = arith.constant 0 : i32
    %c0_i32_2 = arith.constant 0 : i32
    return %c0_i32, %c0_i32_0, %c0_i32_1 : i32, i32, i32
  }
  func.func @transform_4(%arg0: i32) -> (i32, i32) {
    %c0_i32 = arith.constant 0 : i32
    %c0_i32_0 = arith.constant 0 : i32
    %c0_i32_1 = arith.constant 0 : i32
    return %c0_i32, %c0_i32_0 : i32, i32
  }
  func.func @transform_5(%arg0: i32) -> (i32, i32, i32) {
    %c0_i32 = arith.constant 0 : i32
    %c0_i32_0 = arith.constant 0 : i32
    %c0_i32_1 = arith.constant 0 : i32
    %c0_i32_2 = arith.constant 0 : i32
    return %c0_i32, %c0_i32_0, %c0_i32_1 : i32, i32, i32
  }
  func.func @transform_6(%arg0: i32) -> (i32, i32) {
    %c0_i32 = arith.constant 0 : i32
    %c0_i32_0 = arith.constant 0 : i32
    %c0_i32_1 = arith.constant 0 : i32
    return %c0_i32, %c0_i32_0 : i32, i32
  }
  func.func @transform_7(%arg0: i32) -> (i32, i32, i32) {
    %c0_i32 = arith.constant 0 : i32
    %c0_i32_0 = arith.constant 0 : i32
    %c0_i32_1 = arith.constant 0 : i32
    %c0_i32_2 = arith.constant 0 : i32
    return %c0_i32, %c0_i32_0, %c0_i32_1 : i32, i32, i32
  }
  func.func @transform_8(%arg0: i32) -> (i32, i32) {
    %c0_i32 = arith.constant 0 : i32
    %c0_i32_0 = arith.constant 0 : i32
    %c0_i32_1 = arith.constant 0 : i32
    return %c0_i32, %c0_i32_0 : i32, i32
  }
  func.func @transform_9(%arg0: i32) -> (i32, i32) {
    %c0_i32 = arith.constant 0 : i32
    %c0_i32_0 = arith.constant 0 : i32
    %c0_i32_1 = arith.constant 0 : i32
    return %c0_i32, %c0_i32_0 : i32, i32
  }
  func.func @transform_10(%arg0: i32) -> (i32, i32, i32) {
    %c0_i32 = arith.constant 0 : i32
    %c0_i32_0 = arith.constant 0 : i32
    %c0_i32_1 = arith.constant 0 : i32
    return %arg0, %c0_i32, %c0_i32_0 : i32, i32, i32
  }
}

</mosaic_0001>

<bundles_post_ra>
// kernel: encoder_forward.1
= control target key start
LH: loop header
LB: loop body
LE: loop exit
PB: predicated region body
PF: predicated region fallthrough
CT: control target
= control target key end

     0   :  { %s16723_s13 = smov 0   ;;  %s24331_s0 = inlined_call_operand.vmem [shape: bf16[4,256,75], index: 0, kind: input, shape index: {}]   ;;  %s24332_s1 = inlined_call_operand.vmem [shape: bf16[75,64], index: 1, kind: input, shape index: {}]   ;;  %s24333_s2 = inlined_call_operand.vmem [shape: f32[1,64], index: 2, kind: input, shape index: {}]   ;;  %s24334_s3 = inlined_call_operand.vmem [shape: bf16[5,384,64], index: 3, kind: input, shape index: {}]   ;;  %s24335_s4 = inlined_call_operand.vmem [shape: f32[1,64], index: 4, kind: input, shape index: {}]   ;;  %s24336_s5 = inlined_call_operand.vmem [shape: bf16[5,384,64], index: 5, kind: input, shape index: {}]   ;;  %s24337_s6 = inlined_call_operand.vmem [shape: f32[1,64], index: 6, kind: input, shape index: {}]   ;;  %s24338_s7 = inlined_call_operand.vmem [shape: bf16[5,320,64], index: 7, kind: input, shape index: {}]   ;;  %s24339_s8 = inlined_call_operand.vmem [shape: f32[1,64], index: 8, kind: input, shape index: {}]   ;;  %s24340_s9 = inlined_call_operand.vmem [shape: f32[16,64], index: 9, kind: input, shape index: {}]   ;;  %s24341_s10 = inlined_call_operand.vmem [shape: f32[4,8,128], index: 10, kind: output, shape index: {}]  }
   0x1 LB: > { %s13572_s14 = sadd.s32 4294967295, %s16662_s13   ;;  %p13576_p0 = scmp.ge.s32.totalorder %s16662_s13, 1  ;;  %s16662_s13 = sphi %s16723_s13, %s20_s13  }
   0x2   : > { %p314_p1 = scmp.lt.s32.totalorder %s16662_s13, 3 }
   0x4   : > { %p315_p2 = pnand %p13576_p0, %p314_p1 }
   0x6   : > { %318 = sbr.rel (%p315_p2) target bundleno = 2286 (0x8ee), region = 60 }
   0xd   : > { %v16251_v0 = vld [vmem:[%s24332_s1] sm:$0xff]   ;;  %v16252_v1 = vld [vmem:[%s24332_s1 + $0x8] sm:$0xff]   ;;  %vm734_vm0 = vcmask 1044480   ;;  %v16253_v2 = vld [vmem:[%s24332_s1 + $0x10] sm:$0xff]   ;;  %vm735_vm1 = vcmask 1045504   ;;  %v16664_v3 = vmov 65535   ;;  %v1162_v41 = vlaneseq }
   0xe   : > { %15629 = vmatprep.subr.bf16.mxu0 %v16251_v0  ;;  %v736_v4 = vsel %vm734_vm0, 4294967295, %v16664_v3  ;;  %s13577_s21 = sshll.u32 %s13572_s14, 1  ;;  %v16254_v5 = vld [vmem:[%s24332_s1 + $0x18] sm:$0xff]   ;;  %v16255_v6 = vld [vmem:[%s24332_s1 + $0x20] sm:$0x3f]   ;;  %vm637_vm2 = vcmask 613376  }
   0xf   : > { %15630 = vmatpush3.bf16.msra.mxu0 %v16251_v0  ;;  %p354_p3 = scmp.lt.s32.totalorder %s13577_s21, 3  ;;  %v737_v7 = vsel %vm735_vm1, %v736_v4, 0  ;;  %v1163_v42 = vshrl.u32 %v1162_v41, 7  ;;  %v16665_v43 = vmov 1983009808   ;;  %vm3270_vm3 = vcmask 1041409  }
  0x10   : > { %15631 = vmatprep.subr.bf16.mxu0 %v16252_v1  ;;  %v739_v8 = vand.u32 %v16255_v6, %v737_v7  ;;  %v1160_v44 = vunpack.c.l.s4 %v16665_v43  ;;  %v16822_v45 = vld [vmem:[%s24333_s2] ss:$0 sm:$0xff]  ;;  %vm3272_vm4 = vcmask 1042434   ;;  %vm3274_vm5 = vcmask 1043459   ;;  %s16666_s12 = smov 64  }
  0x11   : > { %s25461_s21 = smov (!%p354_p3, %s13577_s21), 3  ;;  %v16829_v58 = vsub.s32 0, %v1163_v42  ;;  %v16831_v59 = vsub.s32 1, %v1163_v42  ;;  %vm3276_vm6 = vcmask 1044484   ;;  %vm3278_vm7 = vcmask 1045509  }
  0x12   : > { %s14831_s26 = sshll.u32 %s25461_s21, 7  ;;  %v1161_v46 = vunpack.c.0.s8 %v1160_v44  ;;  %vm3280_vm8 = vcmask 1046534   ;;  %vm3282_vm9 = vcmask 1047559   ;;  %vm4877_vm10 = vcmask 523264  }
  0x13   : > { %15632 = vmatpush3.bf16.msra.mxu0 %v16252_v1  ;;  %s16753_s29 = scalar_lea.vmem %s24331_s0, %s14831_s26  ;;  %24603 = vst [vmem:[#allocation6_spill] sm:$0xff] %v16829_v58  ;;  %24604 = vst [vmem:[#allocation7_spill] sm:$0xff] %v16831_v59  ;;  %vm5104_vm11 = vcmask 1040384   ;;  %vm5137_vm14 = vcmask 1046528   ;;  %vm8992_vm15 = vcmask 1043456   ;;  %vm11011_vm0 = vcmask 1041408  }
  0x14   : > { %15633 = vmatprep.subr.bf16.mxu0 %v16253_v2  ;;  %v16256_v9 = vld [vmem:[%s16753_s29] sm:$0xff]   ;;  %v16257_v10 = vld [vmem:[%s16753_s29 + $0x8] sm:$0xff]   ;;  %v16258_v11 = vld [vmem:[%s16753_s29 + $0x10] sm:$0xff]   ;;  %v16825_v49 = vsub.s32 %v1161_v46, %v1163_v42 }
  0x15   : > { %15639 = vmatprep.mubr.msk.bf16.mxu0 %vm637_vm2, %v16256_v9  ;;  %v16259_v12 = vld [vmem:[%s16753_s29 + $0x18] sm:$0xff]   ;;  %v16260_v13 = vld [vmem:[%s16753_s29 + $0x20] sm:$0xff]   ;;  %v16261_v14 = vld [vmem:[%s16753_s29 + $0x28] sm:$0xff]  }
  0x16   : > { %v16262_v15 = vld [vmem:[%s16753_s29 + $0x30] sm:$0xff]   ;;  %v16263_v16 = vld [vmem:[%s16753_s29 + $0x38] sm:$0xff]   ;;  %v16264_v17 = vld [vmem:[%s16753_s29 + $0x40] sm:$0xff]   ;;  %24602 = vst [vmem:[#allocation5_spill] sm:$0xff] %v16825_v49 }
  0x17   : > { %15634 = vmatpush3.bf16.msra.mxu0 %v16253_v2  ;;  %v16265_v18 = vld [vmem:[%s16753_s29 + $0x48] sm:$0xff]   ;;  %v16266_v19 = vld [vmem:[%s16753_s29 + $0x50] sm:$0xff]   ;;  %v16267_v20 = vld [vmem:[%s16753_s29 + $0x58] sm:$0xff]  }
  0x18   : > { %15635 = vmatprep.subr.bf16.mxu0 %v16254_v5  ;;  %v16268_v21 = vld [vmem:[%s16753_s29 + $0x60] sm:$0xff]   ;;  %v16269_v22 = vld [vmem:[%s16753_s29 + $0x68] sm:$0xff]   ;;  %v16270_v23 = vld [vmem:[%s16753_s29 + $0x70] sm:$0xff]  }
  0x19   : > { %v16271_v24 = vld [vmem:[%s16753_s29 + $0x78] sm:$0xff]   ;;  %v16272_v25 = vld [vmem:[%s16753_s29 + $0x80] sm:$0xff]   ;;  %v16273_v26 = vld [vmem:[%s16753_s29 + $0x88] sm:$0xff]  }
  0x1a   : > { %v16274_v27 = vld [vmem:[%s16753_s29 + $0x90] sm:$0xff]   ;;  %v16275_v28 = vld [vmem:[%s16753_s29 + $0x98] sm:$0xff]   ;;  %v16276_v29 = vld [vmem:[%s16753_s29 + $0xa0] sm:$0xff]  }
  0x1b   : > { %15636 = vmatpush3.bf16.msra.mxu0 %v16254_v5  ;;  %v16277_v30 = vld [vmem:[%s16753_s29 + $0xa8] sm:$0xff]   ;;  %v16278_v31 = vld [vmem:[%s16753_s29 + $0xb0] sm:$0xff]   ;;  %v16279_v32 = vld [vmem:[%s16753_s29 + $0xb8] sm:$0xff]  }
  0x1c   : > { %15637 = vmatprep.subr.bf16.mxu0 %v739_v8  ;;  %v16280_v33 = vld [vmem:[%s16753_s29 + $0xc0] sm:$0xff]   ;;  %v16281_v34 = vld [vmem:[%s16753_s29 + $0xc8] sm:$0xff]   ;;  %v16282_v35 = vld [vmem:[%s16753_s29 + $0xd0] sm:$0xff]  }
  0x1d   : > { %v16283_v36 = vld [vmem:[%s16753_s29 + $0xd8] sm:$0xff]   ;;  %v16284_v37 = vld [vmem:[%s16753_s29 + $0xe0] sm:$0xff]   ;;  %v16285_v38 = vld [vmem:[%s16753_s29 + $0xe8] sm:$0xff]  }
  0x1e   : > { %v16286_v39 = vld [vmem:[%s16753_s29 + $0xf0] sm:$0xff]   ;;  %v16287_v40 = vld [vmem:[%s16753_s29 + $0xf8] sm:$0xff]   ;;  %vm13724_vm12 = vmneg %vm5104_vm11 }
  0x1f   : > { %15638 = vmatpush3.bf16.msra.mxu0 %v739_v8  ;;  %vm19577_vm13 = vmpackc.low %vm13724_vm12, %vm13724_vm12 }
  0x22   : > { %15640 = vmatmul.mubr.msk.bf16.vlgmr.msra.gmra.mrb[0].mxu0 %vm637_vm2, %v16257_v10 }
  0x23   : > { %15643 = vmatprep.mubr.msk.bf16.mxu0 %vm637_vm2, %v16258_v11 }
  0x2a   : > { %15644 = vmatmul.mubr.msk.bf16.gmra.mrb[4].mxu0 %vm637_vm2, %v16259_v12 }
  0x2b   : > { %15647 = vmatprep.mubr.msk.bf16.mxu0 %vm637_vm2, %v16260_v13 }
  0x32   : > { %15648 = vmatmul.mubr.msk.bf16.gmra.mrb[8].mxu0 %vm637_vm2, %v16261_v14 }
  0x33   : > { %15651 = vmatprep.mubr.msk.bf16.mxu0 %vm637_vm2, %v16262_v15 }
  0x3a   : > { %15652 = vmatmul.mubr.msk.bf16.gmra.mrb[12].mxu0 %vm637_vm2, %v16263_v16 }
  0x3b   : > { %15655 = vmatprep.mubr.msk.bf16.mxu0 %vm637_vm2, %v16264_v17 }
  0x42   : > { %15656 = vmatmul.mubr.msk.bf16.gmra.mrb[16].mxu0 %vm637_vm2, %v16265_v18 }
  0x43   : > { %15659 = vmatprep.mubr.msk.bf16.mxu0 %vm637_vm2, %v16266_v19 }
  0x4a   : > { %15660 = vmatmul.mubr.msk.bf16.gmra.mrb[20].mxu0 %vm637_vm2, %v16267_v20 }
  0x4b   : > { %15663 = vmatprep.mubr.msk.bf16.mxu0 %vm637_vm2, %v16268_v21 }
  0x52   : > { %15664 = vmatmul.mubr.msk.bf16.gmra.mrb[24].mxu0 %vm637_vm2, %v16269_v22 }
  0x53   : > { %15667 = vmatprep.mubr.msk.bf16.mxu0 %vm637_vm2, %v16270_v23 }
  0x5a   : > { %15668 = vmatmul.mubr.msk.bf16.gmra.mrb[28].mxu0 %vm637_vm2, %v16271_v24 }
  0x5b   : > { %15671 = vmatprep.mubr.msk.bf16.mxu0 %vm637_vm2, %v16272_v25 }
  0x62   : > { %15672 = vmatmul.mubr.msk.bf16.gmra.mrb[32].mxu0 %vm637_vm2, %v16273_v26 }
  0x63   : > { %15675 = vmatprep.mubr.msk.bf16.mxu0 %vm637_vm2, %v16274_v27 }
  0x6a   : > { %15676 = vmatmul.mubr.msk.bf16.gmra.mrb[36].mxu0 %vm637_vm2, %v16275_v28 }
  0x6b   : > { %15679 = vmatprep.mubr.msk.bf16.mxu0 %vm637_vm2, %v16276_v29 }
  0x72   : > { %15680 = vmatmul.mubr.msk.bf16.gmra.mrb[40].mxu0 %vm637_vm2, %v16277_v30 }
  0x73   : > { %15683 = vmatprep.mubr.msk.bf16.mxu0 %vm637_vm2, %v16278_v31 }
  0x7a   : > { %15684 = vmatmul.mubr.msk.bf16.gmra.mrb[44].mxu0 %vm637_vm2, %v16279_v32 }
  0x7b   : > { %15687 = vmatprep.mubr.msk.bf16.mxu0 %vm637_vm2, %v16280_v33 }
  0x82   : > { %15688 = vmatmul.mubr.msk.bf16.gmra.mrb[48].mxu0 %vm637_vm2, %v16281_v34 }
  0x83   : > { %15691 = vmatprep.mubr.msk.bf16.mxu0 %vm637_vm2, %v16282_v35 }
  0x8a   : > { %15692 = vmatmul.mubr.msk.bf16.gmra.mrb[52].mxu0 %vm637_vm2, %v16283_v36 }
  0x8b   : > { %15695 = vmatprep.mubr.msk.bf16.mxu0 %vm637_vm2, %v16284_v37 }
  0x92   : > { %15696 = vmatmul.mubr.msk.bf16.gmra.mrb[56].mxu0 %vm637_vm2, %v16285_v38 }
  0x93   : > { %15699 = vmatprep.mubr.msk.bf16.mxu0 %vm637_vm2, %v16286_v39 }
  0x9a   : > { %15700 = vmatmul.mubr.msk.bf16.gmra.mrb[60].mxu0 %vm637_vm2, %v16287_v40 }
  0xf5   : > { %v15641_v47 = vpop.f32.mrb[0].mxu0 }
  0xf6   : > { %v784_v48 = vadd.f32 %v15641_v47, %v16822_v45  ;;  %v775_v50 = vpop.f32.mrb[1].mxu0 }
  0xf7   : > { %v776_v51 = vadd.f32 %v16822_v45, %v775_v50  ;;  %v15642_v52 = vpop.f32.mrb[2].mxu0 }
  0xf8   : > { %v1032_v53 = vmax.f32 %v784_v48, 0.0  ;;  %v778_v54 = vpop.f32.mrb[3].mxu0  ;;  %v787_v62 = vadd.f32 %v15642_v52, %v16822_v45 }
  0xf9   : > { %v1030_v55 = vmax.f32 %v776_v51, 0.0  ;;  %v779_v1 = vadd.f32 %v16822_v45, %v778_v54 }
  0xfa   : > { %v1192_v56 = vcombine.high %v1032_v53, %v1032_v53  ;;  %v1199_v57 = vrot.slane %v1032_v53, %v16825_v49  ;;  %v1033_v12 = vmax.f32 %v787_v62, 0.0 }
  0xfb   : > { %v1158_v60 = vcombine.high %v1030_v55, %v1030_v55  ;;  %v1165_v61 = vrot.slane %v1030_v55, %v16825_v49  ;;  %v1031_v15 = vmax.f32 %v779_v1, 0.0 }
  0xfc   : > { %v16836_v63 = vrot.slane %v1192_v56, %v16825_v49  ;;  %v1207_v0 = vcombine.high %v1199_v57, %v1199_v57  ;;  %v2281_v5 = vrot.slane %v1199_v57, %v16829_v58  ;;  %v3568_v24 = vrot.slane %v1199_v57, %v16831_v59 }
  0xfd   : > { %v16840_v2 = vrot.slane %v1158_v60, %v16825_v49  ;;  %v1173_v3 = vcombine.high %v1165_v61, %v1165_v61  ;;  %v15645_v4 = vpop.f32.mrb[4].mxu0  ;;  %v2249_v9 = vrot.slane %v1165_v61, %v16829_v58  ;;  %v3536_v29 = vrot.slane %v1165_v61, %v16831_v59 }
  0xfe   : > { %v2285_v6 = vrot.slane %v1207_v0, %v16829_v58  ;;  %v2289_v7 = vrot.slane %v16836_v63, %v16829_v58  ;;  %v791_v8 = vpop.f32.mrb[5].mxu0  ;;  %v16857_v19 = vcombine.high %v16836_v63, %v16836_v63  ;;  %v3572_v21 = vrot.slane %v1207_v0, %v16831_v59 }
  0xff   : > { %24605 = vst [vmem:[#allocation8_spill] sm:$0xff] %v16840_v2  ;;  %v2253_v10 = vrot.slane %v1173_v3, %v16829_v58  ;;  %v2257_v11 = vrot.slane %v16840_v2, %v16829_v58  ;;  %v15646_v13 = vpop.f32.mrb[6].mxu0  ;;  %v800_v22 = vadd.f32 %v15645_v4, %v16822_v45  ;;  %v792_v23 = vadd.f32 %v16822_v45, %v791_v8 }
 0x100   : > { %v3284_v14 = vsel %vm3270_vm3, %v2285_v6, %v2281_v5  ;;  %v794_v16 = vpop.f32.mrb[7].mxu0  ;;  %24607 = vst [vmem:[#allocation10_spill] sm:$0xff] %v16857_v19  ;;  %v3576_v27 = vrot.slane %v16836_v63, %v16831_v59  ;;  %v16872_v28 = vcombine.high %v16840_v2, %v16840_v2  ;;  %v3540_v31 = vrot.slane %v1173_v3, %v16831_v59 }
 0x101   : > { %v16852_v17 = vsel %vm3272_vm4, %v2289_v7, %v3284_v14  ;;  %v3271_v18 = vsel %vm3270_vm3, %v2253_v10, %v2249_v9  ;;  %v1209_v32 = vcombine.high %v1033_v12, %v1033_v12  ;;  %v1036_v33 = vmax.f32 %v800_v22, 0.0 }
 0x102   : > { %24606 = vst [vmem:[#allocation9_spill] sm:$0xff] %v16852_v17  ;;  %v16860_v20 = vsel %vm3272_vm4, %v2257_v11, %v3271_v18  ;;  %24609 = vst [vmem:[#allocation12_spill] sm:$0xff] %v16872_v28  ;;  %v1034_v34 = vmax.f32 %v792_v23, 0.0  ;;  %v3580_v36 = vrot.slane %v16857_v19, %v16831_v59  ;;  %v16883_v37 = vsel %vm3270_vm3, %v3572_v21, %v3568_v24 }
 0x103   : > { %24608 = vst [vmem:[#allocation11_spill] sm:$0xff] %v16860_v20  ;;  %v16886_v38 = vrot.slane %v1033_v12, %v16825_v49  ;;  %v1175_v39 = vcombine.high %v1031_v15, %v1031_v15  ;;  %v1260_v41 = vcombine.high %v1036_v33, %v1036_v33  ;;  %v16891_v42 = vrot.slane %v1036_v33, %v16825_v49 }
 0x104   : > { %v1226_v43 = vcombine.high %v1034_v34, %v1034_v34  ;;  %v16894_v44 = vrot.slane %v1034_v34, %v16825_v49  ;;  %v16903_v50 = vrot.slane %v1031_v15, %v16825_v49  ;;  %v16906_v51 = vsel %vm3270_vm3, %v3540_v31, %v3536_v29 }
 0x105   : > { %v15649_v25 = vpop.f32.mrb[8].mxu0  ;;  %24610 = vst [vmem:[#allocation13_spill] sm:$0xff] %v16886_v38  ;;  %24612 = vst [vmem:[#allocation15_spill] sm:$0xff] %v16906_v51  ;;  %v16909_v52 = vrot.slane %v1209_v32, %v16825_v49  ;;  %v16912_v53 = vrot.slane %v1260_v41, %v16825_v49  ;;  %v1275_v54 = vcombine.high %v16891_v42, %v16891_v42 }
 0x106   : > { %v16875_v30 = vpop.f32.mrb[9].mxu0  ;;  %24611 = vst [vmem:[#allocation14_spill] sm:$0xff] %v16903_v50  ;;  %v16918_v55 = vcombine.high %v16886_v38, %v16886_v38  ;;  %v16921_v56 = vrot.slane %v1226_v43, %v16825_v49  ;;  %v16925_v57 = vcombine.high %v16894_v44, %v16894_v44  ;;  %v803_v60 = vadd.f32 %v15646_v13, %v16822_v45 }
 0x107   : > { %v16878_v35 = vpop.f32.mrb[10].mxu0  ;;  %24613 = vst [vmem:[#allocation16_spill] sm:$0xff] %v16909_v52  ;;  %v16929_v61 = vrot.slane %v1175_v39, %v16825_v49  ;;  %v2345_v62 = vrot.slane %v16891_v42, %v16829_v58  ;;  %v2349_v0 = vrot.slane %v1275_v54, %v16829_v58  ;;  %v2353_v1 = vrot.slane %v16912_v53, %v16829_v58 }
 0x108   : > { %v16888_v40 = vpop.f32.mrb[11].mxu0  ;;  %24614 = vst [vmem:[#allocation17_spill] sm:$0xff] %v16918_v55  ;;  %24615 = vst [vmem:[#allocation18_spill] sm:$0xff] %v16921_v56  ;;  %v16940_v4 = vcombine.high %v16903_v50, %v16903_v50  ;;  %v2313_v5 = vrot.slane %v16894_v44, %v16829_v58  ;;  %v2317_v6 = vrot.slane %v16925_v57, %v16829_v58  ;;  %v1037_v21 = vmax.f32 %v803_v60, 0.0 }
 0x109   : > { %24616 = vst [vmem:[#allocation19_spill] sm:$0xff] %v16929_v61  ;;  %v2321_v7 = vrot.slane %v16921_v56, %v16829_v58  ;;  %v3298_v10 = vsel %vm3270_vm3, %v2349_v0, %v2345_v62  ;;  %v795_v11 = vadd.f32 %v16822_v45, %v794_v16  ;;  %v816_v12 = vadd.f32 %v15649_v25, %v16822_v45 }
 0x10a   : > { %24617 = vst [vmem:[#allocation20_spill] sm:$0xff] %v16940_v4  ;;  %v3584_v14 = vrot.slane %v16886_v38, %v16831_v59  ;;  %v16960_v15 = vsel %vm3272_vm4, %v2353_v1, %v3298_v10  ;;  %v3291_v18 = vsel %vm3270_vm3, %v2317_v6, %v2313_v5  ;;  %v16982_v33 = vcombine.high %v16912_v53, %v16912_v53 }
 0x10b   : > { %24618 = vst [vmem:[#allocation21_spill] sm:$0xff] %v16960_v15  ;;  %v16972_v25 = vsel %vm3272_vm4, %v2321_v7, %v3291_v18  ;;  %v3636_v34 = vrot.slane %v1275_v54, %v16831_v59  ;;  %v16987_v39 = vcombine.high %v16921_v56, %v16921_v56  ;;  %v16989_v41 = vmax.f32 %v795_v11, 0.0 }
 0x10c   : > { %24619 = vst [vmem:[#allocation22_spill] sm:$0xff] %v16972_v25  ;;  %24620 = vst [vmem:[#allocation23_spill] sm:$0xff] %v16982_v33  ;;  %v1040_v43 = vmax.f32 %v816_v12, 0.0  ;;  %v1277_v62 = vcombine.high %v1037_v21, %v1037_v21  ;;  %v16994_v0 = vrot.slane %v1037_v21, %v16825_v49  ;;  %v808_v1 = vadd.f32 %v16822_v45, %v16875_v30 }
 0x10d   : > { %v16936_v3 = vpop.f32.mrb[12].mxu0  ;;  %24621 = vst [vmem:[#allocation24_spill] sm:$0xff] %v16987_v39  ;;  %v3632_v54 = vrot.slane %v16891_v42, %v16831_v59  ;;  %v3600_v6 = vrot.slane %v16894_v44, %v16831_v59  ;;  %v3604_v7 = vrot.slane %v16925_v57, %v16831_v59  ;;  %v1243_v9 = vcombine.high %v16989_v41, %v16989_v41 }
 0x10e   : > { %v16948_v8 = vpop.f32.mrb[13].mxu0  ;;  %24622 = vst [vmem:[#allocation25_spill] sm:$0xff] %v16994_v0  ;;  %v1328_v30 = vcombine.high %v1040_v43, %v1040_v43  ;;  %v17011_v12 = vrot.slane %v1040_v43, %v16825_v49  ;;  %v1038_v42 = vmax.f32 %v808_v1, 0.0  ;;  %v17029_v1 = vrot.slane %v1277_v62, %v16825_v49 }
 0x10f   : > { %v16955_v13 = vpop.f32.mrb[14].mxu0  ;;  %v17018_v21 = vsel %vm3270_vm3, %v3636_v34, %v3632_v54  ;;  %v17041_v57 = vsel %vm3270_vm3, %v3604_v7, %v3600_v6  ;;  %v17045_v46 = vcombine.high %v16994_v0, %v16994_v0  ;;  %v17060_v7 = vrot.slane %v16989_v41, %v16825_v49 }
 0x110   : > { %v16963_v22 = vpop.f32.mrb[15].mxu0  ;;  %24623 = vst [vmem:[#allocation26_spill] sm:$0xff] %v17029_v1  ;;  %v17032_v16 = vrot.slane %v1328_v30, %v16825_v49  ;;  %v17036_v34 = vcombine.high %v17011_v12, %v17011_v12  ;;  %24624 = vst [vmem:[#allocation27_spill] sm:$0xff] %v17041_v57  ;;  %v1294_v11 = vcombine.high %v1038_v42, %v1038_v42 }
 0x111   : > { %24625 = vst [vmem:[#allocation28_spill] sm:$0xff] %v17045_v46  ;;  %v17048_v62 = vrot.slane %v1038_v42, %v16825_v49  ;;  %v2409_v43 = vrot.slane %v17011_v12, %v16829_v58  ;;  %24626 = vst [vmem:[#allocation29_spill] sm:$0xff] %v17060_v7  ;;  %v4565_v30 = vsel %vm3272_vm4, %v3576_v27, %v16883_v37 }
 0x112   : > { %v2413_v32 = vrot.slane %v17036_v34, %v16829_v58  ;;  %v2417_v6 = vrot.slane %v17032_v16, %v16829_v58  ;;  %v17063_v23 = vrot.slane %v1294_v11, %v16825_v49  ;;  %v17081_v11 = vcombine.high %v16909_v52, %v16909_v52 }
 0x113   : > { %v17067_v42 = vcombine.high %v17048_v62, %v17048_v62  ;;  %v2377_v63 = vrot.slane %v17048_v62, %v16829_v58  ;;  %v17108_v48 = vcombine.high %v17060_v7, %v17060_v7  ;;  %v24641_v7 = vrot.slane %v16994_v0, %v16831_v59 }
 0x114   : > { %24627 = vst [vmem:[#allocation30_spill] sm:$0xff] %v17063_v23  ;;  %v3312_v26 = vsel %vm3270_vm3, %v2413_v32, %v2409_v43  ;;  %24628 = vst [vmem:[#allocation31_spill] sm:$0xff] %v17081_v11  ;;  %v2385_v37 = vrot.slane %v17063_v23, %v16829_v58  ;;  %v4566_v43 = vsel %vm3274_vm5, %v3580_v36, %v4565_v30 }
 0x115   : > { %v17006_v10 = vpop.f32.mrb[16].mxu0  ;;  %v17084_v60 = vsel %vm3272_vm4, %v2417_v6, %v3312_v26  ;;  %v2381_v27 = vrot.slane %v17067_v42, %v16829_v58  ;;  %v3588_v26 = vrot.slane %v16918_v55, %v16831_v59  ;;  %24630 = vst [vmem:[#allocation33_spill] sm:$0xff] %v17108_v48  ;;  %v3592_v32 = vrot.slane %v16909_v52, %v16831_v59 }
 0x116   : > { %v17013_v18 = vpop.f32.mrb[17].mxu0  ;;  %24629 = vst [vmem:[#allocation32_spill] sm:$0xff] %v17084_v60  ;;  %v4567_v41 = vsel %vm3276_vm6, %v3584_v14, %v4566_v43  ;;  %v17120_v36 = vrot.slane %v1243_v9, %v16825_v49  ;;  %v3596_v44 = vrot.slane %v17081_v11, %v16831_v59  ;;  %v819_v43 = vadd.f32 %v16878_v35, %v16822_v45 }
 0x117   : > { %v17024_v31 = vpop.f32.mrb[18].mxu0  ;;  %v3305_v47 = vsel %vm3270_vm3, %v2381_v27, %v2377_v63  ;;  %v4568_v63 = vsel %vm3278_vm7, %v3588_v26, %v4567_v41  ;;  %v832_v9 = vadd.f32 %v16936_v3, %v16822_v45  ;;  %v17143_v41 = vcombine.high %v17032_v16, %v17032_v16 }
 0x118   : > { %v17038_v54 = vpop.f32.mrb[19].mxu0  ;;  %24631 = vst [vmem:[#allocation34_spill] sm:$0xff] %v17120_v36  ;;  %v17123_v30 = vsel %vm3272_vm4, %v2385_v37, %v3305_v47  ;;  %v4569_v14 = vsel %vm3280_vm8, %v3592_v32, %v4568_v63  ;;  %v3700_v35 = vrot.slane %v17036_v34, %v16831_v59  ;;  %v824_v63 = vadd.f32 %v16822_v45, %v16948_v8 }
 0x119   : > { %24632 = vst [vmem:[#allocation35_spill] sm:$0xff] %v17123_v30  ;;  %24633 = vst [vmem:[#allocation36_spill] sm:$0xff] %v17143_v41  ;;  %v4570_v26 = vsel %vm3282_vm9, %v3596_v44, %v4569_v14  ;;  %v1044_v3 = vmax.f32 %v832_v9, 0.0  ;;  %v3696_v44 = vrot.slane %v17011_v12, %v16831_v59  ;;  %v811_v14 = vadd.f32 %v16822_v45, %v16888_v40 }
 0x11a   : > { %4783 = vrot.lane.b32.xlu0 %v4570_v26, %s16666_s12  ;;  %v17163_v34 = vcombine.high %v17063_v23, %v17063_v23  ;;  %v1041_v9 = vmax.f32 %v819_v43, 0.0  ;;  %v24635_v37 = vrot.slane %v16912_v53, %v16831_v59  ;;  %v3664_v47 = vrot.slane %v17048_v62, %v16831_v59 }
 0x11b   : > { %v1396_v26 = vcombine.high %v1044_v3, %v1044_v3  ;;  %v17166_v8 = vrot.slane %v1044_v3, %v16825_v49  ;;  %v17184_v3 = vsel %vm3270_vm3, %v3700_v35, %v3696_v44  ;;  %v3668_v12 = vrot.slane %v17067_v42, %v16831_v59 }
 0x11c   : > { %24634 = vst [vmem:[#allocation37_spill] sm:$0xff] %v17163_v34  ;;  %v4579_v43 = vsel %vm3272_vm4, %v24635_v37, %v17018_v21  ;;  %v1042_v25 = vmax.f32 %v824_v63, 0.0  ;;  %v1039_v53 = vmax.f32 %v811_v14, 0.0  ;;  %v1345_v42 = vcombine.high %v1041_v9, %v1041_v9 }
 0x11d   : > { %v17092_v24 = vpop.f32.mrb[20].mxu0  ;;  %v17195_v21 = vrot.slane %v1396_v26, %v16825_v49  ;;  %v17199_v37 = vcombine.high %v17166_v8, %v17166_v8  ;;  %v17207_v63 = vcombine.high %v17029_v1, %v17029_v1  ;;  %v24637_v44 = vrot.slane %v16982_v33, %v16831_v59 }
 0x11e   : > { %v17104_v6 = vpop.f32.mrb[21].mxu0  ;;  %v17214_v26 = vrot.slane %v1041_v9, %v16825_v49  ;;  %v2473_v40 = vrot.slane %v17166_v8, %v16829_v58  ;;  %v17225_v15 = vsel %vm3270_vm3, %v3668_v12, %v3664_v47  ;;  %v1362_v33 = vcombine.high %v1042_v25, %v1042_v25 }
 0x11f   : > { %v17117_v29 = vpop.f32.mrb[22].mxu0  ;;  %24636 = vst [vmem:[#allocation38_spill] sm:$0xff] %v17207_v63  ;;  %v4580_v14 = vsel %vm3274_vm5, %v24637_v44, %v4579_v43  ;;  %v2477_v20 = vrot.slane %v17199_v37, %v16829_v58  ;;  %v2481_v62 = vrot.slane %v17195_v21, %v16829_v58  ;;  %24639 = vst [vmem:[#allocation40_spill] sm:$0xff] %v17225_v15 }
 0x120   : > { %v17128_v27 = vpop.f32.mrb[23].mxu0  ;;  %24638 = vst [vmem:[#allocation39_spill] sm:$0xff] %v17214_v26  ;;  %v17228_v43 = vrot.slane %v1042_v25, %v16825_v49  ;;  %v1311_v9 = vcombine.high %v1039_v53, %v1039_v53  ;;  %v17231_v44 = vrot.slane %v1039_v53, %v16825_v49  ;;  %v4581_v39 = vsel %vm3276_vm6, %v24641_v7, %v4580_v14 }
 0x121   : > { %v3326_v48 = vsel %vm3270_vm3, %v2477_v20, %v2473_v40  ;;  %v17242_v47 = vrot.slane %v1362_v33, %v16825_v49  ;;  %v3656_v12 = vrot.slane %v17029_v1, %v16831_v59  ;;  %v17253_v20 = vrot.slane %v1345_v42, %v16825_v49 }
 0x122   : > { %24640 = vst [vmem:[#allocation41_spill] sm:$0xff] %v17231_v44  ;;  %v17239_v60 = vsel %vm3272_vm4, %v2481_v62, %v3326_v48  ;;  %v17246_v25 = vcombine.high %v17228_v43, %v17228_v43  ;;  %v17257_v7 = vcombine.high %v17214_v26, %v17214_v26  ;;  %v3660_v48 = vrot.slane %v17207_v63, %v16831_v59 }
 0x123   : > { %24642 = vst [vmem:[#allocation42_spill] sm:$0xff] %v17239_v60  ;;  %24643 = vst [vmem:[#allocation43_spill] sm:$0xff] %v17242_v47  ;;  %v24646_v33 = vrot.slane %v17045_v46, %v16831_v59  ;;  %v2441_v14 = vrot.slane %v17228_v43, %v16829_v58  ;;  %v2449_v60 = vrot.slane %v17242_v47, %v16829_v58 }
 0x124   : > { %24644 = vst [vmem:[#allocation44_spill] sm:$0xff] %v17253_v20  ;;  %24645 = vst [vmem:[#allocation45_spill] sm:$0xff] %v17257_v7  ;;  %v2445_v42 = vrot.slane %v17246_v25, %v16829_v58  ;;  %v835_v1 = vadd.f32 %v16955_v13, %v16822_v45  ;;  %v17298_v36 = vcombine.high %v17195_v21, %v17195_v21 }
 0x125   : > { %v17168_v32 = vpop.f32.mrb[24].mxu0  ;;  %v4582_v40 = vsel %vm3278_vm7, %v24646_v33, %v4581_v39  ;;  %v17280_v39 = vrot.slane %v1311_v9, %v16825_v49  ;;  %v17284_v33 = vcombine.high %v17231_v44, %v17231_v44  ;;  %v3764_v13 = vrot.slane %v17199_v37, %v16831_v59 }
 0x126   : > { %v17181_v5 = vpop.f32.mrb[25].mxu0  ;;  %v4583_v0 = vsel %vm3280_vm8, %v3656_v12, %v4582_v40  ;;  %v3319_v9 = vsel %vm3270_vm3, %v2445_v42, %v2441_v14  ;;  %24649 = vst [vmem:[#allocation48_spill] sm:$0xff] %v17298_v36  ;;  %v827_v40 = vadd.f32 %v16822_v45, %v16963_v22  ;;  %v1045_v46 = vmax.f32 %v835_v1, 0.0 }
 0x127   : > { %v17190_v30 = vpop.f32.mrb[26].mxu0  ;;  %24647 = vst [vmem:[#allocation46_spill] sm:$0xff] %v17280_v39  ;;  %24648 = vst [vmem:[#allocation47_spill] sm:$0xff] %v17284_v33  ;;  %v17301_v11 = vsel %vm3272_vm4, %v2449_v60, %v3319_v9  ;;  %v4584_v12 = vsel %vm3282_vm9, %v3660_v48, %v4583_v0  ;;  %v848_v14 = vadd.f32 %v17006_v10, %v16822_v45 }
 0x128   : > { %v17201_v35 = vpop.f32.mrb[27].mxu0  ;;  %24650 = vst [vmem:[#allocation49_spill] sm:$0xff] %v17301_v11  ;;  %4787 = vrot.lane.b32.xlu0 %v4584_v12, %s16666_s12  ;;  %v840_v42 = vadd.f32 %v16822_v45, %v17013_v18  ;;  %v3760_v1 = vrot.slane %v17166_v8, %v16831_v59  ;;  %v17325_v10 = vcombine.high %v17242_v47, %v17242_v47  ;;  %v1043_v0 = vmax.f32 %v827_v40, 0.0 }
 0x129   : > { %v1048_v18 = vmax.f32 %v848_v14, 0.0  ;;  %v17343_v57 = vrot.slane %v1045_v46, %v16825_v49 }
 0x12a   : > { %24651 = vst [vmem:[#allocation50_spill] sm:$0xff] %v17325_v10  ;;  %v1046_v48 = vmax.f32 %v840_v42, 0.0  ;;  %v17340_v14 = vsel %vm3270_vm3, %v3764_v13, %v3760_v1  ;;  %v1413_v42 = vcombine.high %v1045_v46, %v1045_v46  ;;  %v3728_v1 = vrot.slane %v17228_v43, %v16831_v59 }
 0x12b   : > { %24652 = vst [vmem:[#allocation51_spill] sm:$0xff] %v17343_v57  ;;  %v1464_v11 = vcombine.high %v1048_v18, %v1048_v18  ;;  %v17348_v22 = vrot.slane %v1048_v18, %v16825_v49  ;;  %v3732_v46 = vrot.slane %v17246_v25, %v16831_v59  ;;  %v1379_v18 = vcombine.high %v1043_v0, %v1043_v0 }
 0x12c   : > { %v1430_v37 = vcombine.high %v1046_v48, %v1046_v48  ;;  %v17351_v40 = vrot.slane %v1046_v48, %v16825_v49  ;;  %v17364_v55 = vrot.slane %v1043_v0, %v16825_v49  ;;  %v17376_v13 = vrot.slane %v1413_v42, %v16825_v49 }
 0x12d   : > { %v17250_v53 = vpop.f32.mrb[28].mxu0  ;;  %v17367_v48 = vrot.slane %v1464_v11, %v16825_v49  ;;  %v17371_v33 = vcombine.high %v17348_v22, %v17348_v22  ;;  %v17387_v11 = vcombine.high %v17343_v57, %v17343_v57  ;;  %v2537_v8 = vrot.slane %v17348_v22, %v16829_v58 }
 0x12e   : > { %v17265_v62 = vpop.f32.mrb[29].mxu0  ;;  %24653 = vst [vmem:[#allocation52_spill] sm:$0xff] %v17364_v55  ;;  %24654 = vst [vmem:[#allocation53_spill] sm:$0xff] %v17376_v13  ;;  %v17379_v25 = vrot.slane %v1430_v37, %v16825_v49  ;;  %v17383_v0 = vcombine.high %v17351_v40, %v17351_v40  ;;  %v17396_v37 = vsel %vm3270_vm3, %v3732_v46, %v3728_v1 }
 0x12f   : > { %v17275_v63 = vpop.f32.mrb[30].mxu0  ;;  %24656 = vst [vmem:[#allocation55_spill] sm:$0xff] %v17387_v11  ;;  %v2541_v43 = vrot.slane %v17371_v33, %v16829_v58  ;;  %v2545_v42 = vrot.slane %v17367_v48, %v16829_v58  ;;  %24657 = vst [vmem:[#allocation56_spill] sm:$0xff] %v17396_v37  ;;  %v2505_v10 = vrot.slane %v17351_v40, %v16829_v58 }
 0x130   : > { %v17287_v56 = vpop.f32.mrb[31].mxu0  ;;  %24655 = vst [vmem:[#allocation54_spill] sm:$0xff] %v17379_v25  ;;  %v2509_v47 = vrot.slane %v17383_v0, %v16829_v58  ;;  %v2513_v38 = vrot.slane %v17379_v25, %v16829_v58  ;;  %v17407_v19 = vrot.slane %v1379_v18, %v16825_v49  ;;  %v17411_v17 = vcombine.high %v17364_v55, %v17364_v55 }
 0x131   : > { %v3340_v1 = vsel %vm3270_vm3, %v2541_v43, %v2537_v8  ;;  %v17416_v46 = vcombine.high %v17253_v20, %v17253_v20  ;;  %v17464_v50 = vcombine.high %v17367_v48, %v17367_v48  ;;  %v24692_v39 = vrot.slane %v17367_v48, %v16831_v59 }
 0x132   : > { %24658 = vst [vmem:[#allocation57_spill] sm:$0xff] %v17407_v19  ;;  %24659 = vst [vmem:[#allocation58_spill] sm:$0xff] %v17411_v17  ;;  %v17425_v18 = vsel %vm3272_vm4, %v2545_v42, %v3340_v1  ;;  %v3333_v15 = vsel %vm3270_vm3, %v2509_v47, %v2505_v10  ;;  %v3716_v10 = vrot.slane %v17257_v7, %v16831_v59 }
 0x133   : > { %24660 = vst [vmem:[#allocation59_spill] sm:$0xff] %v17416_v46  ;;  %24661 = vst [vmem:[#allocation60_spill] sm:$0xff] %v17425_v18  ;;  %v17437_v34 = vsel %vm3272_vm4, %v2513_v38, %v3333_v15  ;;  %v24663_v1 = vrot.slane %v17032_v16, %v16831_v59  ;;  %v24664_v42 = vrot.slane %v17143_v41, %v16831_v59 }
 0x134   : > { %24662 = vst [vmem:[#allocation61_spill] sm:$0xff] %v17437_v34  ;;  %v864_v47 = vadd.f32 %v17092_v24, %v16822_v45  ;;  %24665 = vst [vmem:[#allocation62_spill] sm:$0xff] %v17464_v50  ;;  %v3720_v16 = vrot.slane %v17253_v20, %v16831_v59  ;;  %v851_v15 = vadd.f32 %v17024_v31, %v16822_v45 }
 0x135   : > { %v17327_v9 = vpop.f32.mrb[32].mxu0  ;;  %v4593_v43 = vsel %vm3272_vm4, %v24663_v1, %v17184_v3  ;;  %v24666_v3 = vrot.slane %v17214_v26, %v16831_v59  ;;  %v856_v38 = vadd.f32 %v16822_v45, %v17104_v6  ;;  %v3828_v18 = vrot.slane %v17371_v33, %v16831_v59 }
 0x136   : > { %v17335_v60 = vpop.f32.mrb[33].mxu0  ;;  %v4594_v8 = vsel %vm3274_vm5, %v24664_v42, %v4593_v43  ;;  %v3724_v43 = vrot.slane %v17416_v46, %v16831_v59  ;;  %v1052_v42 = vmax.f32 %v864_v47, 0.0  ;;  %v843_v31 = vadd.f32 %v16822_v45, %v17038_v54 }
 0x137   : > { %v17345_v12 = vpop.f32.mrb[34].mxu0  ;;  %v4595_v1 = vsel %vm3276_vm6, %v24666_v3, %v4594_v8  ;;  %v3824_v33 = vrot.slane %v17348_v22, %v16831_v59  ;;  %v3792_v45 = vrot.slane %v17351_v40, %v16831_v59  ;;  %v3796_v54 = vrot.slane %v17383_v0, %v16831_v59 }
 0x138   : > { %v17353_v52 = vpop.f32.mrb[35].mxu0  ;;  %v4596_v24 = vsel %vm3278_vm7, %v3716_v10, %v4595_v1  ;;  %v17490_v10 = vcombine.high %v17379_v25, %v17379_v25  ;;  %v1532_v6 = vcombine.high %v1052_v42, %v1052_v42  ;;  %v17494_v1 = vrot.slane %v1052_v42, %v16825_v49 }
 0x139   : > { %v4597_v8 = vsel %vm3280_vm8, %v3720_v16, %v4596_v24  ;;  %v1049_v16 = vmax.f32 %v851_v15, 0.0  ;;  %v17516_v40 = vsel %vm3270_vm3, %v3828_v18, %v3824_v33  ;;  %v1047_v0 = vmax.f32 %v843_v31, 0.0 }
 0x13a   : > { %24667 = vst [vmem:[#allocation63_spill] sm:$0xff] %v17490_v10  ;;  %v4598_v47 = vsel %vm3282_vm9, %v3724_v43, %v4597_v8  ;;  %v1050_v8 = vmax.f32 %v856_v38, 0.0  ;;  %v17519_v15 = vrot.slane %v1532_v6, %v16825_v49  ;;  %v17533_v18 = vcombine.high %v17494_v1, %v17494_v1 }
 0x13b   : > { %4791 = vrot.lane.b32.xlu1 %v4598_v47, %s16666_s12  ;;  %v17523_v47 = vcombine.high %v17376_v13, %v17376_v13  ;;  %v17536_v31 = vsel %vm3270_vm3, %v3796_v54, %v3792_v45  ;;  %v1481_v6 = vcombine.high %v1049_v16, %v1049_v16  ;;  %v17539_v33 = vrot.slane %v1049_v16, %v16825_v49 }
 0x13c   : > { %24669 = vst [vmem:[#allocation65_spill] sm:$0xff] %v17536_v31  ;;  %v2609_v43 = vrot.slane %v17519_v15, %v16829_v58  ;;  %v2601_v22 = vrot.slane %v17494_v1, %v16829_v58  ;;  %v2605_v38 = vrot.slane %v17533_v18, %v16829_v58  ;;  %v1498_v42 = vcombine.high %v1050_v8, %v1050_v8 }
 0x13d   : > { %v17404_v44 = vpop.f32.mrb[36].mxu0  ;;  %24668 = vst [vmem:[#allocation64_spill] sm:$0xff] %v17523_v47  ;;  %24670 = vst [vmem:[#allocation66_spill] sm:$0xff] %v17539_v33  ;;  %v3784_v20 = vrot.slane %v17376_v13, %v16831_v59  ;;  %v1447_v7 = vcombine.high %v1047_v0, %v1047_v0  ;;  %v17550_v45 = vrot.slane %v1050_v8, %v16825_v49 }
 0x13e   : > { %v17418_v37 = vpop.f32.mrb[37].mxu0  ;;  %v3788_v54 = vrot.slane %v17523_v47, %v16831_v59  ;;  %v24671_v16 = vrot.slane %v17195_v21, %v16831_v59  ;;  %v17562_v17 = vrot.slane %v1047_v0, %v16825_v49  ;;  %v3354_v13 = vsel %vm3270_vm3, %v2605_v38, %v2601_v22 }
 0x13f   : > { %v17428_v4 = vpop.f32.mrb[38].mxu0  ;;  %v17566_v55 = vrot.slane %v1498_v42, %v16825_v49  ;;  %v24674_v8 = vrot.slane %v17298_v36, %v16831_v59  ;;  %v17575_v21 = vrot.slane %v1481_v6, %v16825_v49  ;;  %v17582_v0 = vsel %vm3272_vm4, %v2609_v43, %v3354_v13 }
 0x140   : > { %v17439_v23 = vpop.f32.mrb[39].mxu0  ;;  %v4607_v26 = vsel %vm3272_vm4, %v24671_v16, %v17340_v14  ;;  %24672 = vst [vmem:[#allocation67_spill] sm:$0xff] %v17562_v17  ;;  %v17579_v14 = vcombine.high %v17539_v33, %v17539_v33  ;;  %24677 = vst [vmem:[#allocation71_spill] sm:$0xff] %v17582_v0  ;;  %v1513_v42 = vcombine.high %v17550_v45, %v17550_v45 }
 0x141   : > { %24673 = vst [vmem:[#allocation68_spill] sm:$0xff] %v17566_v55  ;;  %v4608_v47 = vsel %vm3274_vm5, %v24674_v8, %v4607_v26  ;;  %24675 = vst [vmem:[#allocation69_spill] sm:$0xff] %v17575_v21  ;;  %v2577_v6 = vrot.slane %v17566_v55, %v16829_v58  ;;  %v24678_v16 = vrot.slane %v17343_v57, %v16831_v59 }
 0x142   : > { %24676 = vst [vmem:[#allocation70_spill] sm:$0xff] %v17579_v14  ;;  %v17601_v8 = vrot.slane %v1447_v7, %v16825_v49  ;;  %v2569_v0 = vrot.slane %v17550_v45, %v16829_v58  ;;  %v2573_v26 = vrot.slane %v1513_v42, %v16829_v58  ;;  %v24680_v38 = vrot.slane %v17387_v11, %v16831_v59 }
 0x143   : > { %v4609_v13 = vsel %vm3276_vm6, %v24678_v16, %v4608_v47  ;;  %v17612_v57 = vcombine.high %v17562_v17, %v17562_v17  ;;  %v17620_v16 = vld [vmem:[%s24333_s2] ss:$0 sm:$0xff]  ;;  %v4621_v28 = vsel %vm3272_vm4, %v24692_v39, %v17516_v40 }
 0x144   : > { %24679 = vst [vmem:[#allocation72_spill] sm:$0xff] %v17601_v8  ;;  %v4610_v36 = vsel %vm3278_vm7, %v24680_v38, %v4609_v13  ;;  %v867_v10 = vadd.f32 %v17620_v16, %v17117_v29  ;;  %v3347_v11 = vsel %vm3270_vm3, %v2573_v26, %v2569_v0  ;;  %v880_v29 = vadd.f32 %v17620_v16, %v17168_v32  ;;  %v16288_v32 = vld [vmem:[%s24334_s3 + $0x100] sm:$0xff]  }
 0x145   : > { %v17486_v3 = vpop.f32.mrb[40].mxu0  ;;  %24681 = vst [vmem:[#allocation73_spill] sm:$0xff] %v17612_v57  ;;  %v4611_v7 = vsel %vm3280_vm8, %v3784_v20, %v4610_v36  ;;  %v17632_v36 = vcombine.high %v17519_v15, %v17519_v15  ;;  %v17635_v20 = vsel %vm3272_vm4, %v2577_v6, %v3347_v11  ;;  %v872_v38 = vadd.f32 %v17620_v16, %v17181_v5 }
 0x146   : > { %v17496_v34 = vpop.f32.mrb[41].mxu0  ;;  %v4612_v47 = vsel %vm3282_vm9, %v3788_v54, %v4611_v7  ;;  %24683 = vst [vmem:[#allocation75_spill] sm:$0xff] %v17635_v20  ;;  %v3892_v26 = vrot.slane %v17533_v18, %v16831_v59  ;;  %v859_v11 = vadd.f32 %v17620_v16, %v17128_v27  ;;  %v17656_v5 = vcombine.high %v17566_v55, %v17566_v55 }
 0x147   : > { %v17505_v24 = vpop.f32.mrb[42].mxu0  ;;  %24682 = vst [vmem:[#allocation74_spill] sm:$0xff] %v17632_v36  ;;  %4795 = vrot.lane.b32.xlu1 %v4612_v47, %s16666_s12  ;;  %v1053_v47 = vmax.f32 %v867_v10, 0.0  ;;  %v1056_v7 = vmax.f32 %v880_v29, 0.0  ;;  %v3888_v27 = vrot.slane %v17494_v1, %v16831_v59  ;;  %v1054_v54 = vmax.f32 %v872_v38, 0.0  ;;  %14869 = vmatprep.subr.bf16.mxu1 %v16288_v32 }
 0x148   : > { %v17513_v46 = vpop.f32.mrb[43].mxu0  ;;  %24684 = vst [vmem:[#allocation76_spill] sm:$0xff] %v17656_v5  ;;  %v3860_v18 = vrot.slane %v1513_v42, %v16831_v59  ;;  %v3856_v38 = vrot.slane %v17550_v45, %v16831_v59  ;;  %v1051_v17 = vmax.f32 %v859_v11, 0.0 }
 0x149   : > { %v17681_v1 = vsel %vm3270_vm3, %v3892_v26, %v3888_v27  ;;  %v1600_v25 = vcombine.high %v1056_v7, %v1056_v7  ;;  %v1549_v13 = vcombine.high %v1053_v47, %v1053_v47  ;;  %v17690_v42 = vrot.slane %v1056_v7, %v16825_v49 }
 0x14a   : > { %v17693_v31 = vrot.slane %v1053_v47, %v16825_v49  ;;  %v1566_v45 = vcombine.high %v1054_v54, %v1054_v54  ;;  %v17699_v11 = vrot.slane %v1054_v54, %v16825_v49  ;;  %v17704_v27 = vsel %vm3270_vm3, %v3860_v18, %v3856_v38 }
 0x14b   : > { %v17696_v26 = vrot.slane %v1600_v25, %v16825_v49  ;;  %24687 = vst [vmem:[#allocation79_spill] sm:$0xff] %v17704_v27  ;;  %v17708_v7 = vcombine.high %v17690_v42, %v17690_v42  ;;  %v17712_v47 = vcombine.high %v17575_v21, %v17575_v21  ;;  %v1515_v25 = vcombine.high %v1051_v17, %v1051_v17 }
 0x14c   : > { %24686 = vst [vmem:[#allocation78_spill] sm:$0xff] %v17693_v31  ;;  %v17715_v10 = vrot.slane %v1051_v17, %v16825_v49  ;;  %v17720_v32 = vrot.slane %v1566_v45, %v16825_v49  ;;  %v2665_v38 = vrot.slane %v17690_v42, %v16829_v58  ;;  %v17730_v5 = vcombine.high %v17699_v11, %v17699_v11 }
 0x14d   : > { %v17559_v41 = vpop.f32.mrb[44].mxu0  ;;  %24688 = vst [vmem:[#allocation80_spill] sm:$0xff] %v17712_v47  ;;  %v2673_v54 = vrot.slane %v17696_v26, %v16829_v58  ;;  %v2669_v29 = vrot.slane %v17708_v7, %v16829_v58  ;;  %v3848_v17 = vrot.slane %v17575_v21, %v16831_v59  ;;  %v17737_v45 = vrot.slane %v1549_v13, %v16825_v49 }
 0x14e   : > { %v17572_v19 = vpop.f32.mrb[45].mxu0  ;;  %24689 = vst [vmem:[#allocation81_spill] sm:$0xff] %v17715_v10  ;;  %v17741_v27 = vcombine.high %v17693_v31, %v17693_v31  ;;  %v2641_v8 = vrot.slane %v17720_v32, %v16829_v58  ;;  %v2633_v51 = vrot.slane %v17699_v11, %v16829_v58  ;;  %v2637_v61 = vrot.slane %v17730_v5, %v16829_v58 }
 0x14f   : > { %v17586_v22 = vpop.f32.mrb[46].mxu0  ;;  %24690 = vst [vmem:[#allocation82_spill] sm:$0xff] %v17737_v45  ;;  %v3368_v13 = vsel %vm3270_vm3, %v2669_v29, %v2665_v38  ;;  %v17764_v39 = vrot.slane %v1515_v25, %v16825_v49  ;;  %v17768_v40 = vcombine.high %v17715_v10, %v17715_v10  ;;  %v16289_v38 = vld [vmem:[%s24334_s3 + $0xc0] sm:$0xff]   ;;  %v24700_v21 = vrot.slane %v17539_v33, %v16831_v59 }
 0x150   : > { %v17598_v43 = vpop.f32.mrb[47].mxu0  ;;  %24691 = vst [vmem:[#allocation83_spill] sm:$0xff] %v17741_v27  ;;  %v17771_v29 = vsel %vm3272_vm4, %v2673_v54, %v3368_v13  ;;  %v3361_v25 = vsel %vm3270_vm3, %v2637_v61, %v2633_v51  ;;  %14870 = vmatpush3.bf16.msra.mxu1 %v16289_v38  ;;  %v3852_v51 = vrot.slane %v17712_v47, %v16831_v59 }
 0x151   : > { %24695 = vst [vmem:[#allocation86_spill] sm:$0xff] %v17764_v39  ;;  %24696 = vst [vmem:[#allocation87_spill] sm:$0xff] %v17768_v40  ;;  %v875_v54 = vadd.f32 %v17620_v16, %v17201_v35 }
 0x152   : > { %24697 = vst [vmem:[#allocation88_spill] sm:$0xff] %v17771_v29  ;;  %v17790_v29 = vsel %vm3272_vm4, %v2641_v8, %v3361_v25  ;;  %v888_v8 = vadd.f32 %v17620_v16, %v17265_v62  ;;  %v16290_v25 = vld [vmem:[%s24334_s3 + $0x108] sm:$0xff]  }
 0x153   : > { %24699 = vst [vmem:[#allocation89_spill] sm:$0xff] %v17790_v29  ;;  %v16291_v62 = vld [vmem:[%s24334_s3 + $0xc8] sm:$0xff]   ;;  %14871 = vmatprep.subr.bf16.mxu1 %v16290_v25  ;;  %v16292_v25 = vld [vmem:[%s24334_s3 + $0x110] sm:$0xff]   ;;  %v1055_v35 = vmax.f32 %v875_v54, 0.0 }
 0x154   : > { %14872 = vmatpush3.bf16.msra.mxu1 %v16291_v62  ;;  %v3924_v62 = vrot.slane %v17730_v5, %v16831_v59 }
 0x155   : > { %v17650_v6 = vpop.f32.mrb[48].mxu0  ;;  %14873 = vmatprep.subr.bf16.mxu1 %v16292_v25 }
 0x156   : > { %v17658_v0 = vpop.f32.mrb[49].mxu0 }
 0x157   : > { %v17666_v20 = vpop.f32.mrb[50].mxu0 }
 0x158   : > { %v17678_v57 = vpop.f32.mrb[51].mxu0 }
 0x159   : > { %24685 = vst [vmem:[#allocation77_spill] sm:$0xff] %v17678_v57 }
 0x15d   : > { %v17722_v18 = vpop.f32.mrb[52].mxu0 }
 0x15e   : > { %v17734_v55 = vpop.f32.mrb[53].mxu0 }
 0x15f   : > { %v17750_v2 = vpop.f32.mrb[54].mxu0 }
 0x160   : > { %24693 = vst [vmem:[#allocation84_spill] sm:$0xff] %v17750_v2  ;;  %v17759_v57 = vpop.f32.mrb[55].mxu0 }
 0x161   : > { %24694 = vst [vmem:[#allocation85_spill] sm:$0xff] %v17759_v57  ;;  %v24698_v57 = vrot.slane %v17464_v50, %v16831_v59 }
 0x163   : > { %v4622_v2 = vsel %vm3274_vm5, %v24698_v57, %v4621_v28  ;;  %v24701_v28 = vrot.slane %v17579_v14, %v16831_v59  ;;  %v896_v57 = vadd.f32 %v17620_v16, %v17250_v53  ;;  %v1583_v14 = vcombine.high %v1055_v35, %v1055_v35 }
 0x164   : > { %v4623_v48 = vsel %vm3276_vm6, %v24700_v21, %v4622_v2  ;;  %v17813_v21 = vcombine.high %v17696_v26, %v17696_v26 }
 0x165   : > { %v4624_v61 = vsel %vm3278_vm7, %v24701_v28, %v4623_v48  ;;  %v883_v48 = vadd.f32 %v17620_v16, %v17190_v30  ;;  %v17818_v53 = vpop.f32.mrb[56].mxu0  ;;  %v3956_v28 = vrot.slane %v17708_v7, %v16831_v59  ;;  %v1060_v2 = vmax.f32 %v896_v57, 0.0 }
 0x166   : > { %24702 = vst [vmem:[#allocation90_spill] sm:$0xff] %v17813_v21  ;;  %v4625_v38 = vsel %vm3280_vm8, %v3848_v17, %v4624_v61  ;;  %v17828_v29 = vpop.f32.mrb[57].mxu0  ;;  %v17836_v61 = vcombine.high %v17720_v32, %v17720_v32  ;;  %v3952_v7 = vrot.slane %v17690_v42, %v16831_v59  ;;  %v1058_v57 = vmax.f32 %v888_v8, 0.0  ;;  %v16293_v42 = vld [vmem:[%s24334_s3 + $0xd0] sm:$0xff]  }
 0x167   : > { %v4626_v13 = vsel %vm3282_vm9, %v3852_v51, %v4625_v38  ;;  %v1057_v17 = vmax.f32 %v883_v48, 0.0  ;;  %v3920_v30 = vrot.slane %v17699_v11, %v16831_v59  ;;  %v1668_v51 = vcombine.high %v1060_v2, %v1060_v2  ;;  %v17862_v38 = vpop.f32.mrb[58].mxu0  ;;  %14874 = vmatpush3.bf16.msra.mxu1 %v16293_v42  ;;  %v16294_v48 = vld [vmem:[%s24334_s3 + $0x118] sm:$0xff]  }
 0x168   : > { %24703 = vst [vmem:[#allocation91_spill] sm:$0xff] %v17836_v61  ;;  %4799 = vrot.lane.b32.xlu0 %v4626_v13, %s16666_s12  ;;  %v17858_v8 = vsel %vm3270_vm3, %v3956_v28, %v3952_v7  ;;  %v17871_v28 = vrot.slane %v1060_v2, %v16825_v49  ;;  %v17873_v7 = vpop.f32.mrb[59].mxu0  ;;  %v1634_v54 = vcombine.high %v1058_v57, %v1058_v57 }
 0x169   : > { %v17876_v11 = vrot.slane %v1668_v51, %v16825_v49  ;;  %v17879_v25 = vrot.slane %v1058_v57, %v16825_v49  ;;  %v17883_v13 = vcombine.high %v17737_v45, %v17737_v45  ;;  %v17889_v2 = vsel %vm3270_vm3, %v3924_v62, %v3920_v30  ;;  %14875 = vmatprep.subr.bf16.mxu1 %v16294_v48 }
 0x16a   : > { %v1617_v5 = vcombine.high %v1057_v17, %v1057_v17  ;;  %v1683_v51 = vcombine.high %v17871_v28, %v17871_v28  ;;  %v24706_v57 = vrot.slane %v17519_v15, %v16831_v59  ;;  %v17899_v47 = vrot.slane %v1057_v17, %v16825_v49 }
 0x16b   : > { %24704 = vst [vmem:[#allocation92_spill] sm:$0xff] %v17876_v11  ;;  %24705 = vst [vmem:[#allocation93_spill] sm:$0xff] %v17883_v13  ;;  %v2737_v33 = vrot.slane %v17876_v11, %v16829_v58  ;;  %v17904_v30 = vrot.slane %v1634_v54, %v16825_v49  ;;  %v17907_v62 = vrot.slane %v1055_v35, %v16825_v49 }
 0x16c   : > { %v4635_v42 = vsel %vm3272_vm4, %v24706_v57, %v17681_v1  ;;  %24707 = vst [vmem:[#allocation94_spill] sm:$0xff] %v17899_v47  ;;  %v2729_v50 = vrot.slane %v17871_v28, %v16829_v58  ;;  %v2733_v15 = vrot.slane %v1683_v51, %v16829_v58  ;;  %v17914_v1 = vcombine.high %v17879_v25, %v17879_v25 }
 0x16d   : > { %v2705_v17 = vrot.slane %v17904_v30, %v16829_v58  ;;  %v3912_v54 = vrot.slane %v17737_v45, %v16831_v59  ;;  %v3916_v48 = vrot.slane %v17883_v13, %v16831_v59  ;;  %v24708_v35 = vrot.slane %v17632_v36, %v16831_v59 }
 0x16e   : > { %v17927_v40 = vrot.slane %v1617_v5, %v16825_v49  ;;  %v3382_v10 = vsel %vm3270_vm3, %v2733_v15, %v2729_v50  ;;  %v2697_v39 = vrot.slane %v17879_v25, %v16829_v58  ;;  %v2701_v61 = vrot.slane %v17914_v1, %v16829_v58 }
 0x16f   : > { %v4636_v57 = vsel %vm3274_vm5, %v24708_v35, %v4635_v42  ;;  %v17936_v45 = vcombine.high %v17899_v47, %v17899_v47  ;;  %v3968_v42 = vrot.slane %v17899_v47, %v16831_v59  ;;  %v17943_v5 = vsel %vm3272_vm4, %v2737_v33, %v3382_v10 }
 0x170   : > { %24709 = vst [vmem:[#allocation95_spill] sm:$0xff] %v17927_v40  ;;  %24711 = vst [vmem:[#allocation97_spill] sm:$0xff] %v17943_v5  ;;  %v17946_v50 = vrot.slane %v1583_v14, %v16825_v49  ;;  %v17950_v15 = vcombine.high %v17907_v62, %v17907_v62  ;;  %v3375_v35 = vsel %vm3270_vm3, %v2701_v61, %v2697_v39 }
 0x171   : > { %24710 = vst [vmem:[#allocation96_spill] sm:$0xff] %v17936_v45  ;;  %v24714_v36 = vrot.slane %v17693_v31, %v16831_v59  ;;  %v17962_v14 = vsel %vm3272_vm4, %v2705_v17, %v3375_v35  ;;  %v24716_v10 = vrot.slane %v17741_v27, %v16831_v59  ;;  %v17970_v39 = vcombine.high %v17876_v11, %v17876_v11 }
 0x172   : > { %24712 = vst [vmem:[#allocation98_spill] sm:$0xff] %v17946_v50  ;;  %24713 = vst [vmem:[#allocation99_spill] sm:$0xff] %v17950_v15  ;;  %v912_v61 = vadd.f32 %v17620_v16, %v17327_v9  ;;  %v4020_v35 = vrot.slane %v1683_v51, %v16831_v59  ;;  %v16296_v9 = vld [vmem:[%s24334_s3 + $0x120] sm:$0xff]  }
 0x173   : > { %v4637_v13 = vsel %vm3276_vm6, %v24714_v36, %v4636_v57  ;;  %24715 = vst [vmem:[#allocation100_spill] sm:$0xff] %v17962_v14  ;;  %24717 = vst [vmem:[#allocation101_spill] sm:$0xff] %v17970_v39  ;;  %v904_v57 = vadd.f32 %v17620_v16, %v17335_v60  ;;  %v4016_v60 = vrot.slane %v17871_v28, %v16831_v59 }
 0x174   : > { %v4638_v5 = vsel %vm3278_vm7, %v24716_v10, %v4637_v13  ;;  %v899_v13 = vadd.f32 %v17620_v16, %v17275_v63  ;;  %v891_v63 = vadd.f32 %v17620_v16, %v17287_v56  ;;  %v1064_v51 = vmax.f32 %v912_v61, 0.0  ;;  %v16297_v56 = vld [vmem:[%s24334_s3 + $0xe0] sm:$0xff]  }
 0x175   : > { %v4639_v36 = vsel %vm3280_vm8, %v3912_v54, %v4638_v5  ;;  %v16295_v54 = vld [vmem:[%s24334_s3 + $0xd8] sm:$0xff]   ;;  %v17993_v5 = vcombine.high %v17904_v30, %v17904_v30  ;;  %v1062_v17 = vmax.f32 %v904_v57, 0.0  ;;  %v24720_v28 = vrot.slane %v17696_v26, %v16831_v59 }
 0x176   : > { %v4640_v47 = vsel %vm3282_vm9, %v3916_v48, %v4639_v36  ;;  %v3972_v48 = vrot.slane %v17936_v45, %v16831_v59  ;;  %14876 = vmatpush3.bf16.msra.mxu1 %v16295_v54  ;;  %v18015_v36 = vsel %vm3270_vm3, %v4020_v35, %v4016_v60  ;;  %v1061_v33 = vmax.f32 %v899_v13, 0.0  ;;  %v16298_v13 = vld [vmem:[%s24334_s3 + $0x128] sm:$0xff]  }
 0x177   : > { %24718 = vst [vmem:[#allocation102_spill] sm:$0xff] %v17993_v5  ;;  %4803 = vrot.lane.b32.xlu1 %v4640_v47, %s16666_s12  ;;  %14877 = vmatprep.subr.bf16.mxu1 %v16296_v9  ;;  %24719 = vst [vmem:[#allocation103_spill] sm:$0xff] %v18015_v36  ;;  %v4649_v54 = vsel %vm3272_vm4, %v24720_v28, %v17858_v8  ;;  %v3984_v9 = vrot.slane %v17879_v25, %v16831_v59  ;;  %v1059_v10 = vmax.f32 %v891_v63, 0.0 }
 0x178   : > { %v1736_v35 = vcombine.high %v1064_v51, %v1064_v51  ;;  %v3988_v26 = vrot.slane %v17914_v1, %v16831_v59  ;;  %v18037_v60 = vrot.slane %v1064_v51, %v16825_v49  ;;  %v18041_v28 = vcombine.high %v17927_v40, %v17927_v40 }
 0x179   : > { %v1702_v63 = vcombine.high %v1062_v17, %v1062_v17  ;;  %v18047_v57 = vrot.slane %v1062_v17, %v16825_v49  ;;  %v24722_v1 = vrot.slane %v17813_v21, %v16831_v59  ;;  %v1685_v8 = vcombine.high %v1061_v33, %v1061_v33 }
 0x17a   : > { %24721 = vst [vmem:[#allocation104_spill] sm:$0xff] %v18041_v28  ;;  %14878 = vmatpush3.bf16.msra.mxu1 %v16297_v56  ;;  %v18044_v25 = vrot.slane %v1736_v35, %v16825_v49  ;;  %v1751_v56 = vcombine.high %v18037_v60, %v18037_v60  ;;  %v18059_v47 = vrot.slane %v1061_v33, %v16825_v49  ;;  %v16299_v33 = vld [vmem:[%s24334_s3 + $0xe8] sm:$0xff]  }
 0x17b   : > { %v4650_v61 = vsel %vm3274_vm5, %v24722_v1, %v4649_v54  ;;  %14879 = vmatprep.subr.bf16.mxu1 %v16298_v13  ;;  %v1651_v17 = vcombine.high %v1059_v10, %v1059_v10  ;;  %v18064_v45 = vrot.slane %v1702_v63, %v16825_v49  ;;  %v18067_v54 = vrot.slane %v1059_v10, %v16825_v49 }
 0x17c   : > { %v4651_v35 = vsel %vm3276_vm6, %v3968_v42, %v4650_v61  ;;  %24723 = vst [vmem:[#allocation105_spill] sm:$0xff] %v18059_v47  ;;  %v2801_v14 = vrot.slane %v18044_v25, %v16829_v58  ;;  %v2793_v13 = vrot.slane %v18037_v60, %v16829_v58  ;;  %v2797_v1 = vrot.slane %v1751_v56, %v16829_v58  ;;  %v16300_v61 = vld [vmem:[%s24334_s3 + $0x130] sm:$0xff]  }
 0x17d   : > { %24724 = vst [vmem:[#allocation106_spill] sm:$0xff] %v18067_v54  ;;  %v18074_v42 = vcombine.high %v18047_v57, %v18047_v57  ;;  %v18083_v10 = vsel %vm3270_vm3, %v3988_v26, %v3984_v9  ;;  %v2769_v63 = vrot.slane %v18064_v45, %v16829_v58  ;;  %v3976_v51 = vrot.slane %v17927_v40, %v16831_v59 }
 0x17e   : > { %v3980_v21 = vrot.slane %v18041_v28, %v16831_v59  ;;  %v18092_v27 = vrot.slane %v1685_v8, %v16825_v49  ;;  %v3396_v31 = vsel %vm3270_vm3, %v2797_v1, %v2793_v13  ;;  %v2761_v39 = vrot.slane %v18047_v57, %v16829_v58  ;;  %14880 = vmatpush3.bf16.msra.mxu1 %v16299_v33 }
 0x17f   : > { %v2765_v9 = vrot.slane %v18074_v42, %v16829_v58  ;;  %v18101_v26 = vcombine.high %v18059_v47, %v18059_v47  ;;  %v18108_v28 = vsel %vm3272_vm4, %v2801_v14, %v3396_v31  ;;  %14881 = vmatprep.subr.bf16.mxu1 %v16300_v61  ;;  %v18111_v13 = vrot.slane %v1651_v17, %v16825_v49  ;;  %v16301_v17 = vld [vmem:[%s24334_s3 + $0xf0] sm:$0xff]  }
 0x180   : > { %24725 = vst [vmem:[#allocation107_spill] sm:$0xff] %v18092_v27  ;;  %24727 = vst [vmem:[#allocation109_spill] sm:$0xff] %v18108_v28  ;;  %v18115_v1 = vcombine.high %v18067_v54, %v18067_v54  ;;  %v4652_v11 = vsel %vm3278_vm7, %v3972_v48, %v4651_v35  ;;  %v915_v14 = vadd.f32 %v17620_v16, %v17345_v12 }
 0x181   : > { %24726 = vst [vmem:[#allocation108_spill] sm:$0xff] %v18101_v26  ;;  %24728 = vst [vmem:[#allocation110_spill] sm:$0xff] %v18111_v13  ;;  %v3389_v33 = vsel %vm3270_vm3, %v2765_v9, %v2761_v39  ;;  %v4653_v31 = vsel %vm3280_vm8, %v3976_v51, %v4652_v11  ;;  %v16302_v39 = vld [vmem:[%s24334_s3 + $0x138] sm:$0xff]   ;;  %v907_v35 = vadd.f32 %v17620_v16, %v17353_v52 }
 0x182   : > { %24729 = vst [vmem:[#allocation111_spill] sm:$0xff] %v18115_v1  ;;  %v18122_v8 = vsel %vm3272_vm4, %v2769_v63, %v3389_v33  ;;  %v4654_v48 = vsel %vm3282_vm9, %v3980_v21, %v4653_v31  ;;  %v928_v61 = vadd.f32 %v17620_v16, %v17404_v44  ;;  %v920_v11 = vadd.f32 %v17620_v16, %v17418_v37 }
 0x183   : > { %24730 = vst [vmem:[#allocation112_spill] sm:$0xff] %v18122_v8  ;;  %v18144_v51 = vcombine.high %v18044_v25, %v18044_v25  ;;  %v4084_v63 = vrot.slane %v1751_v56, %v16831_v59  ;;  %4807 = vrot.lane.b32.xlu0 %v4654_v48, %s16666_s12  ;;  %14882 = vmatpush3.bf16.msra.mxu1 %v16301_v17  ;;  %v1065_v31 = vmax.f32 %v915_v14, 0.0  ;;  %v1063_v44 = vmax.f32 %v907_v35, 0.0  ;;  %v18173_v14 = vpop.f32.mrb[60].mxu0 }
 0x184   : > { %v18154_v37 = vcombine.high %v18064_v45, %v18064_v45  ;;  %v1068_v21 = vmax.f32 %v928_v61, 0.0  ;;  %14883 = vmatprep.subr.bf16.mxu1 %v16302_v39  ;;  %v4080_v33 = vrot.slane %v18037_v60, %v16831_v59  ;;  %v1066_v52 = vmax.f32 %v920_v11, 0.0 }
 0x185   : > { %24731 = vst [vmem:[#allocation113_spill] sm:$0xff] %v18144_v51  ;;  %v4052_v60 = vrot.slane %v18074_v42, %v16831_v59  ;;  %v4048_v35 = vrot.slane %v18047_v57, %v16831_v59  ;;  %v1753_v9 = vcombine.high %v1065_v31, %v1065_v31  ;;  %v18182_v17 = vrot.slane %v1065_v31, %v16825_v49 }
 0x186   : > { %24732 = vst [vmem:[#allocation114_spill] sm:$0xff] %v18154_v37  ;;  %v4676_v56 = vsel %vm3270_vm3, %v4084_v63, %v4080_v33  ;;  %v1804_v39 = vcombine.high %v1068_v21, %v1068_v21  ;;  %v1811_v63 = vrot.slane %v1068_v21, %v16825_v49  ;;  %v931_v42 = vadd.f32 %v17620_v16, %v17428_v4 }
 0x187   : > { %24733 = vst [vmem:[#allocation115_spill] sm:$0xff] %v18182_v17  ;;  %v1719_v33 = vcombine.high %v1063_v44, %v1063_v44  ;;  %v1770_v40 = vcombine.high %v1066_v52, %v1066_v52  ;;  %v18191_v57 = vrot.slane %v1066_v52, %v16825_v49  ;;  %v18196_v61 = vsel %vm3270_vm3, %v4052_v60, %v4048_v35  ;;  %v16303_v60 = vld [vmem:[%s24334_s3 + $0xf8] sm:$0xff]   ;;  %v18213_v35 = vpop.f32.mrb[61].mxu0 }
 0x188   : > { %v18188_v12 = vrot.slane %v1804_v39, %v16825_v49  ;;  %v18199_v31 = vrot.slane %v1063_v44, %v16825_v49  ;;  %v1819_v21 = vcombine.high %v1811_v63, %v1811_v63  ;;  %v923_v52 = vadd.f32 %v17620_v16, %v17439_v23  ;;  %14884 = vmatpush3.bf16.msra.mxu1 %v16303_v60 }
 0x189   : > { %v18204_v39 = vrot.slane %v1770_v40, %v16825_v49  ;;  %v944_v48 = vadd.f32 %v17620_v16, %v17486_v3  ;;  %v18217_v44 = vcombine.high %v18182_v17, %v18182_v17  ;;  %v2857_v11 = vrot.slane %v1811_v63, %v16829_v58 }
 0x18a   : > { %24734 = vst [vmem:[#allocation116_spill] sm:$0xff] %v18199_v31  ;;  %v2865_v4 = vrot.slane %v18188_v12, %v16829_v58  ;;  %v2861_v40 = vrot.slane %v1819_v21, %v16829_v58  ;;  %v1785_v23 = vcombine.high %v18191_v57, %v18191_v57  ;;  %v18224_v8 = vrot.slane %v1753_v9, %v16825_v49 }
 0x18b   : > { %24735 = vst [vmem:[#allocation117_spill] sm:$0xff] %v18204_v39  ;;  %24736 = vst [vmem:[#allocation118_spill] sm:$0xff] %v18217_v44  ;;  %v18227_v3 = vrot.slane %v1719_v33, %v16825_v49  ;;  %v2833_v28 = vrot.slane %v18204_v39, %v16829_v58  ;;  %v1069_v26 = vmax.f32 %v931_v42, 0.0  ;;  %v18233_v47 = vcombine.high %v18199_v31, %v18199_v31 }
 0x18c   : > { %24737 = vst [vmem:[#allocation119_spill] sm:$0xff] %v18224_v8  ;;  %v3410_v36 = vsel %vm3270_vm3, %v2861_v40, %v2857_v11  ;;  %v2825_v27 = vrot.slane %v18191_v57, %v16829_v58  ;;  %v2829_v9 = vrot.slane %v1785_v23, %v16829_v58  ;;  %v4096_v1 = vrot.slane %v18182_v17, %v16831_v59  ;;  %v18296_v40 = vpop.f32.mrb[62].mxu0 }
 0x18d   : > { %24738 = vst [vmem:[#allocation120_spill] sm:$0xff] %v18227_v3  ;;  %24739 = vst [vmem:[#allocation121_spill] sm:$0xff] %v18233_v47  ;;  %v18244_v42 = vsel %vm3272_vm4, %v2865_v4, %v3410_v36  ;;  %v18246_v60 = vmax.f32 %v923_v52, 0.0  ;;  %v18259_v36 = vcombine.high %v18188_v12, %v18188_v12  ;;  %v4148_v4 = vrot.slane %v1819_v21, %v16831_v59 }
 0x18e   : > { %24740 = vst [vmem:[#allocation122_spill] sm:$0xff] %v18244_v42  ;;  %v3403_v5 = vsel %vm3270_vm3, %v2829_v9, %v2825_v27  ;;  %v4100_v11 = vrot.slane %v18217_v44, %v16831_v59  ;;  %v18273_v9 = vcombine.high %v18204_v39, %v18204_v39  ;;  %v4144_v21 = vrot.slane %v1811_v63, %v16831_v59  ;;  %v18322_v44 = vpop.f32.mrb[63].mxu0 }
 0x18f   : > { %24741 = vst [vmem:[#allocation123_spill] sm:$0xff] %v18259_v36  ;;  %v18263_v52 = vsel %vm3272_vm4, %v2833_v28, %v3403_v5  ;;  %v1072_v5 = vmax.f32 %v944_v48, 0.0  ;;  %v936_v28 = vadd.f32 %v17620_v16, %v17496_v34  ;;  %v1821_v54 = vcombine.high %v1069_v26, %v1069_v26  ;;  %24746 = vst [vmem:[#allocation127_spill] sm:$0xff] %v18296_v40 }
 0x190   : > { %24742 = vst [vmem:[#allocation124_spill] sm:$0xff] %v18263_v52  ;;  %24743 = vst [vmem:[#allocation125_spill] sm:$0xff] %v18273_v9  ;;  %v18283_v52 = vrot.slane %v1069_v26, %v16825_v49  ;;  %v24745_v27 = vrot.slane %v18044_v25, %v16831_v59  ;;  %v18294_v34 = vsel %vm3270_vm3, %v4148_v4, %v4144_v21 }
 0x191   : > { %v1872_v63 = vcombine.high %v1072_v5, %v1072_v5  ;;  %v4112_v25 = vrot.slane %v18191_v57, %v16831_v59  ;;  %v4116_v33 = vrot.slane %v1785_v23, %v16831_v59  ;;  %v24747_v21 = vrot.slane %v18144_v51, %v16831_v59  ;;  %24749 = vst [vmem:[#allocation129_spill] sm:$0xff] %v18322_v44 }
 0x192   : > { %24744 = vst [vmem:[#allocation126_spill] sm:$0xff] %v18283_v52  ;;  %v4677_v42 = vsel %vm3272_vm4, %v24745_v27, %v4676_v56  ;;  %v18303_v56 = vrot.slane %v1072_v5, %v16825_v49  ;;  %v1070_v27 = vmax.f32 %v936_v28, 0.0  ;;  %v18318_v5 = vrot.slane %v1821_v54, %v16825_v49 }
 0x193   : > { %v18309_v4 = vrot.slane %v1872_v63, %v16825_v49  ;;  %v4678_v26 = vsel %vm3274_vm5, %v24747_v21, %v4677_v42  ;;  %v18326_v63 = vcombine.high %v18283_v52, %v18283_v52  ;;  %v18335_v54 = vcombine.high %v18224_v8, %v18224_v8 }
 0x194   : > { %24748 = vst [vmem:[#allocation128_spill] sm:$0xff] %v18318_v5  ;;  %v1887_v23 = vcombine.high %v18303_v56, %v18303_v56  ;;  %v1838_v28 = vcombine.high %v1070_v27, %v1070_v27  ;;  %v18331_v42 = vrot.slane %v1070_v27, %v16825_v49  ;;  %v2921_v21 = vrot.slane %v18303_v56, %v16829_v58 }
 0x195   : > { %24750 = vst [vmem:[#allocation130_spill] sm:$0xff] %v18326_v63  ;;  %v2929_v48 = vrot.slane %v18309_v4, %v16829_v58  ;;  %24751 = vst [vmem:[#allocation131_spill] sm:$0xff] %v18335_v54  ;;  %v4679_v51 = vsel %vm3276_vm6, %v4096_v1, %v4678_v26  ;;  %v18345_v9 = vsel %vm3270_vm3, %v4116_v33, %v4112_v25 }
 0x196   : > { %v2925_v57 = vrot.slane %v1887_v23, %v16829_v58  ;;  %v18341_v17 = vrot.slane %v1838_v28, %v16825_v49  ;;  %24752 = vst [vmem:[#allocation132_spill] sm:$0xff] %v18345_v9  ;;  %v1787_v27 = vcombine.high %v18246_v60, %v18246_v60  ;;  %v18351_v39 = vrot.slane %v18246_v60, %v16825_v49 }
 0x197   : > { %v18355_v44 = vcombine.high %v18331_v42, %v18331_v42  ;;  %v2889_v60 = vrot.slane %v18331_v42, %v16829_v58  ;;  %v4104_v28 = vrot.slane %v18224_v8, %v16831_v59 }
 0x198   : > { %24753 = vst [vmem:[#allocation133_spill] sm:$0xff] %v18351_v39  ;;  %v3424_v33 = vsel %vm3270_vm3, %v2925_v57, %v2921_v21  ;;  %v2897_v26 = vrot.slane %v18341_v17, %v16829_v58  ;;  %v4108_v57 = vrot.slane %v18335_v54, %v16831_v59  ;;  %v4680_v21 = vsel %vm3278_vm7, %v4100_v11, %v4679_v51 }
 0x199   : > { %v18365_v25 = vsel %vm3272_vm4, %v2929_v48, %v3424_v33  ;;  %v2893_v9 = vrot.slane %v18355_v44, %v16829_v58  ;;  %v947_v48 = vadd.f32 %v17620_v16, %v17505_v24  ;;  %v18381_v33 = vrot.slane %v1787_v27, %v16825_v49 }
 0x19a   : > { %24754 = vst [vmem:[#allocation134_spill] sm:$0xff] %v18365_v25  ;;  %v18385_v25 = vcombine.high %v18351_v39, %v18351_v39  ;;  %v4681_v40 = vsel %vm3280_vm8, %v4104_v28, %v4680_v21  ;;  %v960_v24 = vadd.f32 %v17620_v16, %v17559_v41  ;;  %v4212_v41 = vrot.slane %v1887_v23, %v16831_v59 }
 0x19b   : > { %24755 = vst [vmem:[#allocation135_spill] sm:$0xff] %v18381_v33  ;;  %v3417_v8 = vsel %vm3270_vm3, %v2893_v9, %v2889_v60  ;;  %v4682_v51 = vsel %vm3282_vm9, %v4108_v57, %v4681_v40  ;;  %v18403_v9 = vcombine.high %v18309_v4, %v18309_v4  ;;  %v1073_v28 = vmax.f32 %v947_v48, 0.0 }
 0x19c   : > { %24756 = vst [vmem:[#allocation136_spill] sm:$0xff] %v18385_v25  ;;  %v18392_v54 = vsel %vm3272_vm4, %v2897_v26, %v3417_v8  ;;  %4815 = vrot.lane.b32.xlu1 %v4682_v51, %s16666_s12  ;;  %v952_v8 = vadd.f32 %v17620_v16, %v17572_v19  ;;  %v1076_v26 = vmax.f32 %v960_v24, 0.0  ;;  %v18419_v51 = vcombine.high %v18341_v17, %v18341_v17 }
 0x19d   : > { %24757 = vst [vmem:[#allocation137_spill] sm:$0xff] %v18392_v54  ;;  %24758 = vst [vmem:[#allocation138_spill] sm:$0xff] %v18403_v9  ;;  %v4208_v19 = vrot.slane %v18303_v56, %v16831_v59  ;;  %v939_v23 = vadd.f32 %v17620_v16, %v17513_v46  ;;  %v4176_v46 = vrot.slane %v18331_v42, %v16831_v59 }
 0x19e   : > { %24759 = vst [vmem:[#allocation139_spill] sm:$0xff] %v18419_v51  ;;  %v1940_v48 = vcombine.high %v1076_v26, %v1076_v26  ;;  %v18426_v24 = vrot.slane %v1076_v26, %v16825_v49  ;;  %v1074_v1 = vmax.f32 %v952_v8, 0.0  ;;  %v1889_v56 = vcombine.high %v1073_v28, %v1073_v28 }
 0x19f   : > { %v18435_v21 = vsel %vm3270_vm3, %v4212_v41, %v4208_v19  ;;  %v18440_v26 = vrot.slane %v1073_v28, %v16825_v49  ;;  %v4180_v40 = vrot.slane %v18355_v44, %v16831_v59  ;;  %v1071_v28 = vmax.f32 %v939_v23, 0.0 }
 0x1a0   : > { %v18447_v60 = vrot.slane %v1940_v48, %v16825_v49  ;;  %v18451_v8 = vcombine.high %v18426_v24, %v18426_v24  ;;  %v1906_v19 = vcombine.high %v1074_v1, %v1074_v1  ;;  %v2985_v57 = vrot.slane %v18426_v24, %v16829_v58 }
 0x1a1   : > { %24760 = vst [vmem:[#allocation140_spill] sm:$0xff] %v18440_v26  ;;  %v24761_v27 = vrot.slane %v18188_v12, %v16831_v59  ;;  %v18469_v11 = vrot.slane %v1889_v56, %v16825_v49  ;;  %v18473_v23 = vcombine.high %v18440_v26, %v18440_v26  ;;  %v18476_v41 = vrot.slane %v1074_v1, %v16825_v49 }
 0x1a2   : > { %v2989_v44 = vrot.slane %v18451_v8, %v16829_v58  ;;  %v2993_v48 = vrot.slane %v18447_v60, %v16829_v58  ;;  %v18479_v54 = vrot.slane %v1906_v19, %v16825_v49  ;;  %v18482_v25 = vsel %vm3270_vm3, %v4180_v40, %v4176_v46 }
 0x1a3   : > { %v4691_v42 = vsel %vm3272_vm4, %v24761_v27, %v18294_v34  ;;  %24762 = vst [vmem:[#allocation141_spill] sm:$0xff] %v18469_v11  ;;  %24763 = vst [vmem:[#allocation142_spill] sm:$0xff] %v18473_v23  ;;  %v18487_v34 = vcombine.high %v18318_v5, %v18318_v5  ;;  %v4168_v27 = vrot.slane %v18318_v5, %v16831_v59 }
 0x1a4   : > { %24764 = vst [vmem:[#allocation143_spill] sm:$0xff] %v18479_v54  ;;  %v3438_v12 = vsel %vm3270_vm3, %v2989_v44, %v2985_v57  ;;  %v18500_v40 = vcombine.high %v18476_v41, %v18476_v41  ;;  %v1855_v57 = vcombine.high %v1071_v28, %v1071_v28  ;;  %v18503_v46 = vrot.slane %v1071_v28, %v16825_v49 }
 0x1a5   : > { %24765 = vst [vmem:[#allocation144_spill] sm:$0xff] %v18487_v34  ;;  %v18496_v19 = vsel %vm3272_vm4, %v2993_v48, %v3438_v12  ;;  %v2961_v44 = vrot.slane %v18479_v54, %v16829_v58  ;;  %v24768_v56 = vrot.slane %v18259_v36, %v16831_v59  ;;  %v2953_v1 = vrot.slane %v18476_v41, %v16829_v58 }
 0x1a6   : > { %24766 = vst [vmem:[#allocation145_spill] sm:$0xff] %v18496_v19  ;;  %24767 = vst [vmem:[#allocation146_spill] sm:$0xff] %v18503_v46  ;;  %v2957_v28 = vrot.slane %v18500_v40, %v16829_v58  ;;  %v24769_v36 = vrot.slane %v18283_v52, %v16831_v59  ;;  %v976_v12 = vadd.f32 %v17620_v16, %v17650_v6 }
 0x1a7   : > { %v4692_v5 = vsel %vm3274_vm5, %v24768_v56, %v4691_v42  ;;  %v963_v56 = vadd.f32 %v17620_v16, %v17586_v22  ;;  %v4172_v39 = vrot.slane %v18487_v34, %v16831_v59  ;;  %v24770_v33 = vrot.slane %v18326_v63, %v16831_v59 }
 0x1a8   : > { %v4693_v42 = vsel %vm3276_vm6, %v24769_v36, %v4692_v5  ;;  %v3431_v48 = vsel %vm3270_vm3, %v2957_v28, %v2953_v1  ;;  %v968_v52 = vadd.f32 %v17620_v16, %v17658_v0  ;;  %v18540_v36 = vcombine.high %v18503_v46, %v18503_v46 }
 0x1a9   : > { %v4694_v19 = vsel %vm3278_vm7, %v24770_v33, %v4693_v42  ;;  %v18543_v22 = vsel %vm3272_vm4, %v2961_v44, %v3431_v48  ;;  %v955_v5 = vadd.f32 %v17620_v16, %v17598_v43  ;;  %v18550_v1 = vcombine.high %v18447_v60, %v18447_v60 }
 0x1aa   : > { %24771 = vst [vmem:[#allocation147_spill] sm:$0xff] %v18540_v36  ;;  %24772 = vst [vmem:[#allocation148_spill] sm:$0xff] %v18543_v22  ;;  %v4695_v6 = vsel %vm3280_vm8, %v4168_v27, %v4694_v19  ;;  %v1080_v28 = vmax.f32 %v976_v12, 0.0  ;;  %v1078_v0 = vmax.f32 %v968_v52, 0.0  ;;  %v18554_v42 = vrot.slane %v1855_v57, %v16825_v49 }
 0x1ab   : > { %24773 = vst [vmem:[#allocation149_spill] sm:$0xff] %v18550_v1  ;;  %v4696_v33 = vsel %vm3282_vm9, %v4172_v39, %v4695_v6  ;;  %v1077_v43 = vmax.f32 %v963_v56, 0.0  ;;  %v4272_v16 = vrot.slane %v18426_v24, %v16831_v59  ;;  %v4276_v39 = vrot.slane %v18451_v8, %v16831_v59  ;;  %v16304_v24 = vld [vmem:[%s24334_s3 + $0x1c0] sm:$0xff]  }
 0x1ac   : > { %24774 = vst [vmem:[#allocation150_spill] sm:$0xff] %v18554_v42  ;;  %4819 = vrot.lane.b32.xlu0 %v4696_v33, %s16666_s12  ;;  %v2008_v19 = vcombine.high %v1080_v28, %v1080_v28  ;;  %v18566_v52 = vrot.slane %v1080_v28, %v16825_v49  ;;  %v18574_v12 = vcombine.high %v18479_v54, %v18479_v54  ;;  %v1075_v56 = vmax.f32 %v955_v5, 0.0  ;;  %v16305_v8 = vld [vmem:[%s24334_s3 + $0x180] sm:$0xff]  }
 0x1ad   : > { %v1974_v57 = vcombine.high %v1078_v0, %v1078_v0  ;;  %v4244_v5 = vrot.slane %v18500_v40, %v16831_v59  ;;  %v18591_v44 = vrot.slane %v1077_v43, %v16825_v49  ;;  %v18597_v27 = vrot.slane %v1078_v0, %v16825_v49  ;;  %15029 = vmatprep.subr.bf16.mxu0 %v16304_v24 }
 0x1ae   : > { %24775 = vst [vmem:[#allocation151_spill] sm:$0xff] %v18574_v12  ;;  %v18594_v48 = vrot.slane %v2008_v19, %v16825_v49  ;;  %v18600_v6 = vsel %vm3270_vm3, %v4276_v39, %v4272_v16  ;;  %v4240_v28 = vrot.slane %v18476_v41, %v16831_v59  ;;  %v1957_v33 = vcombine.high %v1077_v43, %v1077_v43  ;;  %v16306_v41 = vld [vmem:[%s24334_s3 + $0x1c8] sm:$0xff]  }
 0x1af   : > { %24776 = vst [vmem:[#allocation152_spill] sm:$0xff] %v18591_v44  ;;  %v18606_v40 = vcombine.high %v18566_v52, %v18566_v52  ;;  %15030 = vmatpush3.bf16.msra.mxu0 %v16305_v8  ;;  %v1923_v22 = vcombine.high %v1075_v56, %v1075_v56  ;;  %v16307_v43 = vld [vmem:[%s24334_s3 + $0x188] sm:$0xff]   ;;  %v18621_v39 = vrot.slane %v1075_v56, %v16825_v49 }
 0x1b0   : > { %v3057_v16 = vrot.slane %v18594_v48, %v16829_v58  ;;  %v3049_v24 = vrot.slane %v18566_v52, %v16829_v58  ;;  %v18628_v19 = vrot.slane %v1974_v57, %v16825_v49  ;;  %v18633_v34 = vsel %vm3270_vm3, %v4244_v5, %v4240_v28  ;;  %15031 = vmatprep.subr.bf16.mxu0 %v16306_v41 }
 0x1b1   : > { %24777 = vst [vmem:[#allocation153_spill] sm:$0xff] %v18621_v39  ;;  %v3053_v8 = vrot.slane %v18606_v40, %v16829_v58  ;;  %24778 = vst [vmem:[#allocation154_spill] sm:$0xff] %v18633_v34  ;;  %v18637_v63 = vcombine.high %v18591_v44, %v18591_v44  ;;  %v18641_v56 = vcombine.high %v18597_v27, %v18597_v27 }
 0x1b2   : > { %v18644_v54 = vrot.slane %v1957_v33, %v16825_v49  ;;  %v3025_v0 = vrot.slane %v18628_v19, %v16829_v58  ;;  %v18651_v28 = vcombine.high %v18469_v11, %v18469_v11  ;;  %v3017_v33 = vrot.slane %v18597_v27, %v16829_v58 }
 0x1b3   : > { %24779 = vst [vmem:[#allocation155_spill] sm:$0xff] %v18637_v63  ;;  %v3452_v57 = vsel %vm3270_vm3, %v3053_v8, %v3049_v24  ;;  %15032 = vmatpush3.bf16.msra.mxu0 %v16307_v43  ;;  %v3021_v41 = vrot.slane %v18641_v56, %v16829_v58  ;;  %v18665_v24 = vld [vmem:[%s24334_s3 + $0x140] sm:$0xff]   ;;  %v16309_v43 = vld [vmem:[%s24334_s3 + $0x1d0] sm:$0xff]   ;;  %v18680_v5 = vcombine.high %v18621_v39, %v18621_v39  ;;  %v24806_v39 = vld [vmem:[#allocation84_spill] sm:$0xff] }
 0x1b4   : > { %24780 = vst [vmem:[#allocation156_spill] sm:$0xff] %v18644_v54  ;;  %24781 = vst [vmem:[#allocation157_spill] sm:$0xff] %v18651_v28  ;;  %v18656_v12 = vsel %vm3272_vm4, %v3057_v16, %v3452_v57  ;;  %v16310_v16 = vld [vmem:[%s24334_s3 + $0x190] sm:$0xff]   ;;  %v18676_v57 = vrot.slane %v1923_v22, %v16825_v49  ;;  %v24785_v22 = vrot.slane %v18309_v4, %v16831_v59  ;;  %15703 = vmatprep.subr.bf16.mxu1 %v18665_v24 }
 0x1b5   : > { %24782 = vst [vmem:[#allocation158_spill] sm:$0xff] %v18656_v12  ;;  %24784 = vst [vmem:[#allocation160_spill] sm:$0xff] %v18680_v5  ;;  %v3445_v46 = vsel %vm3270_vm3, %v3021_v41, %v3017_v33  ;;  %v4232_v34 = vrot.slane %v18469_v11, %v16831_v59  ;;  %v24787_v33 = vrot.slane %v18403_v9, %v16831_v59  ;;  %15033 = vmatprep.subr.bf16.mxu0 %v16309_v43  ;;  %v24792_v43 = vld [vmem:[#allocation77_spill] sm:$0xff] }
 0x1b6   : > { %24783 = vst [vmem:[#allocation159_spill] sm:$0xff] %v18676_v57  ;;  %v4705_v8 = vsel %vm3272_vm4, %v24785_v22, %v18435_v21  ;;  %v18698_v12 = vsel %vm3272_vm4, %v3025_v0, %v3445_v46  ;;  %v24788_v4 = vrot.slane %v18440_v26, %v16831_v59  ;;  %v18713_v22 = vld [vmem:[%s24333_s2] ss:$0 sm:$0xff]  ;;  %v4296_v26 = vrot.slane %v18644_v54, %v16831_v59 }
 0x1b7   : > { %24786 = vst [vmem:[#allocation161_spill] sm:$0xff] %v18698_v12  ;;  %v4706_v41 = vsel %vm3274_vm5, %v24787_v33, %v4705_v8  ;;  %v979_v46 = vadd.f32 %v18713_v22, %v17666_v20  ;;  %v992_v0 = vadd.f32 %v18713_v22, %v17722_v18  ;;  %v984_v8 = vadd.f32 %v18713_v22, %v17734_v55 }
 0x1b8   : > { %v4707_v21 = vsel %vm3276_vm6, %v24788_v4, %v4706_v41  ;;  %15034 = vmatpush3.bf16.msra.mxu0 %v16310_v16  ;;  %v4236_v41 = vrot.slane %v18651_v28, %v16831_v59  ;;  %v24789_v4 = vrot.slane %v18473_v23, %v16831_v59  ;;  %v18733_v18 = vcombine.high %v18594_v48, %v18594_v48 }
 0x1b9   : > { %v4340_v55 = vrot.slane %v18606_v40, %v16831_v59  ;;  %v1084_v51 = vmax.f32 %v992_v0, 0.0  ;;  %v18740_v33 = vcombine.high %v18628_v19, %v18628_v19  ;;  %v971_v12 = vadd.f32 %v18713_v22, %v24792_v43 }
 0x1ba   : > { %v4708_v20 = vsel %vm3278_vm7, %v24789_v4, %v4707_v21  ;;  %24790 = vst [vmem:[#allocation162_spill] sm:$0xff] %v18733_v18  ;;  %v1082_v21 = vmax.f32 %v984_v8, 0.0  ;;  %v4336_v4 = vrot.slane %v18566_v52, %v16831_v59  ;;  %v1081_v11 = vmax.f32 %v979_v46, 0.0 }
 0x1bb   : > { %v4709_v16 = vsel %vm3280_vm8, %v4232_v34, %v4708_v20  ;;  %24791 = vst [vmem:[#allocation163_spill] sm:$0xff] %v18740_v33  ;;  %v2076_v40 = vcombine.high %v1084_v51, %v1084_v51  ;;  %v18749_v34 = vrot.slane %v1084_v51, %v16825_v49  ;;  %v4308_v8 = vrot.slane %v18641_v56, %v16831_v59 }
 0x1bc   : > { %v4710_v36 = vsel %vm3282_vm9, %v4236_v41, %v4709_v16  ;;  %v18764_v51 = vsel %vm3270_vm3, %v4340_v55, %v4336_v4  ;;  %v4304_v46 = vrot.slane %v18597_v27, %v16831_v59  ;;  %v1079_v16 = vmax.f32 %v971_v12, 0.0  ;;  %v16314_v55 = vld [vmem:[%s24334_s3 + $0x198] sm:$0xff]  }
 0x1bd   : > { %4823 = vrot.lane.b32.xlu1 %v4710_v36, %s16666_s12  ;;  %v18771_v0 = vrot.slane %v2076_v40, %v16825_v49  ;;  %v2042_v56 = vcombine.high %v1082_v21, %v1082_v21  ;;  %v16313_v36 = vld [vmem:[%s24334_s3 + $0x1d8] sm:$0xff]   ;;  %v18782_v27 = vrot.slane %v1081_v11, %v16825_v49  ;;  %v2091_v12 = vcombine.high %v18749_v34, %v18749_v34 }
 0x1be   : > { %v18788_v40 = vcombine.high %v18644_v54, %v18644_v54  ;;  %v18793_v41 = vsel %vm3270_vm3, %v4308_v8, %v4304_v46  ;;  %v2025_v52 = vcombine.high %v1081_v11, %v1081_v11  ;;  %15035 = vmatprep.subr.bf16.mxu0 %v16313_v36  ;;  %v3113_v43 = vrot.slane %v18749_v34, %v16829_v58 }
 0x1bf   : > { %v3121_v4 = vrot.slane %v18771_v0, %v16829_v58  ;;  %v3117_v28 = vrot.slane %v2091_v12, %v16829_v58  ;;  %v18801_v23 = vrot.slane %v1082_v21, %v16825_v49  ;;  %15036 = vmatpush3.bf16.msra.mxu0 %v16314_v55  ;;  %v1991_v20 = vcombine.high %v1079_v16, %v1079_v16 }
 0x1c0   : > { %24793 = vst [vmem:[#allocation77_spill] sm:$0xff] %v18788_v40  ;;  %v18806_v8 = vrot.slane %v1079_v16, %v16825_v49  ;;  %v18809_v11 = vrot.slane %v2042_v56, %v16825_v49  ;;  %v24796_v36 = vrot.slane %v18447_v60, %v16831_v59  ;;  %v18818_v21 = vcombine.high %v18782_v27, %v18782_v27 }
 0x1c1   : > { %v3466_v54 = vsel %vm3270_vm3, %v3117_v28, %v3113_v43  ;;  %v2057_v55 = vcombine.high %v18801_v23, %v18801_v23  ;;  %v4300_v16 = vrot.slane %v18788_v40, %v16831_v59  ;;  %v18826_v56 = vrot.slane %v2025_v52, %v16825_v49 }
 0x1c2   : > { %24794 = vst [vmem:[#allocation164_spill] sm:$0xff] %v18806_v8  ;;  %24795 = vst [vmem:[#allocation165_spill] sm:$0xff] %v18809_v11  ;;  %v4719_v46 = vsel %vm3272_vm4, %v24796_v36, %v18600_v6  ;;  %v18831_v6 = vsel %vm3272_vm4, %v3121_v4, %v3466_v54  ;;  %v3089_v36 = vrot.slane %v18809_v11, %v16829_v58 }
 0x1c3   : > { %24797 = vst [vmem:[#allocation166_spill] sm:$0xff] %v18818_v21  ;;  %24798 = vst [vmem:[#allocation167_spill] sm:$0xff] %v18826_v56  ;;  %v3081_v43 = vrot.slane %v18801_v23, %v16829_v58  ;;  %v3085_v40 = vrot.slane %v2057_v55, %v16829_v58  ;;  %v24800_v52 = vrot.slane %v18550_v1, %v16831_v59 }
 0x1c4   : > { %24799 = vst [vmem:[#allocation168_spill] sm:$0xff] %v18831_v6  ;;  %v18845_v60 = vrot.slane %v1991_v20, %v16825_v49  ;;  %v18849_v54 = vcombine.high %v18806_v8, %v18806_v8  ;;  %v24803_v28 = vrot.slane %v18591_v44, %v16831_v59  ;;  %v18876_v1 = vcombine.high %v18771_v0, %v18771_v0 }
 0x1c5   : > { %v4720_v9 = vsel %vm3274_vm5, %v24800_v52, %v4719_v46  ;;  %v3459_v20 = vsel %vm3270_vm3, %v3085_v40, %v3081_v43  ;;  %v24804_v52 = vrot.slane %v18637_v63, %v16831_v59  ;;  %v4404_v40 = vrot.slane %v2091_v12, %v16831_v59 }
 0x1c6   : > { %24801 = vst [vmem:[#allocation169_spill] sm:$0xff] %v18845_v60  ;;  %24802 = vst [vmem:[#allocation170_spill] sm:$0xff] %v18849_v54  ;;  %v4721_v6 = vsel %vm3276_vm6, %v24803_v28, %v4720_v9  ;;  %v18867_v4 = vsel %vm3272_vm4, %v3089_v36, %v3459_v20  ;;  %v995_v9 = vadd.f32 %v18713_v22, %v24806_v39 }
 0x1c7   : > { %v4722_v5 = vsel %vm3278_vm7, %v24804_v52, %v4721_v6  ;;  %24805 = vst [vmem:[#allocation171_spill] sm:$0xff] %v18867_v4  ;;  %v1008_v28 = vadd.f32 %v18713_v22, %v17818_v53  ;;  %24807 = vst [vmem:[#allocation84_spill] sm:$0xff] %v18876_v1  ;;  %v1000_v6 = vadd.f32 %v18713_v22, %v17828_v29  ;;  %v24808_v53 = vld [vmem:[#allocation85_spill] sm:$0xff] }
 0x1c8   : > { %v4723_v44 = vsel %vm3280_vm8, %v4296_v26, %v4722_v5  ;;  %v4356_v39 = vrot.slane %v18818_v21, %v16831_v59  ;;  %v987_v5 = vadd.f32 %v18713_v22, %v24808_v53  ;;  %v4400_v29 = vrot.slane %v18749_v34, %v16831_v59 }
 0x1c9   : > { %v4724_v43 = vsel %vm3282_vm9, %v4300_v16, %v4723_v44  ;;  %v1088_v36 = vmax.f32 %v1008_v28, 0.0  ;;  %v18897_v16 = vcombine.high %v18809_v11, %v18809_v11  ;;  %v1085_v28 = vmax.f32 %v995_v9, 0.0 }
 0x1ca   : > { %4827 = vrot.lane.b32.xlu0 %v4724_v43, %s16666_s12  ;;  %v1086_v43 = vmax.f32 %v1000_v6, 0.0  ;;  %v4746_v34 = vsel %vm3270_vm3, %v4404_v40, %v4400_v29  ;;  %v4372_v12 = vrot.slane %v2057_v55, %v16831_v59  ;;  %v4368_v26 = vrot.slane %v18801_v23, %v16831_v59 }
 0x1cb   : > { %24809 = vst [vmem:[#allocation85_spill] sm:$0xff] %v18897_v16  ;;  %v1083_v46 = vmax.f32 %v987_v5, 0.0  ;;  %v2144_v52 = vcombine.high %v1088_v36, %v1088_v36  ;;  %v18918_v53 = vrot.slane %v1088_v36, %v16825_v49  ;;  %v18922_v55 = vcombine.high %v18826_v56, %v18826_v56 }
 0x1cc   : > { %v2093_v40 = vcombine.high %v1085_v28, %v1085_v28  ;;  %v2110_v29 = vcombine.high %v1086_v43, %v1086_v43  ;;  %v18928_v5 = vrot.slane %v1086_v43, %v16825_v49  ;;  %v18931_v9 = vsel %vm3270_vm3, %v4372_v12, %v4368_v26 }
 0x1cd   : > { %24810 = vst [vmem:[#allocation172_spill] sm:$0xff] %v18922_v55  ;;  %v18925_v23 = vrot.slane %v2144_v52, %v16825_v49  ;;  %24811 = vst [vmem:[#allocation173_spill] sm:$0xff] %v18931_v9  ;;  %v18934_v6 = vrot.slane %v1085_v28, %v16825_v49  ;;  %v2159_v36 = vcombine.high %v18918_v53, %v18918_v53 }
 0x1ce   : > { %v24813_v20 = vrot.slane %v18594_v48, %v16831_v59  ;;  %v2059_v44 = vcombine.high %v1083_v46, %v1083_v46  ;;  %v18946_v4 = vrot.slane %v2110_v29, %v16825_v49  ;;  %v4360_v26 = vrot.slane %v18826_v56, %v16831_v59 }
 0x1cf   : > { %24812 = vst [vmem:[#allocation174_spill] sm:$0xff] %v18934_v6  ;;  %v3185_v43 = vrot.slane %v18925_v23, %v16829_v58  ;;  %v18951_v12 = vrot.slane %v1083_v46, %v16825_v49  ;;  %v3177_v28 = vrot.slane %v18918_v53, %v16829_v58  ;;  %v3181_v48 = vrot.slane %v2159_v36, %v16829_v58 }
 0x1d0   : > { %v4733_v52 = vsel %vm3272_vm4, %v24813_v20, %v18764_v51  ;;  %v18958_v51 = vcombine.high %v18928_v5, %v18928_v5  ;;  %v18961_v20 = vrot.slane %v2093_v40, %v16825_v49  ;;  %v3153_v29 = vrot.slane %v18946_v4, %v16829_v58 }
 0x1d1   : > { %24814 = vst [vmem:[#allocation175_spill] sm:$0xff] %v18951_v12  ;;  %v4364_v56 = vrot.slane %v18922_v55, %v16831_v59  ;;  %v24816_v46 = vrot.slane %v18733_v18, %v16831_v59  ;;  %v18973_v63 = vcombine.high %v18934_v6, %v18934_v6  ;;  %v3480_v16 = vsel %vm3270_vm3, %v3181_v48, %v3177_v28  ;;  %v16317_v28 = vld [vmem:[%s24334_s3 + $0x1e0] sm:$0xff]  }
 0x1d2   : > { %24815 = vst [vmem:[#allocation176_spill] sm:$0xff] %v18961_v20  ;;  %v3145_v40 = vrot.slane %v18928_v5, %v16829_v58  ;;  %v3149_v11 = vrot.slane %v18958_v51, %v16829_v58  ;;  %v4416_v18 = vrot.slane %v18934_v6, %v16831_v59  ;;  %v16318_v48 = vld [vmem:[%s24334_s3 + $0x1a0] sm:$0xff]   ;;  %v18998_v55 = vcombine.high %v18951_v12, %v18951_v12 }
 0x1d3   : > { %v4734_v21 = vsel %vm3274_vm5, %v24816_v46, %v4733_v52  ;;  %24817 = vst [vmem:[#allocation177_spill] sm:$0xff] %v18973_v63  ;;  %v18985_v52 = vrot.slane %v2059_v44, %v16825_v49  ;;  %v18988_v46 = vsel %vm3272_vm4, %v3185_v43, %v3480_v16  ;;  %v24821_v44 = vrot.slane %v18782_v27, %v16831_v59 }
 0x1d4   : > { %24819 = vst [vmem:[#allocation179_spill] sm:$0xff] %v18988_v46  ;;  %24820 = vst [vmem:[#allocation180_spill] sm:$0xff] %v18998_v55  ;;  %v3473_v6 = vsel %vm3270_vm3, %v3149_v11, %v3145_v40  ;;  %v1011_v43 = vadd.f32 %v18713_v22, %v17862_v38  ;;  %15037 = vmatprep.subr.bf16.mxu0 %v16317_v28 }
 0x1d5   : > { %24818 = vst [vmem:[#allocation178_spill] sm:$0xff] %v18985_v52  ;;  %v4735_v16 = vsel %vm3276_vm6, %v24821_v44, %v4734_v21  ;;  %v19012_v52 = vsel %vm3272_vm4, %v3153_v29, %v3473_v6  ;;  %15038 = vmatpush3.bf16.msra.mxu0 %v16318_v48  ;;  %v19022_v44 = vcombine.high %v18925_v23, %v18925_v23 }
 0x1d6   : > { %24822 = vst [vmem:[#allocation181_spill] sm:$0xff] %v19012_v52  ;;  %v4736_v54 = vsel %vm3278_vm7, %v4356_v39, %v4735_v16  ;;  %v1089_v40 = vmax.f32 %v1011_v43, 0.0  ;;  %v4468_v6 = vrot.slane %v2159_v36, %v16831_v59  ;;  %v24823_v39 = vrot.slane %v18771_v0, %v16831_v59  ;;  %v24829_v52 = vld [vmem:[#allocation8_spill] sm:$0xff] }
 0x1d7   : > { %v4737_v38 = vsel %vm3280_vm8, %v4360_v26, %v4736_v54  ;;  %v19036_v26 = vcombine.high %v18961_v20, %v18961_v20  ;;  %v24825_v36 = vrot.slane %v18876_v1, %v16831_v59  ;;  %v4420_v0 = vrot.slane %v18973_v63, %v16831_v59  ;;  %v24840_v1 = vld [vmem:[#allocation40_spill] sm:$0xff] }
 0x1d8   : > { %v4738_v29 = vsel %vm3282_vm9, %v4364_v56, %v4737_v38  ;;  %v4747_v28 = vsel %vm3272_vm4, %v24823_v39, %v4746_v34  ;;  %v2161_v16 = vcombine.high %v1089_v40, %v1089_v40  ;;  %v19032_v54 = vrot.slane %v1089_v40, %v16825_v49  ;;  %v24826_v39 = vld [vmem:[#allocation19_spill] sm:$0xff] }
 0x1d9   : > { %4831 = vrot.lane.b32.xlu1 %v4738_v29, %s16666_s12  ;;  %24824 = vst [vmem:[#allocation182_spill] sm:$0xff] %v19036_v26  ;;  %v4748_v56 = vsel %vm3274_vm5, %v24825_v36, %v4747_v28  ;;  %v4464_v38 = vrot.slane %v18918_v53, %v16831_v59  ;;  %v19060_v28 = vcombine.high %v24826_v39, %v24826_v39 }
 0x1da   : > { %v4749_v43 = vsel %vm3276_vm6, %v4416_v18, %v4748_v56  ;;  %v19052_v40 = vrot.slane %v2161_v16, %v16825_v49  ;;  %v19056_v29 = vcombine.high %v19032_v54, %v19032_v54  ;;  %v4472_v36 = vrot.slane %v18925_v23, %v16831_v59 }
 0x1db   : > { %24827 = vst [vmem:[#allocation183_spill] sm:$0xff] %v19060_v28  ;;  %v4476_v18 = vrot.slane %v19022_v44, %v16831_v59  ;;  %v19068_v53 = vcombine.high %v18946_v4, %v18946_v4  ;;  %v4424_v16 = vrot.slane %v18961_v20, %v16831_v59  ;;  %v4760_v56 = vsel %vm3270_vm3, %v4468_v6, %v4464_v38  ;;  %v24828_v38 = vld [vmem:[#allocation15_spill] sm:$0xff] }
 0x1dc   : > { %v1003_v34 = vadd.f32 %v18713_v22, %v17873_v7  ;;  %v4428_v46 = vrot.slane %v19036_v26, %v16831_v59  ;;  %v4750_v23 = vsel %vm3278_vm7, %v4420_v0, %v4749_v43  ;;  %v4480_v21 = vrot.slane %v19032_v54, %v16831_v59 }
 0x1dd   : > { %v4484_v11 = vrot.slane %v19056_v29, %v16831_v59  ;;  %v4751_v48 = vsel %vm3280_vm8, %v4424_v16, %v4750_v23  ;;  %v3560_v9 = vrot.slane %v24826_v39, %v16831_v59  ;;  %v3564_v7 = vrot.slane %v19060_v28, %v16831_v59  ;;  %v24832_v16 = vld [vmem:[#allocation12_spill] sm:$0xff]  ;;  %v24834_v39 = vld [vmem:[#allocation46_spill] sm:$0xff] }
 0x1de   : > { %v4752_v6 = vsel %vm3282_vm9, %v4428_v46, %v4751_v48  ;;  %v24830_v0 = vrot.slane %v24829_v52, %v16831_v59  ;;  %v19095_v26 = vcombine.high %v19052_v40, %v19052_v40  ;;  %v24833_v23 = vrot.slane %v24832_v16, %v16831_v59 }
 0x1df   : > { %4835 = vrot.lane.b32.xlu0 %v4752_v6, %s16666_s12  ;;  %v4488_v48 = vrot.slane %v19052_v40, %v16831_v59  ;;  %v4761_v28 = vsel %vm3272_vm4, %v4472_v36, %v4760_v56  ;;  %v19107_v52 = vcombine.high %v24834_v39, %v24834_v39 }
 0x1e0   : > { %v4558_v43 = vsel %vm3272_vm4, %v24830_v0, %v24828_v38  ;;  %24831 = vst [vmem:[#allocation15_spill] sm:$0xff] %v19095_v26  ;;  %v24836_v38 = vld [vmem:[#allocation14_spill] sm:$0xff]  ;;  %v4492_v6 = vrot.slane %v19095_v26, %v16831_v59  ;;  %v4762_v63 = vsel %vm3274_vm5, %v4476_v18, %v4761_v28 }
 0x1e1   : > { %v4559_v46 = vsel %vm3274_vm5, %v24833_v23, %v4558_v43  ;;  %24835 = vst [vmem:[#allocation8_spill] sm:$0xff] %v19107_v52  ;;  %v24837_v0 = vrot.slane %v24836_v38, %v16831_v59  ;;  %v3688_v43 = vrot.slane %v24834_v39, %v16831_v59  ;;  %v24838_v23 = vld [vmem:[#allocation20_spill] sm:$0xff]  ;;  %v4763_v16 = vsel %vm3276_vm6, %v4480_v21, %v4762_v63  ;;  %v24843_v39 = vld [vmem:[#allocation37_spill] sm:$0xff]  ;;  %v24846_v63 = vld [vmem:[#allocation10_spill] sm:$0xff] }
 0x1e2   : > { %v24839_v36 = vrot.slane %v24838_v23, %v16831_v59  ;;  %v3692_v38 = vrot.slane %v19107_v52, %v16831_v59  ;;  %v4764_v18 = vsel %vm3278_vm7, %v4484_v11, %v4763_v16  ;;  %v24844_v23 = vrot.slane %v24843_v39, %v16831_v59  ;;  %v24848_v16 = vld [vmem:[#allocation41_spill] sm:$0xff] }
 0x1e3   : > { %v4560_v20 = vsel %vm3276_vm6, %v24837_v0, %v4559_v46  ;;  %v24841_v46 = vld [vmem:[#allocation30_spill] sm:$0xff]  ;;  %v24847_v21 = vrot.slane %v24846_v63, %v16829_v58  ;;  %v4765_v11 = vsel %vm3280_vm8, %v4488_v48, %v4764_v18  ;;  %v24854_v48 = vld [vmem:[#allocation17_spill] sm:$0xff] }
 0x1e4   : > { %v4561_v56 = vsel %vm3278_vm7, %v24839_v36, %v4560_v20  ;;  %v24842_v0 = vrot.slane %v24841_v46, %v16831_v59  ;;  %v24845_v36 = vld [vmem:[#allocation9_spill] sm:$0xff]  ;;  %v16321_v46 = vld [vmem:[%s24334_s3 + $0x1e8] sm:$0xff]   ;;  %v4766_v63 = vsel %vm3282_vm9, %v4492_v6, %v4765_v11  ;;  %v4784_v11 = vpop.permute.xlu0 %4783 }
 0x1e5   : > { %v4562_v28 = vsel %vm3280_vm8, %v3560_v9, %v4561_v56  ;;  %v3286_v52 = vsel %vm3274_vm5, %v24847_v21, %v24845_v36  ;;  %v24850_v56 = vld [vmem:[#allocation13_spill] sm:$0xff]  ;;  %v24852_v21 = vld [vmem:[#allocation47_spill] sm:$0xff]  ;;  %15039 = vmatprep.subr.bf16.mxu0 %v16321_v46  ;;  %4839 = vrot.lane.b32.xlu1 %v4766_v63, %s16666_s12  ;;  %v24862_v63 = vld [vmem:[#allocation18_spill] sm:$0xff] }
 0x1e6   : > { %v4586_v26 = vsel %vm3272_vm4, %v24842_v0, %v24840_v1  ;;  %v16322_v1 = vld [vmem:[%s24334_s3 + $0x1a8] sm:$0xff]   ;;  %v4563_v9 = vsel %vm3282_vm9, %v3564_v7, %v4562_v28  ;;  %v24851_v0 = vrot.slane %v24850_v56, %v16829_v58  ;;  %v24853_v39 = vrot.slane %v24852_v21, %v16831_v59  ;;  %v24878_v21 = vld [vmem:[#allocation57_spill] sm:$0xff] }
 0x1e7   : > { %v4587_v20 = vsel %vm3274_vm5, %v24844_v23, %v4586_v26  ;;  %v24849_v26 = vrot.slane %v24848_v16, %v16831_v59  ;;  %4781 = vrot.lane.b32.xlu0 %v4563_v9, %s16666_s12  ;;  %v24855_v28 = vrot.slane %v24854_v48, %v16829_v58  ;;  %v24864_v48 = vld [vmem:[#allocation72_spill] sm:$0xff]  ;;  %15040 = vmatpush3.bf16.msra.mxu0 %v16322_v1  ;;  %v16324_v1 = vld [vmem:[%s24334_s3 + $0x1b0] sm:$0xff]  }
 0x1e8   : > { %v3287_v36 = vsel %vm3276_vm6, %v24851_v0, %v3286_v52  ;;  %v19179_v0 = vmax.f32 %v1003_v34, 0.0 }
 0x1e9   : > { %v4588_v23 = vsel %vm3276_vm6, %v24849_v26, %v4587_v20  ;;  %v3288_v18 = vsel %vm3278_vm7, %v24855_v28, %v3287_v36  ;;  %v24856_v20 = vld [vmem:[#allocation16_spill] sm:$0xff]  ;;  %v24858_v26 = vld [vmem:[#allocation31_spill] sm:$0xff]  ;;  %v19189_v28 = vcombine.high %v24864_v48, %v24864_v48 }
 0x1ea   : > { %v4589_v7 = vsel %vm3278_vm7, %v24853_v39, %v4588_v23  ;;  %v24857_v9 = vrot.slane %v24856_v20, %v16829_v58  ;;  %v2309_v39 = vrot.slane %v24858_v26, %v16829_v58  ;;  %v24859_v23 = vld [vmem:[#allocation34_spill] sm:$0xff]  ;;  %v24861_v36 = vld [vmem:[#allocation27_spill] sm:$0xff] }
 0x1eb   : > { %v4590_v52 = vsel %vm3280_vm8, %v3688_v43, %v4589_v7  ;;  %v19177_v56 = vcombine.high %v24859_v23, %v24859_v23  ;;  %v24863_v43 = vrot.slane %v24862_v63, %v16831_v59  ;;  %24865 = vst [vmem:[#allocation30_spill] sm:$0xff] %v19189_v28  ;;  %v3624_v20 = vrot.slane %v24859_v23, %v16831_v59  ;;  %v16323_v26 = vld [vmem:[%s24334_s3 + $0x1f0] sm:$0xff]  }
 0x1ec   : > { %v3289_v6 = vsel %vm3280_vm8, %v24857_v9, %v3288_v18  ;;  %v4591_v46 = vsel %vm3282_vm9, %v3692_v38, %v4590_v52  ;;  %v24866_v38 = vld [vmem:[#allocation24_spill] sm:$0xff]  ;;  %15041 = vmatprep.subr.bf16.mxu0 %v16323_v26  ;;  %v24885_v26 = vld [vmem:[#allocation73_spill] sm:$0xff] }
 0x1ed   : > { %24860 = vst [vmem:[#allocation40_spill] sm:$0xff] %v19177_v56  ;;  %v4572_v7 = vsel %vm3272_vm4, %v24863_v43, %v24861_v36  ;;  %v3290_v18 = vsel %vm3282_vm9, %v2309_v39, %v3289_v6  ;;  %v3628_v34 = vrot.slane %v19177_v56, %v16831_v59  ;;  %v24867_v52 = vrot.slane %v24866_v38, %v16831_v59  ;;  %v24869_v39 = vld [vmem:[#allocation29_spill] sm:$0xff]  ;;  %v24883_v38 = vld [vmem:[#allocation43_spill] sm:$0xff] }
 0x1ee   : > { %4789 = vrot.lane.b32.xlu0 %v4591_v46, %s16666_s12  ;;  %v19208_v6 = vsel %vm4877_vm10, %v3290_v18, %v4784_v11  ;;  %v24870_v36 = vrot.slane %v24869_v39, %v16831_v59  ;;  %v3816_v43 = vrot.slane %v24864_v48, %v16831_v59  ;;  %v24874_v46 = vld [vmem:[#allocation33_spill] sm:$0xff]  ;;  %v3820_v39 = vrot.slane %v19189_v28, %v16831_v59  ;;  %v24882_v28 = vld [vmem:[#allocation56_spill] sm:$0xff] }
 0x1ef   : > { %v4573_v9 = vsel %vm3274_vm5, %v24867_v52, %v4572_v7  ;;  %24868 = vst [vmem:[#allocation9_spill] sm:$0xff] %v19208_v6  ;;  %v24871_v7 = vld [vmem:[#allocation65_spill] sm:$0xff]  ;;  %v24872_v52 = vld [vmem:[#allocation54_spill] sm:$0xff]  ;;  %4913 = vst [vmem:[#allocation2 + $0x30] sm:$0xff] %v19208_v6  ;;  %v24875_v11 = vrot.slane %v24874_v46, %v16831_v59  ;;  %15042 = vmatpush3.bf16.msra.mxu0 %v16324_v1 }
 0x1f0   : > { %v4574_v63 = vsel %vm3276_vm6, %v24870_v36, %v4573_v9  ;;  %v24873_v23 = vrot.slane %v24872_v52, %v16831_v59  ;;  %v24876_v9 = vld [vmem:[#allocation63_spill] sm:$0xff]  ;;  %v19234_v52 = vcombine.high %v24878_v21, %v24878_v21 }
 0x1f1   : > { %v4575_v18 = vsel %vm3278_vm7, %v24875_v11, %v4574_v63  ;;  %v24877_v36 = vrot.slane %v24876_v9, %v16831_v59  ;;  %v3752_v11 = vrot.slane %v24878_v21, %v16831_v59  ;;  %v24884_v9 = vrot.slane %v24883_v38, %v16831_v59  ;;  %v24890_v38 = vld [vmem:[#allocation52_spill] sm:$0xff] }
 0x1f2   : > { %v4614_v56 = vsel %vm3272_vm4, %v24873_v23, %v24871_v7  ;;  %24879 = vst [vmem:[#allocation10_spill] sm:$0xff] %v19234_v52  ;;  %v4576_v23 = vsel %vm3280_vm8, %v3624_v20, %v4575_v18  ;;  %v24880_v7 = vld [vmem:[#allocation67_spill] sm:$0xff]  ;;  %v24886_v20 = vrot.slane %v24885_v26, %v16831_v59  ;;  %v19259_v21 = vcombine.high %v17946_v50, %v17946_v50 }
 0x1f3   : > { %v4615_v48 = vsel %vm3274_vm5, %v24877_v36, %v4614_v56  ;;  %v24881_v46 = vrot.slane %v24880_v7, %v16831_v59  ;;  %v4600_v56 = vsel %vm3272_vm4, %v24884_v9, %v24882_v28  ;;  %v4577_v36 = vsel %vm3282_vm9, %v3628_v34, %v4576_v23  ;;  %v24887_v7 = vld [vmem:[#allocation50_spill] sm:$0xff] }
 0x1f4   : > { %24889 = vst [vmem:[#allocation41_spill] sm:$0xff] %v19259_v21  ;;  %4785 = vrot.lane.b32.xlu1 %v4577_v36, %s16666_s12  ;;  %v3756_v34 = vrot.slane %v19234_v52, %v16831_v59  ;;  %v24891_v1 = vrot.slane %v24890_v38, %v16831_v59  ;;  %v3944_v23 = vrot.slane %v17946_v50, %v16831_v59  ;;  %v24896_v52 = vld [vmem:[#allocation23_spill] sm:$0xff]  ;;  %v24906_v38 = vld [vmem:[#allocation86_spill] sm:$0xff] }
 0x1f5   : > { %v4616_v63 = vsel %vm3276_vm6, %v24881_v46, %v4615_v48  ;;  %v24888_v48 = vrot.slane %v24887_v7, %v16831_v59 }
 0x1f6   : > { %v4617_v18 = vsel %vm3278_vm7, %v24886_v20, %v4616_v63 }
 0x1f7   : > { %v4601_v46 = vsel %vm3274_vm5, %v24888_v48, %v4600_v56  ;;  %v4618_v28 = vsel %vm3280_vm8, %v3816_v43, %v4617_v18  ;;  %v24892_v56 = vld [vmem:[#allocation58_spill] sm:$0xff]  ;;  %v24894_v43 = vrot.slane %v17720_v32, %v16831_v59  ;;  %v24895_v48 = vld [vmem:[#allocation21_spill] sm:$0xff] }
 0x1f8   : > { %v4602_v9 = vsel %vm3276_vm6, %v24891_v1, %v4601_v46  ;;  %v4619_v63 = vsel %vm3282_vm9, %v3820_v39, %v4618_v28  ;;  %v24893_v20 = vrot.slane %v24892_v56, %v16831_v59  ;;  %v24897_v46 = vrot.slane %v24896_v52, %v16829_v58  ;;  %v16326_v39 = vld [vmem:[%s24334_s3 + $0x1f8] sm:$0xff]   ;;  %v24900_v52 = vld [vmem:[#allocation25_spill] sm:$0xff] }
 0x1f9   : > { %v4642_v18 = vsel %vm3272_vm4, %v24894_v43, %v17889_v2  ;;  %v16327_v28 = vld [vmem:[%s24334_s3 + $0x1b8] sm:$0xff]   ;;  %4797 = vrot.lane.b32.xlu0 %v4619_v63, %s16666_s12  ;;  %v24901_v43 = vrot.slane %v24900_v52, %v16829_v58  ;;  %v24903_v63 = vrot.slane %v17907_v62, %v16831_v59  ;;  %v19315_v52 = vcombine.high %v24906_v38, %v24906_v38 }
 0x1fa   : > { %v4603_v36 = vsel %vm3278_vm7, %v24893_v20, %v4602_v9  ;;  %v3300_v1 = vsel %vm3274_vm5, %v24897_v46, %v24895_v48  ;;  %v24898_v9 = vld [vmem:[#allocation91_spill] sm:$0xff]  ;;  %v24902_v46 = vld [vmem:[#allocation38_spill] sm:$0xff]  ;;  %15043 = vmatprep.subr.bf16.mxu0 %v16326_v39 }
 0x1fb   : > { %v4604_v32 = vsel %vm3280_vm8, %v3752_v11, %v4603_v36  ;;  %v24899_v2 = vrot.slane %v24898_v9, %v16831_v59  ;;  %v3301_v48 = vsel %vm3276_vm6, %v24901_v43, %v3300_v1  ;;  %v2373_v50 = vrot.slane %v24902_v46, %v16829_v58  ;;  %v24904_v36 = vld [vmem:[#allocation28_spill] sm:$0xff]  ;;  %24907 = vst [vmem:[#allocation13_spill] sm:$0xff] %v19315_v52 }
 0x1fc   : > { %v4605_v56 = vsel %vm3282_vm9, %v3756_v34, %v4604_v32  ;;  %v24905_v9 = vrot.slane %v24904_v36, %v16829_v58  ;;  %v3948_v34 = vrot.slane %v19259_v21, %v16831_v59  ;;  %v24908_v1 = vrot.slane %v17950_v15, %v16831_v59  ;;  %v24912_v46 = vld [vmem:[#allocation68_spill] sm:$0xff]  ;;  %15044 = vmatpush3.bf16.msra.mxu0 %v16327_v28 }
 0x1fd   : > { %v4643_v20 = vsel %vm3274_vm5, %v24899_v2, %v4642_v18  ;;  %v4788_v2 = vpop.permute.xlu0 %4787  ;;  %4793 = vrot.lane.b32.xlu1 %v4605_v56, %s16666_s12  ;;  %v3880_v21 = vrot.slane %v24906_v38, %v16831_v59  ;;  %v24914_v15 = vld [vmem:[#allocation76_spill] sm:$0xff]  ;;  %v3884_v28 = vrot.slane %v19315_v52, %v16831_v59 }
 0x1fe   : > { %v4644_v11 = vsel %vm3276_vm6, %v24903_v63, %v4643_v20  ;;  %v3302_v18 = vsel %vm3278_vm7, %v24905_v9, %v3301_v48  ;;  %v24909_v20 = vld [vmem:[#allocation26_spill] sm:$0xff]  ;;  %v24911_v48 = vld [vmem:[#allocation79_spill] sm:$0xff]  ;;  %v24913_v63 = vrot.slane %v24912_v46, %v16831_v59 }
 0x1ff   : > { %v4645_v32 = vsel %vm3278_vm7, %v24908_v1, %v4644_v11  ;;  %v24910_v43 = vrot.slane %v24909_v20, %v16829_v58  ;;  %v24915_v11 = vrot.slane %v24914_v15, %v16831_v59 }
 0x200   : > { %v4628_v39 = vsel %vm3272_vm4, %v24913_v63, %v24911_v48  ;;  %v4646_v56 = vsel %vm3280_vm8, %v3944_v23, %v4645_v32  ;;  %v1024_v63 = vadd.f32 %v18713_v22, %v18173_v14 }
 0x201   : > { %v3303_v9 = vsel %vm3280_vm8, %v24910_v43, %v3302_v18  ;;  %v4629_v1 = vsel %vm3274_vm5, %v24915_v11, %v4628_v39  ;;  %v4647_v18 = vsel %vm3282_vm9, %v3948_v34, %v4646_v56  ;;  %v24916_v43 = vld [vmem:[#allocation81_spill] sm:$0xff]  ;;  %v24919_v34 = vld [vmem:[#allocation87_spill] sm:$0xff]  ;;  %v4072_v56 = vrot.slane %v18227_v3, %v16831_v59 }
 0x202   : > { %v3304_v36 = vsel %vm3282_vm9, %v2373_v50, %v3303_v9  ;;  %v24917_v48 = vrot.slane %v24916_v43, %v16831_v59  ;;  %v19351_v50 = vcombine.high %v18227_v3, %v18227_v3  ;;  %4805 = vrot.lane.b32.xlu0 %v4647_v18, %s16666_s12  ;;  %v24921_v9 = vrot.slane %v18064_v45, %v16831_v59  ;;  %v24946_v43 = vld [vmem:[#allocation146_spill] sm:$0xff] }
 0x203   : > { %v19343_v20 = vsel %vm4877_vm10, %v3304_v36, %v4788_v2  ;;  %v24920_v2 = vrot.slane %v24919_v34, %v16831_v59  ;;  %v24922_v36 = vrot.slane %v18154_v37, %v16831_v59  ;;  %v19382_v18 = vmax.f32 %v1024_v63, 0.0 }
 0x204   : > { %v4630_v23 = vsel %vm3276_vm6, %v24917_v48, %v4629_v1  ;;  %24918 = vst [vmem:[#allocation17_spill] sm:$0xff] %v19351_v50  ;;  %4917 = vst [vmem:[#allocation2 + $0x50] sm:$0xff] %v19343_v20  ;;  %v4670_v46 = vsel %vm3272_vm4, %v24921_v9, %v18196_v61  ;;  %v1016_v1 = vadd.f32 %v18713_v22, %v18213_v35 }
 0x205   : > { %v4631_v32 = vsel %vm3278_vm7, %v24920_v2, %v4630_v23  ;;  %v4671_v11 = vsel %vm3274_vm5, %v24922_v36, %v4670_v46  ;;  %v24923_v61 = vrot.slane %v18199_v31, %v16831_v59  ;;  %v4076_v48 = vrot.slane %v19351_v50, %v16831_v59 }
 0x206   : > { %v4632_v39 = vsel %vm3280_vm8, %v3880_v21, %v4631_v32  ;;  %v19386_v21 = vrot.slane %v19179_v0, %v16825_v49  ;;  %v24924_v35 = vrot.slane %v18233_v47, %v16831_v59  ;;  %v24526_v2 = vmov 0.0   ;;  %v24937_v47 = vld [vmem:[#allocation106_spill] sm:$0xff] }
 0x207   : > { %v4633_v45 = vsel %vm3282_vm9, %v3884_v28, %v4632_v39  ;;  %v4672_v14 = vsel %vm3276_vm6, %v24923_v61, %v4671_v11  ;;  %v19395_v28 = vmax.f32 %v1016_v1, 0.0  ;;  %4977 = vst [vmem:[#allocation2 + $0x10] sm:$0xff] %v24526_v2  ;;  %4912 = vst [vmem:[#allocation2 + $0x28] sm:$0x1] %v24526_v2  ;;  %v4432_v32 = vrot.slane %v18928_v5, %v16831_v59 }
 0x208   : > { %4801 = vrot.lane.b32.xlu1 %v4633_v45, %s16666_s12  ;;  %v4673_v23 = vsel %vm3278_vm7, %v24924_v35, %v4672_v14  ;;  %4914 = vst [vmem:[#allocation2 + $0x38] sm:$0x1] %v24526_v2  ;;  %4916 = vst [vmem:[#allocation2 + $0x48] sm:$0x1] %v24526_v2  ;;  %v2212_v46 = vcombine.high %v19382_v18, %v19382_v18  ;;  %v19468_v63 = vrot.slane %v19382_v18, %v16825_v49 }
 0x209   : > { %4918 = vst [vmem:[#allocation2 + $0x58] sm:$0x1] %v24526_v2  ;;  %4920 = vst [vmem:[#allocation2 + $0x68] sm:$0x1] %v24526_v2  ;;  %v4674_v9 = vsel %vm3280_vm8, %v4072_v56, %v4673_v23  ;;  %v4436_v39 = vrot.slane %v18958_v51, %v16831_v59  ;;  %v2178_v36 = vcombine.high %v19395_v28, %v19395_v28 }
 0x20a   : > { %4922 = vst [vmem:[#allocation2 + $0x78] sm:$0x1] %v24526_v2  ;;  %4924 = vst [vmem:[#allocation2 + $0x88] sm:$0x1] %v24526_v2  ;;  %v4675_v5 = vsel %vm3282_vm9, %v4076_v48, %v4674_v9  ;;  %v19480_v56 = vrot.slane %v19395_v28, %v16825_v49  ;;  %v2127_v11 = vcombine.high %v19179_v0, %v19179_v0 }
 0x20b   : > { %4926 = vst [vmem:[#allocation2 + $0x98] sm:$0x1] %v24526_v2  ;;  %4928 = vst [vmem:[#allocation2 + $0xa8] sm:$0x1] %v24526_v2  ;;  %4813 = vrot.lane.b32.xlu0 %v4675_v5, %s16666_s12  ;;  %v19486_v1 = vrot.slane %v2212_v46, %v16825_v49  ;;  %v19490_v51 = vcombine.high %v19468_v63, %v19468_v63  ;;  %v3241_v45 = vrot.slane %v19468_v63, %v16829_v58 }
 0x20c   : > { %4930 = vst [vmem:[#allocation2 + $0xb8] sm:$0x1] %v24526_v2  ;;  %4932 = vst [vmem:[#allocation2 + $0xc8] sm:$0x1] %v24526_v2  ;;  %v19496_v61 = vcombine.high %v19386_v21, %v19386_v21  ;;  %v19499_v14 = vrot.slane %v2178_v36, %v16825_v49  ;;  %v19503_v0 = vcombine.high %v19480_v56, %v19480_v56  ;;  %v19520_v5 = vrot.slane %v24526_v2, 7 }
 0x20d   : > { %4934 = vst [vmem:[#allocation2 + $0xd8] sm:$0x1] %v24526_v2  ;;  %4936 = vst [vmem:[#allocation2 + $0xe8] sm:$0x1] %v24526_v2  ;;  %v3209_v18 = vrot.slane %v19480_v56, %v16829_v58  ;;  %v3245_v23 = vrot.slane %v19490_v51, %v16829_v58  ;;  %v3249_v28 = vrot.slane %v19486_v1, %v16829_v58  ;;  %v5291_v36 = vrot.slane %v19208_v6, 7 }
 0x20e   : > { %4938 = vst [vmem:[#allocation2 + $0xf8] sm:$0x1] %v24526_v2  ;;  %4940 = vst [vmem:[#allocation2 + $0x108] sm:$0x1] %v24526_v2  ;;  %v3213_v9 = vrot.slane %v19503_v0, %v16829_v58  ;;  %v3217_v46 = vrot.slane %v19499_v14, %v16829_v58  ;;  %v19524_v48 = vsel %vm3270_vm3, %v4436_v39, %v4432_v32 }
 0x20f   : > { %4942 = vst [vmem:[#allocation2 + $0x118] sm:$0x1] %v24526_v2  ;;  %4944 = vst [vmem:[#allocation2 + $0x168] sm:$0x1] %v24526_v2  ;;  %v19527_v35 = vrot.slane %v2127_v11, %v16825_v49  ;;  %v3494_v3 = vsel %vm3270_vm3, %v3245_v23, %v3241_v45  ;;  %v19542_v39 = vcombine.high %v19486_v1, %v19486_v1  ;;  %v24927_v23 = vmov 0.0  }
 0x210   : > { %4946 = vst [vmem:[#allocation2 + $0x178] sm:$0x1] %v24526_v2  ;;  %4948 = vst [vmem:[#allocation2 + $0x188] sm:$0x1] %v24526_v2  ;;  %v19535_v52 = vsel %vm3272_vm4, %v3249_v28, %v3494_v3  ;;  %v3487_v32 = vsel %vm3270_vm3, %v3213_v9, %v3209_v18  ;;  %v4496_v45 = vrot.slane %v19480_v56, %v16831_v59 }
 0x211   : > { %4950 = vst [vmem:[#allocation2 + $0x198] sm:$0x1] %v24526_v2  ;;  %4952 = vst [vmem:[#allocation2 + $0x1a8] sm:$0x1] %v24526_v2  ;;  %v19545_v11 = vsel %vm3272_vm4, %v3217_v46, %v3487_v32  ;;  %v5419_v38 = vpack.c.bf16 %v19208_v6, %v24927_v23  ;;  %v4532_v3 = vrot.slane %v19490_v51, %v16831_v59  ;;  %v24933_v32 = vld [vmem:[#allocation102_spill] sm:$0xff]  ;;  %v25112_v6 = vld [vmem:[#allocation12_spill] sm:$0xff] }
 0x212   : > { %4954 = vst [vmem:[#allocation2 + $0x1b8] sm:$0x1] %v24526_v2  ;;  %4956 = vst [vmem:[#allocation2 + $0x1c8] sm:$0x1] %v24526_v2  ;;  %v19556_v18 = vcombine.high %v18111_v13, %v18111_v13  ;;  %v19560_v28 = vcombine.high %v19499_v14, %v19499_v14  ;;  %v4008_v56 = vrot.slane %v18111_v13, %v16831_v59 }
 0x213   : > { %4958 = vst [vmem:[#allocation2 + $0x1d8] sm:$0x1] %v24526_v2  ;;  %4960 = vst [vmem:[#allocation2 + $0x1e8] sm:$0x1] %v24526_v2  ;;  %5667 = vmatprep.mubr.bf16.mxu1 %v5419_v38  ;;  %v24929_v51 = vrot.slane %v17904_v30, %v16831_v59  ;;  %v19572_v46 = vcombine.high %v18554_v42, %v18554_v42  ;;  %v24934_v50 = vrot.slane %v24933_v32, %v16831_v59 }
 0x214   : > { %4962 = vst [vmem:[#allocation2 + $0x1f8] sm:$0x1] %v24526_v2  ;;  %4964 = vst [vmem:[#allocation2 + $0x208] sm:$0x1] %v24526_v2  ;;  %v4200_v30 = vrot.slane %v18554_v42, %v16831_v59  ;;  %v4012_v32 = vrot.slane %v19556_v18, %v16831_v59  ;;  %v24939_v42 = vld [vmem:[#allocation139_spill] sm:$0xff] }
 0x215   : > { %4966 = vst [vmem:[#allocation2 + $0x218] sm:$0x1] %v24526_v2  ;;  %4968 = vst [vmem:[#allocation2 + $0x228] sm:$0x1] %v24526_v2  ;;  %v4656_v9 = vsel %vm3272_vm4, %v24929_v51, %v18083_v10  ;;  %v24935_v10 = vrot.slane %v18341_v17, %v16831_v59  ;;  %v24940_v31 = vrot.slane %v24939_v42, %v16831_v59  ;;  %v24948_v42 = vld [vmem:[#allocation39_spill] sm:$0xff] }
 0x216   : > { %4970 = vst [vmem:[#allocation2 + $0x238] sm:$0x1] %v24526_v2  ;;  %4972 = vst [vmem:[#allocation2 + $0x248] sm:$0x1] %v24526_v2  ;;  %v4657_v13 = vsel %vm3274_vm5, %v24934_v50, %v4656_v9  ;;  %v24938_v50 = vrot.slane %v24937_v47, %v16831_v59  ;;  %v24947_v47 = vrot.slane %v24946_v43, %v16831_v59  ;;  %v24952_v43 = vld [vmem:[#allocation45_spill] sm:$0xff] }
 0x217   : > { %4974 = vst [vmem:[#allocation2 + $0x258] sm:$0x1] %v24526_v2  ;;  %4976 = vst [vmem:[#allocation2 + $0x8] sm:$0x1] %v24526_v2  ;;  %v4698_v51 = vsel %vm3272_vm4, %v24935_v10, %v18482_v25  ;;  %v24941_v25 = vld [vmem:[#allocation32_spill] sm:$0xff] }
 0x218   : > { %4978 = vst [vmem:[#allocation2 + $0x18] sm:$0x1] %v24526_v2  ;;  %4980 = vst [vmem:[#allocation2 + $0x148] sm:$0x1] %v24526_v2  ;;  %v4658_v9 = vsel %vm3276_vm6, %v24938_v50, %v4657_v13  ;;  %v4699_v17 = vsel %vm3274_vm5, %v24940_v31, %v4698_v51  ;;  %v24942_v10 = vld [vmem:[#allocation36_spill] sm:$0xff]  ;;  %v24949_v31 = vrot.slane %v24948_v42, %v16829_v58 }
 0x219   : > { %4982 = vst [vmem:[#allocation2 + $0x158] sm:$0x1] %v24526_v2  ;;  %4985 = vst [vmem:[#allocation2 + $0x128] sm:$0x1] %v24526_v2  ;;  %v4700_v13 = vsel %vm3276_vm6, %v24947_v47, %v4699_v17  ;;  %v24953_v47 = vrot.slane %v24952_v43, %v16829_v58  ;;  %v24954_v17 = vld [vmem:[#allocation44_spill] sm:$0xff] }
 0x21a   : > { %4989 = vst [vmem:[#allocation2 + $0x268] sm:$0x1] %v24526_v2  ;;  %9026 = vst [vmem:[#allocation3] sm:$0x1f] %v24526_v2 }
 0x21b   : > { %9027 = vst [vmem:[#allocation3 + $0x8] sm:$0x1f] %v24526_v2  ;;  %9028 = vst [vmem:[#allocation3 + $0x60] sm:$0x1f] %v24526_v2 }
 0x21c   : > { %9029 = vst [vmem:[#allocation3 + $0x68] sm:$0x1f] %v24526_v2  ;;  %9031 = vst [vmem:[#allocation3 + $0x50] sm:$0x1f] %v24526_v2 }
 0x21d   : > { %9033 = vst [vmem:[#allocation3 + $0xb0] sm:$0x1f] %v24526_v2  ;;  %11037 = vst.msk [vmem:[#allocation4] sm:$0xff] %vm4877_vm10, %v24526_v2 }
 0x21e   : > { %11038 = vst.msk [vmem:[#allocation4 + $0x8] sm:$0xff] %vm4877_vm10, %v24526_v2  ;;  %11039 = vst.msk [vmem:[#allocation4 + $0x40] sm:$0xff] %vm4877_vm10, %v24526_v2 }
 0x21f   : > { %11040 = vst.msk [vmem:[#allocation4 + $0x48] sm:$0xff] %vm4877_vm10, %v24526_v2  ;;  %11042 = vst.msk [vmem:[#allocation4 + $0x30] sm:$0xff] %vm4877_vm10, %v24526_v2 }
 0x220   : > { %11043 = vst.msk [vmem:[#allocation4 + $0x38] sm:$0xff] %vm4877_vm10, %v24526_v2  ;;  %11044 = vst.msk [vmem:[#allocation4 + $0x70] sm:$0xff] %vm4877_vm10, %v24526_v2 }
 0x221   : > { %11045 = vst.msk [vmem:[#allocation4 + $0x78] sm:$0xff] %vm4877_vm10, %v24526_v2  ;;  %24925 = vst [vmem:[#allocation16_spill] sm:$0xff] %v19535_v52  ;;  %v4528_v2 = vrot.slane %v19468_v63, %v16831_v59  ;;  %v13727_v63 = vpack.c.bf16 %v5291_v36, %v19520_v5  ;;  %v16311_v36 = vld [vmem:[%s24334_s3 + $0x148] sm:$0xff]   ;;  %v24936_v52 = vld [vmem:[#allocation127_spill] sm:$0xff] }
 0x222   : > { %24926 = vst [vmem:[#allocation31_spill] sm:$0xff] %v19545_v11  ;;  %24928 = vst [vmem:[#allocation27_spill] sm:$0xff] %v19556_v18  ;;  %v1027_v11 = vadd.f32 %v18713_v22, %v24936_v52  ;;  %v24943_v52 = vrot.slane %v24942_v10, %v16829_v58  ;;  %v4204_v10 = vrot.slane %v19572_v46, %v16831_v59 }
 0x223   : > { %24930 = vst [vmem:[#allocation18_spill] sm:$0xff] %v19572_v46  ;;  %13728 = vmatmul.mubr.msk.bf16.vlgmr.msra.gmra.mrb[0].mxu1 %vm19577_vm13, %v13727_v63  ;;  %v24944_v63 = vld [vmem:[#allocation111_spill] sm:$0xff]  ;;  %v24972_v46 = vrot.slane %v18806_v8, %v16831_v59 }
 0x224   : > { %v3314_v37 = vsel %vm3274_vm5, %v24943_v52, %v24941_v25  ;;  %v24945_v34 = vrot.slane %v24944_v63, %v16831_v59  ;;  %v1093_v50 = vmax.f32 %v1027_v11, 0.0  ;;  %15704 = vmatpush3.bf16.msra.mxu1 %v18665_v24  ;;  %v24950_v52 = vld [vmem:[#allocation147_spill] sm:$0xff] }
 0x225   : > { %v3315_v51 = vsel %vm3276_vm6, %v24949_v31, %v3314_v37  ;;  %15705 = vmatprep.subr.bf16.mxu1 %v16311_v36  ;;  %v4500_v37 = vrot.slane %v19503_v0, %v16831_v59  ;;  %v4792_v31 = vpop.permute.xlu1 %4791 }
 0x226   : > { %v4659_v18 = vsel %vm3278_vm7, %v24945_v34, %v4658_v9  ;;  %v24951_v34 = vrot.slane %v24950_v52, %v16831_v59  ;;  %v3316_v11 = vsel %vm3278_vm7, %v24953_v47, %v3315_v51  ;;  %v24957_v51 = vld [vmem:[#allocation129_spill] sm:$0xff]  ;;  %v2229_v47 = vcombine.high %v1093_v50, %v1093_v50 }
 0x227   : > { %v4660_v25 = vsel %vm3280_vm8, %v4008_v56, %v4659_v18  ;;  %v19640_v18 = vrot.slane %v1093_v50, %v16825_v49  ;;  %v16312_v56 = vld [vmem:[%s24334_s3 + $0x150] sm:$0xff]  }
 0x228   : > { %v4701_v9 = vsel %vm3278_vm7, %v24951_v34, %v4700_v13  ;;  %v4661_v42 = vsel %vm3282_vm9, %v4012_v32, %v4660_v25  ;;  %v24955_v13 = vrot.slane %v24954_v17, %v16829_v58  ;;  %v24956_v32 = vld [vmem:[#allocation59_spill] sm:$0xff]  ;;  %v1019_v25 = vadd.f32 %v18713_v22, %v24957_v51  ;;  %15706 = vmatpush3.bf16.msra.mxu1 %v16311_v36 }
 0x229   : > { %v4702_v24 = vsel %vm3280_vm8, %v4200_v30, %v4701_v9  ;;  %4809 = vrot.lane.b32.xlu1 %v4661_v42, %s16666_s12  ;;  %v2437_v30 = vrot.slane %v24956_v32, %v16829_v58  ;;  %v24958_v22 = vld [vmem:[#allocation135_spill] sm:$0xff]  ;;  %15707 = vmatprep.subr.bf16.mxu1 %v16312_v56  ;;  %v24960_v32 = vld [vmem:[#allocation132_spill] sm:$0xff]  ;;  %v4328_v34 = vrot.slane %v18845_v60, %v16831_v59 }
 0x22a   : > { %v4703_v43 = vsel %vm3282_vm9, %v4204_v10, %v4702_v24  ;;  %v3317_v0 = vsel %vm3280_vm8, %v24955_v13, %v3316_v11  ;;  %v19660_v10 = vsel %vm3270_vm3, %v4532_v3, %v4528_v2  ;;  %v19665_v11 = vcombine.high %v19640_v18, %v19640_v18  ;;  %v24970_v13 = vld [vmem:[#allocation136_spill] sm:$0xff] }
 0x22b   : > { %4821 = vrot.lane.b32.xlu0 %v4703_v43, %s16666_s12  ;;  %v3318_v42 = vsel %vm3282_vm9, %v2437_v30, %v3317_v0  ;;  %v1091_v24 = vmax.f32 %v1019_v25, 0.0  ;;  %v19670_v17 = vcombine.high %v24958_v22, %v24958_v22  ;;  %v19677_v3 = vsel %vm3270_vm3, %v4500_v37, %v4496_v45  ;;  %v16315_v43 = vld [vmem:[%s24334_s3 + $0x158] sm:$0xff]   ;;  %v24961_v30 = vld [vmem:[#allocation117_spill] sm:$0xff] }
 0x22c   : > { %v19680_v50 = vsel %vm4877_vm10, %v3318_v42, %v4792_v31  ;;  %v24962_v51 = vrot.slane %v24961_v30, %v16831_v59  ;;  %v19696_v37 = vcombine.high %v18845_v60, %v18845_v60  ;;  %v19699_v31 = vrot.slane %v2229_v47, %v16825_v49  ;;  %v24964_v42 = vld [vmem:[#allocation125_spill] sm:$0xff]  ;;  %15708 = vmatpush3.bf16.msra.mxu1 %v16312_v56 }
 0x22d   : > { %24959 = vst [vmem:[#allocation65_spill] sm:$0xff] %v19670_v17  ;;  %4921 = vst [vmem:[#allocation2 + $0x70] sm:$0xff] %v19680_v50  ;;  %v2195_v36 = vcombine.high %v1091_v24, %v1091_v24  ;;  %v19687_v0 = vrot.slane %v1091_v24, %v16825_v49  ;;  %v24965_v24 = vrot.slane %v24964_v42, %v16831_v59  ;;  %15709 = vmatprep.subr.bf16.mxu1 %v16315_v43 }
 0x22e   : > { %v4684_v45 = vsel %vm3272_vm4, %v24962_v51, %v24960_v32  ;;  %24963 = vst [vmem:[#allocation54_spill] sm:$0xff] %v19696_v37  ;;  %v24966_v30 = vrot.slane %v18628_v19, %v16831_v59  ;;  %v4136_v47 = vrot.slane %v24958_v22, %v16831_v59  ;;  %v4140_v25 = vrot.slane %v19670_v17, %v16831_v59  ;;  %v24973_v22 = vld [vmem:[#allocation154_spill] sm:$0xff] }
 0x22f   : > { %v4685_v9 = vsel %vm3274_vm5, %v24965_v24, %v4684_v45  ;;  %v19721_v45 = vrot.slane %v2195_v36, %v16825_v49  ;;  %v24967_v24 = vld [vmem:[#allocation133_spill] sm:$0xff]  ;;  %v19733_v2 = vcombine.high %v18676_v57, %v18676_v57  ;;  %v19737_v56 = vcombine.high %v19687_v0, %v19687_v0  ;;  %v24976_v17 = vld [vmem:[#allocation170_spill] sm:$0xff] }
 0x230   : > { %v4726_v32 = vsel %vm3272_vm4, %v24966_v30, %v18793_v41  ;;  %v24968_v19 = vrot.slane %v24967_v24, %v16831_v59  ;;  %v24969_v30 = vrot.slane %v18740_v33, %v16831_v59  ;;  %v4264_v36 = vrot.slane %v18676_v57, %v16831_v59  ;;  %15710 = vmatpush3.bf16.msra.mxu1 %v16315_v43 }
 0x231   : > { %v24977_v33 = vrot.slane %v24976_v17, %v16831_v59 }
 0x232   : > { %v4686_v41 = vsel %vm3276_vm6, %v24968_v19, %v4685_v9  ;;  %v4727_v51 = vsel %vm3274_vm5, %v24969_v30, %v4726_v32  ;;  %v24971_v9 = vrot.slane %v24970_v13, %v16831_v59  ;;  %v4332_v32 = vrot.slane %v19696_v37, %v16831_v59  ;;  %v16316_v30 = vld [vmem:[%s24334_s3 + $0x160] sm:$0xff]   ;;  %v24974_v13 = vld [vmem:[#allocation143_spill] sm:$0xff] }
 0x233   : > { %v4728_v60 = vsel %vm3276_vm6, %v24972_v46, %v4727_v51  ;;  %v19773_v51 = vcombine.high %v19527_v35, %v19527_v35  ;;  %15711 = vmatprep.subr.bf16.mxu1 %v16316_v30 }
 0x234   : > { %v4687_v19 = vsel %vm3278_vm7, %v24971_v9, %v4686_v41  ;;  %v24975_v41 = vrot.slane %v24974_v13, %v16831_v59  ;;  %v24981_v13 = vld [vmem:[#allocation153_spill] sm:$0xff]  ;;  %15712 = vmatpush3.bf16.msra.mxu1 %v16316_v30  ;;  %v16320_v30 = vld [vmem:[%s24334_s3 + $0x170] sm:$0xff]  }
 0x235   : > { %v4688_v49 = vsel %vm3280_vm8, %v4136_v47, %v4687_v19  ;;  %v4729_v47 = vsel %vm3278_vm7, %v24977_v33, %v4728_v60  ;;  %v24978_v19 = vld [vmem:[#allocation151_spill] sm:$0xff]  ;;  %24980 = vst [vmem:[#allocation56_spill] sm:$0xff] %v19773_v51  ;;  %v24982_v33 = vrot.slane %v24981_v13, %v16831_v59 }
 0x236   : > { %v4712_v9 = vsel %vm3272_vm4, %v24975_v41, %v24973_v22  ;;  %v4689_v37 = vsel %vm3282_vm9, %v4140_v25, %v4688_v49  ;;  %v24979_v8 = vrot.slane %v24978_v19, %v16831_v59  ;;  %v4730_v22 = vsel %vm3280_vm8, %v4328_v34, %v4729_v47  ;;  %v24984_v41 = vld [vmem:[#allocation160_spill] sm:$0xff] }
 0x237   : > { %4817 = vrot.lane.b32.xlu1 %v4689_v37, %s16666_s12  ;;  %v4268_v49 = vrot.slane %v19733_v2, %v16831_v59  ;;  %v4731_v43 = vsel %vm3282_vm9, %v4332_v32, %v4730_v22  ;;  %v24985_v37 = vrot.slane %v24984_v41, %v16831_v59  ;;  %v24986_v47 = vrot.slane %v19068_v53, %v16831_v59 }
 0x238   : > { %v4713_v46 = vsel %vm3274_vm5, %v24979_v8, %v4712_v9  ;;  %v24983_v8 = vrot.slane %v18946_v4, %v16831_v59  ;;  %v4456_v9 = vrot.slane %v19527_v35, %v16831_v59  ;;  %v16319_v4 = vld [vmem:[%s24334_s3 + $0x168] sm:$0xff]   ;;  %4829 = vrot.lane.b32.xlu0 %v4731_v43, %s16666_s12  ;;  %v4460_v32 = vrot.slane %v19773_v51, %v16831_v59 }
 0x239   : > { %v4714_v60 = vsel %vm3276_vm6, %v24982_v33, %v4713_v46  ;;  %v24987_v22 = vrot.slane %v19386_v21, %v16831_v59  ;;  %v24991_v43 = vrot.slane %v19496_v61, %v16831_v59  ;;  %v24994_v51 = vld [vmem:[#allocation178_spill] sm:$0xff]  ;;  %15713 = vmatprep.subr.bf16.mxu1 %v16319_v4 }
 0x23a   : > { %v4754_v25 = vsel %vm3272_vm4, %v24983_v8, %v19524_v48  ;;  %v4715_v34 = vsel %vm3278_vm7, %v24985_v37, %v4714_v60  ;;  %v24988_v60 = vld [vmem:[#allocation42_spill] sm:$0xff]  ;;  %v24989_v8 = vld [vmem:[#allocation48_spill] sm:$0xff]  ;;  %15714 = vmatpush3.bf16.msra.mxu1 %v16319_v4 }
 0x23b   : > { %v4755_v46 = vsel %vm3274_vm5, %v24986_v47, %v4754_v25  ;;  %v4716_v48 = vsel %vm3280_vm8, %v4264_v36, %v4715_v34  ;;  %v24990_v25 = vrot.slane %v24989_v8, %v16829_v58  ;;  %v24992_v34 = vld [vmem:[#allocation51_spill] sm:$0xff]  ;;  %v24998_v8 = vld [vmem:[#allocation64_spill] sm:$0xff]  ;;  %15715 = vmatprep.subr.bf16.mxu1 %v16320_v30 }
 0x23c   : > { %v4756_v33 = vsel %vm3276_vm6, %v24987_v22, %v4755_v46  ;;  %v4717_v47 = vsel %vm3282_vm9, %v4268_v49, %v4716_v48  ;;  %v24993_v57 = vrot.slane %v24992_v34, %v16829_v58  ;;  %v19826_v46 = vcombine.high %v24994_v51, %v24994_v51  ;;  %v24996_v49 = vld [vmem:[#allocation55_spill] sm:$0xff] }
 0x23d   : > { %v3328_v37 = vsel %vm3274_vm5, %v24990_v25, %v24988_v60  ;;  %v4757_v36 = vsel %vm3278_vm7, %v24991_v43, %v4756_v33  ;;  %4825 = vrot.lane.b32.xlu1 %v4717_v47, %s16666_s12  ;;  %v24997_v48 = vrot.slane %v24996_v49, %v16829_v58  ;;  %v4796_v33 = vpop.permute.xlu1 %4795  ;;  %v2501_v25 = vrot.slane %v24998_v8, %v16829_v58  ;;  %v24999_v43 = vld [vmem:[#allocation173_spill] sm:$0xff] }
 0x23e   : > { %v3329_v41 = vsel %vm3276_vm6, %v24993_v57, %v3328_v37  ;;  %24995 = vst [vmem:[#allocation43_spill] sm:$0xff] %v19826_v46  ;;  %v4758_v22 = vsel %vm3280_vm8, %v4456_v9, %v4757_v36  ;;  %v25000_v57 = vld [vmem:[#allocation165_spill] sm:$0xff]  ;;  %v4516_v9 = vrot.slane %v19737_v56, %v16831_v59  ;;  %15716 = vmatpush3.bf16.msra.mxu1 %v16320_v30 }
 0x23f   : > { %v3330_v60 = vsel %vm3278_vm7, %v24997_v48, %v3329_v41  ;;  %v25001_v37 = vrot.slane %v25000_v57, %v16831_v59  ;;  %v4759_v47 = vsel %vm3282_vm9, %v4460_v32, %v4758_v22  ;;  %v25002_v41 = vld [vmem:[#allocation53_spill] sm:$0xff]  ;;  %v25006_v32 = vrot.slane %v18951_v12, %v16831_v59 }
 0x240   : > { %v25003_v36 = vrot.slane %v25002_v41, %v16829_v58  ;;  %v25004_v48 = vld [vmem:[#allocation85_spill] sm:$0xff]  ;;  %4837 = vrot.lane.b32.xlu0 %v4759_v47, %s16666_s12  ;;  %v25007_v41 = vld [vmem:[#allocation107_spill] sm:$0xff] }
 0x241   : > { %v4740_v34 = vsel %vm3272_vm4, %v25001_v37, %v24999_v43  ;;  %v25005_v8 = vrot.slane %v25004_v48, %v16831_v59  ;;  %v4392_v37 = vrot.slane %v24994_v51, %v16831_v59  ;;  %v16328_v30 = vld [vmem:[%s24334_s3 + $0x40] sm:$0xff]  }
 0x242   : > { %v3331_v49 = vsel %vm3280_vm8, %v25003_v36, %v3330_v60  ;;  %v19865_v60 = vcombine.high %v25007_v41, %v25007_v41 }
 0x243   : > { %v4741_v57 = vsel %vm3274_vm5, %v25005_v8, %v4740_v34  ;;  %v3332_v43 = vsel %vm3282_vm9, %v2501_v25, %v3331_v49  ;;  %v4396_v34 = vrot.slane %v19826_v46, %v16831_v59  ;;  %v25009_v25 = vrot.slane %v18998_v55, %v16831_v59  ;;  %v25010_v49 = vld [vmem:[#allocation103_spill] sm:$0xff]  ;;  %v25011_v8 = vld [vmem:[#allocation92_spill] sm:$0xff] }
 0x244   : > { %v4742_v22 = vsel %vm3276_vm6, %v25006_v32, %v4741_v57  ;;  %25008 = vst [vmem:[#allocation73_spill] sm:$0xff] %v19865_v60  ;;  %v19868_v36 = vsel %vm4877_vm10, %v3332_v43, %v4796_v33  ;;  %v25012_v12 = vrot.slane %v25011_v8, %v16831_v59  ;;  %v25013_v43 = vld [vmem:[#allocation101_spill] sm:$0xff]  ;;  %v5292_v55 = vrot.slane %v19343_v20, 7  ;;  %v25017_v8 = vld [vmem:[#allocation108_spill] sm:$0xff] }
 0x245   : > { %v4743_v47 = vsel %vm3278_vm7, %v25009_v25, %v4742_v22  ;;  %4925 = vst [vmem:[#allocation2 + $0x90] sm:$0xff] %v19868_v36  ;;  %v25014_v32 = vrot.slane %v25013_v43, %v16831_v59  ;;  %v5293_v22 = vrot.slane %v19680_v50, 7  ;;  %v4044_v4 = vrot.slane %v19865_v60, %v16831_v59  ;;  %v16325_v60 = vld [vmem:[%s24334_s3 + $0x178] sm:$0xff]   ;;  %v25025_v43 = vld [vmem:[#allocation66_spill] sm:$0xff] }
 0x246   : > { %v4663_v57 = vsel %vm3272_vm4, %v25012_v12, %v25010_v49  ;;  %v4744_v33 = vsel %vm3280_vm8, %v4392_v37, %v4743_v47  ;;  %v4040_v12 = vrot.slane %v25007_v41, %v16831_v59  ;;  %v25015_v49 = vld [vmem:[#allocation105_spill] sm:$0xff]  ;;  %v19907_v41 = vcombine.high %v19721_v45, %v19721_v45  ;;  %15717 = vmatprep.subr.bf16.mxu1 %v16325_v60 }
 0x247   : > { %v4664_v46 = vsel %vm3274_vm5, %v25014_v32, %v4663_v57  ;;  %v4745_v25 = vsel %vm3282_vm9, %v4396_v34, %v4744_v33  ;;  %v25016_v37 = vrot.slane %v25015_v49, %v16831_v59  ;;  %v25018_v57 = vrot.slane %v25017_v8, %v16831_v59  ;;  %15718 = vmatpush3.bf16.msra.mxu1 %v16325_v60 }
 0x248   : > { %4833 = vrot.lane.b32.xlu1 %v4745_v25, %s16666_s12  ;;  %v5422_v34 = vpack.c.bf16 %v19680_v50, %v19343_v20  ;;  %v13732_v33 = vpack.c.bf16 %v5293_v22, %v5292_v55  ;;  %25019 = vst [vmem:[#allocation50_spill] sm:$0xff] %v19907_v41  ;;  %v4520_v25 = vrot.slane %v19721_v45, %v16831_v59  ;;  %v25021_v55 = vld [vmem:[#allocation60_spill] sm:$0xff]  ;;  %v25022_v22 = vld [vmem:[#allocation62_spill] sm:$0xff] }
 0x249   : > { %v4665_v47 = vsel %vm3276_vm6, %v25016_v37, %v4664_v46  ;;  %v25020_v37 = vrot.slane %v19499_v14, %v16831_v59  ;;  %14949 = vmatprep.subr.bf16.mxu1 %v16328_v30  ;;  %v25039_v60 = vrot.slane %v19640_v18, %v16831_v59  ;;  %v25067_v30 = vld [vmem:[#allocation123_spill] sm:$0xff] }
 0x24a   : > { %v4666_v32 = vsel %vm3278_vm7, %v25018_v57, %v4665_v47  ;;  %v25023_v57 = vrot.slane %v25022_v22, %v16829_v58  ;;  %5675 = vmatprep.mubr.bf16.mxu1 %v5422_v34 }
 0x24b   : > { %v4667_v46 = vsel %vm3280_vm8, %v4040_v12, %v4666_v32  ;;  %v4768_v47 = vsel %vm3272_vm4, %v25020_v37, %v19677_v3  ;;  %v4524_v12 = vrot.slane %v19907_v41, %v16831_v59  ;;  %v25024_v32 = vrot.slane %v19560_v28, %v16831_v59  ;;  %13733 = vmatmul.mubr.msk.bf16.gmra.mrb[4].mxu1 %vm19577_vm13, %v13732_v33 }
 0x24c   : > { %v3342_v8 = vsel %vm3274_vm5, %v25023_v57, %v25021_v55  ;;  %v4668_v49 = vsel %vm3282_vm9, %v4044_v4, %v4667_v46  ;;  %v25026_v3 = vrot.slane %v25025_v43, %v16829_v58  ;;  %v25027_v4 = vrot.slane %v19687_v0, %v16831_v59  ;;  %v25028_v46 = vld [vmem:[#allocation70_spill] sm:$0xff]  ;;  %v25030_v55 = vld [vmem:[#allocation80_spill] sm:$0xff]  ;;  %v25031_v57 = vld [vmem:[#allocation69_spill] sm:$0xff] }
 0x24d   : > { %v4769_v14 = vsel %vm3274_vm5, %v25024_v32, %v4768_v47  ;;  %4811 = vrot.lane.b32.xlu0 %v4668_v49, %s16666_s12  ;;  %v25029_v47 = vrot.slane %v25028_v46, %v16829_v58  ;;  %v2565_v22 = vrot.slane %v25030_v55, %v16829_v58  ;;  %v16344_v49 = vld [vmem:[%s24334_s3 + $0x280] sm:$0xff]   ;;  %v25032_v32 = vrot.slane %v25031_v57, %v16829_v58 }
 0x24e   : > { %v3343_v37 = vsel %vm3276_vm6, %v25026_v3, %v3342_v8  ;;  %v4770_v34 = vsel %vm3276_vm6, %v25027_v4, %v4769_v14  ;;  %v4800_v8 = vpop.permute.xlu0 %4799  ;;  %v19962_v3 = vcombine.high %v19699_v31, %v19699_v31  ;;  %15109 = vmatprep.subr.bf16.mxu0 %v16344_v49  ;;  %v25046_v49 = vld [vmem:[#allocation82_spill] sm:$0xff] }
 0x24f   : > { %v3344_v43 = vsel %vm3278_vm7, %v25029_v47, %v3343_v37  ;;  %v4771_v33 = vsel %vm3278_vm7, %v4516_v9, %v4770_v34  ;;  %v4552_v37 = vrot.slane %v19699_v31, %v16831_v59  ;;  %v25034_v9 = vrot.slane %v19486_v1, %v16831_v59  ;;  %v25035_v47 = vld [vmem:[#allocation71_spill] sm:$0xff] }
 0x250   : > { %v3345_v14 = vsel %vm3280_vm8, %v25032_v32, %v3344_v43  ;;  %25033 = vst [vmem:[#allocation21_spill] sm:$0xff] %v19962_v3  ;;  %v4772_v4 = vsel %vm3280_vm8, %v4520_v25, %v4771_v33  ;;  %v25036_v43 = vld [vmem:[#allocation74_spill] sm:$0xff]  ;;  %v4556_v25 = vrot.slane %v19962_v3, %v16831_v59  ;;  %v25038_v1 = vrot.slane %v19542_v39, %v16831_v59 }
 0x251   : > { %v3346_v46 = vsel %vm3282_vm9, %v2565_v22, %v3345_v14  ;;  %v4775_v34 = vsel %vm3272_vm4, %v25034_v9, %v19660_v10  ;;  %v25037_v55 = vrot.slane %v25036_v43, %v16829_v58  ;;  %v4773_v32 = vsel %vm3282_vm9, %v4524_v12, %v4772_v4 }
 0x252   : > { %v19980_v41 = vsel %vm4877_vm10, %v3346_v46, %v4800_v8  ;;  %v4776_v10 = vsel %vm3274_vm5, %v25038_v1, %v4775_v34  ;;  %4841 = vrot.lane.b32.xlu1 %v4773_v32, %s16666_s12  ;;  %v25040_v8 = vld [vmem:[#allocation78_spill] sm:$0xff]  ;;  %v5294_v14 = vrot.slane %v19868_v36, 7  ;;  %v25042_v46 = vrot.slane %v19665_v11, %v16831_v59  ;;  %v25043_v34 = vld [vmem:[#allocation83_spill] sm:$0xff] }
 0x253   : > { %v3356_v57 = vsel %vm3274_vm5, %v25037_v55, %v25035_v47  ;;  %4929 = vst [vmem:[#allocation2 + $0xb0] sm:$0xff] %v19980_v41  ;;  %v4777_v12 = vsel %vm3276_vm6, %v25039_v60, %v4776_v10  ;;  %v25041_v22 = vrot.slane %v25040_v8, %v16829_v58  ;;  %v5295_v4 = vrot.slane %v19980_v41, 7  ;;  %v4804_v55 = vpop.permute.xlu1 %4803 }
 0x254   : > { %v4778_v9 = vsel %vm3278_vm7, %v25042_v46, %v4777_v12  ;;  %v25044_v47 = vrot.slane %v25043_v34, %v16829_v58  ;;  %v25047_v10 = vrot.slane %v25046_v49, %v16829_v58  ;;  %v5425_v8 = vpack.c.bf16 %v19980_v41, %v19868_v36  ;;  %v25048_v34 = vld [vmem:[#allocation88_spill] sm:$0xff] }
 0x255   : > { %v3357_v33 = vsel %vm3276_vm6, %v25041_v22, %v3356_v57  ;;  %v25045_v57 = vld [vmem:[#allocation93_spill] sm:$0xff]  ;;  %v4779_v1 = vsel %vm3280_vm8, %v4552_v37, %v4778_v9  ;;  %v13737_v12 = vpack.c.bf16 %v5295_v4, %v5294_v14  ;;  %v25051_v14 = vld [vmem:[#allocation94_spill] sm:$0xff] }
 0x256   : > { %v3358_v43 = vsel %vm3278_vm7, %v25044_v47, %v3357_v33  ;;  %v2629_v32 = vrot.slane %v25045_v57, %v16829_v58  ;;  %v4780_v33 = vsel %vm3282_vm9, %v4556_v25, %v4779_v1  ;;  %v25049_v47 = vld [vmem:[#allocation90_spill] sm:$0xff]  ;;  %5683 = vmatprep.mubr.bf16.mxu1 %v5425_v8  ;;  %v25052_v4 = vrot.slane %v25051_v14, %v16829_v58  ;;  %v25053_v25 = vld [vmem:[#allocation109_spill] sm:$0xff]  ;;  %v25061_v14 = vld [vmem:[#allocation95_spill] sm:$0xff] }
 0x257   : > { %v3359_v60 = vsel %vm3280_vm8, %v25047_v10, %v3358_v43  ;;  %v25050_v37 = vrot.slane %v25049_v47, %v16829_v58  ;;  %4843 = vrot.lane.b32.xlu1 %v4780_v33, %s16666_s12  ;;  %v25054_v1 = vld [vmem:[#allocation113_spill] sm:$0xff]  ;;  %13738 = vmatmul.mubr.msk.bf16.gmra.mrb[8].mxu1 %vm19577_vm13, %v13737_v12  ;;  %v4808_v33 = vpop.permute.xlu0 %4807  ;;  %v25059_v47 = vld [vmem:[#allocation115_spill] sm:$0xff]  ;;  %v25063_v12 = vld [vmem:[#allocation118_spill] sm:$0xff] }
 0x258   : > { %v3360_v46 = vsel %vm3282_vm9, %v2629_v32, %v3359_v60  ;;  %v25055_v32 = vrot.slane %v25054_v1, %v16829_v58  ;;  %v25064_v1 = vrot.slane %v25063_v12, %v16829_v58  ;;  %v25076_v22 = vld [vmem:[#allocation138_spill] sm:$0xff] }
 0x259   : > { %v3370_v9 = vsel %vm3274_vm5, %v25050_v37, %v25048_v34  ;;  %v20030_v43 = vsel %vm4877_vm10, %v3360_v46, %v4804_v55  ;;  %v25056_v55 = vld [vmem:[#allocation96_spill] sm:$0xff]  ;;  %v25060_v37 = vrot.slane %v25059_v47, %v16829_v58  ;;  %v25068_v47 = vrot.slane %v25067_v30, %v16829_v58 }
 0x25a   : > { %v3371_v57 = vsel %vm3276_vm6, %v25052_v4, %v3370_v9  ;;  %v3398_v49 = vsel %vm3274_vm5, %v25055_v32, %v25053_v25  ;;  %4933 = vst [vmem:[#allocation2 + $0xd0] sm:$0xff] %v20030_v43  ;;  %v25057_v60 = vrot.slane %v25056_v55, %v16829_v58  ;;  %v25058_v46 = vld [vmem:[#allocation104_spill] sm:$0xff]  ;;  %v25062_v4 = vrot.slane %v25061_v14, %v16829_v58  ;;  %v25065_v55 = vld [vmem:[#allocation131_spill] sm:$0xff] }
 0x25b   : > { %v2693_v34 = vrot.slane %v25058_v46, %v16829_v58  ;;  %v3399_v9 = vsel %vm3276_vm6, %v25060_v37, %v3398_v49  ;;  %v25066_v46 = vld [vmem:[#allocation122_spill] sm:$0xff]  ;;  %v5296_v14 = vrot.slane %v20030_v43, 7 }
 0x25c   : > { %v3372_v8 = vsel %vm3278_vm7, %v25057_v60, %v3371_v57  ;;  %v3400_v32 = vsel %vm3278_vm7, %v25064_v1, %v3399_v9  ;;  %v4816_v57 = vpop.permute.xlu1 %4815  ;;  %v2821_v60 = vrot.slane %v25065_v55, %v16829_v58  ;;  %v3412_v49 = vsel %vm3274_vm5, %v25068_v47, %v25066_v46  ;;  %v25071_v9 = vld [vmem:[#allocation126_spill] sm:$0xff] }
 0x25d   : > { %v3373_v25 = vsel %vm3280_vm8, %v25062_v4, %v3372_v8  ;;  %v25069_v8 = vld [vmem:[#allocation119_spill] sm:$0xff]  ;;  %v25072_v1 = vrot.slane %v25071_v9, %v16829_v58  ;;  %v25073_v46 = vld [vmem:[#allocation130_spill] sm:$0xff]  ;;  %v3193_v9 = vrot.slane %v19032_v54, %v16829_v58 }
 0x25e   : > { %v3374_v37 = vsel %vm3282_vm9, %v2693_v34, %v3373_v25  ;;  %v25070_v4 = vrot.slane %v25069_v8, %v16829_v58  ;;  %v25074_v34 = vrot.slane %v25073_v46, %v16829_v58  ;;  %v25075_v47 = vld [vmem:[#allocation134_spill] sm:$0xff]  ;;  %v25077_v8 = vrot.slane %v25076_v22, %v16829_v58 }
 0x25f   : > { %v3413_v55 = vsel %vm3276_vm6, %v25072_v1, %v3412_v49  ;;  %v20082_v10 = vsel %vm4877_vm10, %v3374_v37, %v4808_v33  ;;  %v4820_v37 = vpop.permute.xlu0 %4819  ;;  %v25080_v1 = vld [vmem:[#allocation128_spill] sm:$0xff] }
 0x260   : > { %v3401_v12 = vsel %vm3280_vm8, %v25070_v4, %v3400_v32  ;;  %v3414_v25 = vsel %vm3278_vm7, %v25074_v34, %v3413_v55  ;;  %v3426_v32 = vsel %vm3274_vm5, %v25077_v8, %v25075_v47  ;;  %4937 = vst [vmem:[#allocation2 + $0xf0] sm:$0xff] %v20082_v10  ;;  %v5297_v49 = vrot.slane %v20082_v10, 7  ;;  %v25079_v4 = vld [vmem:[#allocation144_spill] sm:$0xff]  ;;  %v4824_v59 = vpop.permute.xlu1 %4823 }
 0x261   : > { %v3402_v30 = vsel %vm3282_vm9, %v2821_v60, %v3401_v12  ;;  %v5428_v33 = vpack.c.bf16 %v20082_v10, %v20030_v43  ;;  %v2885_v12 = vrot.slane %v25079_v4, %v16829_v58  ;;  %v25081_v55 = vrot.slane %v25080_v1, %v16829_v58  ;;  %v25082_v47 = vld [vmem:[#allocation140_spill] sm:$0xff]  ;;  %v25084_v1 = vld [vmem:[#allocation142_spill] sm:$0xff] }
 0x262   : > { %v20099_v60 = vsel %vm4877_vm10, %v3402_v30, %v4816_v57  ;;  %v3197_v30 = vrot.slane %v19056_v29, %v16829_v58  ;;  %v13742_v34 = vpack.c.bf16 %v5297_v49, %v5296_v14  ;;  %v25083_v8 = vrot.slane %v25082_v47, %v16829_v58  ;;  %v25086_v29 = vld [vmem:[#allocation157_spill] sm:$0xff] }
 0x263   : > { %25078 = vst [vmem:[#allocation23_spill] sm:$0xff] %v20099_v60  ;;  %4945 = vst [vmem:[#allocation2 + $0x170] sm:$0xff] %v20099_v60  ;;  %v3415_v46 = vsel %vm3280_vm8, %v25081_v55, %v3414_v25  ;;  %v5431_v57 = vpack.c.bf16 %v20099_v60, %v24927_v23  ;;  %5691 = vmatprep.mubr.bf16.mxu1 %v5428_v33  ;;  %v25085_v25 = vrot.slane %v25084_v1, %v16829_v58  ;;  %v25087_v14 = vld [vmem:[#allocation145_spill] sm:$0xff] }
 0x264   : > { %v3416_v54 = vsel %vm3282_vm9, %v2885_v12, %v3415_v46  ;;  %v3427_v4 = vsel %vm3276_vm6, %v25083_v8, %v3426_v32  ;;  %v2949_v33 = vrot.slane %v25086_v29, %v16829_v58  ;;  %v25088_v49 = vld [vmem:[#allocation149_spill] sm:$0xff]  ;;  %v3201_v32 = vrot.slane %v19052_v40, %v16829_v58  ;;  %13743 = vmatmul.mubr.msk.bf16.gmra.mrb[12].mxu1 %vm19577_vm13, %v13742_v34  ;;  %v25094_v29 = vld [vmem:[#allocation155_spill] sm:$0xff] }
 0x265   : > { %v20122_v22 = vsel %vm4877_vm10, %v3416_v54, %v4820_v37  ;;  %v3428_v55 = vsel %vm3278_vm7, %v25085_v25, %v3427_v4  ;;  %v25089_v12 = vrot.slane %v25088_v49, %v16829_v58  ;;  %v5299_v37 = vrot.slane %v20099_v60, 7  ;;  %v25090_v54 = vld [vmem:[#allocation141_spill] sm:$0xff]  ;;  %v25092_v4 = vld [vmem:[#allocation152_spill] sm:$0xff]  ;;  %5699 = vmatprep.mubr.bf16.mxu1 %v5431_v57 }
 0x266   : > { %4949 = vst [vmem:[#allocation2 + $0x190] sm:$0xff] %v20122_v22  ;;  %v25091_v47 = vrot.slane %v25090_v54, %v16829_v58  ;;  %v25093_v1 = vrot.slane %v25092_v4, %v16829_v58  ;;  %v25097_v54 = vld [vmem:[#allocation162_spill] sm:$0xff]  ;;  %v25099_v57 = vld [vmem:[#allocation156_spill] sm:$0xff] }
 0x267   : > { %v3440_v46 = vsel %vm3274_vm5, %v25089_v12, %v25087_v14  ;;  %v25095_v14 = vrot.slane %v25094_v29, %v16829_v58  ;;  %v25096_v12 = vld [vmem:[#allocation158_spill] sm:$0xff]  ;;  %v20175_v29 = vrot.slane %v24927_v23, 1  ;;  %v25104_v23 = vld [vmem:[#allocation168_spill] sm:$0xff] }
 0x268   : > { %v3429_v8 = vsel %vm3280_vm8, %v25091_v47, %v3428_v55  ;;  %v3441_v25 = vsel %vm3276_vm6, %v25093_v1, %v3440_v46  ;;  %v25098_v55 = vrot.slane %v25097_v54, %v16829_v58  ;;  %v25101_v1 = vrot.slane %v18782_v27, %v16829_v58  ;;  %v25102_v54 = vld [vmem:[#allocation166_spill] sm:$0xff]  ;;  %v25107_v46 = vld [vmem:[#allocation167_spill] sm:$0xff]  ;;  %v5011_v60 = vld [vmem:[#allocation2 + $0x98] sm:$0x1] }
 0x269   : > { %v3430_v34 = vsel %vm3282_vm9, %v2949_v33, %v3429_v8  ;;  %v3442_v49 = vsel %vm3278_vm7, %v25095_v14, %v3441_v25  ;;  %v25100_v33 = vrot.slane %v25099_v57, %v16829_v58  ;;  %v5300_v14 = vrot.slane %v20122_v22, 7 }
 0x26a   : > { %v3454_v47 = vsel %vm3274_vm5, %v25098_v55, %v25096_v12  ;;  %v20164_v4 = vsel %vm4877_vm10, %v3430_v34, %v4824_v59  ;;  %v25103_v27 = vrot.slane %v25102_v54, %v16829_v58  ;;  %v25108_v40 = vrot.slane %v25107_v46, %v16829_v58  ;;  %v25109_v12 = vld [vmem:[#allocation174_spill] sm:$0xff]  ;;  %v25111_v54 = vld [vmem:[#allocation11_spill] sm:$0xff] }
 0x26b   : > { %v3443_v8 = vsel %vm3280_vm8, %v25100_v33, %v3442_v49  ;;  %v3455_v25 = vsel %vm3276_vm6, %v25101_v1, %v3454_v47  ;;  %4953 = vst [vmem:[#allocation2 + $0x1b0] sm:$0xff] %v20164_v4  ;;  %v5301_v59 = vrot.slane %v20164_v4, 7  ;;  %v5434_v34 = vpack.c.bf16 %v20164_v4, %v20122_v22  ;;  %v25105_v47 = vld [vmem:[#allocation84_spill] sm:$0xff] }
 0x26c   : > { %v13747_v49 = vpack.c.bf16 %v5299_v37, %v19520_v5  ;;  %v3456_v55 = vsel %vm3278_vm7, %v25103_v27, %v3455_v25  ;;  %v25106_v57 = vrot.slane %v25105_v47, %v16829_v58  ;;  %v25110_v5 = vrot.slane %v25109_v12, %v16829_v58  ;;  %v25118_v47 = vld [vmem:[#allocation179_spill] sm:$0xff] }
 0x26d   : > { %v13752_v1 = vpack.c.bf16 %v5301_v59, %v5300_v14  ;;  %v3457_v3 = vsel %vm3280_vm8, %v25108_v40, %v3456_v55  ;;  %v25113_v25 = vrot.slane %v25112_v6, %v16829_v58  ;;  %v25114_v14 = vld [vmem:[#allocation177_spill] sm:$0xff]  ;;  %v25116_v40 = vld [vmem:[#allocation14_spill] sm:$0xff] }
 0x26e   : > { %v3468_v33 = vsel %vm3274_vm5, %v25106_v57, %v25104_v23  ;;  %v25115_v59 = vrot.slane %v25114_v14, %v16829_v58  ;;  %v25117_v55 = vrot.slane %v25116_v40, %v16829_v58  ;;  %v25119_v57 = vrot.slane %v19022_v44, %v16829_v58  ;;  %13748 = vmatmul.mubr.msk.bf16.gmra.mrb[16].mxu1 %vm19577_vm13, %v13747_v49  ;;  %v25158_v49 = vld [vmem:[#allocation19_spill] sm:$0xff] }
 0x26f   : > { %v3469_v37 = vsel %vm3276_vm6, %v25110_v5, %v3468_v33  ;;  %v3275_v27 = vsel %vm3274_vm5, %v25113_v25, %v25111_v54  ;;  %v25120_v33 = vld [vmem:[#allocation77_spill] sm:$0xff]  ;;  %v25121_v54 = vld [vmem:[#allocation176_spill] sm:$0xff]  ;;  %5707 = vmatprep.mubr.bf16.mxu1 %v5434_v34  ;;  %v25129_v34 = vld [vmem:[#allocation22_spill] sm:$0xff] }
 0x270   : > { %v3470_v46 = vsel %vm3278_vm7, %v25115_v59, %v3469_v37  ;;  %v3277_v12 = vsel %vm3276_vm6, %v25117_v55, %v3275_v27  ;;  %v3482_v6 = vsel %vm3274_vm5, %v25119_v57, %v25118_v47  ;;  %v3013_v5 = vrot.slane %v25120_v33, %v16829_v58  ;;  %v25123_v37 = vld [vmem:[#allocation20_spill] sm:$0xff]  ;;  %v25125_v33 = vld [vmem:[#allocation35_spill] sm:$0xff]  ;;  %v25138_v47 = vld [vmem:[#allocation61_spill] sm:$0xff] }
 0x271   : > { %v25122_v25 = vrot.slane %v25121_v54, %v16829_v58  ;;  %v25124_v59 = vrot.slane %v25123_v37, %v16829_v58  ;;  %v3483_v27 = vsel %vm3276_vm6, %v3193_v9, %v3482_v6  ;;  %v25126_v54 = vld [vmem:[#allocation37_spill] sm:$0xff]  ;;  %v25139_v55 = vld [vmem:[#allocation63_spill] sm:$0xff] }
 0x272   : > { %v3444_v9 = vsel %vm3282_vm9, %v3013_v5, %v3443_v8  ;;  %v25130_v5 = vld [vmem:[#allocation24_spill] sm:$0xff] }
 0x273   : > { %v3471_v14 = vsel %vm3280_vm8, %v25122_v25, %v3470_v46  ;;  %v3279_v40 = vsel %vm3278_vm7, %v25124_v59, %v3277_v12  ;;  %v3484_v46 = vsel %vm3278_vm7, %v3197_v30, %v3483_v27  ;;  %v4828_v12 = vpop.permute.xlu0 %4827  ;;  %v25127_v25 = vrot.slane %v25126_v54, %v16829_v58  ;;  %v25134_v54 = vld [vmem:[#allocation29_spill] sm:$0xff] }
 0x274   : > { %v3485_v6 = vsel %vm3280_vm8, %v3201_v32, %v3484_v46  ;;  %v20253_v30 = vsel %vm4877_vm10, %v3444_v9, %v4828_v12  ;;  %v25128_v59 = vrot.slane %v24848_v16, %v16829_v58  ;;  %v25131_v32 = vrot.slane %v25130_v5, %v16829_v58  ;;  %v25132_v12 = vld [vmem:[#allocation47_spill] sm:$0xff]  ;;  %v25136_v5 = vld [vmem:[#allocation33_spill] sm:$0xff] }
 0x275   : > { %v3307_v37 = vsel %vm3274_vm5, %v25127_v25, %v25125_v33  ;;  %4957 = vst [vmem:[#allocation2 + $0x1d0] sm:$0xff] %v20253_v30  ;;  %v25133_v9 = vrot.slane %v25132_v12, %v16829_v58  ;;  %v25135_v25 = vrot.slane %v25134_v54, %v16829_v58  ;;  %v25140_v12 = vrot.slane %v25139_v55, %v16829_v58 }
 0x276   : > { %v3308_v8 = vsel %vm3276_vm6, %v25128_v59, %v3307_v37  ;;  %v3293_v27 = vsel %vm3274_vm5, %v25131_v32, %v25129_v34  ;;  %v25137_v32 = vrot.slane %v25136_v5, %v16829_v58  ;;  %v25143_v55 = vrot.slane %v24885_v26, %v16829_v58  ;;  %v25150_v26 = vld [vmem:[#allocation91_spill] sm:$0xff]  ;;  %13753 = vmatmul.mubr.msk.bf16.gmra.mrb[20].mxu1 %vm19577_vm13, %v13752_v1  ;;  %v25188_v34 = vld [vmem:[#allocation137_spill] sm:$0xff] }
 0x277   : > { %v3309_v16 = vsel %vm3278_vm7, %v25133_v9, %v3308_v8  ;;  %v3294_v37 = vsel %vm3276_vm6, %v25135_v25, %v3293_v27  ;;  %v3335_v8 = vsel %vm3274_vm5, %v25140_v12, %v25138_v47  ;;  %v25141_v25 = vld [vmem:[#allocation67_spill] sm:$0xff]  ;;  %v25145_v12 = vrot.slane %v24887_v7, %v16829_v58  ;;  %v25149_v27 = vld [vmem:[#allocation89_spill] sm:$0xff]  ;;  %v25186_v9 = vld [vmem:[#allocation106_spill] sm:$0xff] }
 0x278   : > { %v3295_v57 = vsel %vm3278_vm7, %v25137_v32, %v3294_v37  ;;  %v25142_v23 = vrot.slane %v25141_v25, %v16829_v58  ;;  %v25144_v32 = vld [vmem:[#allocation49_spill] sm:$0xff]  ;;  %v25146_v25 = vld [vmem:[#allocation172_spill] sm:$0xff]  ;;  %v25165_v5 = vld [vmem:[#allocation87_spill] sm:$0xff] }
 0x279   : > { %v3321_v46 = vsel %vm3274_vm5, %v25145_v12, %v25144_v32  ;;  %v25152_v32 = vld [vmem:[#allocation58_spill] sm:$0xff]  ;;  %v25206_v59 = vld [vmem:[#allocation163_spill] sm:$0xff] }
 0x27a   : > { %v3336_v33 = vsel %vm3276_vm6, %v25142_v23, %v3335_v8  ;;  %v3077_v23 = vrot.slane %v25146_v25, %v16829_v58  ;;  %v25147_v8 = vld [vmem:[#allocation52_spill] sm:$0xff]  ;;  %v25153_v12 = vrot.slane %v25152_v32, %v16829_v58  ;;  %v25159_v32 = vrot.slane %v25158_v49, %v16829_v58 }
 0x27b   : > { %v3337_v47 = vsel %vm3278_vm7, %v25143_v55, %v3336_v33  ;;  %v25148_v44 = vrot.slane %v25147_v8, %v16829_v58  ;;  %v25151_v33 = vrot.slane %v25150_v26, %v16829_v58  ;;  %v25155_v8 = vld [vmem:[#allocation75_spill] sm:$0xff]  ;;  %v25166_v49 = vrot.slane %v25165_v5, %v16829_v58 }
 0x27d   : > { %v3322_v37 = vsel %vm3276_vm6, %v25148_v44, %v3321_v46  ;;  %v3363_v55 = vsel %vm3274_vm5, %v25151_v33, %v25149_v27  ;;  %v25154_v44 = vrot.slane %v17907_v62, %v16829_v58  ;;  %v25156_v27 = vrot.slane %v24914_v15, %v16829_v58  ;;  %v25157_v33 = vld [vmem:[#allocation182_spill] sm:$0xff] }
 0x27e   : > { %v20325_v25 = vsel %vm3278_vm7, %v25153_v12, %v3322_v37  ;;  %v3141_v1 = vrot.slane %v25157_v33, %v16829_v58  ;;  %v3281_v37 = vsel %vm3280_vm8, %v25159_v32, %v3279_v40  ;;  %v25160_v12 = vld [vmem:[#allocation99_spill] sm:$0xff]  ;;  %v25167_v32 = vld [vmem:[#allocation112_spill] sm:$0xff] }
 0x27f   : > { %v3364_v46 = vsel %vm3276_vm6, %v25154_v44, %v3363_v55  ;;  %v3349_v26 = vsel %vm3274_vm5, %v25156_v27, %v25155_v8  ;;  %v25161_v7 = vrot.slane %v25160_v12, %v16829_v58  ;;  %v25162_v55 = vld [vmem:[#allocation81_spill] sm:$0xff]  ;;  %v3458_v8 = vsel %vm3282_vm9, %v3077_v23, %v3457_v3  ;;  %v25164_v27 = vld [vmem:[#allocation183_spill] sm:$0xff]  ;;  %v25168_v12 = vld [vmem:[#allocation114_spill] sm:$0xff] }
 0x280   : > { %v25163_v44 = vrot.slane %v25162_v55, %v16829_v58  ;;  %v2277_v33 = vrot.slane %v25164_v27, %v16829_v58  ;;  %v20367_v55 = vsel %vm3282_vm9, %v3141_v1, %v3471_v14  ;;  %v25170_v3 = vld [vmem:[#allocation15_spill] sm:$0xff]  ;;  %v25172_v27 = vld [vmem:[#allocation116_spill] sm:$0xff] }
 0x281   : > { %v20346_v62 = vsel %vm3278_vm7, %v25161_v7, %v3364_v46  ;;  %v25169_v7 = vrot.slane %v25168_v12, %v16829_v58  ;;  %v3205_v23 = vrot.slane %v25170_v3, %v16829_v58  ;;  %v25173_v5 = vrot.slane %v25172_v27, %v16829_v58  ;;  %v25174_v12 = vld [vmem:[#allocation46_spill] sm:$0xff]  ;;  %v25176_v1 = vld [vmem:[#allocation40_spill] sm:$0xff]  ;;  %v25177_v3 = vld [vmem:[#allocation121_spill] sm:$0xff] }
 0x282   : > { %v3350_v15 = vsel %vm3276_vm6, %v25163_v44, %v3349_v26  ;;  %v25171_v26 = vld [vmem:[#allocation8_spill] sm:$0xff]  ;;  %v25178_v54 = vrot.slane %v25177_v3, %v16829_v58 }
 0x283   : > { %v20359_v40 = vsel %vm3278_vm7, %v25166_v49, %v3350_v15  ;;  %v3391_v46 = vsel %vm3274_vm5, %v25169_v7, %v25167_v32  ;;  %v2405_v44 = vrot.slane %v25171_v26, %v16829_v58  ;;  %v20378_v49 = vsel %vm3282_vm9, %v2277_v33, %v3281_v37  ;;  %v25180_v33 = vld [vmem:[#allocation34_spill] sm:$0xff] }
 0x284   : > { %v3392_v15 = vsel %vm3276_vm6, %v25173_v5, %v3391_v46  ;;  %v25175_v32 = vrot.slane %v25174_v12, %v16829_v58  ;;  %v2341_v7 = vrot.slane %v25176_v1, %v16829_v58  ;;  %v5302_v46 = vrot.slane %v20253_v30, 7  ;;  %v25182_v5 = vld [vmem:[#allocation100_spill] sm:$0xff]  ;;  %v25183_v12 = vld [vmem:[#allocation102_spill] sm:$0xff] }
 0x285   : > { %v20390_v26 = vsel %vm3278_vm7, %v25178_v54, %v3392_v15  ;;  %v20394_v37 = vsel %vm3282_vm9, %v3205_v23, %v3485_v6  ;;  %v25181_v27 = vrot.slane %v25180_v33, %v16829_v58  ;;  %v25185_v15 = vld [vmem:[#allocation30_spill] sm:$0xff]  ;;  %v25187_v6 = vrot.slane %v25186_v9, %v16829_v58  ;;  %v25189_v33 = vld [vmem:[#allocation139_spill] sm:$0xff] }
 0x286   : > { %v3310_v14 = vsel %vm3280_vm8, %v25175_v32, %v3309_v16  ;;  %25179 = vst [vmem:[#allocation25_spill] sm:$0xff] %v20390_v26  ;;  %v25184_v32 = vrot.slane %v25183_v12, %v16829_v58  ;;  %v2533_v3 = vrot.slane %v25185_v15, %v16829_v58  ;;  %v25192_v15 = vrot.slane %v24944_v63, %v16829_v58  ;;  %v25194_v9 = vld [vmem:[#allocation146_spill] sm:$0xff]  ;;  %v5015_v26 = vld [vmem:[#allocation2 + $0xb8] sm:$0x1] }
 0x287   : > { %v3296_v16 = vsel %vm3280_vm8, %v25181_v27, %v3295_v57  ;;  %v25190_v57 = vrot.slane %v25189_v33, %v16829_v58  ;;  %v20418_v12 = vsel %vm3282_vm9, %v2405_v44, %v3310_v14  ;;  %v5003_v33 = vld [vmem:[#allocation2 + $0x58] sm:$0x1]  ;;  %v25196_v44 = vld [vmem:[#allocation41_spill] sm:$0xff] }
 0x288   : > { %v3377_v1 = vsel %vm3274_vm5, %v25184_v32, %v25182_v5  ;;  %v25191_v5 = vld [vmem:[#allocation10_spill] sm:$0xff]  ;;  %v25203_v14 = vld [vmem:[#allocation13_spill] sm:$0xff]  ;;  %v25211_v32 = vld [vmem:[#allocation164_spill] sm:$0xff] }
 0x289   : > { %v3378_v23 = vsel %vm3276_vm6, %v25187_v6, %v3377_v1  ;;  %v3419_v27 = vsel %vm3274_vm5, %v25190_v57, %v25188_v34  ;;  %v25195_v1 = vrot.slane %v25194_v9, %v16829_v58  ;;  %v20433_v34 = vsel %vm3282_vm9, %v2341_v7, %v3296_v16 }
 0x28a   : > { %v20426_v54 = vsel %vm3278_vm7, %v25192_v15, %v3378_v23  ;;  %v25197_v57 = vrot.slane %v24950_v52, %v16829_v58  ;;  %v25199_v23 = vld [vmem:[#allocation124_spill] sm:$0xff]  ;;  %v25200_v15 = vrot.slane %v24964_v42, %v16829_v58  ;;  %v25204_v52 = vrot.slane %v24967_v24, %v16829_v58 }
 0x28b   : > { %25193 = vst [vmem:[#allocation38_spill] sm:$0xff] %v20426_v54  ;;  %v3420_v6 = vsel %vm3276_vm6, %v25195_v1, %v3419_v27  ;;  %v5007_v27 = vld [vmem:[#allocation2 + $0x78] sm:$0x1]  ;;  %v25207_v42 = vrot.slane %v25206_v59, %v16829_v58  ;;  %v25212_v24 = vrot.slane %v25211_v32, %v16829_v58 }
 0x28c   : > { %v20441_v63 = vsel %vm3278_vm7, %v25197_v57, %v3420_v6  ;;  %v3405_v9 = vsel %vm3274_vm5, %v25200_v15, %v25199_v23  ;;  %v25201_v1 = vld [vmem:[#allocation72_spill] sm:$0xff]  ;;  %v25205_v57 = vld [vmem:[#allocation161_spill] sm:$0xff]  ;;  %v4832_v15 = vpop.permute.xlu1 %4831 }
 0x28d   : > { %25198 = vst [vmem:[#allocation28_spill] sm:$0xff] %v20441_v63  ;;  %v25202_v7 = vrot.slane %v25201_v1, %v16829_v58  ;;  %v3406_v6 = vsel %vm3276_vm6, %v25204_v52, %v3405_v9  ;;  %v3447_v23 = vsel %vm3274_vm5, %v25207_v42, %v25205_v57  ;;  %v25208_v63 = vld [vmem:[#allocation65_spill] sm:$0xff]  ;;  %v25209_v54 = vld [vmem:[#allocation136_spill] sm:$0xff]  ;;  %v5361_v52 = vrot.slane %v5003_v33, 1  ;;  %v25213_v57 = vld [vmem:[#allocation135_spill] sm:$0xff] }
 0x28e   : > { %v2853_v1 = vrot.slane %v25208_v63, %v16829_v58  ;;  %v3448_v9 = vsel %vm3276_vm6, %v25212_v24, %v3447_v23  ;;  %v20474_v59 = vsel %vm4877_vm10, %v3458_v8, %v4832_v15  ;;  %v25214_v42 = vrot.slane %v25213_v57, %v16829_v58  ;;  %v25216_v23 = vld [vmem:[#allocation54_spill] sm:$0xff] }
 0x28f   : > { %v3338_v16 = vsel %vm3280_vm8, %v25202_v7, %v3337_v47  ;;  %v25210_v47 = vrot.slane %v25209_v54, %v16829_v58  ;;  %v25215_v54 = vrot.slane %v24976_v17, %v16829_v58  ;;  %4961 = vst [vmem:[#allocation2 + $0x1f0] sm:$0xff] %v20474_v59  ;;  %v5303_v32 = vrot.slane %v20474_v59, 7 }
 0x290   : > { %v5437_v8 = vpack.c.bf16 %v20474_v59, %v20253_v30  ;;  %v3045_v15 = vrot.slane %v25216_v23, %v16829_v58  ;;  %v25220_v57 = vrot.slane %v19680_v50, 1 }
 0x291   : > { %v3407_v7 = vsel %vm3278_vm7, %v25210_v47, %v3406_v6  ;;  %v3449_v6 = vsel %vm3278_vm7, %v25215_v54, %v3448_v9  ;;  %v5364_v47 = vrot.slane %v5007_v27, 1  ;;  %v25219_v27 = vrot.slane %v19343_v20, 1 }
 0x292   : > { %v3408_v63 = vsel %vm3280_vm8, %v25214_v42, %v3407_v7  ;;  %v25217_v7 = vld [vmem:[#allocation169_spill] sm:$0xff]  ;;  %5715 = vmatprep.mubr.bf16.mxu1 %v5437_v8  ;;  %v20513_v20 = vsel %vm3282_vm9, %v2533_v3, %v3338_v16  ;;  %v4999_v3 = vld [vmem:[#allocation2 + $0x38] sm:$0x1]  ;;  %v25224_v16 = vrot.slane %v19980_v41, 1  ;;  %v25225_v8 = vrot.slane %v24981_v13, %v16829_v58 }
 0x293   : > { %v20489_v33 = vsel %vm3282_vm9, %v2853_v1, %v3408_v63  ;;  %v25218_v17 = vrot.slane %v25217_v7, %v16829_v58  ;;  %v20500_v9 = vsel %vm5137_vm14, %v25219_v27, %v5361_v52  ;;  %v20505_v42 = vsel %vm5137_vm14, %v25220_v57, %v5364_v47  ;;  %v25222_v47 = vld [vmem:[#allocation148_spill] sm:$0xff]  ;;  %v25227_v7 = vld [vmem:[#allocation181_spill] sm:$0xff]  ;;  %v4836_v27 = vpop.permute.xlu0 %4835 }
 0x294   : > { %v5367_v1 = vrot.slane %v5011_v60, 1  ;;  %v13757_v63 = vpack.c.bf16 %v5303_v32, %v5302_v46  ;;  %v5423_v23 = vpack.c.bf16 %v20505_v42, %v20500_v9  ;;  %v25221_v52 = vrot.slane %v19868_v36, 1  ;;  %v25229_v57 = vld [vmem:[#allocation160_spill] sm:$0xff]  ;;  %v16331_v9 = vld [vmem:[%s24334_s3 + $0x8] sm:$0xff]  }
 0x295   : > { %v3450_v24 = vsel %vm3280_vm8, %v25218_v17, %v3449_v6  ;;  %v5370_v6 = vrot.slane %v5015_v26, 1  ;;  %v2981_v60 = vrot.slane %v19733_v2, %v16829_v58  ;;  %v25223_v46 = vrot.slane %v24978_v19, %v16829_v58  ;;  %v4995_v26 = vld [vmem:[#allocation2 + $0x18] sm:$0x1] }
 0x296   : > { %v20508_v54 = vsel %vm3282_vm9, %v3045_v15, %v3450_v24  ;;  %v20518_v50 = vsel %vm5137_vm14, %v25221_v52, %v5367_v1  ;;  %13758 = vmatmul.mubr.msk.bf16.gmra.mrb[24].mxu1 %vm19577_vm13, %v13757_v63  ;;  %v25226_v15 = vld [vmem:[#allocation56_spill] sm:$0xff]  ;;  %v25228_v17 = vrot.slane %v19068_v53, %v16829_v58  ;;  %v25230_v1 = vrot.slane %v25229_v57, %v16829_v58  ;;  %v25232_v52 = vld [vmem:[#allocation171_spill] sm:$0xff] }
 0x297   : > { %v3433_v32 = vsel %vm3274_vm5, %v25223_v46, %v25222_v47  ;;  %v20532_v36 = vsel %vm5137_vm14, %v25224_v16, %v5370_v6  ;;  %v3173_v19 = vrot.slane %v25226_v15, %v16829_v58  ;;  %v25231_v63 = vrot.slane %v19386_v21, %v16829_v58  ;;  %v25237_v15 = vld [vmem:[#allocation175_spill] sm:$0xff] }
 0x298   : > { %v3434_v2 = vsel %vm3276_vm6, %v25225_v8, %v3433_v32  ;;  %v3475_v24 = vsel %vm3274_vm5, %v25228_v17, %v25227_v7  ;;  %v5426_v41 = vpack.c.bf16 %v20532_v36, %v20518_v50  ;;  %v25233_v53 = vrot.slane %v25004_v48, %v16829_v58  ;;  %v25234_v32 = vld [vmem:[#allocation159_spill] sm:$0xff]  ;;  %v5019_v17 = vld [vmem:[#allocation2 + $0xd8] sm:$0x1] }
 0x299   : > { %v3435_v13 = vsel %vm3278_vm7, %v25230_v1, %v3434_v2  ;;  %v3476_v6 = vsel %vm3276_vm6, %v25231_v63, %v3475_v24  ;;  %v20562_v46 = vsel %vm4877_vm10, %v20367_v55, %v4836_v27  ;;  %v25235_v16 = vrot.slane %v25234_v32, %v16829_v58  ;;  %v5023_v24 = vld [vmem:[#allocation2 + $0xf8] sm:$0x1]  ;;  %v25240_v63 = vld [vmem:[#allocation43_spill] sm:$0xff] }
 0x29a   : > { %v3461_v47 = vsel %vm3274_vm5, %v25233_v53, %v25232_v52  ;;  %v25236_v21 = vrot.slane %v19496_v61, %v16829_v58  ;;  %v25238_v7 = vrot.slane %v25237_v15, %v16829_v58  ;;  %4965 = vst [vmem:[#allocation2 + $0x210] sm:$0xff] %v20562_v46  ;;  %v5355_v55 = vrot.slane %v4995_v26, 1  ;;  %v25241_v52 = vld [vmem:[#allocation180_spill] sm:$0xff] }
 0x29b   : > { %v3436_v8 = vsel %vm3280_vm8, %v25235_v16, %v3435_v13  ;;  %v5358_v27 = vrot.slane %v4999_v3, 1  ;;  %v25239_v1 = vrot.slane %v19527_v35, %v16829_v58  ;;  %v25242_v53 = vrot.slane %v25241_v52, %v16829_v58  ;;  %v25243_v3 = vld [vmem:[#allocation97_spill] sm:$0xff] }
 0x29c   : > { %v3477_v2 = vsel %vm3278_vm7, %v25236_v21, %v3476_v6  ;;  %v3462_v48 = vsel %vm3276_vm6, %v25238_v7, %v3461_v47  ;;  %v20578_v57 = vsel %vm3282_vm9, %v2981_v60, %v3436_v8  ;;  %v3109_v6 = vrot.slane %v25240_v63, %v16829_v58  ;;  %v25244_v47 = vld [vmem:[#allocation101_spill] sm:$0xff]  ;;  %v4782_v7 = vpop.permute.xlu0 %4781 }
 0x29d   : > { %v3478_v61 = vsel %vm3280_vm8, %v25239_v1, %v3477_v2  ;;  %v3463_v26 = vsel %vm3278_vm7, %v25242_v53, %v3462_v48  ;;  %v25245_v60 = vrot.slane %v25244_v47, %v16829_v58  ;;  %v25246_v35 = vrot.slane %v24994_v51, %v16829_v58  ;;  %v25247_v16 = vld [vmem:[#allocation105_spill] sm:$0xff]  ;;  %v25252_v53 = vld [vmem:[#allocation108_spill] sm:$0xff] }
 0x29e   : > { %v20585_v13 = vsel %vm3282_vm9, %v3173_v19, %v3478_v61  ;;  %v25248_v8 = vrot.slane %v25247_v16, %v16829_v58  ;;  %v5373_v2 = vrot.slane %v5019_v17, 1  ;;  %v5376_v15 = vrot.slane %v5023_v24, 1  ;;  %v25249_v48 = vld [vmem:[#allocation57_spill] sm:$0xff]  ;;  %v4840_v24 = vpop.permute.xlu1 %4839 }
 0x29f   : > { %v3384_v32 = vsel %vm3274_vm5, %v25245_v60, %v25243_v3  ;;  %v3464_v19 = vsel %vm3280_vm8, %v25246_v35, %v3463_v26  ;;  %v25250_v1 = vrot.slane %v25249_v48, %v16829_v58  ;;  %v25251_v51 = vld [vmem:[#allocation73_spill] sm:$0xff]  ;;  %v25253_v26 = vrot.slane %v25252_v53, %v16829_v58  ;;  %v25263_v53 = vld [vmem:[#allocation50_spill] sm:$0xff] }
 0x2a0   : > { %v3385_v21 = vsel %vm3276_vm6, %v25248_v8, %v3384_v32  ;;  %v20612_v63 = vsel %vm3282_vm9, %v3109_v6, %v3464_v19  ;;  %v2757_v52 = vrot.slane %v25251_v51, %v16829_v58  ;;  %v20622_v17 = vsel %vm4877_vm10, %v20378_v49, %v4782_v7  ;;  %v25257_v49 = vld [vmem:[#allocation9_spill] sm:$0xff]  ;;  %v4790_v48 = vpop.permute.xlu0 %4789 }
 0x2a1   : > { %v3324_v61 = vsel %vm3280_vm8, %v25250_v1, %v20325_v25  ;;  %v3386_v3 = vsel %vm3278_vm7, %v25253_v26, %v3385_v21  ;;  %v5356_v47 = vsel %vm5137_vm14, %v20175_v29, %v5355_v55  ;;  %v25254_v25 = vld [vmem:[#allocation107_spill] sm:$0xff]  ;;  %v25256_v32 = vrot.slane %v20082_v10, 1 }
 0x2a2   : > { %v25255_v6 = vrot.slane %v25254_v25, %v16829_v58  ;;  %v20637_v19 = vsel %vm4877_vm10, %v20394_v37, %v4840_v24  ;;  %v25258_v16 = vrot.slane %v25257_v49, 1  ;;  %v25259_v21 = vrot.slane %v20030_v43, 1 }
 0x2a3   : > { %v20633_v35 = vsel %vm5137_vm14, %v25256_v32, %v5376_v15  ;;  %4969 = vst [vmem:[#allocation2 + $0x230] sm:$0xff] %v20637_v19  ;;  %v5304_v10 = vrot.slane %v20562_v46, 7  ;;  %v5305_v15 = vrot.slane %v20637_v19, 7  ;;  %v5440_v37 = vpack.c.bf16 %v20637_v19, %v20562_v46 }
 0x2a4   : > { %v3387_v60 = vsel %vm3280_vm8, %v25255_v6, %v3386_v3  ;;  %v5359_v8 = vsel %vm5137_vm14, %v25258_v16, %v5358_v27  ;;  %v20648_v7 = vsel %vm5137_vm14, %v25259_v21, %v5373_v2  ;;  %v25260_v1 = vrot.slane %v25191_v5, %v16829_v58  ;;  %v25261_v2 = vld [vmem:[#allocation98_spill] sm:$0xff]  ;;  %v25264_v3 = vld [vmem:[#allocation31_spill] sm:$0xff]  ;;  %v5035_v6 = vld [vmem:[#allocation2 + $0x198] sm:$0x1] }
 0x2a5   : > { %v20643_v55 = vsel %vm3282_vm9, %v2757_v52, %v3387_v60  ;;  %v5429_v27 = vpack.c.bf16 %v20633_v35, %v20648_v7  ;;  %v25262_v51 = vrot.slane %v25261_v2, %v16829_v58  ;;  %v3237_v26 = vrot.slane %v25263_v53, %v16829_v58  ;;  %v5039_v60 = vld [vmem:[#allocation2 + $0x1b8] sm:$0x1]  ;;  %5723 = vmatprep.mubr.bf16.mxu1 %v5440_v37  ;;  %v4786_v2 = vpop.permute.xlu1 %4785  ;;  %v16354_v35 = vld [vmem:[%s24334_s3 + $0x2a0] sm:$0xff]   ;;  %v5001_v7 = vld [vmem:[#allocation2 + $0x48] sm:$0x1] }
 0x2a6   : > { %v3325_v43 = vsel %vm3282_vm9, %v25260_v1, %v3324_v61  ;;  %v25265_v24 = vrot.slane %v19560_v28, %v16829_v58  ;;  %v20675_v5 = vsel %vm4877_vm10, %v20418_v12, %v4790_v48  ;;  %v13762_v61 = vpack.c.bf16 %v5305_v15, %v5304_v10  ;;  %v5043_v16 = vld [vmem:[#allocation2 + $0x1d8] sm:$0x1] }
 0x2a7   : > { %v3366_v52 = vsel %vm3280_vm8, %v25262_v51, %v20346_v62  ;;  %v5420_v32 = vpack.c.bf16 %v5359_v8, %v5356_v47  ;;  %v25266_v62 = vrot.slane %v19687_v0, %v16829_v58  ;;  %v5047_v21 = vld [vmem:[#allocation2 + $0x1f8] sm:$0x1]  ;;  %v5393_v28 = vrot.slane %v20474_v59, 1  ;;  %4919 = vst [vmem:[#allocation2 + $0x60] sm:$0xff] %v20675_v5  ;;  %v25268_v47 = vld [vmem:[#allocation21_spill] sm:$0xff] }
 0x2a8   : > { %v3489_v25 = vsel %vm3274_vm5, %v25265_v24, %v25264_v3  ;;  %v5396_v1 = vrot.slane %v20562_v46, 1  ;;  %v25267_v12 = vrot.slane %v19737_v56, %v16829_v58  ;;  %v3269_v8 = vrot.slane %v25268_v47, %v16829_v58  ;;  %13763 = vmatmul.mubr.msk.bf16.gmra.mrb[28].mxu1 %vm19577_vm13, %v13762_v61  ;;  %v25270_v10 = vld [vmem:[#allocation16_spill] sm:$0xff] }
 0x2a9   : > { %v3490_v49 = vsel %vm3276_vm6, %v25266_v62, %v3489_v25  ;;  %v25269_v0 = vrot.slane %v19721_v45, %v16829_v58  ;;  %v25271_v46 = vrot.slane %v19542_v39, %v16829_v58  ;;  %v5385_v56 = vrot.slane %v5035_v6, 1  ;;  %15719 = vmatprep.mubr.bf16.mxu1 %v5420_v32 }
 0x2aa   : > { %v3491_v37 = vsel %vm3278_vm7, %v25267_v12, %v3490_v49  ;;  %v5388_v48 = vrot.slane %v5039_v60, 1  ;;  %v25272_v53 = vrot.slane %v19640_v18, %v16829_v58  ;;  %v5391_v3 = vrot.slane %v5043_v16, 1  ;;  %v4798_v18 = vpop.permute.xlu0 %4797  ;;  %v5051_v16 = vld [vmem:[#allocation2 + $0x218] sm:$0x1] }
 0x2ab   : > { %v3492_v59 = vsel %vm3280_vm8, %v25269_v0, %v3491_v37  ;;  %v3496_v15 = vsel %vm3274_vm5, %v25271_v46, %v25270_v10  ;;  %v5394_v24 = vrot.slane %v5047_v21, 1  ;;  %v20710_v25 = vsel %vm4877_vm10, %v20433_v34, %v4786_v2  ;;  %v5055_v21 = vld [vmem:[#allocation2 + $0x238] sm:$0x1]  ;;  %v4794_v0 = vpop.permute.xlu1 %4793 }
 0x2ac   : > { %v20702_v51 = vsel %vm3282_vm9, %v3237_v26, %v3492_v59  ;;  %v3497_v45 = vsel %vm3276_vm6, %v25272_v53, %v3496_v15  ;;  %v6247_v39 = vrot.slane %v20622_v17, 7  ;;  %v25273_v6 = vrot.slane %v19665_v11, %v16829_v58  ;;  %4915 = vst [vmem:[#allocation2 + $0x40] sm:$0xff] %v20710_v25  ;;  %v5027_v10 = vld [vmem:[#allocation2 + $0x158] sm:$0x1] }
 0x2ad   : > { %v25274_v26 = vrot.slane %v20164_v4, 1  ;;  %v6248_v32 = vrot.slane %v20710_v25, 7  ;;  %v6376_v34 = vpack.c.bf16 %v20710_v25, %v20622_v17  ;;  %v25275_v62 = vrot.slane %v19699_v31, %v16829_v58  ;;  %v5031_v46 = vld [vmem:[#allocation2 + $0x178] sm:$0x1] }
 0x2ae   : > { %v3498_v60 = vsel %vm3278_vm7, %v25273_v6, %v3497_v45  ;;  %v25276_v49 = vrot.slane %v20122_v22, 1  ;;  %v20737_v12 = vsel %vm4877_vm10, %v20513_v20, %v4798_v18  ;;  %v5399_v37 = vrot.slane %v20637_v19, 1  ;;  %v16345_v22 = vld [vmem:[%s24334_s3 + $0x240] sm:$0xff]  }
 0x2af   : > { %v20720_v61 = vsel %vm5137_vm14, %v25274_v26, %v5388_v48  ;;  %v3499_v11 = vsel %vm3280_vm8, %v25275_v62, %v3498_v60  ;;  %4927 = vst [vmem:[#allocation2 + $0xa0] sm:$0xff] %v20737_v12  ;;  %v25277_v59 = vrot.slane %v25196_v44, %v16829_v58  ;;  %6624 = vmatprep.mubr.bf16.mxu0 %v6376_v34  ;;  %v25278_v15 = vrot.slane %v20253_v30, 1  ;;  %v25279_v30 = vld [vmem:[#allocation86_spill] sm:$0xff]  ;;  %v4806_v26 = vpop.permute.xlu0 %4805 }
 0x2b0   : > { %v20733_v4 = vsel %vm5137_vm14, %v25276_v49, %v5385_v56  ;;  %v20741_v47 = vsel %vm3282_vm9, %v3269_v8, %v3499_v11  ;;  %v13903_v19 = vpack.c.bf16 %v6248_v32, %v6247_v39  ;;  %v16329_v8 = vld [vmem:[%s24334_s3] sm:$0xff]   ;;  %v20764_v48 = vsel %vm5137_vm14, %v5393_v28, %v5394_v24  ;;  %v16347_v60 = vld [vmem:[%s24334_s3 + $0x288] sm:$0xff]   ;;  %15720 = vmatmul.mubr.bf16.vlgmr.msra.gmra.mrb[32].mxu1 %v5423_v23 }
 0x2b1   : > { %v5435_v31 = vpack.c.bf16 %v20720_v61, %v20733_v4  ;;  %v3367_v20 = vsel %vm3282_vm9, %v25277_v59, %v3366_v52  ;;  %v20761_v56 = vsel %vm5137_vm14, %v25278_v15, %v5391_v3  ;;  %v20767_v44 = vsel %vm4877_vm10, %v3325_v43, %v4794_v0  ;;  %v16330_v52 = vld [vmem:[%s24334_s3 + $0x48] sm:$0xff]   ;;  %14950 = vmatpush3.bf16.msra.mxu1 %v16329_v8  ;;  %v4802_v59 = vpop.permute.xlu1 %4801 }
 0x2b2   : > { %v5438_v2 = vpack.c.bf16 %v20764_v48, %v20761_v56  ;;  %v5397_v53 = vrot.slane %v5051_v16, 1  ;;  %v5400_v45 = vrot.slane %v5055_v21, 1  ;;  %4923 = vst [vmem:[#allocation2 + $0x80] sm:$0xff] %v20767_v44  ;;  %v25280_v3 = vrot.slane %v25279_v30, %v16829_v58  ;;  %13904 = vmatmul.mubr.msk.bf16.vlgmr.msra.gmra.mrb[64].mxu0 %vm19577_vm13, %v13903_v19  ;;  %v16348_v11 = vld [vmem:[%s24334_s3 + $0x248] sm:$0xff]   ;;  %v16349_v16 = vld [vmem:[%s24334_s3 + $0x290] sm:$0xff]   ;;  %15723 = vmatprep.mubr.bf16.mxu1 %v5426_v41  ;;  %v25283_v19 = vld [vmem:[#allocation120_spill] sm:$0xff] }
 0x2b3   : > { %v6249_v43 = vrot.slane %v20675_v5, 7  ;;  %v6250_v24 = vrot.slane %v20767_v44, 7  ;;  %v6379_v6 = vpack.c.bf16 %v20767_v44, %v20675_v5  ;;  %v5382_v18 = vrot.slane %v5031_v46, 1  ;;  %15110 = vmatpush3.bf16.msra.mxu0 %v16345_v22  ;;  %14951 = vmatprep.subr.bf16.mxu1 %v16330_v52  ;;  %v16332_v22 = vld [vmem:[%s24334_s3 + $0x50] sm:$0xff]   ;;  %v25285_v46 = vld [vmem:[#allocation17_spill] sm:$0xff] }
 0x2b4   : > { %v3352_v28 = vsel %vm3280_vm8, %v25280_v3, %v20359_v40  ;;  %v5379_v40 = vrot.slane %v5027_v10, 1  ;;  %v20793_v34 = vsel %vm5137_vm14, %v5396_v1, %v5397_v53  ;;  %v20796_v62 = vsel %vm5137_vm14, %v5399_v37, %v5400_v45  ;;  %15111 = vmatprep.subr.bf16.mxu0 %v16347_v60  ;;  %v25286_v53 = vld [vmem:[#allocation23_spill] sm:$0xff]  ;;  %v16334_v60 = vld [vmem:[%s24334_s3 + $0x58] sm:$0xff]  }
 0x2b5   : > { %v20802_v49 = vsel %vm4877_vm10, %v3367_v20, %v4806_v26  ;;  %6632 = vmatprep.mubr.bf16.mxu0 %v6379_v6  ;;  %v13908_v42 = vpack.c.bf16 %v6250_v24, %v6249_v43  ;;  %v6251_v23 = vrot.slane %v20737_v12, 7  ;;  %v5441_v1 = vpack.c.bf16 %v20796_v62, %v20793_v34  ;;  %v25282_v20 = vld [vmem:[#allocation25_spill] sm:$0xff]  ;;  %14952 = vmatpush3.bf16.msra.mxu1 %v16331_v9  ;;  %v4814_v6 = vpop.permute.xlu0 %4813  ;;  %v16350_v26 = vld [vmem:[%s24334_s3 + $0x250] sm:$0xff]   ;;  %v16352_v9 = vld [vmem:[%s24334_s3 + $0x298] sm:$0xff]  }
 0x2b6   : > { %4935 = vst [vmem:[#allocation2 + $0xe0] sm:$0xff] %v20802_v49  ;;  %v25281_v21 = vrot.slane %v25203_v14, %v16829_v58  ;;  %v5206_v0 = vpack.c.bf16 %v20675_v5, %v20710_v25  ;;  %v25284_v8 = vrot.slane %v25283_v19, %v16829_v58  ;;  %v20831_v10 = vpack.c.bf16 %v6249_v43, %v6248_v32  ;;  %v16337_v19 = vld [vmem:[%s24334_s3 + $0x20] sm:$0xff]   ;;  %v16363_v62 = vld [vmem:[%s24334_s3 + $0x278] sm:$0xff]  }
 0x2b7   : > { %v20835_v36 = vpack.c.bf16 %v6251_v23, %v6250_v24  ;;  %v2789_v15 = vrot.slane %v25285_v46, %v16829_v58  ;;  %v5380_v52 = vsel %vm5137_vm14, %v20175_v29, %v5379_v40  ;;  %v25287_v45 = vrot.slane %v25286_v53, 1  ;;  %15112 = vmatpush3.bf16.msra.mxu0 %v16348_v11  ;;  %14953 = vmatprep.subr.bf16.mxu1 %v16332_v22  ;;  %v16355_v53 = vld [vmem:[%s24334_s3 + $0x260] sm:$0xff]   ;;  %v16351_v29 = vld [vmem:[%s24334_s3 + $0x88] sm:$0xff]  }
 0x2b8   : > { %v3353_v37 = vsel %vm3282_vm9, %v25281_v21, %v3352_v28  ;;  %v3394_v14 = vsel %vm3280_vm8, %v25284_v8, %v25282_v20  ;;  %v16333_v28 = vld [vmem:[%s24334_s3 + $0x10] sm:$0xff]   ;;  %v6253_v43 = vrot.slane %v20802_v49, 7  ;;  %15113 = vmatprep.subr.bf16.mxu0 %v16349_v16  ;;  %15724 = vmatmul.mubr.bf16.gmra.mrb[36].mxu1 %v5429_v27  ;;  %v16353_v21 = vld [vmem:[%s24334_s3 + $0x258] sm:$0xff]   ;;  %v5005_v27 = vld [vmem:[#allocation2 + $0x68] sm:$0x1]  ;;  %v6314_v22 = vrot.slane %v20710_v25, 1 }
 0x2b9   : > { %v20838_v41 = vsel %vm4877_vm10, %v3353_v37, %v4802_v59  ;;  %v5383_v30 = vsel %vm5137_vm14, %v25287_v45, %v5382_v18  ;;  %v3395_v24 = vsel %vm3282_vm9, %v2789_v15, %v3394_v14  ;;  %14954 = vmatpush3.bf16.msra.mxu1 %v16333_v28  ;;  %v5009_v37 = vld [vmem:[#allocation2 + $0x88] sm:$0x1]  ;;  %v6317_v59 = vrot.slane %v20675_v5, 1  ;;  %v16346_v34 = vld [vmem:[%s24334_s3 + $0x80] sm:$0xff]  }
 0x2ba   : > { %4931 = vst [vmem:[#allocation2 + $0xc0] sm:$0xff] %v20838_v41  ;;  %v6252_v32 = vrot.slane %v20838_v41, 7  ;;  %v6382_v3 = vpack.c.bf16 %v20838_v41, %v20737_v12  ;;  %v20865_v40 = vsel %vm4877_vm10, %v3395_v24, %v4814_v6  ;;  %13909 = vmatmul.mubr.msk.bf16.gmra.mrb[68].mxu0 %vm19577_vm13, %v13908_v42  ;;  %v5432_v18 = vpack.c.bf16 %v5383_v30, %v5380_v52  ;;  %v16335_v42 = vld [vmem:[%s24334_s3 + $0x18] sm:$0xff]   ;;  %v5013_v8 = vld [vmem:[#allocation2 + $0xa8] sm:$0x1]  ;;  %v25290_v6 = vld [vmem:[#allocation27_spill] sm:$0xff] }
 0x2bb   : > { %14955 = vmatprep.subr.bf16.mxu1 %v16334_v60  ;;  %15114 = vmatpush3.bf16.msra.mxu0 %v16350_v26  ;;  %v6320_v20 = vrot.slane %v20767_v44, 1  ;;  %v25288_v14 = vld [vmem:[#allocation110_spill] sm:$0xff]  ;;  %v24557_v15 = vrot.slane %v20737_v12, 1  ;;  %v5145_v30 = vrot.slane %v5001_v7, 1  ;;  %v2725_v60 = vrot.slane %v25290_v6, %v16829_v58 }
 0x2bc   : > { %v13913_v11 = vpack.c.bf16 %v6252_v32, %v6251_v23  ;;  %v20874_v16 = vpack.c.bf16 %v6253_v43, %v6252_v32  ;;  %6640 = vmatprep.mubr.bf16.mxu0 %v6382_v3  ;;  %15727 = vmatprep.mubr.bf16.mxu1 %v5432_v18  ;;  %v16336_v23 = vld [vmem:[%s24334_s3 + $0x60] sm:$0xff]   ;;  %v2721_v46 = vrot.slane %v25288_v14, %v16829_v58  ;;  %v16338_v52 = vld [vmem:[%s24334_s3 + $0x68] sm:$0xff]   ;;  %v5148_v32 = vrot.slane %v5005_v27, 1  ;;  %v16359_v14 = vld [vmem:[%s24334_s3 + $0x2b0] sm:$0xff]  }
 0x2bd   : > { %15115 = vmatprep.subr.bf16.mxu0 %v16352_v9  ;;  %14956 = vmatpush3.bf16.msra.mxu1 %v16335_v42  ;;  %v16357_v45 = vld [vmem:[%s24334_s3 + $0x2a8] sm:$0xff]   ;;  %v5151_v3 = vrot.slane %v5009_v37, 1  ;;  %v24556_v48 = vrot.slane %v20802_v49, 1 }
 0x2be   : > { %14957 = vmatprep.subr.bf16.mxu1 %v16336_v23  ;;  %v25289_v28 = vld [vmem:[#allocation150_spill] sm:$0xff]  ;;  %v6326_v23 = vrot.slane %v20838_v41, 1  ;;  %v20935_v61 = vsel %vm5137_vm14, %v6317_v59, %v5148_v32  ;;  %v4810_v32 = vpop.permute.xlu1 %4809 }
 0x2bf   : > { %15116 = vmatpush3.bf16.msra.mxu0 %v16353_v21  ;;  %v2913_v24 = vrot.slane %v25289_v28, %v16829_v58  ;;  %v25291_v26 = vld [vmem:[#allocation38_spill] sm:$0xff]  ;;  %v20940_v4 = vsel %vm5137_vm14, %v6320_v20, %v5151_v3 }
 0x2c0   : > { %15117 = vmatprep.subr.bf16.mxu0 %v16354_v35  ;;  %v3380_v18 = vsel %vm3280_vm8, %v2721_v46, %v25291_v26  ;;  %15728 = vmatmul.mubr.bf16.gmra.mrb[40].mxu1 %v5435_v31  ;;  %v5017_v9 = vld [vmem:[#allocation2 + $0xc8] sm:$0x1]  ;;  %v20930_v35 = vsel %vm5137_vm14, %v6314_v22, %v5145_v30  ;;  %v25292_v31 = vld [vmem:[#allocation28_spill] sm:$0xff] }
 0x2c1   : > { %v5021_v42 = vld [vmem:[#allocation2 + $0xe8] sm:$0x1]  ;;  %14958 = vmatpush3.bf16.msra.mxu1 %v16337_v19  ;;  %15731 = vmatprep.mubr.bf16.mxu1 %v5438_v2  ;;  %v3422_v56 = vsel %vm3280_vm8, %v2913_v24, %v25292_v31  ;;  %v16340_v2 = vld [vmem:[%s24334_s3 + $0x70] sm:$0xff]   ;;  %v3381_v30 = vsel %vm3282_vm9, %v2725_v60, %v3380_v18  ;;  %v4822_v24 = vpop.permute.xlu0 %4821 }
 0x2c2   : > { %13914 = vmatmul.mubr.msk.bf16.gmra.mrb[72].mxu0 %vm19577_vm13, %v13913_v11  ;;  %v5154_v11 = vrot.slane %v5013_v8, 1  ;;  %v16339_v21 = vld [vmem:[%s24334_s3 + $0x28] sm:$0xff]   ;;  %14959 = vmatprep.subr.bf16.mxu1 %v16338_v52  ;;  %v5157_v52 = vrot.slane %v5017_v9, 1  ;;  %v20967_v3 = vsel %vm4877_vm10, %v3381_v30, %v4810_v32  ;;  %v16360_v31 = vld [vmem:[%s24334_s3 + $0x270] sm:$0xff]   ;;  %v16368_v32 = vld [vmem:[%s24334_s3 + $0x340] sm:$0xff]  }
 0x2c3   : > { %15118 = vmatpush3.bf16.msra.mxu0 %v16355_v53  ;;  %v16358_v7 = vld [vmem:[%s24334_s3 + $0x268] sm:$0xff]   ;;  %v5160_v53 = vrot.slane %v5021_v42, 1  ;;  %4939 = vst [vmem:[#allocation2 + $0x100] sm:$0xff] %v20967_v3  ;;  %v6254_v26 = vrot.slane %v20967_v3, 7  ;;  %v6385_v18 = vpack.c.bf16 %v20967_v3, %v20802_v49  ;;  %v20994_v42 = vld [vmem:[#allocation2 + $0x10] sm:$0xff]  ;;  %v6332_v5 = vrot.slane %v20967_v3, 1 }
 0x2c4   : > { %v20956_v37 = vsel %vm5137_vm14, %v24557_v15, %v5154_v11  ;;  %v25293_v19 = vld [vmem:[#allocation18_spill] sm:$0xff]  ;;  %15119 = vmatprep.subr.bf16.mxu0 %v16357_v45  ;;  %v16341_v45 = vld [vmem:[%s24334_s3 + $0x30] sm:$0xff]   ;;  %v20976_v6 = vsel %vm5137_vm14, %v6326_v23, %v5157_v52  ;;  %v16342_v11 = vld [vmem:[%s24334_s3 + $0x78] sm:$0xff]   ;;  %v24558_v52 = vrot.slane %v20622_v17, 1 }
 0x2c5   : > { %v2917_v8 = vrot.slane %v25293_v19, %v16829_v58  ;;  %14960 = vmatpush3.bf16.msra.mxu1 %v16339_v21  ;;  %v20991_v9 = vsel %vm5137_vm14, %v24556_v48, %v5160_v53  ;;  %v5203_v21 = vpack.c.bf16 %v20622_v17, %v20994_v42  ;;  %6648 = vmatprep.mubr.bf16.mxu0 %v6385_v18  ;;  %v16343_v19 = vld [vmem:[%s24334_s3 + $0x38] sm:$0xff]   ;;  %v5037_v53 = vld [vmem:[#allocation2 + $0x1a8] sm:$0x1] }
 0x2c6   : > { %14961 = vmatprep.subr.bf16.mxu1 %v16340_v2  ;;  %v13918_v2 = vpack.c.bf16 %v6254_v26, %v6253_v43  ;;  %v21026_v43 = vld [vmem:[#allocation2 + $0x188] sm:$0x1]  ;;  %v24559_v26 = vrot.slane %v20865_v40, 7  ;;  %v5172_v46 = vrot.slane %v5037_v53, 1  ;;  %v16361_v48 = vld [vmem:[%s24334_s3 + $0x98] sm:$0xff]  }
 0x2c7   : > { %v3423_v28 = vsel %vm3282_vm9, %v2917_v8, %v3422_v56  ;;  %15120 = vmatpush3.bf16.msra.mxu0 %v16358_v7  ;;  %v21009_v7 = vrot.slane %v20994_v42, 7  ;;  %v16362_v8 = vld [vmem:[%s24334_s3 + $0x2b8] sm:$0xff]   ;;  %v21028_v30 = vld [vmem:[#allocation2 + $0x1c8] sm:$0x1] }
 0x2c8   : > { %v20980_v60 = vsel %vm4877_vm10, %v3423_v28, %v4822_v24  ;;  %15121 = vmatprep.subr.bf16.mxu0 %v16359_v14  ;;  %15732 = vmatmul.mubr.bf16.gmra.mrb[44].mxu1 %v5441_v1  ;;  %v6168_v14 = vld [vmem:[#allocation2 + $0x28] sm:$0x1]  ;;  %v5175_v53 = vrot.slane %v21028_v30, 1 }
 0x2c9   : > { %4951 = vst [vmem:[#allocation2 + $0x1a0] sm:$0xff] %v20980_v60  ;;  %25294 = vst [vmem:[#allocation26_spill] sm:$0xff] %v21009_v7  ;;  %14962 = vmatpush3.bf16.msra.mxu1 %v16341_v45  ;;  %6005 = vmatprep.mubr.bf16.mxu1 %v5203_v21  ;;  %v6172_v1 = vld [vmem:[#allocation2 + $0x48] sm:$0x1]  ;;  %v6312_v28 = vrot.slane %v6168_v14, 1  ;;  %v13791_v18 = vpack.c.bf16 %v6247_v39, %v21009_v7  ;;  %v6341_v56 = vrot.slane %v20980_v60, 1 }
 0x2ca   : > { %13919 = vmatmul.mubr.msk.bf16.gmra.mrb[76].mxu0 %vm19577_vm13, %v13918_v2  ;;  %14963 = vmatprep.subr.bf16.mxu1 %v16342_v11  ;;  %v6176_v24 = vld [vmem:[#allocation2 + $0x68] sm:$0x1]  ;;  %v6315_v21 = vrot.slane %v6172_v1, 1  ;;  %v5169_v14 = vrot.slane %v21026_v43, 1  ;;  %v4818_v43 = vpop.permute.xlu1 %4817 }
 0x2cb   : > { %15122 = vmatpush3.bf16.msra.mxu0 %v16360_v31  ;;  %v6180_v45 = vld [vmem:[#allocation2 + $0x88] sm:$0x1]  ;;  %v6257_v31 = vrot.slane %v20980_v60, 7  ;;  %v21048_v39 = vsel %vm5137_vm14, %v24558_v52, %v6312_v28  ;;  %v21060_v28 = vsel %vm4877_vm10, %v20489_v33, %v4818_v43  ;;  %v4830_v33 = vpop.permute.xlu0 %4829 }
 0x2cc   : > { %15123 = vmatprep.subr.bf16.mxu0 %v16362_v8  ;;  %v21037_v11 = vld [vmem:[#allocation2 + $0x1e8] sm:$0x1]  ;;  %25295 = vst [vmem:[#allocation79_spill] sm:$0xff] %v21048_v39  ;;  %v6318_v8 = vrot.slane %v6176_v24, 1  ;;  %v6321_v1 = vrot.slane %v6180_v45, 1  ;;  %4947 = vst [vmem:[#allocation2 + $0x180] sm:$0xff] %v21060_v28 }
 0x2cd   : > { %v6184_v2 = vld [vmem:[#allocation2 + $0xa8] sm:$0x1]  ;;  %14964 = vmatpush3.bf16.msra.mxu1 %v16343_v19  ;;  %v21053_v19 = vsel %vm5137_vm14, %v6314_v22, %v6315_v21  ;;  %v5178_v22 = vrot.slane %v21037_v11, 1  ;;  %v6338_v45 = vrot.slane %v21060_v28, 1  ;;  %v25301_v21 = vrot.slane %v20737_v12, 1 }
 0x2ce   : > { %v6188_v27 = vld [vmem:[#allocation2 + $0xc8] sm:$0x1]  ;;  %15735 = vmatprep.subr.bf16.mxu1 %v16346_v34  ;;  %25296 = vst [vmem:[#allocation68_spill] sm:$0xff] %v21053_v19  ;;  %v6324_v50 = vrot.slane %v6184_v2, 1  ;;  %v21073_v24 = vsel %vm5137_vm14, %v6320_v20, %v6321_v1  ;;  %v21087_v20 = vsel %vm4877_vm10, %v20508_v54, %v4830_v33  ;;  %v4826_v54 = vpop.permute.xlu1 %4825  ;;  %v6190_v19 = vld [vmem:[#allocation2 + $0xd8] sm:$0x1] }
 0x2cf   : > { %15124 = vmatpush3.bf16.msra.mxu0 %v16363_v62  ;;  %v6327_v15 = vrot.slane %v6188_v27, 1  ;;  %v21068_v62 = vsel %vm5137_vm14, %v6317_v59, %v6318_v8  ;;  %25298 = vst [vmem:[#allocation127_spill] sm:$0xff] %v21073_v24  ;;  %v6256_v27 = vrot.slane %v21060_v28, 7  ;;  %4959 = vst [vmem:[#allocation2 + $0x1e0] sm:$0xff] %v21087_v20  ;;  %v6259_v11 = vrot.slane %v21087_v20, 7 }
 0x2d0   : > { %13792 = vmatmul.mubr.msk.bf16.vlgmr.msra.gmra.mrb[48].mxu1 %vm19577_vm13, %v13791_v18  ;;  %15189 = vmatprep.subr.bf16.mxu0 %v16368_v32  ;;  %25297 = vst [vmem:[#allocation76_spill] sm:$0xff] %v21068_v62  ;;  %v6388_v32 = vpack.c.bf16 %v21060_v28, %v20865_v40  ;;  %v16356_v18 = vld [vmem:[%s24334_s3 + $0x90] sm:$0xff]   ;;  %v21115_v2 = vsel %vm5137_vm14, %v25301_v21, %v6324_v50  ;;  %v21127_v1 = vld [vmem:[#allocation2 + $0x208] sm:$0x1]  ;;  %v4838_v50 = vpop.permute.xlu0 %4837  ;;  %v6186_v62 = vld [vmem:[#allocation2 + $0xb8] sm:$0x1] }
 0x2d1   : > { %15736 = vmatpush3.bf16.msra.mxu1 %v16346_v34  ;;  %6013 = vmatprep.mubr.bf16.mxu1 %v5206_v0  ;;  %v21095_v34 = vsel %vm5137_vm14, %v6341_v56, %v5172_v46  ;;  %v21102_v25 = vsel %vm5137_vm14, %v6326_v23, %v6327_v15  ;;  %v13923_v0 = vpack.c.bf16 %v6256_v27, %v24559_v26  ;;  %v6347_v23 = vrot.slane %v21087_v20, 1  ;;  %v21129_v43 = vld [vmem:[#allocation2 + $0x228] sm:$0x1] }
 0x2d2   : > { %15737 = vmatprep.subr.bf16.mxu1 %v16351_v29  ;;  %25299 = vst [vmem:[#allocation32_spill] sm:$0xff] %v21095_v34  ;;  %25300 = vst [vmem:[#allocation36_spill] sm:$0xff] %v21102_v25  ;;  %6656 = vmatprep.mubr.bf16.mxu0 %v6388_v32  ;;  %v21110_v46 = vpack.c.bf16 %v6257_v31, %v6256_v27  ;;  %v21119_v15 = vsel %vm4877_vm10, %v20578_v57, %v4826_v54  ;;  %v6192_v54 = vld [vmem:[#allocation2 + $0xe8] sm:$0x1]  ;;  %v5181_v3 = vrot.slane %v21127_v1, 1 }
 0x2d3   : > { %25302 = vst [vmem:[#allocation111_spill] sm:$0xff] %v21115_v2  ;;  %v21125_v8 = vsel %vm5137_vm14, %v6338_v45, %v5169_v14  ;;  %4955 = vst [vmem:[#allocation2 + $0x1c0] sm:$0xff] %v21119_v15  ;;  %13924 = vmatmul.mubr.msk.bf16.gmra.mrb[80].mxu0 %vm19577_vm13, %v13923_v0  ;;  %v6258_v57 = vrot.slane %v21119_v15, 7  ;;  %v6344_v27 = vrot.slane %v21119_v15, 1  ;;  %v6391_v14 = vpack.c.bf16 %v21119_v15, %v20980_v60  ;;  %v6196_v21 = vld [vmem:[#allocation2 + $0x108] sm:$0x1] }
 0x2d4   : > { %25303 = vst [vmem:[#allocation39_spill] sm:$0xff] %v21125_v8  ;;  %v21144_v33 = vsel %vm4877_vm10, %v20585_v13, %v4838_v50  ;;  %v24561_v0 = vrot.slane %v20865_v40, 1  ;;  %v6204_v52 = vld [vmem:[#allocation2 + $0x188] sm:$0x1]  ;;  %v5184_v32 = vrot.slane %v21129_v43, 1  ;;  %v6330_v1 = vrot.slane %v6192_v54, 1  ;;  %v4834_v43 = vpop.permute.xlu1 %4833 }
 0x2d5   : > { %15738 = vmatpush3.bf16.msra.mxu1 %v16351_v29  ;;  %4967 = vst [vmem:[#allocation2 + $0x220] sm:$0xff] %v21144_v33  ;;  %6664 = vmatprep.mubr.bf16.mxu0 %v6391_v14  ;;  %v13928_v13 = vpack.c.bf16 %v6258_v57, %v6257_v31  ;;  %v21156_v50 = vpack.c.bf16 %v6259_v11, %v6258_v57  ;;  %v6200_v59 = vld [vmem:[#allocation2 + $0x168] sm:$0x1]  ;;  %v6333_v57 = vrot.slane %v6196_v21, 1  ;;  %v24560_v30 = vrot.slane %v21144_v33, 1  ;;  %v16364_v54 = vld [vmem:[%s24334_s3 + $0xa0] sm:$0xff]  }
 0x2d6   : > { %15739 = vmatprep.subr.bf16.mxu1 %v16356_v18  ;;  %v21168_v14 = vsel %vm5137_vm14, %v6344_v27, %v5175_v53  ;;  %v21173_v31 = vsel %vm5137_vm14, %v6347_v23, %v5178_v22  ;;  %v25306_v29 = vpack.c.bf16 %v20737_v12, %v20767_v44  ;;  %v6339_v26 = vrot.slane %v6204_v52, 1  ;;  %v4812_v53 = vpop.permute.xlu0 %4811  ;;  %v6224_v58 = vld [vmem:[#allocation2 + $0x228] sm:$0x1]  ;;  %v6202_v8 = vld [vmem:[#allocation2 + $0x178] sm:$0x1] }
 0x2d7   : > { %25304 = vst [vmem:[#allocation147_spill] sm:$0xff] %v21168_v14  ;;  %25305 = vst [vmem:[#allocation45_spill] sm:$0xff] %v21173_v31  ;;  %v21184_v22 = vsel %vm4877_vm10, %v20612_v63, %v4834_v43  ;;  %v25307_v12 = vrot.slane %v20802_v49, 1  ;;  %v6336_v21 = vrot.slane %v6200_v59, 1  ;;  %v6208_v43 = vld [vmem:[#allocation2 + $0x1a8] sm:$0x1] }
 0x2d8   : > { %13797 = vmatmul.mubr.msk.bf16.gmra.mrb[52].mxu1 %vm19577_vm13, %v20831_v10  ;;  %v24562_v10 = vrot.slane %v21144_v33, 7  ;;  %4963 = vst [vmem:[#allocation2 + $0x200] sm:$0xff] %v21184_v22  ;;  %v6260_v52 = vrot.slane %v21184_v22, 7  ;;  %v6350_v63 = vrot.slane %v21184_v22, 1  ;;  %v21209_v59 = vsel %vm5137_vm14, %v6338_v45, %v6339_v26  ;;  %v16365_v26 = vld [vmem:[%s24334_s3 + $0xa8] sm:$0xff]  }
 0x2d9   : > { %6021 = vmatprep.mubr.bf16.mxu1 %v25306_v29  ;;  %15740 = vmatpush3.bf16.msra.mxu1 %v16356_v18  ;;  %v21192_v44 = vsel %vm5137_vm14, %v25307_v12, %v6330_v1  ;;  %v21195_v18 = vsel %vm5137_vm14, %v6332_v5, %v6333_v57  ;;  %v6394_v29 = vpack.c.bf16 %v21184_v22, %v21087_v20  ;;  %v6212_v1 = vld [vmem:[#allocation2 + $0x1c8] sm:$0x1]  ;;  %v25321_v24 = vrot.slane %v21144_v33, 1  ;;  %v6198_v31 = vld [vmem:[#allocation2 + $0x118] sm:$0x1] }
 0x2da   : > { %15741 = vmatprep.subr.bf16.mxu1 %v16361_v48  ;;  %25308 = vst [vmem:[#allocation44_spill] sm:$0xff] %v21192_v44  ;;  %25309 = vst [vmem:[#allocation59_spill] sm:$0xff] %v21195_v18  ;;  %v21213_v5 = vsel %vm4877_vm10, %v20643_v55, %v4812_v53  ;;  %v13933_v57 = vpack.c.bf16 %v6260_v52, %v6259_v11  ;;  %v21219_v12 = vpack.c.bf16 %v24562_v10, %v6260_v52  ;;  %v6216_v11 = vld [vmem:[#allocation2 + $0x1e8] sm:$0x1]  ;;  %v21253_v53 = vld [vmem:[#allocation2 + $0x50] sm:$0xff] }
 0x2db   : > { %25310 = vst [vmem:[#allocation129_spill] sm:$0xff] %v21209_v59  ;;  %13929 = vmatmul.mubr.msk.bf16.gmra.mrb[84].mxu0 %vm19577_vm13, %v13928_v13  ;;  %v21225_v55 = vsel %vm5137_vm14, %v6350_v63, %v5181_v3  ;;  %v21230_v45 = vsel %vm5137_vm14, %v24560_v30, %v5184_v32  ;;  %v6220_v13 = vld [vmem:[#allocation2 + $0x208] sm:$0x1]  ;;  %v4842_v3 = vpop.permute.xlu1 %4841  ;;  %v6342_v32 = vrot.slane %v6208_v43, 1  ;;  %v6348_v52 = vrot.slane %v6216_v11, 1  ;;  %v21291_v18 = vld [vmem:[#allocation2 + $0xf0] sm:$0xff] }
 0x2dc   : > { %6672 = vmatprep.mubr.bf16.mxu0 %v6394_v29  ;;  %25311 = vst [vmem:[#allocation132_spill] sm:$0xff] %v21225_v55  ;;  %25312 = vst [vmem:[#allocation117_spill] sm:$0xff] %v21230_v45  ;;  %v6345_v29 = vrot.slane %v6212_v1, 1  ;;  %v21246_v30 = vsel %vm4877_vm10, %v20702_v51, %v4842_v3  ;;  %v6351_v10 = vrot.slane %v6220_v13, 1  ;;  %v21259_v51 = vld [vmem:[#allocation2 + $0x70] sm:$0xff]  ;;  %v25319_v44 = vrot.slane %v21144_v33, 7 }
 0x2dd   : > { %15742 = vmatpush3.bf16.msra.mxu1 %v16361_v48  ;;  %v21235_v48 = vsel %vm5137_vm14, %v24561_v0, %v6336_v21  ;;  %v25314_v21 = vpack.c.bf16 %v20802_v49, %v20838_v41  ;;  %v21251_v0 = vld [vmem:[#allocation2 + $0x30] sm:$0xff]  ;;  %4971 = vst [vmem:[#allocation2 + $0x240] sm:$0xff] %v21246_v30  ;;  %v6397_v43 = vpack.c.bf16 %v21246_v30, %v21144_v33  ;;  %v6206_v34 = vld [vmem:[#allocation2 + $0x198] sm:$0x1] }
 0x2de   : > { %15743 = vmatprep.subr.bf16.mxu1 %v16364_v54  ;;  %25313 = vst [vmem:[#allocation125_spill] sm:$0xff] %v21235_v48  ;;  %v21261_v1 = vld [vmem:[#allocation2 + $0x90] sm:$0xff]  ;;  %v21273_v11 = vsel %vm5137_vm14, %v6341_v56, %v6342_v32  ;;  %v21278_v13 = vsel %vm5137_vm14, %v6344_v27, %v6345_v29  ;;  %v21283_v3 = vsel %vm5137_vm14, %v6347_v23, %v6348_v52  ;;  %v6170_v48 = vld [vmem:[#allocation2 + $0x38] sm:$0x1]  ;;  %v6228_v52 = vld [vmem:[#allocation2 + $0x248] sm:$0x1] }
 0x2df   : > { %v16366_v49 = vld [vmem:[%s24334_s3 + $0xb0] sm:$0xff]   ;;  %25315 = vst [vmem:[#allocation133_spill] sm:$0xff] %v21273_v11  ;;  %25316 = vst [vmem:[#allocation154_spill] sm:$0xff] %v21278_v13  ;;  %v4844_v59 = vpop.permute.xlu1 %4843  ;;  %v6174_v29 = vld [vmem:[#allocation2 + $0x58] sm:$0x1]  ;;  %v6357_v13 = vrot.slane %v6228_v52, 1 }
 0x2e0   : > { %13802 = vmatmul.mubr.msk.bf16.gmra.mrb[56].mxu1 %vm19577_vm13, %v20835_v36  ;;  %v6262_v36 = vrot.slane %v21246_v30, 7  ;;  %v21266_v41 = vld [vmem:[#allocation2 + $0xb0] sm:$0xff]  ;;  %25317 = vst [vmem:[#allocation143_spill] sm:$0xff] %v21283_v3  ;;  %v16367_v23 = vld [vmem:[%s24334_s3 + $0xb8] sm:$0xff]   ;;  %v6883_v2 = vrot.slane %v6170_v48, 1  ;;  %v6886_v25 = vrot.slane %v6174_v29, 1 }
 0x2e1   : > { %6029 = vmatprep.mubr.bf16.mxu1 %v25314_v21  ;;  %15744 = vmatpush3.bf16.msra.mxu1 %v16364_v54  ;;  %v21268_v54 = vld [vmem:[#allocation2 + $0xd0] sm:$0xff]  ;;  %v21286_v21 = vsel %vm5137_vm14, %v6350_v63, %v6351_v10  ;;  %v21299_v10 = vsel %vm4877_vm10, %v20741_v47, %v4844_v59  ;;  %v6882_v63 = vrot.slane %v21251_v0, 1  ;;  %v6888_v59 = vrot.slane %v21259_v51, 1  ;;  %v6178_v3 = vld [vmem:[#allocation2 + $0x78] sm:$0x1] }
 0x2e2   : > { %15745 = vmatprep.subr.bf16.mxu1 %v16365_v26  ;;  %25318 = vst [vmem:[#allocation170_spill] sm:$0xff] %v21286_v21  ;;  %v13938_v56 = vpack.c.bf16 %v6262_v36, %v25319_v44  ;;  %25320 = vst [vmem:[#allocation151_spill] sm:$0xff] %v21299_v10  ;;  %v6356_v44 = vrot.slane %v21246_v30, 1  ;;  %v6885_v36 = vrot.slane %v21253_v53, 1  ;;  %v21306_v27 = vld [vmem:[#allocation2 + $0x170] sm:$0xff]  ;;  %v6891_v30 = vrot.slane %v21261_v1, 1 }
 0x2e3   : > { %13934 = vmatmul.mubr.msk.bf16.gmra.mrb[88].mxu0 %vm19577_vm13, %v13933_v57  ;;  %v21308_v32 = vld [vmem:[#allocation2 + $0x190] sm:$0xff]  ;;  %v6354_v57 = vrot.slane %v6224_v58, 1  ;;  %v6182_v21 = vld [vmem:[#allocation2 + $0x98] sm:$0x1]  ;;  %v6897_v47 = vrot.slane %v21268_v54, 1  ;;  %v6900_v58 = vrot.slane %v21291_v18, 1 }
 0x2e4   : > { %6680 = vmatprep.mubr.bf16.mxu0 %v6397_v43  ;;  %v21318_v11 = vld [vmem:[#allocation2 + $0x1b0] sm:$0xff]  ;;  %v6894_v43 = vrot.slane %v21266_v41, 1  ;;  %v6906_v48 = vrot.slane %v21306_v27, 1  ;;  %v21333_v52 = vsel %vm5137_vm14, %v6356_v44, %v6357_v13  ;;  %v21339_v29 = vsel %vm5137_vm14, %v6885_v36, %v6886_v25 }
 0x2e5   : > { %15746 = vmatpush3.bf16.msra.mxu1 %v16365_v26  ;;  %v5215_v26 = vpack.c.bf16 %v20865_v40, %v20994_v42  ;;  %v21329_v39 = vsel %vm5137_vm14, %v25321_v24, %v6354_v57  ;;  %v6909_v55 = vrot.slane %v21308_v32, 1  ;;  %v21342_v45 = vld [vmem:[#allocation2 + $0x1d0] sm:$0xff]  ;;  %v6912_v24 = vrot.slane %v21318_v11, 1  ;;  %v6194_v57 = vld [vmem:[#allocation2 + $0xf8] sm:$0x1] }
 0x2e6   : > { %15747 = vmatprep.subr.bf16.mxu1 %v16366_v49  ;;  %v6889_v25 = vrot.slane %v6178_v3, 1  ;;  %v6892_v44 = vrot.slane %v6182_v21, 1  ;;  %v6898_v36 = vrot.slane %v6190_v19, 1  ;;  %v25323_v10 = vrot.slane %v20865_v40, 7  ;;  %v21363_v19 = vld [vmem:[#allocation2 + $0x1f0] sm:$0xff] }
 0x2e7   : > { %v21365_v3 = vld [vmem:[#allocation2 + $0x210] sm:$0xff] }
 0x2e8   : > { %13807 = vmatmul.mubr.msk.bf16.gmra.mrb[60].mxu1 %vm19577_vm13, %v20874_v16  ;;  %v21336_v16 = vsel %vm5137_vm14, %v6882_v63, %v6883_v2  ;;  %v6895_v63 = vrot.slane %v6186_v62, 1  ;;  %v13811_v14 = vpack.c.bf16 %v25323_v10, %v21009_v7  ;;  %v6903_v2 = vrot.slane %v21213_v5, 1 }
 0x2e9   : > { %6037 = vmatprep.mubr.bf16.mxu1 %v5215_v26  ;;  %15748 = vmatpush3.bf16.msra.mxu1 %v16366_v49  ;;  %25322 = vst [vmem:[#allocation153_spill] sm:$0xff] %v21336_v16  ;;  %v21348_v49 = vld [vmem:[%s24334_s3 + $0x200] sm:$0xff]   ;;  %v6947_v26 = vpack.c.bf16 %v21253_v53, %v21251_v0  ;;  %v6915_v62 = vrot.slane %v21342_v45, 1  ;;  %v21368_v21 = vsel %vm5137_vm14, %v6888_v59, %v6889_v25  ;;  %v6901_v7 = vrot.slane %v6194_v57, 1  ;;  %v6210_v16 = vld [vmem:[#allocation2 + $0x1b8] sm:$0x1] }
 0x2ea   : > { %15749 = vmatprep.subr.bf16.mxu1 %v16367_v23  ;;  %25324 = vst [vmem:[#allocation42_spill] sm:$0xff] %v21368_v21  ;;  %v21371_v10 = vsel %vm5137_vm14, %v6891_v30, %v6892_v44  ;;  %v21380_v13 = vsel %vm5137_vm14, %v6897_v47, %v6898_v36  ;;  %v6904_v25 = vrot.slane %v6198_v31, 1  ;;  %v6907_v30 = vrot.slane %v6202_v8, 1  ;;  %v6222_v21 = vld [vmem:[#allocation2 + $0x218] sm:$0x1]  ;;  %v16369_v31 = vld [vmem:[%s24334_s3 + $0x300] sm:$0xff]  }
 0x2eb   : > { %13939 = vmatmul.mubr.msk.bf16.gmra.mrb[92].mxu0 %vm19577_vm13, %v13938_v56  ;;  %v6910_v44 = vrot.slane %v6206_v34, 1  ;;  %v6918_v56 = vrot.slane %v21363_v19, 1  ;;  %v25325_v47 = vpack.c.bf16 %v20980_v60, %v21060_v28  ;;  %v21392_v36 = vsel %vm5137_vm14, %v6900_v58, %v6901_v7 }
 0x2ec   : > { %7195 = vmatprep.mubr.bf16.mxu0 %v6947_v26  ;;  %v6214_v26 = vld [vmem:[#allocation2 + $0x1d8] sm:$0x1]  ;;  %v21395_v8 = vsel %vm5137_vm14, %v6903_v2, %v6904_v25  ;;  %v21398_v34 = vsel %vm5137_vm14, %v6906_v48, %v6907_v30  ;;  %v6913_v28 = vrot.slane %v6210_v16, 1  ;;  %v25326_v2 = vrot.slane %v21251_v0, 7 }
 0x2ed   : > { %15750 = vmatpush3.bf16.msra.mxu1 %v16367_v23  ;;  %v21377_v23 = vsel %vm5137_vm14, %v6894_v43, %v6895_v63  ;;  %v6921_v43 = vrot.slane %v21365_v3, 1  ;;  %v6218_v63 = vld [vmem:[#allocation2 + $0x1f8] sm:$0x1]  ;;  %v6957_v60 = vpack.c.bf16 %v21395_v8, %v21392_v36  ;;  %v6916_v58 = vrot.slane %v6214_v26, 1  ;;  %v21738_v36 = vld [vmem:[#allocation2 + $0x220] sm:$0xff] }
 0x2ee   : > { %15767 = vmatprep.subr.bf16.mxu1 %v21348_v49  ;;  %v6954_v59 = vpack.c.bf16 %v21380_v13, %v21377_v23  ;;  %v25327_v48 = vrot.slane %v21253_v53, 7  ;;  %v6919_v25 = vrot.slane %v6218_v63, 1  ;;  %v6922_v30 = vrot.slane %v6222_v21, 1  ;;  %v16403_v13 = vld [vmem:[%s24334_s3 + $0x398] sm:$0xff]  }
 0x2ef   : > { %v21423_v16 = vsel %vm5137_vm14, %v6915_v62, %v6916_v58  ;;  %v6821_v26 = vrot.slane %v21261_v1, 7  ;;  %v25328_v63 = vpack.c.bf16 %v21087_v20, %v21119_v15  ;;  %v4997_v20 = vld [vmem:[#allocation2 + $0x28] sm:$0x1]  ;;  %v16378_v15 = vld [vmem:[%s24334_s3 + $0x318] sm:$0xff]   ;;  %v6823_v58 = vrot.slane %v21268_v54, 7 }
 0x2f0   : > { %13812 = vmatmul.mubr.msk.bf16.gmra.mrb[64].mxu1 %vm19577_vm13, %v13811_v14  ;;  %v21401_v14 = vsel %vm5137_vm14, %v6909_v55, %v6910_v44  ;;  %v14015_v57 = vpack.c.bf16 %v25327_v48, %v25326_v2  ;;  %v16371_v55 = vld [vmem:[%s24334_s3 + $0x348] sm:$0xff]   ;;  %v6950_v44 = vpack.c.bf16 %v21261_v1, %v21259_v51  ;;  %v21430_v53 = vsel %vm5137_vm14, %v6918_v56, %v6919_v25  ;;  %v16374_v56 = vld [vmem:[%s24334_s3 + $0x350] sm:$0xff]   ;;  %v16380_v2 = vld [vmem:[%s24334_s3 + $0x360] sm:$0xff]  }
 0x2f1   : > { %6045 = vmatprep.mubr.bf16.mxu1 %v25325_v47  ;;  %v6960_v7 = vpack.c.bf16 %v21401_v14, %v21398_v34  ;;  %v21420_v47 = vsel %vm5137_vm14, %v6912_v24, %v6913_v28  ;;  %v21433_v21 = vsel %vm5137_vm14, %v6921_v43, %v6922_v30  ;;  %v16372_v24 = vld [vmem:[%s24334_s3 + $0x308] sm:$0xff]   ;;  %v6820_v43 = vrot.slane %v21259_v51, 7  ;;  %v16375_v1 = vld [vmem:[%s24334_s3 + $0x310] sm:$0xff]   ;;  %v16377_v28 = vld [vmem:[%s24334_s3 + $0x358] sm:$0xff]  }
 0x2f2   : > { %v6963_v0 = vpack.c.bf16 %v21423_v16, %v21420_v47  ;;  %v6966_v62 = vpack.c.bf16 %v21433_v21, %v21430_v53  ;;  %v4993_v51 = vld [vmem:[#allocation2 + $0x8] sm:$0x1]  ;;  %v5138_v48 = vrot.slane %v20994_v42, 1  ;;  %v6822_v25 = vrot.slane %v21266_v41, 7  ;;  %v16406_v47 = vld [vmem:[%s24334_s3 + $0x3b0] sm:$0xff]  }
 0x2f3   : > { %14016 = vmatmul.mubr.msk.bf16.vlgmr.msra.gmra.mrb[96].mxu0 %vm19577_vm13, %v14015_v57  ;;  %v5139_v57 = vrot.slane %v4993_v51, 1  ;;  %v25329_v30 = vpack.c.bf16 %v21144_v33, %v21184_v22  ;;  %v16384_v22 = vld [vmem:[%s24334_s3 + $0x328] sm:$0xff]   ;;  %v16390_v51 = vld [vmem:[%s24334_s3 + $0x338] sm:$0xff]  }
 0x2f4   : > { %7203 = vmatprep.mubr.bf16.mxu0 %v6950_v44  ;;  %15190 = vmatpush3.bf16.msra.mxu0 %v16369_v31  ;;  %v14020_v31 = vpack.c.bf16 %v6821_v26, %v6820_v43  ;;  %v14025_v44 = vpack.c.bf16 %v6823_v58, %v6822_v25  ;;  %v25330_v26 = vrot.slane %v20622_v17, 1  ;;  %v6824_v17 = vrot.slane %v21291_v18, 7  ;;  %v7375_v34 = vld [vmem:[#allocation2 + $0x48] sm:$0x1] }
 0x2f5   : > { %15191 = vmatprep.subr.bf16.mxu0 %v16371_v55  ;;  %v5142_v55 = vrot.slane %v4997_v20, 1  ;;  %v6827_v20 = vrot.slane %v21308_v32, 7 }
 0x2f7   : > { %v5143_v33 = vsel %vm5137_vm14, %v25330_v26, %v5142_v55  ;;  %v25332_v55 = vpack.c.bf16 %v20956_v37, %v20940_v4  ;;  %v16379_v4 = vld [vmem:[%s24334_s3 + $0x218] sm:$0xff]   ;;  %v6829_v37 = vrot.slane %v21342_v45, 7  ;;  %v6830_v26 = vrot.slane %v21363_v19, 7 }
 0x2f8   : > { %13817 = vmatmul.mubr.msk.bf16.gmra.mrb[68].mxu1 %vm19577_vm13, %v21110_v46  ;;  %15192 = vmatpush3.bf16.msra.mxu0 %v16372_v24  ;;  %v6953_v46 = vpack.c.bf16 %v21268_v54, %v21266_v41  ;;  %v16381_v54 = vld [vmem:[%s24334_s3 + $0x320] sm:$0xff]   ;;  %v16383_v24 = vld [vmem:[%s24334_s3 + $0x368] sm:$0xff]   ;;  %v5140_v41 = vsel %vm5137_vm14, %v5138_v48, %v5139_v57  ;;  %v6826_v57 = vrot.slane %v21306_v27, 7 }
 0x2f9   : > { %6053 = vmatprep.mubr.bf16.mxu1 %v25328_v63  ;;  %15193 = vmatprep.subr.bf16.mxu0 %v16374_v56  ;;  %v6825_v56 = vrot.slane %v21213_v5, 7  ;;  %v5204_v43 = vpack.c.bf16 %v5143_v33, %v5140_v41  ;;  %v16386_v63 = vld [vmem:[%s24334_s3 + $0x370] sm:$0xff]   ;;  %v14885_v41 = vpop.f32.mrb[0].mxu1  ;;  %v25338_v33 = vld [vmem:[#allocation45_spill] sm:$0xff] }
 0x2fa   : > { %v14035_v25 = vpack.c.bf16 %v6827_v20, %v6826_v57  ;;  %v25343_v20 = vld [vmem:[#allocation132_spill] sm:$0xff] }
 0x2fb   : > { %14021 = vmatmul.mubr.msk.bf16.gmra.mrb[100].mxu0 %vm19577_vm13, %v14020_v31  ;;  %v14030_v31 = vpack.c.bf16 %v6825_v56, %v6824_v17  ;;  %v25345_v57 = vld [vmem:[#allocation68_spill] sm:$0xff] }
 0x2fc   : > { %7211 = vmatprep.mubr.bf16.mxu0 %v6953_v46  ;;  %15194 = vmatpush3.bf16.msra.mxu0 %v16375_v1  ;;  %v16387_v1 = vld [vmem:[%s24334_s3 + $0x330] sm:$0xff]   ;;  %v16373_v46 = vld [vmem:[%s24334_s3 + $0x208] sm:$0xff]  }
 0x2fd   : > { %15195 = vmatprep.subr.bf16.mxu0 %v16377_v28  ;;  %v6959_v28 = vpack.c.bf16 %v21308_v32, %v21306_v27  ;;  %v16376_v32 = vld [vmem:[%s24334_s3 + $0x210] sm:$0xff]   ;;  %v25333_v27 = vrot.slane %v20865_v40, 1  ;;  %v6828_v40 = vrot.slane %v21318_v11, 7 }
 0x300   : > { %13822 = vmatmul.mubr.msk.bf16.gmra.mrb[72].mxu1 %vm19577_vm13, %v21156_v50  ;;  %15196 = vmatpush3.bf16.msra.mxu0 %v16378_v15  ;;  %v6956_v50 = vpack.c.bf16 %v21213_v5, %v21291_v18  ;;  %v16389_v5 = vld [vmem:[%s24334_s3 + $0x378] sm:$0xff]   ;;  %v5029_v18 = vld [vmem:[#allocation2 + $0x168] sm:$0x1]  ;;  %v25331_v15 = vpack.c.bf16 %v20935_v61, %v20930_v35  ;;  %v6962_v35 = vpack.c.bf16 %v21342_v45, %v21318_v11  ;;  %v25336_v11 = vld [vmem:[#allocation39_spill] sm:$0xff] }
 0x301   : > { %6061 = vmatprep.mubr.bf16.mxu1 %v25329_v30  ;;  %15197 = vmatprep.subr.bf16.mxu0 %v16380_v2  ;;  %v5166_v2 = vrot.slane %v5029_v18, 1  ;;  %v25335_v45 = vld [vmem:[#allocation32_spill] sm:$0xff] }
 0x302   : > { %v16391_v18 = vld [vmem:[%s24334_s3 + $0x238] sm:$0xff]  }
 0x303   : > { %14026 = vmatmul.mubr.msk.bf16.gmra.mrb[104].mxu0 %vm19577_vm13, %v14025_v44  ;;  %v14040_v44 = vpack.c.bf16 %v6829_v37, %v6828_v40  ;;  %v25348_v37 = vld [vmem:[#allocation127_spill] sm:$0xff] }
 0x304   : > { %7219 = vmatprep.mubr.bf16.mxu0 %v6956_v50  ;;  %15198 = vmatpush3.bf16.msra.mxu0 %v16381_v54  ;;  %v16382_v54 = vld [vmem:[%s24334_s3 + $0x220] sm:$0xff]   ;;  %v25337_v50 = vpack.c.bf16 %v25335_v45, %v25336_v11 }
 0x305   : > { %15199 = vmatprep.subr.bf16.mxu0 %v16383_v24  ;;  %v6965_v24 = vpack.c.bf16 %v21365_v3, %v21363_v19  ;;  %v25341_v19 = vld [vmem:[#allocation151_spill] sm:$0xff]  ;;  %v21614_v11 = vld [vmem:[#allocation2 + $0xa0] sm:$0xff] }
 0x308   : > { %13827 = vmatmul.mubr.msk.bf16.gmra.mrb[76].mxu1 %vm19577_vm13, %v21219_v12  ;;  %15200 = vmatpush3.bf16.msra.mxu0 %v16384_v22  ;;  %v5025_v12 = vld [vmem:[#allocation2 + $0x148] sm:$0x1]  ;;  %v25339_v22 = vld [vmem:[#allocation147_spill] sm:$0xff] }
 0x309   : > { %15751 = vmatprep.mubr.bf16.mxu1 %v5204_v43  ;;  %15201 = vmatprep.subr.bf16.mxu0 %v16386_v63  ;;  %v5163_v58 = vrot.slane %v5025_v12, 1  ;;  %v25340_v56 = vpack.c.bf16 %v25338_v33, %v25339_v22  ;;  %v14886_v43 = vpop.f32.mrb[1].mxu1  ;;  %v16388_v63 = vld [vmem:[%s24334_s3 + $0x230] sm:$0xff]   ;;  %v25355_v22 = vld [vmem:[#allocation44_spill] sm:$0xff] }
 0x30a   : > { %v21566_v17 = vadd.f32 %v14886_v43, %v14885_v41  ;;  %v16395_v41 = vld [vmem:[%s24334_s3 + $0x2d8] sm:$0xff]   ;;  %v25354_v33 = vld [vmem:[#allocation59_spill] sm:$0xff]  ;;  %v7425_v43 = vrot.slane %v21614_v11, 7 }
 0x30b   : > { %14031 = vmatmul.mubr.msk.bf16.gmra.mrb[108].mxu0 %vm19577_vm13, %v14030_v31  ;;  %v5164_v61 = vsel %vm5137_vm14, %v5138_v48, %v5163_v58  ;;  %v25334_v48 = vpack.c.bf16 %v20991_v9, %v20976_v6  ;;  %v16385_v6 = vld [vmem:[%s24334_s3 + $0x228] sm:$0xff]   ;;  %v6831_v9 = vrot.slane %v21365_v3, 7  ;;  %v14888_v3 = vpop.f32.mrb[2].mxu1  ;;  %v21568_v31 = vld [vmem:[#allocation2 + $0x230] sm:$0xff] }
 0x30c   : > { %7227 = vmatprep.mubr.bf16.mxu0 %v6959_v28  ;;  %15202 = vmatpush3.bf16.msra.mxu0 %v16387_v1  ;;  %v6968_v28 = vpack.c.bf16 %v25341_v19, %v21568_v31  ;;  %v6832_v58 = vrot.slane %v21568_v31, 7 }
 0x30d   : > { %15203 = vmatprep.subr.bf16.mxu0 %v16389_v5  ;;  %v14045_v1 = vpack.c.bf16 %v6831_v9, %v6830_v26  ;;  %v14889_v5 = vpop.f32.mrb[3].mxu1  ;;  %v16394_v9 = vld [vmem:[%s24334_s3 + $0x2d0] sm:$0xff]  }
 0x30e   : > { %v21572_v12 = vadd.f32 %v14889_v5, %v14888_v3  ;;  %v25357_v3 = vld [vmem:[#allocation129_spill] sm:$0xff] }
 0x310   : > { %15752 = vmatmul.mubr.bf16.vlgmr.msra.gmra.mrb[32].mxu1 %v25331_v15  ;;  %15204 = vmatpush3.bf16.msra.mxu0 %v16390_v51  ;;  %v25342_v51 = vld [vmem:[#allocation117_spill] sm:$0xff] }
 0x311   : > { %15768 = vmatpush3.bf16.msra.mxu1 %v21348_v49  ;;  %15755 = vmatprep.mubr.bf16.mxu1 %v25332_v55  ;;  %v5167_v49 = vsel %vm5137_vm14, %v25333_v27, %v5166_v2  ;;  %v25344_v15 = vpack.c.bf16 %v25342_v51, %v25343_v20  ;;  %v21584_v2 = vld [vmem:[#allocation2 + $0x40] sm:$0xff]  ;;  %v25346_v55 = vld [vmem:[#allocation79_spill] sm:$0xff] }
 0x312   : > { %15769 = vmatprep.subr.bf16.mxu1 %v16373_v46  ;;  %v5216_v30 = vpack.c.bf16 %v5167_v49, %v5164_v61  ;;  %v21592_v61 = vld [vmem:[#allocation2 + $0x60] sm:$0xff]  ;;  %v16393_v49 = vld [vmem:[%s24334_s3 + $0x2c8] sm:$0xff]  }
 0x313   : > { %14036 = vmatmul.mubr.msk.bf16.gmra.mrb[112].mxu0 %vm19577_vm13, %v14035_v25  ;;  %v16392_v25 = vld [vmem:[%s24334_s3 + $0x2c0] sm:$0xff]   ;;  %v7551_v27 = vpack.c.bf16 %v21592_v61, %v21584_v2  ;;  %v7423_v40 = vrot.slane %v21592_v61, 7 }
 0x314   : > { %7235 = vmatprep.mubr.bf16.mxu0 %v6962_v35 }
 0x315   : > { %15770 = vmatpush3.bf16.msra.mxu1 %v16373_v46  ;;  %v6833_v46 = vrot.slane %v25341_v19, 7 }
 0x316   : > { %15771 = vmatprep.subr.bf16.mxu1 %v16376_v32 }
 0x317   : > { %v14050_v35 = vpack.c.bf16 %v6833_v46, %v6832_v58  ;;  %v21636_v46 = vld [vmem:[#allocation2 + $0xe0] sm:$0xff]  ;;  %v16397_v58 = vld [vmem:[%s24334_s3 + $0x2e8] sm:$0xff]  }
 0x318   : > { %15756 = vmatmul.mubr.bf16.gmra.mrb[36].mxu1 %v25334_v48 }
 0x319   : > { %15772 = vmatpush3.bf16.msra.mxu1 %v16376_v32  ;;  %15759 = vmatprep.mubr.bf16.mxu1 %v5216_v30  ;;  %v25347_v32 = vpack.c.bf16 %v25345_v57, %v25346_v55  ;;  %v25349_v30 = vld [vmem:[#allocation76_spill] sm:$0xff] }
 0x31a   : > { %15773 = vmatprep.subr.bf16.mxu1 %v16379_v4  ;;  %v25350_v48 = vpack.c.bf16 %v25348_v37, %v25349_v30  ;;  %v7427_v37 = vrot.slane %v21636_v46, 7  ;;  %v21654_v30 = vld [vmem:[#allocation2 + $0x100] sm:$0xff] }
 0x31b   : > { %14041 = vmatmul.mubr.msk.bf16.gmra.mrb[116].mxu0 %vm19577_vm13, %v14040_v44  ;;  %v25351_v44 = vld [vmem:[#allocation36_spill] sm:$0xff] }
 0x31c   : > { %7243 = vmatprep.mubr.bf16.mxu0 %v6965_v24  ;;  %v25352_v24 = vld [vmem:[#allocation111_spill] sm:$0xff] }
 0x31d   : > { %15774 = vmatpush3.bf16.msra.mxu1 %v16379_v4  ;;  %v7422_v4 = vrot.slane %v21584_v2, 7 }
 0x31e   : > { %15775 = vmatprep.subr.bf16.mxu1 %v16382_v54  ;;  %v14891_v20 = vpop.f32.mrb[4].mxu1 }
 0x31f   : > { %v14127_v45 = vpack.c.bf16 %v7423_v40, %v7422_v4  ;;  %v25364_v40 = vld [vmem:[#allocation143_spill] sm:$0xff] }
 0x320   : > { %15760 = vmatmul.mubr.bf16.gmra.mrb[40].mxu1 %v25337_v50 }
 0x321   : > { %15776 = vmatpush3.bf16.msra.mxu1 %v16382_v54  ;;  %15763 = vmatprep.mubr.bf16.mxu1 %v25340_v56  ;;  %v21606_v54 = vld [vmem:[#allocation2 + $0x80] sm:$0xff]  ;;  %v25356_v56 = vpack.c.bf16 %v25354_v33, %v25355_v22 }
 0x322   : > { %15777 = vmatprep.subr.bf16.mxu1 %v16385_v6  ;;  %v7554_v50 = vpack.c.bf16 %v21614_v11, %v21606_v54  ;;  %v7424_v26 = vrot.slane %v21606_v54, 7 }
 0x323   : > { %14046 = vmatmul.mubr.msk.bf16.gmra.mrb[120].mxu0 %vm19577_vm13, %v14045_v1  ;;  %v25358_v1 = vld [vmem:[#allocation125_spill] sm:$0xff] }
 0x324   : > { %7251 = vmatprep.mubr.bf16.mxu0 %v6968_v28  ;;  %v25359_v5 = vpack.c.bf16 %v25357_v3, %v25358_v1  ;;  %v16396_v28 = vld [vmem:[%s24334_s3 + $0x2e0] sm:$0xff]  }
 0x325   : > { %15778 = vmatpush3.bf16.msra.mxu1 %v16385_v6  ;;  %v25353_v6 = vpack.c.bf16 %v25351_v44, %v25352_v24  ;;  %v16398_v24 = vld [vmem:[%s24334_s3 + $0x2f0] sm:$0xff]   ;;  %v25367_v3 = vld [vmem:[#allocation153_spill] sm:$0xff] }
 0x326   : > { %15779 = vmatprep.subr.bf16.mxu1 %v16388_v63  ;;  %v25368_v1 = vpack.c.bf16 %v21339_v29, %v25367_v3  ;;  %v16401_v29 = vld [vmem:[%s24334_s3 + $0x388] sm:$0xff]   ;;  %v6226_v3 = vld [vmem:[#allocation2 + $0x238] sm:$0x1] }
 0x328   : > { %15764 = vmatmul.mubr.bf16.gmra.mrb[44].mxu1 %v25344_v15  ;;  %v14892_v15 = vpop.f32.mrb[5].mxu1 }
 0x329   : > { %15780 = vmatpush3.bf16.msra.mxu1 %v16388_v63  ;;  %15783 = vmatprep.mubr.bf16.mxu1 %v25347_v32  ;;  %v21628_v63 = vld [vmem:[#allocation2 + $0xc0] sm:$0xff]  ;;  %v21645_v57 = vadd.f32 %v14892_v15, %v14891_v20  ;;  %v14894_v55 = vpop.f32.mrb[6].mxu1 }
 0x32a   : > { %15781 = vmatprep.subr.bf16.mxu1 %v16391_v18  ;;  %v7557_v51 = vpack.c.bf16 %v21636_v46, %v21628_v63  ;;  %v7426_v32 = vrot.slane %v21628_v63, 7  ;;  %v21686_v20 = vld [vmem:[#allocation2 + $0x1a0] sm:$0xff] }
 0x32b   : > { %14051 = vmatmul.mubr.msk.bf16.gmra.mrb[124].mxu0 %vm19577_vm13, %v14050_v35  ;;  %v25360_v35 = vld [vmem:[#allocation154_spill] sm:$0xff] }
 0x32c   : > { %7799 = vmatprep.mubr.bf16.mxu0 %v7551_v27  ;;  %v25361_v27 = vld [vmem:[#allocation133_spill] sm:$0xff] }
 0x32d   : > { %15782 = vmatpush3.bf16.msra.mxu1 %v16391_v18  ;;  %v14132_v18 = vpack.c.bf16 %v7425_v43, %v7424_v26  ;;  %v7428_v26 = vrot.slane %v21654_v30, 7  ;;  %v21675_v43 = vld [vmem:[#allocation2 + $0x180] sm:$0xff] }
 0x32e   : > { %15799 = vmatprep.subr.bf16.mxu1 %v16392_v25  ;;  %v7510_v38 = vrot.slane %v21675_v43, 1 }
 0x330   : > { %15784 = vmatmul.mubr.bf16.vlgmr.msra.gmra.mrb[32].mxu1 %v25350_v48  ;;  %v25363_v48 = vld [vmem:[#allocation170_spill] sm:$0xff] }
 0x331   : > { %15800 = vmatpush3.bf16.msra.mxu1 %v16392_v25  ;;  %15787 = vmatprep.mubr.bf16.mxu1 %v25353_v6  ;;  %v14895_v25 = vpop.f32.mrb[7].mxu1  ;;  %v25365_v44 = vpack.c.bf16 %v25363_v48, %v25364_v40  ;;  %v14137_v6 = vpack.c.bf16 %v7427_v37, %v7426_v32  ;;  %v21702_v37 = vld [vmem:[#allocation2 + $0x1c0] sm:$0xff]  ;;  %v16402_v40 = vld [vmem:[%s24334_s3 + $0x390] sm:$0xff]  }
 0x332   : > { %15801 = vmatprep.subr.bf16.mxu1 %v16393_v49  ;;  %v21651_v4 = vadd.f32 %v14895_v25, %v14894_v55  ;;  %v25370_v25 = vld [vmem:[#allocation42_spill] sm:$0xff] }
 0x333   : > { %14128 = vmatmul.mubr.msk.bf16.vlgmr.msra.gmra.mrb[128].mxu0 %vm19577_vm13, %v14127_v45  ;;  %v14897_v45 = vpop.f32.mrb[8].mxu1 }
 0x334   : > { %7807 = vmatprep.mubr.bf16.mxu0 %v7554_v50  ;;  %v16399_v50 = vld [vmem:[%s24334_s3 + $0x2f8] sm:$0xff]  }
 0x335   : > { %15802 = vmatpush3.bf16.msra.mxu1 %v16393_v49  ;;  %v25362_v49 = vpack.c.bf16 %v25360_v35, %v25361_v27  ;;  %v25371_v35 = vpack.c.bf16 %v21371_v10, %v25370_v25  ;;  %v21712_v10 = vld [vmem:[#allocation2 + $0x1e0] sm:$0xff]  ;;  %v6924_v25 = vrot.slane %v21568_v31, 1 }
 0x336   : > { %15803 = vmatprep.subr.bf16.mxu1 %v16394_v9 }
 0x338   : > { %15788 = vmatmul.mubr.bf16.gmra.mrb[36].mxu1 %v25356_v56 }
 0x339   : > { %15804 = vmatpush3.bf16.msra.mxu1 %v16394_v9  ;;  %15791 = vmatprep.mubr.bf16.mxu1 %v25359_v5  ;;  %v7560_v9 = vpack.c.bf16 %v20994_v42, %v21654_v30  ;;  %v25366_v42 = vpack.c.bf16 %v21333_v52, %v21329_v39  ;;  %v7563_v39 = vpack.c.bf16 %v21686_v20, %v21675_v43 }
 0x33a   : > { %15805 = vmatprep.subr.bf16.mxu1 %v16395_v41 }
 0x33b   : > { %14133 = vmatmul.mubr.msk.bf16.gmra.mrb[132].mxu0 %vm19577_vm13, %v14132_v18  ;;  %v25369_v18 = vld [vmem:[#allocation26_spill] sm:$0xff] }
 0x33c   : > { %7815 = vmatprep.mubr.bf16.mxu0 %v7557_v51  ;;  %v14142_v51 = vpack.c.bf16 %v25369_v18, %v7428_v26  ;;  %v21728_v26 = vld [vmem:[#allocation2 + $0x200] sm:$0xff] }
 0x33d   : > { %15806 = vmatpush3.bf16.msra.mxu1 %v16395_v41  ;;  %v14898_v41 = vpop.f32.mrb[9].mxu1  ;;  %v7569_v8 = vpack.c.bf16 %v21738_v36, %v21728_v26 }
 0x33e   : > { %15807 = vmatprep.subr.bf16.mxu1 %v16396_v28  ;;  %v21670_v33 = vadd.f32 %v14898_v41, %v14897_v45  ;;  %v14900_v22 = vpop.f32.mrb[10].mxu1 }
 0x33f   : > { %v14901_v56 = vpop.f32.mrb[11].mxu1 }
 0x340   : > { %15792 = vmatmul.mubr.bf16.gmra.mrb[40].mxu1 %v25362_v49  ;;  %v21680_v5 = vadd.f32 %v14901_v56, %v14900_v22  ;;  %v14903_v52 = vpop.f32.mrb[12].mxu1  ;;  %v7431_v49 = vrot.slane %v21686_v20, 7 }
 0x341   : > { %15808 = vmatpush3.bf16.msra.mxu1 %v16396_v28  ;;  %15795 = vmatprep.mubr.bf16.mxu1 %v25365_v44  ;;  %v16400_v28 = vld [vmem:[%s24334_s3 + $0x380] sm:$0xff]   ;;  %v14904_v15 = vpop.f32.mrb[13].mxu1 }
 0x342   : > { %15809 = vmatprep.subr.bf16.mxu1 %v16397_v58  ;;  %v21696_v55 = vadd.f32 %v14904_v15, %v14903_v52  ;;  %v14906_v32 = vpop.f32.mrb[14].mxu1  ;;  %v7377_v52 = vld [vmem:[#allocation2 + $0x68] sm:$0x1] }
 0x343   : > { %14138 = vmatmul.mubr.msk.bf16.gmra.mrb[136].mxu0 %vm19577_vm13, %v14137_v6  ;;  %v14907_v27 = vpop.f32.mrb[15].mxu1  ;;  %v7490_v16 = vrot.slane %v7377_v52, 1  ;;  %v7504_v52 = vrot.slane %v21654_v30, 1  ;;  %v7513_v30 = vrot.slane %v21686_v20, 1  ;;  %v7401_v20 = vld [vmem:[#allocation2 + $0x228] sm:$0x1] }
 0x344   : > { %7823 = vmatprep.mubr.bf16.mxu0 %v7560_v9  ;;  %v21707_v48 = vadd.f32 %v14907_v27, %v14906_v32  ;;  %v14909_v6 = vpop.f32.mrb[16].mxu1  ;;  %v7487_v32 = vrot.slane %v7375_v34, 1  ;;  %v7495_v34 = vrot.slane %v21614_v11, 1 }
 0x345   : > { %15810 = vmatpush3.bf16.msra.mxu1 %v16397_v58  ;;  %v7430_v58 = vrot.slane %v21675_v43, 7  ;;  %v14910_v23 = vpop.f32.mrb[17].mxu1  ;;  %v7399_v43 = vld [vmem:[#allocation2 + $0x208] sm:$0x1] }
 0x346   : > { %15811 = vmatprep.subr.bf16.mxu1 %v16398_v24  ;;  %v21722_v9 = vadd.f32 %v14910_v23, %v14909_v6  ;;  %v14912_v45 = vpop.f32.mrb[18].mxu1  ;;  %v16407_v23 = vld [vmem:[%s24334_s3 + $0x3b8] sm:$0xff]  }
 0x347   : > { %v14147_v44 = vpack.c.bf16 %v7431_v49, %v7430_v58  ;;  %v14913_v41 = vpop.f32.mrb[19].mxu1  ;;  %v7489_v49 = vrot.slane %v21592_v61, 1 }
 0x348   : > { %15796 = vmatmul.mubr.bf16.gmra.mrb[44].mxu1 %v25366_v42  ;;  %v21733_v22 = vadd.f32 %v14913_v41, %v14912_v45  ;;  %v16404_v42 = vld [vmem:[%s24334_s3 + $0x3a0] sm:$0xff]   ;;  %v7492_v45 = vrot.slane %v21606_v54, 1 }
 0x349   : > { %15812 = vmatpush3.bf16.msra.mxu1 %v16398_v24  ;;  %15815 = vmatprep.mubr.bf16.mxu1 %v25368_v1  ;;  %v7566_v24 = vpack.c.bf16 %v21712_v10, %v21702_v37  ;;  %v14915_v14 = vpop.f32.mrb[20].mxu1  ;;  %v6927_v1 = vrot.slane %v25341_v19, 1  ;;  %v21757_v19 = vld [vmem:[#allocation2 + $0x240] sm:$0xff] }
 0x34a   : > { %15813 = vmatprep.subr.bf16.mxu1 %v16399_v50 }
 0x34b   : > { %14143 = vmatmul.mubr.msk.bf16.gmra.mrb[140].mxu0 %vm19577_vm13, %v14142_v51  ;;  %v14916_v51 = vpop.f32.mrb[21].mxu1 }
 0x34c   : > { %7831 = vmatprep.mubr.bf16.mxu0 %v7563_v39  ;;  %v21750_v15 = vadd.f32 %v14916_v51, %v14915_v14  ;;  %v14918_v58 = vpop.f32.mrb[22].mxu1  ;;  %v7387_v51 = vld [vmem:[#allocation2 + $0x108] sm:$0x1] }
 0x34d   : > { %15814 = vmatpush3.bf16.msra.mxu1 %v16399_v50  ;;  %v7433_v50 = vrot.slane %v21712_v10, 7  ;;  %v14919_v27 = vpop.f32.mrb[23].mxu1 }
 0x34e   : > { %15831 = vmatprep.subr.bf16.mxu1 %v16400_v28 }
 0x350   : > { %15816 = vmatmul.mubr.bf16.vlgmr.msra.gmra.mrb[32].mxu1 %v25371_v35  ;;  %v7435_v35 = vrot.slane %v21738_v36, 7 }
 0x351   : > { %15832 = vmatpush3.bf16.msra.mxu1 %v16400_v28  ;;  %15819 = vmatprep.mubr.bf16.mxu1 %v6954_v59  ;;  %v7432_v59 = vrot.slane %v21702_v37, 7  ;;  %v7434_v28 = vrot.slane %v21728_v26, 7 }
 0x352   : > { %15833 = vmatprep.subr.bf16.mxu1 %v16401_v29 }
 0x353   : > { %14148 = vmatmul.mubr.msk.bf16.gmra.mrb[144].mxu0 %vm19577_vm13, %v14147_v44  ;;  %v14152_v56 = vpack.c.bf16 %v7433_v50, %v7432_v59  ;;  %v21769_v44 = vld [vmem:[#allocation2 + $0x10] sm:$0xff]  ;;  %v7381_v59 = vld [vmem:[#allocation2 + $0xa8] sm:$0x1]  ;;  %v7436_v50 = vrot.slane %v21757_v19, 7 }
 0x354   : > { %7839 = vmatprep.mubr.bf16.mxu0 %v7566_v24  ;;  %v7572_v53 = vpack.c.bf16 %v21769_v44, %v21757_v19  ;;  %v7383_v24 = vld [vmem:[#allocation2 + $0xc8] sm:$0x1]  ;;  %v7496_v14 = vrot.slane %v7381_v59, 1 }
 0x355   : > { %15834 = vmatpush3.bf16.msra.mxu1 %v16401_v29  ;;  %v7486_v29 = vrot.slane %v21584_v2, 1  ;;  %v6925_v2 = vrot.slane %v6226_v3, 1  ;;  %v14162_v54 = vpack.c.bf16 %v25369_v18, %v7436_v50  ;;  %v7507_v18 = vrot.slane %v21769_v44, 1 }
 0x356   : > { %15835 = vmatprep.subr.bf16.mxu1 %v16402_v40  ;;  %v7497_v11 = vsel %vm5137_vm14, %v7495_v34, %v7496_v14  ;;  %v7522_v50 = vrot.slane %v21728_v26, 1 }
 0x357   : > { %v7488_v21 = vsel %vm5137_vm14, %v7486_v29, %v7487_v32  ;;  %v6926_v61 = vsel %vm5137_vm14, %v6924_v25, %v6925_v2  ;;  %v7393_v2 = vld [vmem:[#allocation2 + $0x1a8] sm:$0x1] }
 0x358   : > { %15820 = vmatmul.mubr.bf16.gmra.mrb[36].mxu1 %v6957_v60  ;;  %v6230_v60 = vld [vmem:[#allocation2 + $0x258] sm:$0x1] }
 0x359   : > { %15836 = vmatpush3.bf16.msra.mxu1 %v16402_v40  ;;  %15823 = vmatprep.mubr.bf16.mxu1 %v6960_v7  ;;  %v16405_v7 = vld [vmem:[%s24334_s3 + $0x3a8] sm:$0xff]   ;;  %v6928_v39 = vrot.slane %v6230_v60, 1  ;;  %v21763_v40 = vadd.f32 %v14919_v27, %v14918_v58  ;;  %v7499_v60 = vrot.slane %v7383_v24, 1 }
 0x35a   : > { %15837 = vmatprep.subr.bf16.mxu1 %v16403_v13 }
 0x35b   : > { %14153 = vmatmul.mubr.msk.bf16.gmra.mrb[148].mxu0 %vm19577_vm13, %v14152_v56  ;;  %v6929_v31 = vsel %vm5137_vm14, %v6927_v1, %v6928_v39  ;;  %v7385_v56 = vld [vmem:[#allocation2 + $0xe8] sm:$0x1] }
 0x35c   : > { %7847 = vmatprep.mubr.bf16.mxu0 %v7569_v8  ;;  %v6969_v6 = vpack.c.bf16 %v6929_v31, %v6926_v61  ;;  %v7498_v8 = vrot.slane %v21628_v63, 1  ;;  %v7502_v3 = vrot.slane %v7385_v56, 1  ;;  %v7389_v39 = vld [vmem:[#allocation2 + $0x128] sm:$0x1] }
 0x35d   : > { %15838 = vmatpush3.bf16.msra.mxu1 %v16403_v13  ;;  %v7491_v13 = vsel %vm5137_vm14, %v7489_v49, %v7490_v16  ;;  %v7391_v63 = vld [vmem:[#allocation2 + $0x188] sm:$0x1]  ;;  %v7508_v27 = vrot.slane %v7389_v39, 1 }
 0x35e   : > { %15839 = vmatprep.subr.bf16.mxu1 %v16404_v42  ;;  %v7552_v41 = vpack.c.bf16 %v7491_v13, %v7488_v21  ;;  %v7511_v16 = vrot.slane %v7391_v63, 1  ;;  %v7395_v61 = vld [vmem:[#allocation2 + $0x1c8] sm:$0x1] }
 0x35f   : > { %v7509_v21 = vsel %vm5137_vm14, %v7507_v18, %v7508_v27  ;;  %v7397_v13 = vld [vmem:[#allocation2 + $0x1e8] sm:$0x1] }
 0x360   : > { %15824 = vmatmul.mubr.bf16.gmra.mrb[40].mxu1 %v6963_v0  ;;  %v14157_v0 = vpack.c.bf16 %v7435_v35, %v7434_v28  ;;  %v7500_v28 = vsel %vm5137_vm14, %v7498_v8, %v7499_v60  ;;  %v7505_v35 = vrot.slane %v7387_v51, 1  ;;  %v7520_v56 = vrot.slane %v7397_v13, 1 }
 0x361   : > { %15840 = vmatpush3.bf16.msra.mxu1 %v16404_v42  ;;  %15827 = vmatprep.mubr.bf16.mxu1 %v6966_v62  ;;  %v7379_v62 = vld [vmem:[#allocation2 + $0x88] sm:$0x1]  ;;  %v7525_v8 = vrot.slane %v21738_v36, 1  ;;  %v7526_v60 = vrot.slane %v7401_v20, 1 }
 0x362   : > { %15841 = vmatprep.subr.bf16.mxu1 %v16405_v7  ;;  %v7493_v42 = vrot.slane %v7379_v62, 1  ;;  %v7506_v44 = vsel %vm5137_vm14, %v7504_v52, %v7505_v35  ;;  %v7512_v62 = vsel %vm5137_vm14, %v7510_v38, %v7511_v16 }
 0x363   : > { %14158 = vmatmul.mubr.msk.bf16.gmra.mrb[152].mxu0 %vm19577_vm13, %v14157_v0  ;;  %v7561_v24 = vpack.c.bf16 %v7509_v21, %v7506_v44  ;;  %v7527_v36 = vsel %vm5137_vm14, %v7525_v8, %v7526_v60 }
 0x364   : > { %7855 = vmatprep.mubr.bf16.mxu0 %v7572_v53  ;;  %v7494_v1 = vsel %vm5137_vm14, %v7492_v45, %v7493_v42  ;;  %v7514_v53 = vrot.slane %v7393_v2, 1  ;;  %v7517_v45 = vrot.slane %v7395_v61, 1  ;;  %v7519_v42 = vrot.slane %v21712_v10, 1 }
 0x365   : > { %15842 = vmatpush3.bf16.msra.mxu1 %v16405_v7  ;;  %v7501_v7 = vrot.slane %v21636_v46, 1  ;;  %v7555_v29 = vpack.c.bf16 %v7497_v11, %v7494_v1  ;;  %v7528_v10 = vrot.slane %v21757_v19, 1 }
 0x366   : > { %15843 = vmatprep.subr.bf16.mxu1 %v16406_v47 }
 0x367   : > { %v7503_v58 = vsel %vm5137_vm14, %v7501_v7, %v7502_v3  ;;  %v7403_v3 = vld [vmem:[#allocation2 + $0x248] sm:$0x1] }
 0x368   : > { %15828 = vmatmul.mubr.bf16.gmra.mrb[44].mxu1 %v6969_v6  ;;  %v7558_v25 = vpack.c.bf16 %v7503_v58, %v7500_v28  ;;  %v7515_v6 = vsel %vm5137_vm14, %v7513_v30, %v7514_v53  ;;  %v7521_v28 = vsel %vm5137_vm14, %v7519_v42, %v7520_v56  ;;  %v7529_v52 = vrot.slane %v7403_v3, 1 }
 0x369   : > { %15844 = vmatpush3.bf16.msra.mxu1 %v16406_v47  ;;  %15847 = vmatprep.mubr.bf16.mxu1 %v7552_v41  ;;  %v14921_v46 = vpop.f32.mrb[24].mxu1  ;;  %v7564_v59 = vpack.c.bf16 %v7515_v6, %v7512_v62  ;;  %v7523_v41 = vrot.slane %v7399_v43, 1 }
 0x36a   : > { %15845 = vmatprep.subr.bf16.mxu1 %v16407_v23  ;;  %v14922_v32 = vpop.f32.mrb[25].mxu1 }
 0x36b   : > { %14163 = vmatmul.mubr.msk.bf16.gmra.mrb[156].mxu0 %vm19577_vm13, %v14162_v54  ;;  %v21796_v49 = vadd.f32 %v14922_v32, %v14921_v46  ;;  %v14924_v47 = vpop.f32.mrb[26].mxu1  ;;  %v7405_v54 = vld [vmem:[#allocation2 + $0x268] sm:$0x1]  ;;  %v7530_v32 = vsel %vm5137_vm14, %v7528_v10, %v7529_v52 }
 0x36c   : > { %v14925_v0 = vpop.f32.mrb[27].mxu1  ;;  %v7532_v46 = vrot.slane %v7405_v54, 1 }
 0x36d   : > { %15846 = vmatpush3.bf16.msra.mxu1 %v16407_v23  ;;  %v21799_v31 = vadd.f32 %v14925_v0, %v14924_v47  ;;  %v7516_v23 = vrot.slane %v21702_v37, 1  ;;  %v7524_v37 = vsel %vm5137_vm14, %v7522_v50, %v7523_v41 }
 0x36e   : > { %v7570_v63 = vpack.c.bf16 %v7527_v36, %v7524_v37 }
 0x36f   : > { %v7518_v14 = vsel %vm5137_vm14, %v7516_v23, %v7517_v45 }
 0x370   : > { %15848 = vmatmul.mubr.bf16.vlgmr.msra.gmra.mrb[32].mxu1 %v7555_v29  ;;  %v7567_v39 = vpack.c.bf16 %v7521_v28, %v7518_v14 }
 0x371   : > { %15851 = vmatprep.mubr.bf16.mxu1 %v7558_v25  ;;  %v7533_v25 = vsel %vm5137_vm14, %v7507_v18, %v7532_v46 }
 0x372   : > { %v7573_v38 = vpack.c.bf16 %v7533_v25, %v7530_v32 }
 0x378   : > { %15852 = vmatmul.mubr.bf16.gmra.mrb[36].mxu1 %v7561_v24 }
 0x379   : > { %15855 = vmatprep.mubr.bf16.mxu1 %v7564_v59 }
 0x37b   : > { %v14927_v34 = vpop.f32.mrb[28].mxu1 }
 0x37c   : > { %v14928_v7 = vpop.f32.mrb[29].mxu1 }
 0x37d   : > { %v21811_v1 = vadd.f32 %v14928_v7, %v14927_v34  ;;  %v14930_v26 = vpop.f32.mrb[30].mxu1 }
 0x37e   : > { %v14931_v51 = vpop.f32.mrb[31].mxu1 }
 0x37f   : > { %v21816_v11 = vadd.f32 %v14931_v51, %v14930_v26 }
 0x380   : > { %15856 = vmatmul.mubr.bf16.gmra.mrb[40].mxu1 %v7567_v39 }
 0x381   : > { %15859 = vmatprep.mubr.bf16.mxu1 %v7570_v63 }
 0x385   : > { %v15045_v29 = vpop.f32.mrb[64].mxu0 }
 0x386   : > { %v15046_v58 = vpop.f32.mrb[65].mxu0 }
 0x387   : > { %v15047_v35 = vadd.f32 %v15046_v58, %v15045_v29  ;;  %v15048_v27 = vpop.f32.mrb[66].mxu0 }
 0x388   : > { %v15049_v19 = vpop.f32.mrb[67].mxu0  ;;  %15860 = vmatmul.mubr.bf16.gmra.mrb[44].mxu1 %v7573_v38 }
 0x389   : > { %v15050_v2 = vadd.f32 %v15049_v19, %v15048_v27 }
 0x38d   : > { %v15051_v47 = vpop.f32.mrb[68].mxu0 }
 0x38e   : > { %v15052_v16 = vpop.f32.mrb[69].mxu0 }
 0x38f   : > { %v15053_v0 = vadd.f32 %v15052_v16, %v15051_v47  ;;  %v15054_v30 = vpop.f32.mrb[70].mxu0 }
 0x390   : > { %v15055_v53 = vpop.f32.mrb[71].mxu0 }
 0x391   : > { %v15056_v44 = vadd.f32 %v15055_v53, %v15054_v30 }
 0x395   : > { %v15057_v21 = vpop.f32.mrb[72].mxu0 }
 0x396   : > { %v15058_v62 = vpop.f32.mrb[73].mxu0 }
 0x397   : > { %v15059_v61 = vadd.f32 %v15058_v62, %v15057_v21  ;;  %v15060_v43 = vpop.f32.mrb[74].mxu0 }
 0x398   : > { %v15061_v24 = vpop.f32.mrb[75].mxu0 }
 0x399   : > { %v15062_v6 = vadd.f32 %v15061_v24, %v15060_v43 }
 0x39d   : > { %v15063_v13 = vpop.f32.mrb[76].mxu0 }
 0x39e   : > { %v15064_v18 = vpop.f32.mrb[77].mxu0 }
 0x39f   : > { %v15065_v23 = vadd.f32 %v15064_v18, %v15063_v13  ;;  %v15066_v59 = vpop.f32.mrb[78].mxu0 }
 0x3a0   : > { %v15067_v45 = vpop.f32.mrb[79].mxu0 }
 0x3a1   : > { %v21820_v20 = vadd.f32 %v15067_v45, %v15066_v59 }
 0x3a3   : > { %v14965_v50 = vpop.f32.mrb[48].mxu1 }
 0x3a4   : > { %v14966_v41 = vpop.f32.mrb[49].mxu1 }
 0x3a5   : > { %v14967_v42 = vadd.f32 %v14966_v41, %v14965_v50  ;;  %v14968_v56 = vpop.f32.mrb[50].mxu1 }
 0x3a6   : > { %v14969_v8 = vpop.f32.mrb[51].mxu1  ;;  %v15069_v14 = vpop.f32.mrb[80].mxu0 }
 0x3a7   : > { %v16028_v60 = vadd.f32 %v14967_v42, %v21566_v17  ;;  %v14970_v34 = vadd.f32 %v14969_v8, %v14968_v56  ;;  %v15070_v7 = vpop.f32.mrb[81].mxu0 }
 0x3a8   : > { %v21826_v54 = vadd.f32 %v15070_v7, %v15069_v14  ;;  %v15072_v26 = vpop.f32.mrb[82].mxu0 }
 0x3a9   : > { %v16038_v37 = vadd.f32 %v14970_v34, %v21572_v12  ;;  %v21824_v3 = vadd.f32 %v16028_v60, %v15047_v35  ;;  %v15073_v28 = vpop.f32.mrb[83].mxu0 }
 0x3aa   : > { %v21830_v39 = vadd.f32 %v15073_v28, %v15072_v26 }
 0x3ab   : > { %v14971_v10 = vpop.f32.mrb[52].mxu1  ;;  %v21828_v51 = vadd.f32 %v16038_v37, %v15050_v2 }
 0x3ac   : > { %v14972_v36 = vpop.f32.mrb[53].mxu1 }
 0x3ad   : > { %v14973_v63 = vadd.f32 %v14972_v36, %v14971_v10  ;;  %v14974_v52 = vpop.f32.mrb[54].mxu1 }
 0x3ae   : > { %v14975_v17 = vpop.f32.mrb[55].mxu1  ;;  %v15075_v58 = vpop.f32.mrb[84].mxu0 }
 0x3af   : > { %v16023_v46 = vadd.f32 %v14973_v63, %v21645_v57  ;;  %v14976_v29 = vadd.f32 %v14975_v17, %v14974_v52  ;;  %v15076_v12 = vpop.f32.mrb[85].mxu0 }
 0x3b0   : > { %v21836_v35 = vadd.f32 %v15076_v12, %v15075_v58  ;;  %v15078_v27 = vpop.f32.mrb[86].mxu0 }
 0x3b1   : > { %v16033_v32 = vadd.f32 %v14976_v29, %v21651_v4  ;;  %v21834_v25 = vadd.f32 %v16023_v46, %v15053_v0  ;;  %v15079_v19 = vpop.f32.mrb[87].mxu0 }
 0x3b2   : > { %v21840_v47 = vadd.f32 %v15079_v19, %v15078_v27 }
 0x3b3   : > { %v14977_v2 = vpop.f32.mrb[56].mxu1  ;;  %v21838_v38 = vadd.f32 %v16033_v32, %v15056_v44 }
 0x3b4   : > { %v14978_v16 = vpop.f32.mrb[57].mxu1 }
 0x3b5   : > { %v14979_v30 = vadd.f32 %v14978_v16, %v14977_v2  ;;  %v14980_v53 = vpop.f32.mrb[58].mxu1 }
 0x3b6   : > { %v14981_v57 = vpop.f32.mrb[59].mxu1  ;;  %v15081_v43 = vpop.f32.mrb[88].mxu0 }
 0x3b7   : > { %v16048_v21 = vadd.f32 %v14979_v30, %v21670_v33  ;;  %v14982_v62 = vadd.f32 %v14981_v57, %v14980_v53  ;;  %v15082_v4 = vpop.f32.mrb[89].mxu0 }
 0x3b8   : > { %v21846_v13 = vadd.f32 %v15082_v4, %v15081_v43  ;;  %v15084_v18 = vpop.f32.mrb[90].mxu0 }
 0x3b9   : > { %v16058_v0 = vadd.f32 %v14982_v62, %v21680_v5  ;;  %v21844_v24 = vadd.f32 %v16048_v21, %v15059_v61  ;;  %v15085_v44 = vpop.f32.mrb[91].mxu0 }
 0x3ba   : > { %v21850_v50 = vadd.f32 %v15085_v44, %v15084_v18 }
 0x3bb   : > { %v14983_v59 = vpop.f32.mrb[60].mxu1  ;;  %v21848_v45 = vadd.f32 %v16058_v0, %v15062_v6 }
 0x3bc   : > { %v14984_v41 = vpop.f32.mrb[61].mxu1 }
 0x3bd   : > { %v14985_v42 = vadd.f32 %v14984_v41, %v14983_v59  ;;  %v14986_v56 = vpop.f32.mrb[62].mxu1 }
 0x3be   : > { %v14987_v33 = vpop.f32.mrb[63].mxu1  ;;  %v15087_v34 = vpop.f32.mrb[92].mxu0 }
 0x3bf   : > { %v16043_v8 = vadd.f32 %v14985_v42, %v21696_v55  ;;  %v14988_v60 = vadd.f32 %v14987_v33, %v14986_v56  ;;  %v15088_v5 = vpop.f32.mrb[93].mxu0 }
 0x3c0   : > { %v21856_v7 = vadd.f32 %v15088_v5, %v15087_v34  ;;  %v15090_v37 = vpop.f32.mrb[94].mxu0 }
 0x3c1   : > { %v16053_v61 = vadd.f32 %v14988_v60, %v21707_v48  ;;  %v21854_v14 = vadd.f32 %v16043_v8, %v15065_v23  ;;  %v15091_v6 = vpop.f32.mrb[95].mxu0 }
 0x3c2   : > { %v21861_v10 = vadd.f32 %v15091_v6, %v15090_v37 }
 0x3c3   : > { %v14989_v26 = vpop.f32.mrb[64].mxu1  ;;  %v21859_v28 = vadd.f32 %v16053_v61, %v21820_v20 }
 0x3c4   : > { %v14990_v36 = vpop.f32.mrb[65].mxu1 }
 0x3c5   : > { %v14991_v63 = vadd.f32 %v14990_v36, %v14989_v26  ;;  %v14992_v55 = vpop.f32.mrb[66].mxu1 }
 0x3c6   : > { %v14993_v52 = vpop.f32.mrb[67].mxu1  ;;  %v15125_v48 = vpop.f32.mrb[96].mxu0 }
 0x3c7   : > { %v16068_v17 = vadd.f32 %v14991_v63, %v21722_v9  ;;  %v14994_v46 = vadd.f32 %v14993_v52, %v14992_v55  ;;  %v15126_v23 = vpop.f32.mrb[97].mxu0 }
 0x3c8   : > { %v15127_v12 = vadd.f32 %v15126_v23, %v15125_v48  ;;  %v15128_v32 = vpop.f32.mrb[98].mxu0 }
 0x3c9   : > { %v16078_v29 = vadd.f32 %v14994_v46, %v21733_v22  ;;  %v21866_v58 = vadd.f32 %v16068_v17, %v21826_v54  ;;  %v15129_v20 = vpop.f32.mrb[99].mxu0 }
 0x3ca   : > { %v21872_v2 = vadd.f32 %v21824_v3, %v15127_v12  ;;  %v15130_v16 = vadd.f32 %v15129_v20, %v15128_v32 }
 0x3cb   : > { %v14995_v27 = vpop.f32.mrb[68].mxu1  ;;  %v21869_v19 = vadd.f32 %v16078_v29, %v21830_v39 }
 0x3cc   : > { %v14996_v9 = vpop.f32.mrb[69].mxu1  ;;  %v21875_v57 = vadd.f32 %v21828_v51, %v15130_v16 }
 0x3cd   : > { %v14997_v30 = vadd.f32 %v14996_v9, %v14995_v27  ;;  %v14998_v53 = vpop.f32.mrb[70].mxu1 }
 0x3ce   : > { %v14999_v22 = vpop.f32.mrb[71].mxu1  ;;  %v15131_v62 = vpop.f32.mrb[100].mxu0 }
 0x3cf   : > { %v16063_v54 = vadd.f32 %v14997_v30, %v21750_v15  ;;  %v15000_v21 = vadd.f32 %v14999_v22, %v14998_v53  ;;  %v15132_v43 = vpop.f32.mrb[101].mxu0 }
 0x3d0   : > { %v15133_v0 = vadd.f32 %v15132_v43, %v15131_v62  ;;  %v15134_v3 = vpop.f32.mrb[102].mxu0 }
 0x3d1   : > { %v16073_v4 = vadd.f32 %v15000_v21, %v21763_v40  ;;  %v16064_v39 = vadd.f32 %v16063_v54, %v21836_v35  ;;  %v15135_v18 = vpop.f32.mrb[103].mxu0 }
 0x3d2   : > { %v21882_v41 = vadd.f32 %v21834_v25, %v15133_v0  ;;  %v15136_v51 = vadd.f32 %v15135_v18, %v15134_v3 }
 0x3d3   : > { %v15001_v44 = vpop.f32.mrb[72].mxu1  ;;  %v16074_v59 = vadd.f32 %v16073_v4, %v21840_v47 }
 0x3d4   : > { %v15002_v42 = vpop.f32.mrb[73].mxu1  ;;  %v21885_v33 = vadd.f32 %v21838_v38, %v15136_v51 }
 0x3d5   : > { %v15003_v56 = vadd.f32 %v15002_v42, %v15001_v44  ;;  %v15004_v15 = vpop.f32.mrb[74].mxu1 }
 0x3d6   : > { %v15005_v8 = vpop.f32.mrb[75].mxu1  ;;  %v15137_v60 = vpop.f32.mrb[104].mxu0 }
 0x3d7   : > { %v16088_v40 = vadd.f32 %v15003_v56, %v21796_v49  ;;  %v15006_v35 = vadd.f32 %v15005_v8, %v15004_v15  ;;  %v15138_v34 = vpop.f32.mrb[105].mxu0 }
 0x3d8   : > { %v15139_v61 = vadd.f32 %v15138_v34, %v15137_v60  ;;  %v15140_v25 = vpop.f32.mrb[106].mxu0 }
 0x3d9   : > { %v16098_v5 = vadd.f32 %v15006_v35, %v21799_v31  ;;  %v16089_v47 = vadd.f32 %v16088_v40, %v21846_v13  ;;  %v15141_v37 = vpop.f32.mrb[107].mxu0 }
 0x3da   : > { %v21892_v36 = vadd.f32 %v21844_v24, %v15139_v61  ;;  %v15142_v38 = vadd.f32 %v15141_v37, %v15140_v25 }
 0x3db   : > { %v15007_v6 = vpop.f32.mrb[76].mxu1  ;;  %v16099_v26 = vadd.f32 %v16098_v5, %v21850_v50 }
 0x3dc   : > { %v15008_v63 = vpop.f32.mrb[77].mxu1  ;;  %v21895_v52 = vadd.f32 %v21848_v45, %v15142_v38 }
 0x3dd   : > { %v15009_v55 = vadd.f32 %v15008_v63, %v15007_v6  ;;  %v15010_v49 = vpop.f32.mrb[78].mxu1 }
 0x3de   : > { %v15011_v17 = vpop.f32.mrb[79].mxu1  ;;  %v15143_v46 = vpop.f32.mrb[108].mxu0 }
 0x3df   : > { %v16083_v31 = vadd.f32 %v15009_v55, %v21811_v1  ;;  %v15012_v13 = vadd.f32 %v15011_v17, %v15010_v49  ;;  %v15144_v48 = vpop.f32.mrb[109].mxu0 }
 0x3e0   : > { %v15145_v29 = vadd.f32 %v15144_v48, %v15143_v46  ;;  %v15146_v24 = vpop.f32.mrb[110].mxu0 }
 0x3e1   : > { %v16093_v23 = vadd.f32 %v15012_v13, %v21816_v11  ;;  %v16084_v50 = vadd.f32 %v16083_v31, %v21856_v7  ;;  %v15147_v12 = vpop.f32.mrb[111].mxu0 }
 0x3e2   : > { %v21902_v20 = vadd.f32 %v21854_v14, %v15145_v29  ;;  %v15148_v45 = vadd.f32 %v15147_v12, %v15146_v24  ;;  %v16413_v24 = vld [vmem:[%s24336_s5 + $0x108] sm:$0xff]  }
 0x3e3   : > { %v16094_v32 = vadd.f32 %v16093_v23, %v21861_v10 }
 0x3e4   : > { %v21905_v27 = vadd.f32 %v21859_v28, %v15148_v45 }
 0x3e6   : > { %v15149_v1 = vpop.f32.mrb[112].mxu0 }
 0x3e7   : > { %v15150_v16 = vpop.f32.mrb[113].mxu0 }
 0x3e8   : > { %v15151_v9 = vadd.f32 %v15150_v16, %v15149_v1  ;;  %v15152_v30 = vpop.f32.mrb[114].mxu0  ;;  %v16410_v1 = vld [vmem:[%s24336_s5 + $0x150] sm:$0xff]  }
 0x3e9   : > { %v15153_v53 = vpop.f32.mrb[115].mxu0 }
 0x3ea   : > { %v21908_v11 = vadd.f32 %v21866_v58, %v15151_v9  ;;  %v15154_v7 = vadd.f32 %v15153_v53, %v15152_v30 }
 0x3ec   : > { %v21911_v22 = vadd.f32 %v21869_v19, %v15154_v7 }
 0x3ee   : > { %v15155_v10 = vpop.f32.mrb[116].mxu0 }
 0x3ef   : > { %v15156_v54 = vpop.f32.mrb[117].mxu0 }
 0x3f0   : > { %v15157_v14 = vadd.f32 %v15156_v54, %v15155_v10  ;;  %v15158_v21 = vpop.f32.mrb[118].mxu0 }
 0x3f1   : > { %v15159_v62 = vpop.f32.mrb[119].mxu0 }
 0x3f2   : > { %v21913_v43 = vadd.f32 %v16064_v39, %v15157_v14  ;;  %v15160_v28 = vadd.f32 %v15159_v62, %v15158_v21 }
 0x3f4   : > { %v21915_v4 = vadd.f32 %v16074_v59, %v15160_v28 }
 0x3f6   : > { %v15161_v0 = vpop.f32.mrb[120].mxu0 }
 0x3f7   : > { %v15162_v3 = vpop.f32.mrb[121].mxu0 }
 0x3f8   : > { %v15163_v18 = vadd.f32 %v15162_v3, %v15161_v0  ;;  %v15164_v44 = vpop.f32.mrb[122].mxu0 }
 0x3f9   : > { %v15165_v58 = vpop.f32.mrb[123].mxu0 }
 0x3fa   : > { %v21917_v51 = vadd.f32 %v16089_v47, %v15163_v18  ;;  %v15166_v42 = vadd.f32 %v15165_v58, %v15164_v44 }
 0x3fc   : > { %v21919_v19 = vadd.f32 %v16099_v26, %v15166_v42 }
 0x3fe   : > { %v15167_v56 = vpop.f32.mrb[124].mxu0 }
 0x3ff   : > { %v15168_v15 = vpop.f32.mrb[125].mxu0 }
 0x400   : > { %v15169_v8 = vadd.f32 %v15168_v15, %v15167_v56  ;;  %v15170_v40 = vpop.f32.mrb[126].mxu0 }
 0x401   : > { %v15171_v35 = vpop.f32.mrb[127].mxu0 }
 0x402   : > { %v21921_v39 = vadd.f32 %v16084_v50, %v15169_v8  ;;  %v15172_v60 = vadd.f32 %v15171_v35, %v15170_v40 }
 0x404   : > { %v21923_v59 = vadd.f32 %v16094_v32, %v15172_v60 }
 0x406   : > { %v15205_v34 = vpop.f32.mrb[128].mxu0 }
 0x407   : > { %v15206_v5 = vpop.f32.mrb[129].mxu0 }
 0x408   : > { %v15207_v61 = vadd.f32 %v15206_v5, %v15205_v34  ;;  %v15208_v25 = vpop.f32.mrb[130].mxu0 }
 0x409   : > { %v15209_v37 = vpop.f32.mrb[131].mxu0 }
 0x40a   : > { %v15210_v47 = vadd.f32 %v15209_v37, %v15208_v25  ;;  %v21926_v6 = vadd.f32 %v21872_v2, %v15207_v61  ;;  %v16408_v2 = vld [vmem:[%s24336_s5 + $0x140] sm:$0xff]  }
 0x40b   : > { %15863 = vmatprep.subr.bf16.mxu0 %v16408_v2 }
 0x40c   : > { %v21929_v26 = vadd.f32 %v21875_v57, %v15210_v47  ;;  %v16409_v57 = vld [vmem:[%s24336_s5 + $0x148] sm:$0xff]   ;;  %15864 = vmatpush3.bf16.msra.mxu0 %v16408_v2 }
 0x40d   : > { %15865 = vmatprep.subr.bf16.mxu0 %v16409_v57 }
 0x40e   : > { %v15211_v38 = vpop.f32.mrb[132].mxu0 }
 0x40f   : > { %v15212_v63 = vpop.f32.mrb[133].mxu0 }
 0x410   : > { %v15213_v55 = vadd.f32 %v15212_v63, %v15211_v38  ;;  %v15214_v49 = vpop.f32.mrb[134].mxu0  ;;  %15866 = vmatpush3.bf16.msra.mxu0 %v16409_v57 }
 0x411   : > { %v15215_v17 = vpop.f32.mrb[135].mxu0  ;;  %15867 = vmatprep.subr.bf16.mxu0 %v16410_v1 }
 0x412   : > { %v15216_v31 = vadd.f32 %v15215_v17, %v15214_v49  ;;  %v21932_v13 = vadd.f32 %v21882_v41, %v15213_v55  ;;  %v16411_v41 = vld [vmem:[%s24336_s5 + $0x100] sm:$0xff]  }
 0x413   : > { %15269 = vmatprep.subr.bf16.mxu1 %v16411_v41 }
 0x414   : > { %v21935_v46 = vadd.f32 %v21885_v33, %v15216_v31  ;;  %v16412_v33 = vld [vmem:[%s24336_s5 + $0xc0] sm:$0xff]   ;;  %15868 = vmatpush3.bf16.msra.mxu0 %v16410_v1 }
 0x415   : > { %15270 = vmatpush3.bf16.msra.mxu1 %v16412_v33 }
 0x416   : > { %v15217_v48 = vpop.f32.mrb[136].mxu0  ;;  %15271 = vmatprep.subr.bf16.mxu1 %v16413_v24 }
 0x417   : > { %v15218_v23 = vpop.f32.mrb[137].mxu0 }
 0x418   : > { %v15219_v50 = vadd.f32 %v15218_v23, %v15217_v48  ;;  %v15220_v29 = vpop.f32.mrb[138].mxu0 }
 0x419   : > { %v15221_v12 = vpop.f32.mrb[139].mxu0 }
 0x41a   : > { %v15222_v32 = vadd.f32 %v15221_v12, %v15220_v29  ;;  %v21953_v45 = vadd.f32 %v21892_v36, %v15219_v50  ;;  %v25372_v12 = vld [vmem:[#allocation5_spill] sm:$0xff] }
 0x41c   : > { %v21959_v16 = vadd.f32 %v21895_v52, %v15222_v32 }
 0x41e   : > { %v15223_v9 = vpop.f32.mrb[140].mxu0 }
 0x41f   : > { %v15224_v30 = vpop.f32.mrb[141].mxu0 }
 0x420   : > { %v15225_v53 = vadd.f32 %v15224_v30, %v15223_v9  ;;  %v15226_v7 = vpop.f32.mrb[142].mxu0 }
 0x421   : > { %v15227_v36 = vpop.f32.mrb[143].mxu0 }
 0x422   : > { %v15228_v10 = vadd.f32 %v15227_v36, %v15226_v7  ;;  %v21962_v54 = vadd.f32 %v21902_v20, %v15225_v53 }
 0x424   : > { %v21965_v14 = vadd.f32 %v21905_v27, %v15228_v10 }
 0x426   : > { %v15229_v21 = vpop.f32.mrb[144].mxu0 }
 0x427   : > { %v15230_v62 = vpop.f32.mrb[145].mxu0 }
 0x428   : > { %v15231_v52 = vadd.f32 %v15230_v62, %v15229_v21  ;;  %v15232_v28 = vpop.f32.mrb[146].mxu0 }
 0x429   : > { %v15233_v0 = vpop.f32.mrb[147].mxu0 }
 0x42a   : > { %v15234_v3 = vadd.f32 %v15233_v0, %v15232_v28  ;;  %v21968_v18 = vadd.f32 %v21908_v11, %v15231_v52  ;;  %v25373_v52 = vld [vmem:[#allocation6_spill] sm:$0xff] }
 0x42c   : > { %v21971_v44 = vadd.f32 %v21911_v22, %v15234_v3  ;;  %v25374_v3 = vld [vmem:[#allocation7_spill] sm:$0xff] }
 0x42e   : > { %v15235_v58 = vpop.f32.mrb[148].mxu0 }
 0x42f   : > { %v15236_v42 = vpop.f32.mrb[149].mxu0 }
 0x430   : > { %v15237_v20 = vadd.f32 %v15236_v42, %v15235_v58  ;;  %v15238_v56 = vpop.f32.mrb[150].mxu0 }
 0x431   : > { %v15239_v15 = vpop.f32.mrb[151].mxu0 }
 0x432   : > { %v15240_v8 = vadd.f32 %v15239_v15, %v15238_v56  ;;  %v21974_v27 = vadd.f32 %v21913_v43, %v15237_v20 }
 0x434   : > { %v21977_v40 = vadd.f32 %v21915_v4, %v15240_v8  ;;  %v21988_v4 = vld [vmem:[%s24335_s4] ss:$0 sm:$0xff] }
 0x436   : > { %v15241_v35 = vpop.f32.mrb[152].mxu0 }
 0x437   : > { %v15242_v60 = vpop.f32.mrb[153].mxu0 }
 0x438   : > { %v15243_v34 = vadd.f32 %v15242_v60, %v15241_v35  ;;  %v15244_v11 = vpop.f32.mrb[154].mxu0 }
 0x439   : > { %v15245_v5 = vpop.f32.mrb[155].mxu0 }
 0x43a   : > { %v15246_v61 = vadd.f32 %v15245_v5, %v15244_v11  ;;  %v21980_v22 = vadd.f32 %v21917_v51, %v15243_v34 }
 0x43c   : > { %v21983_v25 = vadd.f32 %v21919_v19, %v15246_v61 }
 0x43e   : > { %v15247_v37 = vpop.f32.mrb[156].mxu0 }
 0x43f   : > { %v15248_v47 = vpop.f32.mrb[157].mxu0 }
 0x440   : > { %v15249_v38 = vadd.f32 %v15248_v47, %v15247_v37  ;;  %v15250_v43 = vpop.f32.mrb[158].mxu0 }
 0x441   : > { %v15251_v63 = vpop.f32.mrb[159].mxu0 }
 0x442   : > { %v15252_v49 = vadd.f32 %v15251_v63, %v15250_v43  ;;  %v21992_v51 = vadd.f32 %v21921_v39, %v15249_v38 }
 0x443   : > { %v15849_v55 = vpop.f32.mrb[32].mxu1 }
 0x444   : > { %v16027_v17 = vadd.f32 %v21932_v13, %v15849_v55  ;;  %v7898_v31 = vpop.f32.mrb[33].mxu1  ;;  %v21998_v50 = vadd.f32 %v21923_v59, %v15252_v49 }
 0x445   : > { %v16032_v19 = vadd.f32 %v21926_v6, %v7898_v31  ;;  %v15850_v48 = vpop.f32.mrb[34].mxu1 }
 0x446   : > { %v7986_v23 = vadd.f32 %v16027_v17, %v21988_v4  ;;  %v16037_v2 = vadd.f32 %v21935_v46, %v15850_v48  ;;  %v7901_v57 = vpop.f32.mrb[35].mxu1 }
 0x447   : > { %v7984_v29 = vadd.f32 %v16032_v19, %v21988_v4  ;;  %v16042_v41 = vadd.f32 %v21929_v26, %v7901_v57 }
 0x448   : > { %v8002_v13 = vmax.f32 %v7986_v23, 0.0  ;;  %v7987_v39 = vadd.f32 %v16037_v2, %v21988_v4 }
 0x449   : > { %v8000_v33 = vmax.f32 %v7984_v29, 0.0  ;;  %v7985_v24 = vadd.f32 %v16042_v41, %v21988_v4 }
 0x44a   : > { %v8066_v6 = vcombine.high %v8002_v13, %v8002_v13  ;;  %v8073_v32 = vrot.slane %v8002_v13, %v25372_v12  ;;  %v8003_v36 = vmax.f32 %v7987_v39, 0.0 }
 0x44b   : > { %v8032_v1 = vcombine.high %v8000_v33, %v8000_v33  ;;  %v8039_v46 = vrot.slane %v8000_v33, %v25372_v12  ;;  %v15853_v9 = vpop.f32.mrb[36].mxu1  ;;  %v8001_v10 = vmax.f32 %v7985_v24, 0.0 }
 0x44c   : > { %v22007_v59 = vrot.slane %v8066_v6, %v25372_v12  ;;  %v8081_v30 = vcombine.high %v8073_v32, %v8073_v32  ;;  %v7914_v53 = vpop.f32.mrb[37].mxu1  ;;  %v8339_v28 = vrot.slane %v8073_v32, %v25373_v52  ;;  %v8659_v58 = vrot.slane %v8073_v32, %v25374_v3 }
 0x44d   : > { %v22010_v26 = vrot.slane %v8032_v1, %v25372_v12  ;;  %v8047_v7 = vcombine.high %v8039_v46, %v8039_v46  ;;  %v15854_v21 = vpop.f32.mrb[38].mxu1  ;;  %v8307_v56 = vrot.slane %v8039_v46, %v25373_v52  ;;  %v8627_v8 = vrot.slane %v8039_v46, %v25374_v3 }
 0x44e   : > { %v22014_v62 = vcombine.high %v22007_v59, %v22007_v59  ;;  %v8343_v0 = vrot.slane %v8081_v30, %v25373_v52  ;;  %v7917_v42 = vpop.f32.mrb[39].mxu1  ;;  %v8663_v20 = vrot.slane %v8081_v30, %v25374_v3  ;;  %v8667_v34 = vrot.slane %v22007_v59, %v25374_v3 }
 0x44f   : > { %v8311_v15 = vrot.slane %v8047_v7, %v25373_v52  ;;  %v22032_v11 = vcombine.high %v22010_v26, %v22010_v26  ;;  %v8631_v47 = vrot.slane %v8047_v7, %v25374_v3  ;;  %v8083_v43 = vcombine.high %v8003_v36, %v8003_v36 }
 0x450   : > { %v22026_v60 = vsel %vm3270_vm3, %v8343_v0, %v8339_v28  ;;  %v8671_v38 = vrot.slane %v22014_v62, %v25374_v3  ;;  %v22045_v63 = vrot.slane %v8003_v36, %v25372_v12  ;;  %v8049_v55 = vcombine.high %v8001_v10, %v8001_v10 }
 0x451   : > { %v22039_v37 = vsel %vm3270_vm3, %v8311_v15, %v8307_v56  ;;  %v22048_v49 = vsel %vm3270_vm3, %v8663_v20, %v8659_v58  ;;  %v22051_v17 = vrot.slane %v8001_v10, %v25372_v12  ;;  %v16047_v31 = vadd.f32 %v21962_v54, %v15853_v9 }
 0x452   : > { %v16052_v19 = vadd.f32 %v21953_v45, %v7914_v53  ;;  %v22062_v29 = vsel %vm3270_vm3, %v8631_v47, %v8627_v8  ;;  %v22065_v13 = vrot.slane %v8083_v43, %v25372_v12  ;;  %v22069_v45 = vcombine.high %v22045_v63, %v22045_v63 }
 0x453   : > { %v15857_v48 = vpop.f32.mrb[40].mxu1  ;;  %v22076_v24 = vrot.slane %v8049_v55, %v25372_v12  ;;  %v7990_v6 = vadd.f32 %v16047_v31, %v21988_v4  ;;  %v16057_v1 = vadd.f32 %v21965_v14, %v15854_v21  ;;  %v22083_v9 = vcombine.high %v22051_v17, %v22051_v17 }
 0x454   : > { %v7930_v41 = vpop.f32.mrb[41].mxu1  ;;  %25375 = vst [vmem:[#allocation48_spill] sm:$0xff] %v22069_v45  ;;  %v7988_v32 = vadd.f32 %v16052_v19, %v21988_v4  ;;  %v16062_v30 = vadd.f32 %v21959_v16, %v7917_v42  ;;  %v16067_v53 = vadd.f32 %v21974_v27, %v15857_v48 }
 0x455   : > { %v15858_v39 = vpop.f32.mrb[42].mxu1  ;;  %25376 = vst [vmem:[#allocation51_spill] sm:$0xff] %v22076_v24  ;;  %25377 = vst [vmem:[#allocation178_spill] sm:$0xff] %v22083_v9  ;;  %v16072_v7 = vadd.f32 %v21968_v18, %v7930_v41  ;;  %v8006_v36 = vmax.f32 %v7990_v6, 0.0  ;;  %v7991_v28 = vadd.f32 %v16057_v1, %v21988_v4 }
 0x456   : > { %v7933_v46 = vpop.f32.mrb[43].mxu1  ;;  %v8004_v10 = vmax.f32 %v7988_v32, 0.0  ;;  %v22090_v0 = vadd.f32 %v21977_v40, %v15858_v39  ;;  %v7989_v14 = vadd.f32 %v16062_v30, %v21988_v4  ;;  %v7994_v21 = vadd.f32 %v16067_v53, %v21988_v4 }
 0x457   : > { %v7992_v58 = vadd.f32 %v16072_v7, %v21988_v4  ;;  %v22096_v20 = vadd.f32 %v21971_v44, %v7933_v46  ;;  %v8134_v16 = vcombine.high %v8006_v36, %v8006_v36  ;;  %v8141_v27 = vrot.slane %v8006_v36, %v25372_v12 }
 0x458   : > { %v8100_v18 = vcombine.high %v8004_v10, %v8004_v10  ;;  %v8107_v42 = vrot.slane %v8004_v10, %v25372_v12  ;;  %v8007_v55 = vmax.f32 %v7991_v28, 0.0  ;;  %v8005_v31 = vmax.f32 %v7989_v14, 0.0 }
 0x459   : > { %v22111_v47 = vrot.slane %v8134_v16, %v25372_v12  ;;  %v8149_v43 = vcombine.high %v8141_v27, %v8141_v27  ;;  %v8010_v39 = vmax.f32 %v7994_v21, 0.0  ;;  %v8008_v6 = vmax.f32 %v7992_v58, 0.0 }
 0x45a   : > { %v22116_v48 = vrot.slane %v8100_v18, %v25372_v12  ;;  %v8115_v41 = vcombine.high %v8107_v42, %v8107_v42  ;;  %v8403_v46 = vrot.slane %v8141_v27, %v25373_v52  ;;  %v8723_v53 = vrot.slane %v8141_v27, %v25374_v3 }
 0x45b   : > { %v22108_v44 = vpop.f32.mrb[44].mxu1  ;;  %v22122_v1 = vcombine.high %v22111_v47, %v22111_v47  ;;  %v8407_v30 = vrot.slane %v8149_v43, %v25373_v52  ;;  %v8727_v36 = vrot.slane %v8149_v43, %v25374_v3  ;;  %v8371_v10 = vrot.slane %v8107_v42, %v25373_v52 }
 0x45c   : > { %v22113_v19 = vpop.f32.mrb[45].mxu1  ;;  %v8375_v28 = vrot.slane %v8115_v41, %v25373_v52  ;;  %v8691_v14 = vrot.slane %v8107_v42, %v25374_v3  ;;  %v22142_v27 = vcombine.high %v22116_v48, %v22116_v48  ;;  %v8695_v21 = vrot.slane %v8115_v41, %v25374_v3 }
 0x45d   : > { %v22118_v32 = vpop.f32.mrb[46].mxu1  ;;  %v22136_v58 = vsel %vm3270_vm3, %v8407_v30, %v8403_v46  ;;  %v8151_v30 = vcombine.high %v8007_v55, %v8007_v55  ;;  %v22155_v15 = vrot.slane %v8007_v55, %v25372_v12  ;;  %v8117_v40 = vcombine.high %v8005_v31, %v8005_v31 }
 0x45e   : > { %v22127_v7 = vpop.f32.mrb[47].mxu1  ;;  %25378 = vst [vmem:[#allocation55_spill] sm:$0xff] %v22136_v58  ;;  %v22149_v42 = vsel %vm3270_vm3, %v8375_v28, %v8371_v10  ;;  %v22158_v23 = vsel %vm3270_vm3, %v8727_v36, %v8723_v53  ;;  %v22161_v18 = vrot.slane %v8005_v31, %v25372_v12  ;;  %v8202_v43 = vcombine.high %v8010_v39, %v8010_v39 }
 0x45f   : > { %25379 = vst [vmem:[#allocation64_spill] sm:$0xff] %v22149_v42  ;;  %v8209_v10 = vrot.slane %v8010_v39, %v25372_v12  ;;  %v22172_v56 = vcombine.high %v22155_v15, %v22155_v15  ;;  %v22175_v53 = vsel %vm3270_vm3, %v8695_v21, %v8691_v14  ;;  %v22178_v31 = vrot.slane %v8151_v30, %v25372_v12 }
 0x460   : > { %v22184_v36 = vcombine.high %v22161_v18, %v22161_v18  ;;  %v22189_v61 = vrot.slane %v8117_v40, %v25372_v12  ;;  %v22192_v54 = vrot.slane %v8202_v43, %v25372_v12  ;;  %v8168_v39 = vcombine.high %v8008_v6, %v8008_v6 }
 0x461   : > { %v8217_v14 = vcombine.high %v8209_v10, %v8209_v10  ;;  %v8175_v5 = vrot.slane %v8008_v6, %v25372_v12  ;;  %v8467_v43 = vrot.slane %v8209_v10, %v25373_v52  ;;  %v8787_v55 = vrot.slane %v8209_v10, %v25374_v3 }
 0x462   : > { %v22203_v40 = vcombine.high %v22192_v54, %v22192_v54  ;;  %v22211_v16 = vrot.slane %v8168_v39, %v25372_v12  ;;  %v7995_v10 = vadd.f32 %v22090_v0, %v21988_v4  ;;  %v7993_v35 = vadd.f32 %v22096_v20, %v21988_v4 }
 0x463   : > { %v8471_v41 = vrot.slane %v8217_v14, %v25373_v52  ;;  %v8791_v46 = vrot.slane %v8217_v14, %v25374_v3  ;;  %v8183_v6 = vcombine.high %v8175_v5, %v8175_v5  ;;  %v8435_v39 = vrot.slane %v8175_v5, %v25373_v52 }
 0x464   : > { %v22225_v14 = vcombine.high %v22211_v16, %v22211_v16  ;;  %v8755_v2 = vrot.slane %v8175_v5, %v25374_v3  ;;  %v8009_v33 = vmax.f32 %v7993_v35, 0.0  ;;  %v22249_v0 = vcombine.high %v22065_v13, %v22065_v13  ;;  %v16414_v35 = vld [vmem:[%s24336_s5 + $0xc8] sm:$0xff]  }
 0x465   : > { %v22216_v30 = vsel %vm3270_vm3, %v8471_v41, %v8467_v43  ;;  %v8439_v8 = vrot.slane %v8183_v6, %v25373_v52  ;;  %v8759_v43 = vrot.slane %v8183_v6, %v25374_v3  ;;  %v22237_v21 = vsel %vm3270_vm3, %v8791_v46, %v8787_v55  ;;  %15272 = vmatpush3.bf16.msra.mxu1 %v16414_v35 }
 0x466   : > { %25380 = vst [vmem:[#allocation173_spill] sm:$0xff] %v22216_v30  ;;  %v8011_v41 = vmax.f32 %v7995_v10, 0.0  ;;  %25382 = vst [vmem:[#allocation53_spill] sm:$0xff] %v22249_v0  ;;  %v8888_v5 = vsel %vm3272_vm4, %v8667_v34, %v22048_v49  ;;  %v8185_v20 = vcombine.high %v8009_v33, %v8009_v33  ;;  %v22274_v28 = vrot.slane %v8009_v33, %v25372_v12  ;;  %v16416_v33 = vld [vmem:[%s24336_s5 + $0x110] sm:$0xff]  }
 0x467   : > { %v22242_v57 = vsel %vm3270_vm3, %v8439_v8, %v8435_v39  ;;  %v22262_v8 = vcombine.high %v22076_v24, %v22076_v24  ;;  %v22268_v55 = vsel %vm3270_vm3, %v8759_v43, %v8755_v2  ;;  %v8679_v34 = vrot.slane %v22069_v45, %v25374_v3  ;;  %15273 = vmatprep.subr.bf16.mxu1 %v16416_v33 }
 0x468   : > { %25381 = vst [vmem:[#allocation165_spill] sm:$0xff] %v22242_v57  ;;  %v8219_v39 = vcombine.high %v8011_v41, %v8011_v41  ;;  %v22271_v10 = vrot.slane %v8011_v41, %v25372_v12  ;;  %v8683_v49 = vrot.slane %v22065_v13, %v25374_v3  ;;  %v8889_v2 = vsel %vm3274_vm5, %v8671_v38, %v8888_v5  ;;  %v16415_v41 = vld [vmem:[%s24336_s5 + $0x158] sm:$0xff]   ;;  %v16417_v5 = vld [vmem:[%s24336_s5 + $0xd0] sm:$0xff]  }
 0x469   : > { %25383 = vst [vmem:[#allocation85_spill] sm:$0xff] %v22262_v8  ;;  %v8687_v43 = vrot.slane %v22249_v0, %v25374_v3  ;;  %v8647_v46 = vrot.slane %v22083_v9, %v25374_v3  ;;  %v8651_v6 = vrot.slane %v22076_v24, %v25374_v3  ;;  %v8655_v38 = vrot.slane %v22262_v8, %v25374_v3  ;;  %v16418_v9 = vld [vmem:[%s24336_s5 + $0x118] sm:$0xff]  }
 0x46a   : > { %v22302_v35 = vrot.slane %v8219_v39, %v25372_v12  ;;  %v22306_v58 = vcombine.high %v22271_v10, %v22271_v10  ;;  %15869 = vmatprep.subr.bf16.mxu0 %v16415_v41  ;;  %v22316_v8 = vrot.slane %v8185_v20, %v25372_v12  ;;  %v25384_v39 = vrot.slane %v22045_v63, %v25374_v3 }
 0x46b   : > { %v25385_v57 = vrot.slane %v22010_v26, %v25374_v3  ;;  %v16087_v30 = vadd.f32 %v21992_v51, %v22108_v44  ;;  %v22331_v45 = vcombine.high %v22274_v28, %v22274_v28  ;;  %v25386_v0 = vrot.slane %v22032_v11, %v25374_v3  ;;  %15870 = vmatpush3.bf16.msra.mxu0 %v16415_v41 }
 0x46c   : > { %v8890_v42 = vsel %vm3276_vm6, %v25384_v39, %v8889_v2  ;;  %v16092_v39 = vadd.f32 %v21980_v22, %v22113_v19  ;;  %v25387_v51 = vrot.slane %v22051_v17, %v25374_v3  ;;  %15274 = vmatpush3.bf16.msra.mxu1 %v16417_v5  ;;  %v25393_v41 = vrot.slane %v22161_v18, %v25374_v3 }
 0x46d   : > { %v8881_v24 = vsel %vm3272_vm4, %v25385_v57, %v22062_v29  ;;  %v8891_v20 = vsel %vm3278_vm7, %v8679_v34, %v8890_v42  ;;  %v7998_v44 = vadd.f32 %v16087_v30, %v21988_v4  ;;  %v16097_v42 = vadd.f32 %v21998_v50, %v22118_v32  ;;  %15275 = vmatprep.subr.bf16.mxu1 %v16418_v9 }
 0x46e   : > { %v8882_v2 = vsel %vm3274_vm5, %v25386_v0, %v8881_v24  ;;  %v8892_v57 = vsel %vm3280_vm8, %v8683_v49, %v8891_v20  ;;  %v16419_v24 = vld [vmem:[%s24336_s5 + $0xd8] sm:$0xff]   ;;  %v7996_v0 = vadd.f32 %v16092_v39, %v21988_v4  ;;  %v16102_v34 = vadd.f32 %v21983_v25, %v22127_v7 }
 0x46f   : > { %v8883_v29 = vsel %vm3276_vm6, %v25387_v51, %v8882_v2  ;;  %v8893_v22 = vsel %vm3282_vm9, %v8687_v43, %v8892_v57  ;;  %v8014_v32 = vmax.f32 %v7998_v44, 0.0  ;;  %v7999_v49 = vadd.f32 %v16097_v42, %v21988_v4 }
 0x470   : > { %v8884_v19 = vsel %vm3278_vm7, %v8647_v46, %v8883_v29  ;;  %8938 = vrot.lane.b32.xlu1 %v8893_v22, %s16666_s12  ;;  %v8012_v33 = vmax.f32 %v7996_v0, 0.0  ;;  %v7997_v43 = vadd.f32 %v16102_v34, %v21988_v4  ;;  %v22369_v7 = vcombine.high %v22189_v61, %v22189_v61  ;;  %15276 = vmatpush3.bf16.msra.mxu1 %v16419_v24 }
 0x471   : > { %v8885_v50 = vsel %vm3280_vm8, %v8651_v6, %v8884_v19  ;;  %v8270_v25 = vcombine.high %v8014_v32, %v8014_v32  ;;  %v8277_v9 = vrot.slane %v8014_v32, %v25372_v12  ;;  %v8015_v39 = vmax.f32 %v7999_v49, 0.0  ;;  %v16422_v6 = vld [vmem:[%s24336_s5 + $0xe0] sm:$0xff]  }
 0x472   : > { %v8886_v46 = vsel %vm3282_vm9, %v8655_v38, %v8885_v50  ;;  %v8236_v38 = vcombine.high %v8012_v33, %v8012_v33  ;;  %v8243_v20 = vrot.slane %v8012_v33, %v25372_v12  ;;  %v8711_v57 = vrot.slane %v22184_v36, %v25374_v3 }
 0x473   : > { %8936 = vrot.lane.b32.xlu0 %v8886_v46, %s16666_s12  ;;  %v22377_v4 = vrot.slane %v8270_v25, %v25372_v12  ;;  %v8285_v2 = vcombine.high %v8277_v9, %v8277_v9  ;;  %v8013_v44 = vmax.f32 %v7997_v43, 0.0  ;;  %v8715_v42 = vrot.slane %v22189_v61, %v25374_v3 }
 0x474   : > { %v22382_v51 = vrot.slane %v8236_v38, %v25372_v12  ;;  %v8251_v29 = vcombine.high %v8243_v20, %v8243_v20  ;;  %v8531_v22 = vrot.slane %v8277_v9, %v25373_v52  ;;  %v8719_v0 = vrot.slane %v22369_v7, %v25374_v3  ;;  %v16421_v38 = vld [vmem:[%s24336_s5 + $0x120] sm:$0xff]  }
 0x475   : > { %v22388_v24 = vcombine.high %v22377_v4, %v22377_v4  ;;  %v8535_v19 = vrot.slane %v8285_v2, %v25373_v52  ;;  %v8851_v34 = vrot.slane %v8277_v9, %v25374_v3  ;;  %v8855_v50 = vrot.slane %v8285_v2, %v25374_v3  ;;  %15277 = vmatprep.subr.bf16.mxu1 %v16421_v38  ;;  %v16425_v38 = vld [vmem:[%s24336_s5 + $0x168] sm:$0xff]  }
 0x476   : > { %v8499_v32 = vrot.slane %v8243_v20, %v25373_v52  ;;  %v8503_v49 = vrot.slane %v8251_v29, %v25373_v52  ;;  %v22405_v43 = vcombine.high %v22382_v51, %v22382_v51  ;;  %v8819_v25 = vrot.slane %v8243_v20, %v25374_v3  ;;  %v16420_v20 = vld [vmem:[%s24336_s5 + $0x160] sm:$0xff]   ;;  %15278 = vmatpush3.bf16.msra.mxu1 %v16422_v6 }
 0x477   : > { %v22401_v33 = vsel %vm3270_vm3, %v8535_v19, %v8531_v22  ;;  %v8823_v46 = vrot.slane %v8251_v29, %v25374_v3  ;;  %v8287_v19 = vcombine.high %v8015_v39, %v8015_v39  ;;  %v22419_v5 = vrot.slane %v8015_v39, %v25372_v12  ;;  %15871 = vmatprep.subr.bf16.mxu0 %v16420_v20 }
 0x478   : > { %25388 = vst [vmem:[#allocation103_spill] sm:$0xff] %v22401_v33  ;;  %v22413_v2 = vsel %vm3270_vm3, %v8503_v49, %v8499_v32  ;;  %v8253_v30 = vcombine.high %v8013_v44, %v8013_v44  ;;  %v22430_v29 = vsel %vm3270_vm3, %v8855_v50, %v8851_v34  ;;  %v22433_v49 = vrot.slane %v8013_v44, %v25372_v12 }
 0x479   : > { %25389 = vst [vmem:[#allocation92_spill] sm:$0xff] %v22413_v2  ;;  %v25391_v39 = vrot.slane %v22116_v48, %v25374_v3  ;;  %v22450_v50 = vsel %vm3270_vm3, %v8823_v46, %v8819_v25  ;;  %v22460_v9 = vcombine.high %v22419_v5, %v22419_v5  ;;  %v22466_v44 = vcombine.high %v22302_v35, %v22302_v35 }
 0x47a   : > { %25390 = vst [vmem:[#allocation60_spill] sm:$0xff] %v22433_v49  ;;  %v22469_v46 = vrot.slane %v8253_v30, %v25372_v12  ;;  %v22473_v25 = vcombine.high %v22433_v49, %v22433_v49  ;;  %v25392_v34 = vrot.slane %v22142_v27, %v25374_v3  ;;  %15872 = vmatpush3.bf16.msra.mxu0 %v16420_v20 }
 0x47b   : > { %v8895_v22 = vsel %vm3272_vm4, %v25391_v39, %v22175_v53  ;;  %v16423_v53 = vld [vmem:[%s24336_s5 + $0x128] sm:$0xff]   ;;  %v22456_v39 = vrot.slane %v8287_v19, %v25372_v12  ;;  %v8835_v30 = vrot.slane %v22433_v49, %v25374_v3  ;;  %v8807_v19 = vrot.slane %v22306_v58, %v25374_v3  ;;  %15873 = vmatprep.subr.bf16.mxu0 %v16425_v38 }
 0x47c   : > { %v8896_v32 = vsel %vm3274_vm5, %v25392_v34, %v8895_v22  ;;  %v25394_v22 = vrot.slane %v22192_v54, %v25374_v3  ;;  %v8811_v33 = vrot.slane %v22302_v35, %v25374_v3  ;;  %v25395_v49 = vrot.slane %v22203_v40, %v25374_v3  ;;  %15279 = vmatprep.subr.bf16.mxu1 %v16423_v53 }
 0x47d   : > { %v8897_v12 = vsel %vm3276_vm6, %v25393_v41, %v8896_v32  ;;  %v22506_v32 = vcombine.high %v22316_v8, %v22316_v8  ;;  %v8775_v2 = vrot.slane %v22331_v45, %v25374_v3 }
 0x47e   : > { %v8916_v20 = vsel %vm3272_vm4, %v25394_v22, %v22237_v21  ;;  %v8898_v34 = vsel %vm3278_vm7, %v8711_v57, %v8897_v12  ;;  %v16424_v21 = vld [vmem:[%s24336_s5 + $0xe8] sm:$0xff]   ;;  %v8815_v12 = vrot.slane %v22466_v44, %v25374_v3  ;;  %v25396_v57 = vrot.slane %v22271_v10, %v25374_v3  ;;  %15874 = vmatpush3.bf16.msra.mxu0 %v16425_v38 }
 0x47f   : > { %v8917_v41 = vsel %vm3274_vm5, %v25395_v49, %v8916_v20  ;;  %v8899_v6 = vsel %vm3280_vm8, %v8715_v42, %v8898_v34  ;;  %v25397_v49 = vrot.slane %v22211_v16, %v25374_v3  ;;  %v16426_v20 = vld [vmem:[%s24336_s5 + $0x130] sm:$0xff]   ;;  %v8783_v38 = vrot.slane %v22506_v32, %v25374_v3  ;;  %15280 = vmatpush3.bf16.msra.mxu1 %v16424_v21 }
 0x480   : > { %v8918_v22 = vsel %vm3276_vm6, %v25396_v57, %v8917_v41  ;;  %v8900_v42 = vsel %vm3282_vm9, %v8719_v0, %v8899_v6  ;;  %v25398_v41 = vrot.slane %v22225_v14, %v25374_v3  ;;  %v25399_v0 = vrot.slane %v22274_v28, %v25374_v3  ;;  %15281 = vmatprep.subr.bf16.mxu1 %v16426_v20  ;;  %v16432_v20 = vld [vmem:[%s24336_s5 + $0x170] sm:$0xff]  }
 0x481   : > { %v8909_v53 = vsel %vm3272_vm4, %v25397_v49, %v22268_v55  ;;  %v8919_v34 = vsel %vm3278_vm7, %v8807_v19, %v8918_v22  ;;  %8940 = vrot.lane.b32.xlu0 %v8900_v42, %s16666_s12  ;;  %v8779_v49 = vrot.slane %v22316_v8, %v25374_v3  ;;  %v22544_v6 = vcombine.high %v22178_v31, %v22178_v31 }
 0x482   : > { %v8910_v57 = vsel %vm3274_vm5, %v25398_v41, %v8909_v53  ;;  %v8920_v55 = vsel %vm3280_vm8, %v8811_v33, %v8919_v34  ;;  %v25400_v33 = vrot.slane %v22111_v47, %v25374_v3  ;;  %v16427_v34 = vld [vmem:[%s24336_s5 + $0xf0] sm:$0xff]   ;;  %v8519_v41 = vrot.slane %v22473_v25, %v25373_v52  ;;  %15875 = vmatprep.subr.bf16.mxu0 %v16432_v20 }
 0x483   : > { %v8911_v19 = vsel %vm3276_vm6, %v25399_v0, %v8910_v57  ;;  %v8921_v22 = vsel %vm3282_vm9, %v8815_v12, %v8920_v55  ;;  %v8743_v57 = vrot.slane %v22172_v56, %v25374_v3  ;;  %v8747_v0 = vrot.slane %v22178_v31, %v25374_v3  ;;  %15282 = vmatpush3.bf16.msra.mxu1 %v16427_v34 }
 0x484   : > { %v8912_v53 = vsel %vm3278_vm7, %v8775_v2, %v8911_v19  ;;  %v8902_v42 = vsel %vm3272_vm4, %v25400_v33, %v22158_v23  ;;  %v25401_v2 = vrot.slane %v22122_v1, %v25374_v3  ;;  %v16428_v23 = vld [vmem:[%s24336_s5 + $0x138] sm:$0xff]   ;;  %15876 = vmatpush3.bf16.msra.mxu0 %v16432_v20 }
 0x485   : > { %v8913_v12 = vsel %vm3280_vm8, %v8779_v49, %v8912_v53  ;;  %v25402_v49 = vrot.slane %v22155_v15, %v25374_v3  ;;  %v22579_v53 = vcombine.high %v22469_v46, %v22469_v46  ;;  %8946 = vrot.lane.b32.xlu0 %v8921_v22, %s16666_s12  ;;  %v25404_v22 = vrot.slane %v22405_v43, %v25374_v3 }
 0x486   : > { %v8903_v55 = vsel %vm3274_vm5, %v25401_v2, %v8902_v42  ;;  %v8914_v21 = vsel %vm3282_vm9, %v8783_v38, %v8913_v12  ;;  %v8751_v38 = vrot.slane %v22544_v6, %v25374_v3  ;;  %v25403_v42 = vrot.slane %v22382_v51, %v25374_v3  ;;  %15283 = vmatprep.subr.bf16.mxu1 %v16428_v23 }
 0x487   : > { %v8904_v19 = vsel %vm3276_vm6, %v25402_v49, %v8903_v55  ;;  %8944 = vrot.lane.b32.xlu1 %v8914_v21, %s16666_s12  ;;  %v8839_v55 = vrot.slane %v22473_v25, %v25374_v3  ;;  %v22603_v49 = vcombine.high %v22456_v39, %v22456_v39  ;;  %v8847_v34 = vrot.slane %v22579_v53, %v25374_v3 }
 0x488   : > { %v8905_v33 = vsel %vm3278_vm7, %v8743_v57, %v8904_v19  ;;  %v8923_v12 = vsel %vm3272_vm4, %v25403_v42, %v22450_v50  ;;  %v16429_v57 = vld [vmem:[%s24336_s5 + $0xf8] sm:$0xff]   ;;  %v25407_v23 = vrot.slane %v22419_v5, %v25374_v3 }
 0x489   : > { %v8906_v2 = vsel %vm3280_vm8, %v8747_v0, %v8905_v33  ;;  %v8924_v21 = vsel %vm3274_vm5, %v25404_v22, %v8923_v12  ;;  %v8843_v0 = vrot.slane %v22469_v46, %v25374_v3  ;;  %v25405_v33 = vrot.slane %v22377_v4, %v25374_v3  ;;  %15284 = vmatpush3.bf16.msra.mxu1 %v16429_v57 }
 0x48a   : > { %v8907_v50 = vsel %vm3282_vm9, %v8751_v38, %v8906_v2  ;;  %v8925_v19 = vsel %vm3276_vm6, %v8835_v30, %v8924_v21  ;;  %v8871_v38 = vrot.slane %v22460_v9, %v25374_v3  ;;  %v25406_v2 = vrot.slane %v22388_v24, %v25374_v3 }
 0x48b   : > { %v8930_v42 = vsel %vm3272_vm4, %v25405_v33, %v22430_v29  ;;  %v8926_v12 = vsel %vm3278_vm7, %v8839_v55, %v8925_v19  ;;  %8942 = vrot.lane.b32.xlu0 %v8907_v50, %s16666_s12  ;;  %v8875_v29 = vrot.slane %v22456_v39, %v25374_v3  ;;  %v25408_v21 = vrot.slane %v22007_v59, %v25373_v52  ;;  %v16433_v50 = vld [vmem:[%s24336_s5 + $0x40] sm:$0xff]  }
 0x48c   : > { %v8931_v30 = vsel %vm3274_vm5, %v25406_v2, %v8930_v42  ;;  %v8927_v22 = vsel %vm3280_vm8, %v8843_v0, %v8926_v12  ;;  %v8879_v33 = vrot.slane %v22603_v49, %v25374_v3  ;;  %v25409_v12 = vrot.slane %v22014_v62, %v25373_v52  ;;  %15307 = vmatprep.subr.bf16.mxu1 %v16433_v50 }
 0x48d   : > { %v8932_v55 = vsel %vm3276_vm6, %v25407_v23, %v8931_v30  ;;  %v8568_v19 = vsel %vm3272_vm4, %v25408_v21, %v22026_v60  ;;  %v8928_v0 = vsel %vm3282_vm9, %v8847_v34, %v8927_v22  ;;  %v8363_v60 = vrot.slane %v22065_v13, %v25373_v52  ;;  %v25412_v22 = vld [vmem:[#allocation53_spill] sm:$0xff] }
 0x48e   : > { %v8933_v42 = vsel %vm3278_vm7, %v8871_v38, %v8932_v55  ;;  %v8569_v2 = vsel %vm3274_vm5, %v25409_v12, %v8568_v19  ;;  %8948 = vrot.lane.b32.xlu1 %v8928_v0, %s16666_s12  ;;  %v25410_v34 = vrot.slane %v22045_v63, %v25373_v52  ;;  %v25411_v38 = vrot.slane %v22010_v26, %v25373_v52  ;;  %v16437_v26 = vld [vmem:[%s24336_s5 + $0x178] sm:$0xff]   ;;  %v25416_v19 = vld [vmem:[#allocation51_spill] sm:$0xff] }
 0x48f   : > { %v8934_v59 = vsel %vm3280_vm8, %v8875_v29, %v8933_v42  ;;  %v8367_v23 = vrot.slane %v25412_v22, %v25373_v52  ;;  %v25413_v29 = vld [vmem:[#allocation48_spill] sm:$0xff]  ;;  %v25415_v63 = vrot.slane %v22032_v11, %v25373_v52  ;;  %v8331_v0 = vrot.slane %v25416_v19, %v25373_v52  ;;  %15877 = vmatprep.subr.bf16.mxu0 %v16437_v26 }
 0x490   : > { %v8570_v30 = vsel %vm3276_vm6, %v25410_v34, %v8569_v2  ;;  %v8561_v62 = vsel %vm3272_vm4, %v25411_v38, %v22039_v37  ;;  %v8935_v57 = vsel %vm3282_vm9, %v8879_v33, %v8934_v59  ;;  %v25414_v55 = vrot.slane %v25413_v29, %v25373_v52  ;;  %v25418_v12 = vld [vmem:[#allocation64_spill] sm:$0xff]  ;;  %v25420_v59 = vld [vmem:[#allocation85_spill] sm:$0xff]  ;;  %v25421_v34 = vld [vmem:[#allocation178_spill] sm:$0xff]  ;;  %15878 = vmatpush3.bf16.msra.mxu0 %v16437_v26 }
 0x491   : > { %v8562_v21 = vsel %vm3274_vm5, %v25415_v63, %v8561_v62  ;;  %v25417_v33 = vrot.slane %v22051_v17, %v25373_v52  ;;  %v25419_v11 = vrot.slane %v22116_v48, %v25373_v52  ;;  %v25423_v17 = vrot.slane %v22142_v27, %v25373_v52  ;;  %v25425_v29 = vld [vmem:[#allocation173_spill] sm:$0xff] }
 0x492   : > { %v8571_v13 = vsel %vm3278_vm7, %v25414_v55, %v8570_v30  ;;  %v25422_v30 = vrot.slane %v25421_v34, %v25373_v52  ;;  %8950 = vrot.lane.b32.xlu1 %v8935_v57, %s16666_s12  ;;  %v8395_v50 = vrot.slane %v22189_v61, %v25373_v52  ;;  %v25424_v22 = vrot.slane %v22161_v18, %v25373_v52 }
 0x493   : > { %v8572_v37 = vsel %vm3280_vm8, %v8363_v60, %v8571_v13  ;;  %v8563_v42 = vsel %vm3276_vm6, %v25417_v33, %v8562_v21  ;;  %v8575_v20 = vsel %vm3272_vm4, %v25419_v11, %v25418_v12  ;;  %v8335_v60 = vrot.slane %v25420_v59, %v25373_v52  ;;  %v25435_v59 = vld [vmem:[#allocation55_spill] sm:$0xff] }
 0x494   : > { %v8573_v2 = vsel %vm3282_vm9, %v8367_v23, %v8572_v37  ;;  %v8564_v38 = vsel %vm3278_vm7, %v25422_v30, %v8563_v42  ;;  %v8576_v62 = vsel %vm3274_vm5, %v25423_v17, %v8575_v20  ;;  %v25426_v55 = vrot.slane %v22192_v54, %v25373_v52 }
 0x495   : > { %v8565_v48 = vsel %vm3280_vm8, %v8331_v0, %v8564_v38  ;;  %v8577_v23 = vsel %vm3276_vm6, %v25424_v22, %v8576_v62  ;;  %v8399_v57 = vrot.slane %v22369_v7, %v25373_v52  ;;  %v25427_v63 = vrot.slane %v22184_v36, %v25373_v52  ;;  %v25430_v0 = vld [vmem:[#allocation165_spill] sm:$0xff] }
 0x496   : > { %v8596_v27 = vsel %vm3272_vm4, %v25426_v55, %v25425_v29  ;;  %v8566_v13 = vsel %vm3282_vm9, %v8335_v60, %v8565_v48  ;;  %v25428_v18 = vrot.slane %v22203_v40, %v25373_v52  ;;  %v8491_v37 = vrot.slane %v22302_v35, %v25373_v52  ;;  %v25440_v48 = vld [vmem:[#allocation92_spill] sm:$0xff] }
 0x497   : > { %v8578_v61 = vsel %vm3278_vm7, %v25427_v63, %v8577_v23  ;;  %v25429_v19 = vrot.slane %v22271_v10, %v25373_v52  ;;  %v25431_v36 = vrot.slane %v22211_v16, %v25373_v52  ;;  %v8495_v26 = vrot.slane %v22466_v44, %v25373_v52 }
 0x498   : > { %v8597_v21 = vsel %vm3274_vm5, %v25428_v18, %v8596_v27  ;;  %v8579_v54 = vsel %vm3280_vm8, %v8395_v50, %v8578_v61  ;;  %v25432_v42 = vrot.slane %v22306_v58, %v25373_v52  ;;  %v25433_v10 = vrot.slane %v22225_v14, %v25373_v52  ;;  %v25446_v18 = vld [vmem:[#allocation103_spill] sm:$0xff] }
 0x499   : > { %v8598_v7 = vsel %vm3276_vm6, %v25429_v19, %v8597_v21  ;;  %v8589_v33 = vsel %vm3272_vm4, %v25431_v36, %v25430_v0  ;;  %v8580_v40 = vsel %vm3282_vm9, %v8399_v57, %v8579_v54  ;;  %v8459_v16 = vrot.slane %v22316_v8, %v25373_v52  ;;  %v25444_v57 = vld [vmem:[#allocation60_spill] sm:$0xff] }
 0x49a   : > { %v8599_v35 = vsel %vm3278_vm7, %v25432_v42, %v8598_v7  ;;  %v8590_v12 = vsel %vm3274_vm5, %v25433_v10, %v8589_v33  ;;  %v25434_v20 = vrot.slane %v22274_v28, %v25373_v52  ;;  %v25436_v58 = vrot.slane %v22111_v47, %v25373_v52  ;;  %v22773_v47 = vld [vmem:[%s24336_s5 + $0x80] sm:$0xff]  }
 0x49b   : > { %v8600_v11 = vsel %vm3280_vm8, %v8491_v37, %v8599_v35  ;;  %v8463_v34 = vrot.slane %v22506_v32, %v25373_v52  ;;  %v25437_v30 = vrot.slane %v22331_v45, %v25373_v52  ;;  %v25438_v28 = vrot.slane %v22122_v1, %v25373_v52  ;;  %15883 = vmatprep.subr.bf16.mxu0 %v22773_v47 }
 0x49c   : > { %v8591_v44 = vsel %vm3276_vm6, %v25434_v20, %v8590_v12  ;;  %v8582_v60 = vsel %vm3272_vm4, %v25436_v58, %v25435_v59  ;;  %v8601_v14 = vsel %vm3282_vm9, %v8495_v26, %v8600_v11  ;;  %v8427_v32 = vrot.slane %v22178_v31, %v25373_v52 }
 0x49d   : > { %v8592_v8 = vsel %vm3278_vm7, %v25437_v30, %v8591_v44  ;;  %v8583_v38 = vsel %vm3274_vm5, %v25438_v28, %v8582_v60  ;;  %v25439_v45 = vrot.slane %v22155_v15, %v25373_v52  ;;  %v25441_v1 = vrot.slane %v22382_v51, %v25373_v52  ;;  %v9036_v60 = vld [vmem:[#allocation3 + $0x8] sm:$0x1f] }
 0x49e   : > { %v8593_v17 = vsel %vm3280_vm8, %v8459_v16, %v8592_v8  ;;  %v8431_v23 = vrot.slane %v22544_v6, %v25373_v52  ;;  %v25442_v29 = vrot.slane %v22172_v56, %v25373_v52  ;;  %v25443_v15 = vrot.slane %v22405_v43, %v25373_v52 }
 0x49f   : > { %v8584_v62 = vsel %vm3276_vm6, %v25439_v45, %v8583_v38  ;;  %v8603_v50 = vsel %vm3272_vm4, %v25441_v1, %v25440_v48  ;;  %v8594_v22 = vsel %vm3282_vm9, %v8463_v34, %v8593_v17  ;;  %v8547_v51 = vrot.slane %v22419_v5, %v25373_v52 }
 0x4a0   : > { %v8585_v31 = vsel %vm3278_vm7, %v25442_v29, %v8584_v62  ;;  %v8604_v55 = vsel %vm3274_vm5, %v25443_v15, %v8603_v50  ;;  %v8523_v6 = vrot.slane %v22469_v46, %v25373_v52  ;;  %v25445_v56 = vrot.slane %v25444_v57, %v25373_v52 }
 0x4a1   : > { %v8586_v27 = vsel %vm3280_vm8, %v8427_v32, %v8585_v31  ;;  %v8527_v43 = vrot.slane %v22579_v53, %v25373_v52  ;;  %v25447_v21 = vrot.slane %v22377_v4, %v25373_v52  ;;  %v8551_v54 = vrot.slane %v22460_v9, %v25373_v52 }
 0x4a2   : > { %v8605_v63 = vsel %vm3276_vm6, %v25445_v56, %v8604_v55  ;;  %v8587_v61 = vsel %vm3282_vm9, %v8431_v23, %v8586_v27  ;;  %v25448_v19 = vrot.slane %v22388_v24, %v25373_v52  ;;  %v8559_v4 = vrot.slane %v22603_v49, %v25373_v52 }
 0x4a3   : > { %v8606_v5 = vsel %vm3278_vm7, %v8519_v41, %v8605_v63  ;;  %v8610_v46 = vsel %vm3272_vm4, %v25447_v21, %v25446_v18  ;;  %v8555_v41 = vrot.slane %v22456_v39, %v25373_v52  ;;  %v9193_v45 = vrot.slane %v9036_v60, 7 }
 0x4a4   : > { %v8607_v37 = vsel %vm3280_vm8, %v8523_v6, %v8606_v5  ;;  %v8611_v53 = vsel %vm3274_vm5, %v25448_v19, %v8610_v46 }
 0x4a5   : > { %v8608_v25 = vsel %vm3282_vm9, %v8527_v43, %v8607_v37  ;;  %v8612_v7 = vsel %vm3276_vm6, %v8547_v51, %v8611_v53  ;;  %v9209_v27 = vsel %vm5104_vm11, 0.0, %v9193_v45 }
 0x4a6   : > { %v8613_v0 = vsel %vm3278_vm7, %v8551_v54, %v8612_v7 }
 0x4a7   : > { %v8614_v9 = vsel %vm3280_vm8, %v8555_v41, %v8613_v0 }
 0x4a8   : > { %v22836_v36 = vsel %vm3282_vm9, %v8559_v4, %v8614_v9 }
 0x4e2   : > { %v8939_v24 = vpop.permute.xlu1 %8938 }
 0x4e3   : > { %v8961_v33 = vsel %vm4877_vm10, %v8573_v2, %v8939_v24 }
 0x4e4   : > { %v8977_v26 = vcombine.high %v8961_v33, %v8961_v33  ;;  %v8995_v42 = vsel %vm8992_vm15, %v8961_v33, 0.0 }
 0x4e5   : > { %v8937_v39 = vpop.permute.xlu0 %8936  ;;  %9012 = vst [vmem:[#allocation3 + $0x20] sm:$0x1f] %v8995_v42 }
 0x4e6   : > { %v8960_v35 = vsel %vm4877_vm10, %v8566_v13, %v8937_v39  ;;  %v8996_v49 = vsel %vm8992_vm15, %v8977_v26, 0.0 }
 0x4e7   : > { %v8976_v10 = vcombine.high %v8960_v35, %v8960_v35  ;;  %v8993_v12 = vsel %vm8992_vm15, %v8960_v35, 0.0  ;;  %9013 = vst [vmem:[#allocation3 + $0x28] sm:$0x1f] %v8996_v49  ;;  %v16434_v35 = vld [vmem:[%s24336_s5] sm:$0xff]  }
 0x4e8   : > { %9010 = vst [vmem:[#allocation3 + $0x10] sm:$0x1f] %v8993_v12 }
 0x4e9   : > { %v8994_v11 = vsel %vm8992_vm15, %v8976_v10, 0.0 }
 0x4ea   : > { %9011 = vst [vmem:[#allocation3 + $0x18] sm:$0x1f] %v8994_v11 }
 0x4ee   : > { %v9040_v32 = vld [vmem:[#allocation3 + $0x28] sm:$0x1f] }
 0x4ef   : > { %v9195_v15 = vrot.slane %v9040_v32, 7  ;;  %v9219_v6 = vrot.slane %v9040_v32, 1 }
 0x4f1   : > { %v9038_v17 = vld [vmem:[#allocation3 + $0x18] sm:$0x1f]  ;;  %v9211_v37 = vsel %vm5104_vm11, 0.0, %v9195_v15 }
 0x4f2   : > { %v9194_v50 = vrot.slane %v9038_v17, 7  ;;  %v9218_v55 = vrot.slane %v9038_v17, 1  ;;  %v14174_v43 = vcombine.low %v9036_v60, %v9038_v17 }
 0x4f3   : > { %v8941_v16 = vpop.permute.xlu0 %8940 }
 0x4f4   : > { %v8962_v2 = vsel %vm4877_vm10, %v8580_v40, %v8941_v16  ;;  %v9210_v18 = vsel %vm5104_vm11, 0.0, %v9194_v50 }
 0x4f5   : > { %v8978_v20 = vcombine.high %v8962_v2, %v8962_v2  ;;  %v8997_v44 = vsel %vm8992_vm15, %v8962_v2, 0.0  ;;  %v14173_v9 = vcombine.low %v9209_v27, %v9210_v18  ;;  %v22875_v2 = vld [vmem:[#allocation3] sm:$0x1f]  ;;  %v16440_v27 = vld [vmem:[%s24336_s5 + $0x58] sm:$0xff]   ;;  %v16449_v18 = vld [vmem:[%s24336_s5 + $0x88] sm:$0xff]  }
 0x4f6   : > { %9014 = vst [vmem:[#allocation3 + $0x30] sm:$0x1f] %v8997_v44  ;;  %v22877_v44 = vld [vmem:[#allocation3 + $0x10] sm:$0x1f] }
 0x4f7   : > { %v8998_v59 = vsel %vm8992_vm15, %v8978_v20, 0.0  ;;  %v8947_v13 = vpop.permute.xlu0 %8946  ;;  %v9084_v45 = vrot.slane %v22877_v44, 1 }
 0x4f8   : > { %9015 = vst [vmem:[#allocation3 + $0x38] sm:$0x1f] %v8998_v59  ;;  %v8965_v34 = vsel %vm4877_vm10, %v8601_v14, %v8947_v13  ;;  %v22879_v59 = vld [vmem:[#allocation3 + $0x20] sm:$0x1f] }
 0x4f9   : > { %v8945_v58 = vpop.permute.xlu1 %8944  ;;  %v8981_v8 = vcombine.high %v8965_v34, %v8965_v34  ;;  %v9003_v28 = vsel %vm8992_vm15, %v8965_v34, 0.0  ;;  %v16436_v34 = vld [vmem:[%s24336_s5 + $0x8] sm:$0xff]  }
 0x4fa   : > { %v8964_v30 = vsel %vm4877_vm10, %v8594_v22, %v8945_v58  ;;  %9020 = vst [vmem:[#allocation3 + $0x80] sm:$0x1f] %v9003_v28  ;;  %v9217_v22 = vrot.slane %v9036_v60, 1  ;;  %v9083_v28 = vrot.slane %v22875_v2, 1 }
 0x4fb   : > { %v8980_v38 = vcombine.high %v8964_v30, %v8964_v30  ;;  %v9001_v40 = vsel %vm8992_vm15, %v8964_v30, 0.0  ;;  %v9004_v62 = vsel %vm8992_vm15, %v8981_v8, 0.0 }
 0x4fc   : > { %9018 = vst [vmem:[#allocation3 + $0x70] sm:$0x1f] %v9001_v40  ;;  %9021 = vst [vmem:[#allocation3 + $0x88] sm:$0x1f] %v9004_v62  ;;  %v9243_v19 = vcombine.low %v9217_v22, %v9218_v55  ;;  %v9085_v62 = vrot.slane %v22879_v59, 1 }
 0x4fd   : > { %v9002_v48 = vsel %vm8992_vm15, %v8980_v38, 0.0  ;;  %v8943_v1 = vpop.permute.xlu0 %8942  ;;  %v22869_v10 = vld [vmem:[#allocation3 + $0x30] sm:$0x1f] }
 0x4fe   : > { %9019 = vst [vmem:[#allocation3 + $0x78] sm:$0x1f] %v9002_v48  ;;  %v8963_v14 = vsel %vm4877_vm10, %v8587_v61, %v8943_v1  ;;  %v9086_v60 = vrot.slane %v22869_v10, 1  ;;  %v16438_v38 = vld [vmem:[%s24336_s5 + $0x50] sm:$0xff]  }
 0x4ff   : > { %v8979_v23 = vcombine.high %v8963_v14, %v8963_v14  ;;  %v8999_v29 = vsel %vm8992_vm15, %v8963_v14, 0.0  ;;  %v9042_v61 = vld [vmem:[#allocation3 + $0x38] sm:$0x1f] }
 0x500   : > { %v8949_v31 = vpop.permute.xlu1 %8948  ;;  %9016 = vst [vmem:[#allocation3 + $0x40] sm:$0x1f] %v8999_v29  ;;  %v9196_v5 = vrot.slane %v9042_v61, 7  ;;  %v14176_v21 = vcombine.low %v9040_v32, %v9042_v61  ;;  %v9220_v46 = vrot.slane %v9042_v61, 1  ;;  %v16439_v29 = vld [vmem:[%s24336_s5 + $0x10] sm:$0xff]   ;;  %v9109_v61 = vcombine.low %v9083_v28, %v9084_v45 }
 0x501   : > { %v8966_v51 = vsel %vm4877_vm10, %v8608_v25, %v8949_v31  ;;  %v9000_v57 = vsel %vm8992_vm15, %v8979_v23, 0.0  ;;  %v9044_v25 = vld [vmem:[#allocation3 + $0x68] sm:$0x1f]  ;;  %v9112_v23 = vcombine.low %v9085_v62, %v9086_v60 }
 0x502   : > { %v8982_v56 = vcombine.high %v8966_v51, %v8966_v51  ;;  %v9005_v63 = vsel %vm8992_vm15, %v8966_v51, 0.0  ;;  %9017 = vst [vmem:[#allocation3 + $0x48] sm:$0x1f] %v9000_v57  ;;  %v9212_v41 = vsel %vm5104_vm11, 0.0, %v9196_v5  ;;  %v9266_v7 = vpack.c.bf16 %v14176_v21, %v14174_v43  ;;  %v16441_v21 = vld [vmem:[%s24336_s5 + $0x18] sm:$0xff]  }
 0x503   : > { %9022 = vst [vmem:[#allocation3 + $0x90] sm:$0x1f] %v9005_v63  ;;  %v9246_v4 = vcombine.low %v9219_v6, %v9220_v46  ;;  %v14175_v24 = vcombine.low %v9211_v37, %v9212_v41  ;;  %v9197_v49 = vrot.slane %v9044_v25, 7  ;;  %v9048_v16 = vld [vmem:[#allocation3 + $0x88] sm:$0x1f]  ;;  %v9221_v13 = vrot.slane %v9044_v25, 1 }
 0x504   : > { %v9006_v54 = vsel %vm8992_vm15, %v8982_v56, 0.0  ;;  %v8951_v53 = vpop.permute.xlu1 %8950  ;;  %9496 = vmatprep.mubr.bf16.mxu1 %v9266_v7  ;;  %v9199_v30 = vrot.slane %v9048_v16, 7  ;;  %v9223_v17 = vrot.slane %v9048_v16, 1  ;;  %v14168_v56 = vcombine.low %v22879_v59, %v22869_v10  ;;  %v16451_v41 = vld [vmem:[%s24336_s5 + $0x28] sm:$0xff]   ;;  %v16453_v7 = vld [vmem:[%s24336_s5 + $0x70] sm:$0xff]  }
 0x505   : > { %9023 = vst [vmem:[#allocation3 + $0x98] sm:$0x1f] %v9006_v54  ;;  %v8967_v0 = vsel %vm4877_vm10, %v22836_v36, %v8951_v53  ;;  %v9046_v42 = vld [vmem:[#allocation3 + $0x78] sm:$0x1f]  ;;  %v9267_v39 = vpack.c.bf16 %v9246_v4, %v9243_v19  ;;  %v9265_v11 = vpack.c.bf16 %v14175_v24, %v14173_v9  ;;  %v16435_v36 = vld [vmem:[%s24336_s5 + $0x48] sm:$0xff]   ;;  %v9213_v8 = vsel %vm5104_vm11, 0.0, %v9197_v49 }
 0x506   : > { %v8983_v33 = vcombine.high %v8967_v0, %v8967_v0  ;;  %v9007_v26 = vsel %vm8992_vm15, %v8967_v0, 0.0  ;;  %v9198_v20 = vrot.slane %v9046_v42, 7  ;;  %v9222_v58 = vrot.slane %v9046_v42, 1  ;;  %v16445_v54 = vld [vmem:[%s24336_s5 + $0x60] sm:$0xff]   ;;  %v16452_v19 = vld [vmem:[%s24336_s5 + $0x90] sm:$0xff]  }
 0x507   : > { %9024 = vst [vmem:[#allocation3 + $0xa0] sm:$0x1f] %v9007_v26  ;;  %15879 = vmatprep.mubr.bf16.mxu0 %v9267_v39  ;;  %9497 = vmatmul.mubr.bf16.vlgmr.msra.gmra.mrb[80].mxu1 %v9265_v11  ;;  %v14178_v32 = vcombine.low %v9044_v25, %v9046_v42  ;;  %v9215_v55 = vsel %vm5104_vm11, 0.0, %v9199_v30  ;;  %v14166_v5 = vcombine.low %v22875_v2, %v22877_v44  ;;  %v16446_v53 = vld [vmem:[%s24336_s5 + $0x20] sm:$0xff]   ;;  %v16450_v25 = vld [vmem:[%s24336_s5 + $0x68] sm:$0xff]   ;;  %v9062_v4 = vrot.slane %v22869_v10, 7 }
 0x508   : > { %v9008_v12 = vsel %vm8992_vm15, %v8983_v33, 0.0  ;;  %15308 = vmatpush3.bf16.msra.mxu1 %v16434_v35  ;;  %v9214_v50 = vsel %vm5104_vm11, 0.0, %v9198_v20  ;;  %v9249_v22 = vcombine.low %v9221_v13, %v9222_v58  ;;  %v9133_v46 = vpack.c.bf16 %v9112_v23, %v9109_v61  ;;  %v16458_v0 = vld [vmem:[%s24336_s5 + $0xa0] sm:$0xff]   ;;  %v16454_v26 = vld [vmem:[%s24336_s5 + $0x30] sm:$0xff]   ;;  %v16456_v42 = vld [vmem:[%s24336_s5 + $0x78] sm:$0xff]  }
 0x509   : > { %9025 = vst [vmem:[#allocation3 + $0xa8] sm:$0x1f] %v9008_v12  ;;  %15309 = vmatprep.subr.bf16.mxu1 %v16435_v36  ;;  %v14177_v6 = vcombine.low %v9213_v8, %v9214_v50  ;;  %v9132_v37 = vpack.c.bf16 %v14168_v56, %v14166_v5  ;;  %v9059_v9 = vrot.slane %v22875_v2, 7  ;;  %v9060_v24 = vrot.slane %v22877_v44, 7  ;;  %v16463_v35 = vld [vmem:[%s24336_s5 + $0xa8] sm:$0xff]   ;;  %v16457_v36 = vld [vmem:[%s24336_s5 + $0x38] sm:$0xff]  }
 0x50a   : > { %v9061_v33 = vrot.slane %v22879_v59, 7  ;;  %v9078_v39 = vsel %vm5104_vm11, 0.0, %v9062_v4  ;;  %v9049_v49 = vld [vmem:[#allocation3 + $0x90] sm:$0x1f]  ;;  %v9043_v20 = vld [vmem:[#allocation3 + $0x60] sm:$0x1f] }
 0x50b   : > { %v9075_v10 = vsel %vm5104_vm11, 0.0, %v9059_v9  ;;  %v9076_v12 = vsel %vm5104_vm11, 0.0, %v9060_v24  ;;  %v9045_v44 = vld [vmem:[#allocation3 + $0x70] sm:$0x1f]  ;;  %v9047_v59 = vld [vmem:[#allocation3 + $0x80] sm:$0x1f] }
 0x50c   : > { %v9050_v40 = vld [vmem:[#allocation3 + $0x98] sm:$0x1f]  ;;  %15310 = vmatpush3.bf16.msra.mxu1 %v16436_v34  ;;  %v9077_v11 = vsel %vm5104_vm11, 0.0, %v9061_v33  ;;  %v14172_v13 = vcombine.low %v9047_v59, %v9049_v49  ;;  %v16466_v58 = vld [vmem:[%s24336_s5 + $0xb0] sm:$0xff]   ;;  %v9066_v60 = vrot.slane %v9049_v49, 7  ;;  %v14165_v34 = vcombine.low %v9075_v10, %v9076_v12  ;;  %v16462_v8 = vld [vmem:[%s24336_s5 + $0x180] sm:$0xff]  }
 0x50d   : > { %v9224_v48 = vrot.slane %v9050_v40, 1  ;;  %v14180_v1 = vcombine.low %v9048_v16, %v9050_v40  ;;  %v9200_v14 = vrot.slane %v9050_v40, 7  ;;  %15311 = vmatprep.subr.bf16.mxu1 %v16438_v38  ;;  %v16459_v16 = vld [vmem:[%s24336_s5 + $0x1c0] sm:$0xff]   ;;  %v14167_v2 = vcombine.low %v9077_v11, %v9078_v39  ;;  %v22978_v23 = vld [vmem:[#allocation3 + $0x30] sm:$0x1f]  ;;  %v16477_v9 = vld [vmem:[%s24336_s5 + $0x208] sm:$0xff]  }
 0x50e   : > { %v14170_v30 = vcombine.low %v9043_v20, %v9045_v44  ;;  %v9063_v28 = vrot.slane %v9043_v20, 7  ;;  %v9064_v38 = vrot.slane %v9045_v44, 7  ;;  %v9065_v40 = vrot.slane %v9047_v59, 7  ;;  %v22968_v45 = vld [vmem:[#allocation3 + $0x40] sm:$0x1f]  ;;  %v16473_v24 = vld [vmem:[%s24336_s5 + $0x198] sm:$0xff]  }
 0x50f   : > { %v9252_v31 = vcombine.low %v9223_v17, %v9224_v48  ;;  %v9269_v15 = vpack.c.bf16 %v14180_v1, %v14178_v32  ;;  %v9216_v51 = vsel %vm5104_vm11, 0.0, %v9200_v14  ;;  %v9131_v17 = vpack.c.bf16 %v14167_v2, %v14165_v34  ;;  %v16464_v32 = vld [vmem:[%s24336_s5 + $0x1c8] sm:$0xff]   ;;  %v22971_v1 = vld [vmem:[#allocation3 + $0x20] sm:$0x1f]  ;;  %v16471_v14 = vld [vmem:[%s24336_s5 + $0xb8] sm:$0xff]  }
 0x510   : > { %v14179_v57 = vcombine.low %v9215_v55, %v9216_v51  ;;  %15312 = vmatpush3.bf16.msra.mxu1 %v16439_v29  ;;  %v9135_v62 = vpack.c.bf16 %v14172_v13, %v14170_v30  ;;  %v9082_v48 = vsel %vm5104_vm11, 0.0, %v9066_v60  ;;  %v9090_v50 = vrot.slane %v9049_v49, 1  ;;  %v16465_v29 = vld [vmem:[%s24336_s5 + $0x188] sm:$0xff]   ;;  %v16476_v39 = vld [vmem:[%s24336_s5 + $0x1a0] sm:$0xff]   ;;  %v16483_v49 = vld [vmem:[%s24336_s5 + $0x218] sm:$0xff]  }
 0x511   : > { %9504 = vmatprep.mubr.bf16.mxu1 %v9269_v15  ;;  %v9270_v63 = vpack.c.bf16 %v9252_v31, %v9249_v22  ;;  %15313 = vmatprep.subr.bf16.mxu1 %v16440_v27  ;;  %v22976_v22 = vld [vmem:[#allocation3 + $0x10] sm:$0x1f]  ;;  %v9079_v31 = vsel %vm5104_vm11, 0.0, %v9063_v28  ;;  %v9080_v15 = vsel %vm5104_vm11, 0.0, %v9064_v38  ;;  %v9081_v55 = vsel %vm5104_vm11, 0.0, %v9065_v40  ;;  %v16479_v10 = vld [vmem:[%s24336_s5 + $0x1a8] sm:$0xff]  }
 0x512   : > { %v9268_v43 = vpack.c.bf16 %v14179_v57, %v14177_v6  ;;  %v9855_v51 = vrot.slane %v22968_v45, 1  ;;  %v9087_v27 = vrot.slane %v9043_v20, 1  ;;  %v9088_v6 = vrot.slane %v9045_v44, 1  ;;  %v16481_v12 = vld [vmem:[%s24336_s5 + $0x1f0] sm:$0xff]   ;;  %v16491_v60 = vld [vmem:[%s24336_s5 + $0x228] sm:$0xff]   ;;  %v16485_v28 = vld [vmem:[%s24336_s5 + $0x1b8] sm:$0xff]  }
 0x513   : > { %15880 = vmatmul.mubr.bf16.vlgmr.msra.gmra.mrb[160].mxu0 %v9270_v63  ;;  %v9089_v57 = vrot.slane %v9047_v59, 1  ;;  %v14171_v56 = vcombine.low %v9081_v55, %v9082_v48  ;;  %v16467_v63 = vld [vmem:[%s24336_s5 + $0x1d0] sm:$0xff]   ;;  %v14280_v61 = vcombine.low %v22978_v23, %v22968_v45  ;;  %v9852_v5 = vrot.slane %v22976_v22, 1  ;;  %v16484_v59 = vld [vmem:[%s24336_s5 + $0x1f8] sm:$0xff]   ;;  %v16487_v38 = vld [vmem:[%s24336_s5 + $0x280] sm:$0xff]  }
 0x514   : > { %15884 = vmatpush3.bf16.msra.mxu0 %v22773_v47  ;;  %9505 = vmatmul.mubr.bf16.gmra.mrb[84].mxu1 %v9268_v43  ;;  %v16455_v47 = vld [vmem:[%s24336_s5 + $0x98] sm:$0xff]   ;;  %v16474_v43 = vld [vmem:[%s24336_s5 + $0x200] sm:$0xff]   ;;  %v9831_v11 = vrot.slane %v22968_v45, 7  ;;  %v9829_v2 = vrot.slane %v22971_v1, 7  ;;  %v9830_v20 = vrot.slane %v22978_v23, 7  ;;  %v16482_v44 = vld [vmem:[%s24336_s5 + $0x1b0] sm:$0xff]  }
 0x515   : > { %15899 = vmatprep.mubr.bf16.mxu0 %v9133_v46  ;;  %9738 = vmatprep.mubr.bf16.mxu1 %v9132_v37  ;;  %v14169_v46 = vcombine.low %v9079_v31, %v9080_v15  ;;  %v16468_v37 = vld [vmem:[%s24336_s5 + $0x190] sm:$0xff]   ;;  %v16492_v55 = vld [vmem:[%s24336_s5 + $0x288] sm:$0xff]  }
 0x516   : > { %15885 = vmatprep.subr.bf16.mxu0 %v16449_v18  ;;  %15314 = vmatpush3.bf16.msra.mxu1 %v16441_v21  ;;  %v9854_v21 = vrot.slane %v22978_v23, 1  ;;  %v9847_v13 = vsel %vm5104_vm11, 0.0, %v9831_v11  ;;  %v9845_v30 = vsel %vm5104_vm11, 0.0, %v9829_v2  ;;  %v9816_v45 = vld [vmem:[#allocation3 + $0x90] sm:$0x1f]  ;;  %v16501_v2 = vld [vmem:[%s24336_s5 + $0x258] sm:$0xff]  }
 0x517   : > { %15315 = vmatprep.subr.bf16.mxu1 %v16445_v54  ;;  %v9118_v54 = vcombine.low %v9089_v57, %v9090_v50  ;;  %v9834_v31 = vrot.slane %v9816_v45, 7  ;;  %v23071_v57 = vld [vmem:[#allocation3 + $0x28] sm:$0x1f] }
 0x518   : > { %15886 = vmatpush3.bf16.msra.mxu0 %v16449_v18  ;;  %v9853_v18 = vrot.slane %v22971_v1, 1 }
 0x519   : > { %15887 = vmatprep.subr.bf16.mxu0 %v16452_v19 }
 0x51a   : > { %15316 = vmatpush3.bf16.msra.mxu1 %v16446_v53  ;;  %v9881_v53 = vcombine.low %v9854_v21, %v9855_v51  ;;  %v9878_v4 = vcombine.low %v9852_v5, %v9853_v18  ;;  %v23068_v51 = vld [vmem:[#allocation3 + $0x48] sm:$0x1f] }
 0x51b   : > { %15317 = vmatprep.subr.bf16.mxu1 %v16450_v25  ;;  %v9134_v25 = vpack.c.bf16 %v14171_v56, %v14169_v46  ;;  %v16493_v5 = vld [vmem:[%s24336_s5 + $0x248] sm:$0xff]   ;;  %v9850_v46 = vsel %vm5104_vm11, 0.0, %v9834_v31 }
 0x51c   : > { %15888 = vmatpush3.bf16.msra.mxu0 %v16452_v19  ;;  %v14278_v19 = vcombine.low %v22976_v22, %v22971_v1  ;;  %v9902_v33 = vpack.c.bf16 %v9881_v53, %v9878_v4  ;;  %v9858_v53 = vrot.slane %v9816_v45, 1  ;;  %v10234_v4 = vrot.slane %v23071_v57, 1 }
 0x51d   : > { %15889 = vmatprep.subr.bf16.mxu0 %v16455_v47 }
 0x51e   : > { %15318 = vmatpush3.bf16.msra.mxu1 %v16451_v41  ;;  %v9115_v41 = vcombine.low %v9087_v27, %v9088_v6 }
 0x51f   : > { %15319 = vmatprep.subr.bf16.mxu1 %v16453_v7  ;;  %v9901_v7 = vpack.c.bf16 %v14280_v61, %v14278_v19  ;;  %v23075_v61 = vld [vmem:[#allocation3 + $0x38] sm:$0x1f] }
 0x520   : > { %15890 = vmatpush3.bf16.msra.mxu0 %v16455_v47  ;;  %v16472_v47 = vld [vmem:[%s24336_s5 + $0x1d8] sm:$0xff]  }
 0x521   : > { %15891 = vmatprep.subr.bf16.mxu0 %v16458_v0 }
 0x522   : > { %15320 = vmatpush3.bf16.msra.mxu1 %v16454_v26  ;;  %v16475_v26 = vld [vmem:[%s24336_s5 + $0x1e0] sm:$0xff]  }
 0x523   : > { %15321 = vmatprep.subr.bf16.mxu1 %v16456_v42  ;;  %v16480_v42 = vld [vmem:[%s24336_s5 + $0x210] sm:$0xff]  }
 0x524   : > { %15892 = vmatpush3.bf16.msra.mxu0 %v16458_v0  ;;  %v9136_v0 = vpack.c.bf16 %v9118_v54, %v9115_v41  ;;  %v10236_v54 = vrot.slane %v23068_v51, 1  ;;  %v14360_v41 = vcombine.low %v23075_v61, %v23068_v51 }
 0x525   : > { %15893 = vmatprep.subr.bf16.mxu0 %v16463_v35 }
 0x526   : > { %15322 = vmatpush3.bf16.msra.mxu1 %v16457_v36  ;;  %v16486_v36 = vld [vmem:[%s24336_s5 + $0x220] sm:$0xff]  }
 0x527   : > { %15345 = vmatprep.subr.bf16.mxu1 %v16459_v16  ;;  %v9828_v16 = vrot.slane %v22976_v22, 7  ;;  %v16490_v22 = vld [vmem:[%s24336_s5 + $0x240] sm:$0xff]  }
 0x528   : > { %15894 = vmatpush3.bf16.msra.mxu0 %v16463_v35  ;;  %v16478_v35 = vld [vmem:[%s24336_s5 + $0x1e8] sm:$0xff]  }
 0x529   : > { %15895 = vmatprep.subr.bf16.mxu0 %v16466_v58  ;;  %9739 = vmatmul.mubr.bf16.vlgmr.msra.gmra.mrb[88].mxu1 %v9131_v17  ;;  %v9844_v34 = vsel %vm5104_vm11, 0.0, %v9828_v16  ;;  %v9812_v17 = vld [vmem:[#allocation3 + $0x70] sm:$0x1f]  ;;  %v16505_v16 = vld [vmem:[%s24336_s5 + $0x2c8] sm:$0xff]  }
 0x52a   : > { %9746 = vmatprep.mubr.bf16.mxu1 %v9135_v62  ;;  %15346 = vmatpush3.bf16.msra.mxu1 %v16462_v8  ;;  %v9846_v8 = vsel %vm5104_vm11, 0.0, %v9830_v20  ;;  %v14277_v1 = vcombine.low %v9844_v34, %v9845_v30  ;;  %v9832_v23 = vrot.slane %v9812_v17, 7  ;;  %v16507_v34 = vld [vmem:[%s24336_s5 + $0x268] sm:$0xff]   ;;  %v16509_v30 = vld [vmem:[%s24336_s5 + $0x2b0] sm:$0xff]  }
 0x52b   : > { %15347 = vmatprep.subr.bf16.mxu1 %v16464_v32  ;;  %v14279_v40 = vcombine.low %v9846_v8, %v9847_v13  ;;  %v9814_v32 = vld [vmem:[#allocation3 + $0x80] sm:$0x1f]  ;;  %v10212_v8 = vrot.slane %v23068_v51, 7  ;;  %v9817_v51 = vld [vmem:[#allocation3 + $0x98] sm:$0x1f] }
 0x52c   : > { %15896 = vmatpush3.bf16.msra.mxu0 %v16466_v58  ;;  %v9818_v58 = vld [vmem:[#allocation3 + $0xa0] sm:$0x1f]  ;;  %v14282_v50 = vcombine.low %v9812_v17, %v9814_v32  ;;  %v9848_v18 = vsel %vm5104_vm11, 0.0, %v9832_v23  ;;  %v9857_v19 = vrot.slane %v9814_v32, 1  ;;  %v16513_v23 = vld [vmem:[%s24336_s5 + $0x278] sm:$0xff]  }
 0x52d   : > { %15897 = vmatprep.subr.bf16.mxu0 %v16471_v14  ;;  %v14284_v62 = vcombine.low %v9816_v45, %v9818_v58  ;;  %v9835_v48 = vrot.slane %v9818_v58, 7  ;;  %v9900_v15 = vpack.c.bf16 %v14279_v40, %v14277_v1  ;;  %v9859_v56 = vrot.slane %v9818_v58, 1  ;;  %v16504_v13 = vld [vmem:[%s24336_s5 + $0x260] sm:$0xff]   ;;  %v16506_v58 = vld [vmem:[%s24336_s5 + $0x2a8] sm:$0xff]   ;;  %v16512_v45 = vld [vmem:[%s24336_s5 + $0x2b8] sm:$0xff]  }
 0x52e   : > { %15348 = vmatpush3.bf16.msra.mxu1 %v16465_v29  ;;  %v9833_v29 = vrot.slane %v9814_v32, 7  ;;  %v10210_v40 = vrot.slane %v23071_v57, 7  ;;  %v16510_v32 = vld [vmem:[%s24336_s5 + $0x270] sm:$0xff]   ;;  %v16519_v1 = vld [vmem:[%s24336_s5 + $0x2e8] sm:$0xff]  }
 0x52f   : > { %15349 = vmatprep.subr.bf16.mxu1 %v16467_v63  ;;  %v9904_v27 = vpack.c.bf16 %v14284_v62, %v14282_v50  ;;  %v9851_v6 = vsel %vm5104_vm11, 0.0, %v9835_v48  ;;  %v23073_v63 = vld [vmem:[#allocation3 + $0x18] sm:$0x1f]  ;;  %v10228_v62 = vsel %vm5104_vm11, 0.0, %v10212_v8  ;;  %v9819_v48 = vld [vmem:[#allocation3 + $0xa8] sm:$0x1f] }
 0x530   : > { %15898 = vmatpush3.bf16.msra.mxu0 %v16471_v14  ;;  %v16494_v14 = vld [vmem:[%s24336_s5 + $0x230] sm:$0xff]   ;;  %v9849_v21 = vsel %vm5104_vm11, 0.0, %v9833_v29  ;;  %v10226_v50 = vsel %vm5104_vm11, 0.0, %v10210_v40  ;;  %v16515_v29 = vld [vmem:[%s24336_s5 + $0x340] sm:$0xff]   ;;  %v16529_v40 = vld [vmem:[%s24336_s5 + $0x318] sm:$0xff]  }
 0x531   : > { %15903 = vmatprep.subr.bf16.mxu0 %v16474_v43  ;;  %9747 = vmatmul.mubr.bf16.gmra.mrb[92].mxu1 %v9134_v25  ;;  %v14283_v25 = vcombine.low %v9850_v46, %v9851_v6  ;;  %v10216_v6 = vrot.slane %v9819_v48, 7 }
 0x532   : > { %15350 = vmatpush3.bf16.msra.mxu1 %v16468_v37  ;;  %10131 = vmatprep.mubr.bf16.mxu1 %v9901_v7  ;;  %v9856_v37 = vrot.slane %v9812_v17, 1  ;;  %v10233_v7 = vrot.slane %v23073_v63, 1  ;;  %v10211_v17 = vrot.slane %v23075_v61, 7 }
 0x533   : > { %15351 = vmatprep.subr.bf16.mxu1 %v16472_v47  ;;  %15900 = vmatmul.mubr.bf16.vlgmr.msra.gmra.mrb[160].mxu0 %v9136_v0  ;;  %v16495_v47 = vld [vmem:[%s24336_s5 + $0x290] sm:$0xff]   ;;  %v10235_v0 = vrot.slane %v23075_v61, 1  ;;  %v16518_v61 = vld [vmem:[%s24336_s5 + $0x300] sm:$0xff]  }
 0x534   : > { %15904 = vmatpush3.bf16.msra.mxu0 %v16474_v43  ;;  %15919 = vmatprep.mubr.bf16.mxu0 %v9902_v33  ;;  %v16499_v43 = vld [vmem:[%s24336_s5 + $0x238] sm:$0xff]   ;;  %v16502_v33 = vld [vmem:[%s24336_s5 + $0x2c0] sm:$0xff]   ;;  %v10259_v11 = vcombine.low %v10233_v7, %v10234_v4  ;;  %v16521_v4 = vld [vmem:[%s24336_s5 + $0x308] sm:$0xff]  }
 0x535   : > { %15905 = vmatprep.subr.bf16.mxu0 %v16477_v9 }
 0x536   : > { %15352 = vmatpush3.bf16.msra.mxu1 %v16473_v24  ;;  %v9887_v24 = vcombine.low %v9858_v53, %v9859_v56  ;;  %v16522_v56 = vld [vmem:[%s24336_s5 + $0x2f0] sm:$0xff]   ;;  %v10232_v53 = vsel %vm5104_vm11, 0.0, %v10216_v6 }
 0x537   : > { %15353 = vmatprep.subr.bf16.mxu1 %v16475_v26  ;;  %v16496_v26 = vld [vmem:[%s24336_s5 + $0x250] sm:$0xff]  }
 0x538   : > { %15906 = vmatpush3.bf16.msra.mxu0 %v16477_v9  ;;  %v14281_v9 = vcombine.low %v9848_v18, %v9849_v21  ;;  %v10215_v18 = vrot.slane %v9817_v51, 7  ;;  %v23165_v21 = vld [vmem:[#allocation3 + $0x50] sm:$0x1f] }
 0x539   : > { %15907 = vmatprep.subr.bf16.mxu0 %v16480_v42  ;;  %v10626_v7 = vrot.slane %v23165_v21, 1 }
 0x53a   : > { %15354 = vmatpush3.bf16.msra.mxu1 %v16476_v39  ;;  %v10262_v39 = vcombine.low %v10235_v0, %v10236_v54  ;;  %v16520_v54 = vld [vmem:[%s24336_s5 + $0x348] sm:$0xff]  }
 0x53b   : > { %15355 = vmatprep.subr.bf16.mxu1 %v16478_v35  ;;  %v9903_v35 = vpack.c.bf16 %v14283_v25, %v14281_v9  ;;  %v10240_v25 = vrot.slane %v9819_v48, 1 }
 0x53c   : > { %15908 = vmatpush3.bf16.msra.mxu0 %v16480_v42  ;;  %v14358_v42 = vcombine.low %v23073_v63, %v23071_v57  ;;  %v10283_v20 = vpack.c.bf16 %v10262_v39, %v10259_v11  ;;  %v10239_v39 = vrot.slane %v9817_v51, 1 }
 0x53d   : > { %15909 = vmatprep.subr.bf16.mxu0 %v16483_v49 }
 0x53e   : > { %15356 = vmatpush3.bf16.msra.mxu1 %v16479_v10  ;;  %v9884_v10 = vcombine.low %v9856_v37, %v9857_v19  ;;  %v23170_v37 = vld [vmem:[#allocation3 + $0x40] sm:$0x1f] }
 0x53f   : > { %15357 = vmatprep.subr.bf16.mxu1 %v16481_v12  ;;  %v10282_v12 = vpack.c.bf16 %v14360_v41, %v14358_v42  ;;  %v16527_v41 = vld [vmem:[%s24336_s5 + $0x2f8] sm:$0xff]  }
 0x540   : > { %15910 = vmatpush3.bf16.msra.mxu0 %v16483_v49  ;;  %v16500_v49 = vld [vmem:[%s24336_s5 + $0x298] sm:$0xff]  }
 0x541   : > { %15911 = vmatprep.subr.bf16.mxu0 %v16486_v36 }
 0x542   : > { %15358 = vmatpush3.bf16.msra.mxu1 %v16482_v44  ;;  %v16503_v44 = vld [vmem:[%s24336_s5 + $0x2a0] sm:$0xff]  }
 0x543   : > { %15359 = vmatprep.subr.bf16.mxu1 %v16484_v59  ;;  %v16508_v59 = vld [vmem:[%s24336_s5 + $0x2d0] sm:$0xff]  }
 0x544   : > { %15912 = vmatpush3.bf16.msra.mxu0 %v16486_v36  ;;  %v9905_v36 = vpack.c.bf16 %v9887_v24, %v9884_v10  ;;  %v10231_v24 = vsel %vm5104_vm11, 0.0, %v10215_v18  ;;  %v23189_v10 = vld [vmem:[#allocation3 + $0x20] sm:$0x1f]  ;;  %v10588_v18 = vld [vmem:[#allocation3 + $0x90] sm:$0x1f] }
 0x545   : > { %15913 = vmatprep.subr.bf16.mxu0 %v16491_v60 }
 0x546   : > { %15360 = vmatpush3.bf16.msra.mxu1 %v16485_v28  ;;  %v16514_v28 = vld [vmem:[%s24336_s5 + $0x2e0] sm:$0xff]  }
 0x547   : > { %15383 = vmatprep.subr.bf16.mxu1 %v16487_v38  ;;  %v10209_v38 = vrot.slane %v23073_v63, 7 }
 0x548   : > { %15914 = vmatpush3.bf16.msra.mxu0 %v16491_v60  ;;  %v16511_v60 = vld [vmem:[%s24336_s5 + $0x2d8] sm:$0xff]  }
 0x549   : > { %10132 = vmatmul.mubr.bf16.vlgmr.msra.gmra.mrb[96].mxu1 %v9900_v15  ;;  %15915 = vmatprep.subr.bf16.mxu0 %v16494_v14  ;;  %v9813_v15 = vld [vmem:[#allocation3 + $0x78] sm:$0x1f] }
 0x54a   : > { %10139 = vmatprep.mubr.bf16.mxu1 %v9904_v27  ;;  %15384 = vmatpush3.bf16.msra.mxu1 %v16490_v22  ;;  %v10227_v22 = vsel %vm5104_vm11, 0.0, %v10211_v17  ;;  %v14364_v27 = vcombine.low %v9817_v51, %v9819_v48  ;;  %v16534_v48 = vld [vmem:[%s24336_s5 + $0x368] sm:$0xff]   ;;  %v10599_v51 = vrot.slane %v23189_v10, 7 }
 0x54b   : > { %15385 = vmatprep.subr.bf16.mxu1 %v16492_v55  ;;  %v14359_v31 = vcombine.low %v10227_v22, %v10228_v62  ;;  %v9815_v55 = vld [vmem:[#allocation3 + $0x88] sm:$0x1f]  ;;  %v16532_v62 = vld [vmem:[%s24336_s5 + $0x320] sm:$0xff]   ;;  %v10601_v22 = vrot.slane %v23170_v37, 7 }
 0x54c   : > { %15916 = vmatpush3.bf16.msra.mxu0 %v16494_v14  ;;  %v10225_v14 = vsel %vm5104_vm11, 0.0, %v10209_v38  ;;  %v14362_v63 = vcombine.low %v9813_v15, %v9815_v55  ;;  %v10238_v42 = vrot.slane %v9815_v55, 1  ;;  %v16533_v38 = vld [vmem:[%s24336_s5 + $0x388] sm:$0xff]  }
 0x54d   : > { %15917 = vmatprep.subr.bf16.mxu0 %v16499_v43  ;;  %v14357_v57 = vcombine.low %v10225_v14, %v10226_v50  ;;  %v16535_v14 = vld [vmem:[%s24336_s5 + $0x328] sm:$0xff]   ;;  %v16537_v50 = vld [vmem:[%s24336_s5 + $0x370] sm:$0xff]  }
 0x54e   : > { %15386 = vmatpush3.bf16.msra.mxu1 %v16493_v5  ;;  %v10214_v5 = vrot.slane %v9815_v55, 7  ;;  %v10285_v19 = vpack.c.bf16 %v14364_v27, %v14362_v63  ;;  %v16540_v55 = vld [vmem:[%s24336_s5 + $0x378] sm:$0xff]   ;;  %v10617_v27 = vsel %vm5104_vm11, 0.0, %v10601_v22  ;;  %v16545_v63 = vld [vmem:[%s24336_s5 + $0x3a8] sm:$0xff]  }
 0x54f   : > { %15387 = vmatprep.subr.bf16.mxu1 %v16495_v47  ;;  %v10281_v46 = vpack.c.bf16 %v14359_v31, %v14357_v57  ;;  %v23173_v47 = vld [vmem:[#allocation3 + $0x30] sm:$0x1f]  ;;  %v10589_v57 = vld [vmem:[#allocation3 + $0xa0] sm:$0x1f]  ;;  %v16549_v22 = vld [vmem:[%s24338_s7 + $0x128] sm:$0xff]  }
 0x550   : > { %15918 = vmatpush3.bf16.msra.mxu0 %v16499_v43  ;;  %v10213_v43 = vrot.slane %v9813_v15, 7  ;;  %v10230_v9 = vsel %vm5104_vm11, 0.0, %v10214_v5  ;;  %v10624_v11 = vrot.slane %v23173_v47, 1  ;;  %v10600_v31 = vrot.slane %v23173_v47, 7 }
 0x551   : > { %10140 = vmatmul.mubr.bf16.gmra.mrb[100].mxu1 %v9903_v35  ;;  %15923 = vmatprep.subr.bf16.mxu0 %v16502_v33  ;;  %v14363_v35 = vcombine.low %v10231_v24, %v10232_v53  ;;  %v10587_v53 = vld [vmem:[#allocation3 + $0x80] sm:$0x1f] }
 0x552   : > { %15388 = vmatpush3.bf16.msra.mxu1 %v16496_v26  ;;  %10512 = vmatprep.mubr.bf16.mxu1 %v10282_v12  ;;  %v10229_v0 = vsel %vm5104_vm11, 0.0, %v10213_v43  ;;  %v10237_v26 = vrot.slane %v9813_v15, 1  ;;  %v14440_v12 = vcombine.low %v23170_v37, %v23165_v21  ;;  %v16538_v15 = vld [vmem:[%s24336_s5 + $0x330] sm:$0xff]   ;;  %v16541_v43 = vld [vmem:[%s24336_s5 + $0x338] sm:$0xff]  }
 0x553   : > { %15389 = vmatprep.subr.bf16.mxu1 %v16500_v49  ;;  %15920 = vmatmul.mubr.bf16.vlgmr.msra.gmra.mrb[160].mxu0 %v9905_v36  ;;  %v16523_v49 = vld [vmem:[%s24336_s5 + $0x350] sm:$0xff]   ;;  %v14361_v36 = vcombine.low %v10229_v0, %v10230_v9  ;;  %v10603_v0 = vrot.slane %v10587_v53, 7 }
 0x554   : > { %15924 = vmatpush3.bf16.msra.mxu0 %v16502_v33  ;;  %15939 = vmatprep.mubr.bf16.mxu0 %v10283_v20  ;;  %v10625_v33 = vrot.slane %v23170_v37, 1  ;;  %v16524_v20 = vld [vmem:[%s24336_s5 + $0x310] sm:$0xff]  }
 0x555   : > { %15925 = vmatprep.subr.bf16.mxu0 %v16505_v16 }
 0x556   : > { %15390 = vmatpush3.bf16.msra.mxu1 %v16501_v2  ;;  %v16530_v2 = vld [vmem:[%s24336_s5 + $0x380] sm:$0xff]  }
 0x557   : > { %15391 = vmatprep.subr.bf16.mxu1 %v16503_v44  ;;  %v14438_v44 = vcombine.low %v23189_v10, %v23173_v47  ;;  %v14442_v47 = vcombine.low %v10587_v53, %v10588_v18 }
 0x558   : > { %15926 = vmatpush3.bf16.msra.mxu0 %v16505_v16  ;;  %v10268_v16 = vcombine.low %v10239_v39, %v10240_v25  ;;  %v16546_v25 = vld [vmem:[%s24336_s5 + $0x3b0] sm:$0xff]  }
 0x559   : > { %15927 = vmatprep.subr.bf16.mxu0 %v16508_v59 }
 0x55a   : > { %15392 = vmatpush3.bf16.msra.mxu1 %v16504_v13  ;;  %v10652_v13 = vcombine.low %v10625_v33, %v10626_v7  ;;  %v10629_v33 = vrot.slane %v10589_v57, 1 }
 0x55b   : > { %15393 = vmatprep.subr.bf16.mxu1 %v16506_v58  ;;  %v10284_v58 = vpack.c.bf16 %v14363_v35, %v14361_v36  ;;  %v10628_v35 = vrot.slane %v10588_v18, 1 }
 0x55c   : > { %15928 = vmatpush3.bf16.msra.mxu0 %v16508_v59  ;;  %v10623_v59 = vrot.slane %v23189_v10, 1  ;;  %v10619_v10 = vsel %vm5104_vm11, 0.0, %v10603_v0 }
 0x55d   : > { %15929 = vmatprep.subr.bf16.mxu0 %v16511_v60 }
 0x55e   : > { %15394 = vmatpush3.bf16.msra.mxu1 %v16507_v34  ;;  %v10265_v34 = vcombine.low %v10237_v26, %v10238_v42  ;;  %v10649_v8 = vcombine.low %v10623_v59, %v10624_v11  ;;  %v16547_v42 = vld [vmem:[%s24336_s5 + $0x3b8] sm:$0xff]  }
 0x55f   : > { %15395 = vmatprep.subr.bf16.mxu1 %v16509_v30  ;;  %v10672_v30 = vpack.c.bf16 %v14440_v12, %v14438_v44  ;;  %v10627_v12 = vrot.slane %v10587_v53, 1 }
 0x560   : > { %15930 = vmatpush3.bf16.msra.mxu0 %v16511_v60  ;;  %v16528_v60 = vld [vmem:[%s24336_s5 + $0x358] sm:$0xff]   ;;  %v10673_v17 = vpack.c.bf16 %v10652_v13, %v10649_v8 }
 0x561   : > { %15931 = vmatprep.subr.bf16.mxu0 %v16514_v28 }
 0x562   : > { %15396 = vmatpush3.bf16.msra.mxu1 %v16510_v32  ;;  %v16531_v32 = vld [vmem:[%s24336_s5 + $0x360] sm:$0xff]  }
 0x563   : > { %15397 = vmatprep.subr.bf16.mxu1 %v16512_v45  ;;  %v16536_v45 = vld [vmem:[%s24336_s5 + $0x390] sm:$0xff]  }
 0x564   : > { %15932 = vmatpush3.bf16.msra.mxu0 %v16514_v28  ;;  %v10286_v28 = vpack.c.bf16 %v10268_v16, %v10265_v34 }
 0x565   : > { %15933 = vmatprep.subr.bf16.mxu0 %v16519_v1 }
 0x566   : > { %15398 = vmatpush3.bf16.msra.mxu1 %v16513_v23  ;;  %v10602_v23 = vrot.slane %v23165_v21, 7  ;;  %v10615_v21 = vsel %vm5104_vm11, 0.0, %v10599_v51 }
 0x567   : > { %15421 = vmatprep.subr.bf16.mxu1 %v16515_v29  ;;  %v16542_v29 = vld [vmem:[%s24336_s5 + $0x3a0] sm:$0xff]  }
 0x568   : > { %15934 = vmatpush3.bf16.msra.mxu0 %v16519_v1  ;;  %v16539_v1 = vld [vmem:[%s24336_s5 + $0x398] sm:$0xff]   ;;  %v10618_v6 = vsel %vm5104_vm11, 0.0, %v10602_v23  ;;  %v23286_v23 = vld [vmem:[#allocation4] sm:$0xff] }
 0x569   : > { %10513 = vmatmul.mubr.bf16.vlgmr.msra.gmra.mrb[104].mxu1 %v10281_v46  ;;  %15935 = vmatprep.subr.bf16.mxu0 %v16522_v56  ;;  %v14439_v5 = vcombine.low %v10617_v27, %v10618_v6 }
 0x56a   : > { %10520 = vmatprep.mubr.bf16.mxu1 %v10285_v19  ;;  %15422 = vmatpush3.bf16.msra.mxu1 %v16518_v61  ;;  %v10616_v61 = vsel %vm5104_vm11, 0.0, %v10600_v31 }
 0x56b   : > { %15423 = vmatprep.subr.bf16.mxu1 %v16520_v54  ;;  %v10605_v54 = vrot.slane %v10589_v57, 7  ;;  %v14437_v19 = vcombine.low %v10615_v21, %v10616_v61  ;;  %v16551_v61 = vld [vmem:[%s24338_s7 + $0x138] sm:$0xff]  }
 0x56c   : > { %15936 = vmatpush3.bf16.msra.mxu0 %v16522_v56  ;;  %v10590_v56 = vld [vmem:[#allocation3 + $0xb0] sm:$0x1f] }
 0x56d   : > { %15937 = vmatprep.subr.bf16.mxu0 %v16527_v41  ;;  %v14444_v46 = vcombine.low %v10589_v57, %v10590_v56  ;;  %v10606_v37 = vrot.slane %v10590_v56, 7  ;;  %v10671_v7 = vpack.c.bf16 %v14439_v5, %v14437_v19  ;;  %v10621_v9 = vsel %vm5104_vm11, 0.0, %v10605_v54  ;;  %v23300_v5 = vld [vmem:[#allocation4 + $0x40] sm:$0xff] }
 0x56e   : > { %15424 = vmatpush3.bf16.msra.mxu1 %v16521_v4  ;;  %v10630_v26 = vrot.slane %v10590_v56, 1  ;;  %v23307_v54 = vld [vmem:[%s24338_s7 + $0x80] sm:$0xff]  }
 0x56f   : > { %15425 = vmatprep.subr.bf16.mxu1 %v16523_v49  ;;  %v10675_v4 = vpack.c.bf16 %v14444_v46, %v14442_v47  ;;  %v10622_v24 = vsel %vm5104_vm11, 0.0, %v10606_v37  ;;  %v11114_v46 = vrot.slane %v23300_v5, 3 }
 0x570   : > { %15938 = vmatpush3.bf16.msra.mxu0 %v16527_v41  ;;  %v10604_v41 = vrot.slane %v10588_v18, 7  ;;  %v14443_v49 = vcombine.low %v10621_v9, %v10622_v24  ;;  %v10658_v36 = vcombine.low %v10629_v33, %v10630_v26 }
 0x571   : > { %10521 = vmatmul.mubr.bf16.gmra.mrb[108].mxu1 %v10284_v58  ;;  %15943 = vmatprep.subr.bf16.mxu0 %v16530_v2 }
 0x572   : > { %15426 = vmatpush3.bf16.msra.mxu1 %v16524_v20  ;;  %10902 = vmatprep.mubr.bf16.mxu1 %v10672_v30  ;;  %v10620_v39 = vsel %vm5104_vm11, 0.0, %v10604_v41  ;;  %v23266_v30 = vld [vmem:[#allocation4 + $0x8] sm:$0xff] }
 0x573   : > { %15427 = vmatprep.subr.bf16.mxu1 %v16528_v60  ;;  %15940 = vmatmul.mubr.bf16.vlgmr.msra.gmra.mrb[160].mxu0 %v10286_v28  ;;  %v14441_v11 = vcombine.low %v10619_v10, %v10620_v39  ;;  %v11325_v8 = vrot.slane %v23266_v30, 3 }
 0x574   : > { %15944 = vmatpush3.bf16.msra.mxu0 %v16530_v2  ;;  %15959 = vmatprep.mubr.bf16.mxu0 %v10673_v17  ;;  %v10655_v2 = vcombine.low %v10627_v12, %v10628_v35 }
 0x575   : > { %15945 = vmatprep.subr.bf16.mxu0 %v16533_v38  ;;  %v10674_v16 = vpack.c.bf16 %v14443_v49, %v14441_v11  ;;  %11333 = vrot.lane.b32.xlu0 %v11325_v8, %s16666_s12 }
 0x576   : > { %15428 = vmatpush3.bf16.msra.mxu1 %v16529_v40  ;;  %v10676_v20 = vpack.c.bf16 %v10658_v36, %v10655_v2  ;;  %11120 = vrot.lane.b32.xlu1 %v11325_v8, %s16666_s12  ;;  %v11277_v40 = vrot.slane %v23266_v30, 1 }
 0x577   : > { %15429 = vmatprep.subr.bf16.mxu1 %v16531_v32 }
 0x578   : > { %15946 = vmatpush3.bf16.msra.mxu0 %v16533_v38 }
 0x579   : > { %15947 = vmatprep.subr.bf16.mxu0 %v16536_v45  ;;  %11285 = vrot.lane.b32.xlu0 %v11277_v40, %s16666_s12 }
 0x57a   : > { %15430 = vmatpush3.bf16.msra.mxu1 %v16532_v62  ;;  %11072 = vrot.lane.b32.xlu1 %v11277_v40, %s16666_s12 }
 0x57b   : > { %15431 = vmatprep.subr.bf16.mxu1 %v16534_v48  ;;  %v23274_v48 = vld [vmem:[#allocation4 + $0x48] sm:$0xff] }
 0x57c   : > { %15948 = vmatpush3.bf16.msra.mxu0 %v16536_v45 }
 0x57d   : > { %15949 = vmatprep.subr.bf16.mxu0 %v16539_v1 }
 0x57e   : > { %15432 = vmatpush3.bf16.msra.mxu1 %v16535_v14  ;;  %v11281_v14 = vrot.slane %v23274_v48, 1 }
 0x57f   : > { %15433 = vmatprep.subr.bf16.mxu1 %v16537_v50  ;;  %v16548_v50 = vld [vmem:[%s24338_s7 + $0x120] sm:$0xff]  }
 0x580   : > { %15950 = vmatpush3.bf16.msra.mxu0 %v16539_v1  ;;  %v11329_v1 = vrot.slane %v23274_v48, 3 }
 0x581   : > { %15951 = vmatprep.subr.bf16.mxu0 %v16542_v29 }
 0x582   : > { %15434 = vmatpush3.bf16.msra.mxu1 %v16538_v15  ;;  %11341 = vrot.lane.b32.xlu0 %v11329_v1, %s16666_s12  ;;  %v11110_v15 = vrot.slane %v23286_v23, 3 }
 0x583   : > { %15435 = vmatprep.subr.bf16.mxu1 %v16540_v55  ;;  %11128 = vrot.lane.b32.xlu1 %v11329_v1, %s16666_s12  ;;  %v16550_v55 = vld [vmem:[%s24338_s7 + $0x130] sm:$0xff]  }
 0x584   : > { %15952 = vmatpush3.bf16.msra.mxu0 %v16542_v29 }
 0x585   : > { %15953 = vmatprep.subr.bf16.mxu0 %v16545_v63 }
 0x586   : > { %15436 = vmatpush3.bf16.msra.mxu1 %v16541_v43  ;;  %11293 = vrot.lane.b32.xlu0 %v11281_v14, %s16666_s12 }
 0x588   : > { %15954 = vmatpush3.bf16.msra.mxu0 %v16545_v63  ;;  %v11062_v63 = vrot.slane %v23286_v23, 1 }
 0x589   : > { %10903 = vmatmul.mubr.bf16.vlgmr.msra.gmra.mrb[112].mxu1 %v10671_v7  ;;  %15955 = vmatprep.subr.bf16.mxu0 %v16546_v25 }
 0x58a   : > { %10910 = vmatprep.mubr.bf16.mxu1 %v10675_v4  ;;  %11118 = vrot.lane.b32.xlu0 %v11110_v15, %s16666_s12 }
 0x58c   : > { %15956 = vmatpush3.bf16.msra.mxu0 %v16546_v25 }
 0x58d   : > { %15957 = vmatprep.subr.bf16.mxu0 %v16547_v42 }
 0x58e   : > { %11070 = vrot.lane.b32.xlu0 %v11062_v63, %s16666_s12 }
 0x590   : > { %15958 = vmatpush3.bf16.msra.mxu0 %v16547_v42 }
 0x591   : > { %10911 = vmatmul.mubr.bf16.gmra.mrb[116].mxu1 %v10674_v16  ;;  %15963 = vmatprep.subr.bf16.mxu0 %v16548_v50 }
 0x592   : > { %11126 = vrot.lane.b32.xlu0 %v11114_v46, %s16666_s12 }
 0x593   : > { %15960 = vmatmul.mubr.bf16.vlgmr.msra.gmra.mrb[160].mxu0 %v10676_v20 }
 0x594   : > { %15964 = vmatpush3.bf16.msra.mxu0 %v16548_v50 }
 0x595   : > { %15965 = vmatprep.subr.bf16.mxu0 %v16549_v22 }
 0x598   : > { %15966 = vmatpush3.bf16.msra.mxu0 %v16549_v22 }
 0x599   : > { %15967 = vmatprep.subr.bf16.mxu0 %v16550_v55 }
 0x59c   : > { %15968 = vmatpush3.bf16.msra.mxu0 %v16550_v55 }
 0x59d   : > { %15969 = vmatprep.subr.bf16.mxu0 %v16551_v61 }
 0x5a0   : > { %15970 = vmatpush3.bf16.msra.mxu0 %v16551_v61 }
 0x5a1   : > { %15975 = vmatprep.subr.bf16.mxu0 %v23307_v54 }
 0x5da   : > { %v15285_v44 = vpop.f32.mrb[80].mxu1 }
 0x5db   : > { %v15286_v59 = vpop.f32.mrb[81].mxu1 }
 0x5dc   : > { %v15287_v13 = vadd.f32 %v15286_v59, %v15285_v44  ;;  %v15288_v58 = vpop.f32.mrb[82].mxu1 }
 0x5dd   : > { %v15289_v60 = vpop.f32.mrb[83].mxu1 }
 0x5de   : > { %v15290_v34 = vadd.f32 %v15289_v60, %v15288_v58 }
 0x5e7   : > { %v15291_v28 = vpop.f32.mrb[84].mxu1  ;;  %v23311_v15 = vpop.permute.xlu0 %11333 }
 0x5e8   : > { %v15292_v38 = vpop.f32.mrb[85].mxu1 }
 0x5e9   : > { %v15293_v17 = vadd.f32 %v15292_v38, %v15291_v28  ;;  %v15294_v32 = vpop.f32.mrb[86].mxu1 }
 0x5ea   : > { %v15295_v45 = vpop.f32.mrb[87].mxu1 }
 0x5eb   : > { %v15296_v62 = vadd.f32 %v15295_v45, %v15294_v32 }
 0x5fc   : > { %v15323_v29 = vpop.f32.mrb[88].mxu1 }
 0x5fd   : > { %v15324_v31 = vpop.f32.mrb[89].mxu1 }
 0x5fe   : > { %v15325_v51 = vadd.f32 %v15324_v31, %v15323_v29  ;;  %v15326_v27 = vpop.f32.mrb[90].mxu1 }
 0x5ff   : > { %v15327_v6 = vpop.f32.mrb[91].mxu1 }
 0x600   : > { %v16108_v57 = vadd.f32 %v15325_v51, %v15287_v13  ;;  %v15328_v56 = vadd.f32 %v15327_v6, %v15326_v27 }
 0x602   : > { %v16118_v43 = vadd.f32 %v15328_v56, %v15290_v34  ;;  %v23313_v56 = vpop.permute.xlu0 %11285 }
 0x604   : > { %v15329_v18 = vpop.f32.mrb[92].mxu1 }
 0x605   : > { %v15330_v21 = vpop.f32.mrb[93].mxu1 }
 0x606   : > { %v15331_v37 = vadd.f32 %v15330_v21, %v15329_v18  ;;  %v15332_v19 = vpop.f32.mrb[94].mxu1  ;;  %v14517_v21 = vld [vmem:[%s24337_s6] ss:$0 sm:$0xff] }
 0x607   : > { %v15333_v53 = vpop.f32.mrb[95].mxu1 }
 0x608   : > { %v16103_v25 = vadd.f32 %v15331_v37, %v15293_v17  ;;  %v15334_v47 = vadd.f32 %v15333_v53, %v15332_v19 }
 0x60a   : > { %v16113_v41 = vadd.f32 %v15334_v47, %v15296_v62 }
 0x61c   : > { %v15361_v7 = vpop.f32.mrb[96].mxu1 }
 0x61d   : > { %v15362_v4 = vpop.f32.mrb[97].mxu1 }
 0x61e   : > { %v15363_v0 = vadd.f32 %v15362_v4, %v15361_v7  ;;  %v15364_v9 = vpop.f32.mrb[98].mxu1 }
 0x61f   : > { %v15365_v24 = vpop.f32.mrb[99].mxu1 }
 0x620   : > { %v16109_v33 = vadd.f32 %v16108_v57, %v15363_v0  ;;  %v15366_v26 = vadd.f32 %v15365_v24, %v15364_v9  ;;  %v23318_v9 = vpop.permute.xlu0 %11341 }
 0x622   : > { %v16119_v42 = vadd.f32 %v16118_v43, %v15366_v26 }
 0x624   : > { %v15367_v39 = vpop.f32.mrb[100].mxu1 }
 0x625   : > { %v15368_v35 = vpop.f32.mrb[101].mxu1 }
 0x626   : > { %v15369_v49 = vadd.f32 %v15368_v35, %v15367_v39  ;;  %v15370_v10 = vpop.f32.mrb[102].mxu1  ;;  %v11309_v39 = vrot.slane %v23266_v30, 2  ;;  %v11121_v35 = vpop.permute.xlu1 %11120 }
 0x627   : > { %v15371_v12 = vpop.f32.mrb[103].mxu1 }
 0x628   : > { %v16104_v11 = vadd.f32 %v16103_v25, %v15369_v49  ;;  %v15372_v36 = vadd.f32 %v15371_v12, %v15370_v10 }
 0x62a   : > { %v16114_v16 = vadd.f32 %v16113_v41, %v15372_v36 }
 0x63c   : > { %v15399_v2 = vpop.f32.mrb[104].mxu1 }
 0x63d   : > { %v15400_v20 = vpop.f32.mrb[105].mxu1 }
 0x63e   : > { %v15401_v44 = vadd.f32 %v15400_v20, %v15399_v2  ;;  %v15402_v59 = vpop.f32.mrb[106].mxu1  ;;  %v11094_v2 = vrot.slane %v23286_v23, 2 }
 0x63f   : > { %v15403_v13 = vpop.f32.mrb[107].mxu1 }
 0x640   : > { %v16110_v58 = vadd.f32 %v16109_v33, %v15401_v44  ;;  %v15404_v60 = vadd.f32 %v15403_v13, %v15402_v59 }
 0x642   : > { %v16120_v34 = vadd.f32 %v16119_v42, %v15404_v60 }
 0x644   : > { %v15405_v8 = vpop.f32.mrb[108].mxu1 }
 0x645   : > { %v15406_v28 = vpop.f32.mrb[109].mxu1 }
 0x646   : > { %v15407_v38 = vadd.f32 %v15406_v28, %v15405_v8  ;;  %v15408_v40 = vpop.f32.mrb[110].mxu1 }
 0x647   : > { %v15409_v17 = vpop.f32.mrb[111].mxu1 }
 0x648   : > { %v16105_v32 = vadd.f32 %v16104_v11, %v15407_v38  ;;  %v15410_v45 = vadd.f32 %v15409_v17, %v15408_v40  ;;  %v23332_v17 = vsel %vm4877_vm10, %v11309_v39, %v11121_v35 }
 0x64a   : > { %v16115_v62 = vadd.f32 %v16114_v16, %v15410_v45  ;;  %v23321_v16 = vpop.permute.xlu0 %11293 }
 0x65c   : > { %v15437_v1 = vpop.f32.mrb[112].mxu1 }
 0x65d   : > { %v15438_v50 = vpop.f32.mrb[113].mxu1 }
 0x65e   : > { %v15439_v22 = vadd.f32 %v15438_v50, %v15437_v1  ;;  %v15440_v29 = vpop.f32.mrb[114].mxu1  ;;  %v11119_v50 = vpop.permute.xlu0 %11118 }
 0x65f   : > { %v15441_v31 = vpop.f32.mrb[115].mxu1 }
 0x660   : > { %v15442_v55 = vadd.f32 %v15441_v31, %v15440_v29  ;;  %v16111_v51 = vadd.f32 %v16110_v58, %v15439_v22  ;;  %v11073_v22 = vpop.permute.xlu1 %11072 }
 0x662   : > { %v16121_v27 = vadd.f32 %v16120_v34, %v15442_v55 }
 0x664   : > { %v15443_v6 = vpop.f32.mrb[116].mxu1 }
 0x665   : > { %v15444_v57 = vpop.f32.mrb[117].mxu1 }
 0x666   : > { %v15445_v63 = vadd.f32 %v15444_v57, %v15443_v6  ;;  %v15446_v61 = vpop.f32.mrb[118].mxu1  ;;  %v15961_v43 = vpop.f32.mrb[160].mxu0 }
 0x667   : > { %v15447_v18 = vpop.f32.mrb[119].mxu1  ;;  %v10953_v46 = vpop.f32.mrb[161].mxu0 }
 0x668   : > { %v15448_v37 = vadd.f32 %v15447_v18, %v15446_v61  ;;  %v16106_v19 = vadd.f32 %v16105_v32, %v15445_v63  ;;  %v16112_v53 = vadd.f32 %v16111_v51, %v10953_v46  ;;  %v15962_v25 = vpop.f32.mrb[162].mxu0  ;;  %v23341_v51 = vsel %vm4877_vm10, %v11094_v2, %v11119_v50  ;;  %v16556_v2 = vld [vmem:[%s24338_s7 + $0xe0] sm:$0xff]  }
 0x669   : > { %v10956_v47 = vpop.f32.mrb[163].mxu0  ;;  %15459 = vmatprep.subr.bf16.mxu1 %v16556_v2 }
 0x66a   : > { %v16107_v41 = vadd.f32 %v16106_v19, %v15961_v43  ;;  %v10979_v7 = vadd.f32 %v16112_v53, %v14517_v21  ;;  %v16116_v4 = vadd.f32 %v16115_v62, %v15448_v37  ;;  %v16122_v0 = vadd.f32 %v16121_v27, %v10956_v47  ;;  %v11071_v19 = vpop.permute.xlu0 %11070 }
 0x66c   : > { %v10981_v24 = vadd.f32 %v16107_v41, %v14517_v21  ;;  %v10983_v33 = vmax.f32 %v10979_v7, 0.0  ;;  %v16117_v26 = vadd.f32 %v16116_v4, %v15962_v25  ;;  %v10980_v42 = vadd.f32 %v16122_v0, %v14517_v21 }
 0x66d   : > { %v23363_v25 = vsel %vm4877_vm10, %v23286_v23, %v11071_v19  ;;  %v11142_v0 = vrot.slane %v23286_v23, 4  ;;  %v16565_v19 = vld [vmem:[%s24338_s7 + $0xc0] sm:$0xff]  }
 0x66e   : > { %v10985_v49 = vmax.f32 %v10981_v24, 0.0  ;;  %v10991_v10 = vcombine.high %v10983_v33, %v10983_v33  ;;  %v10995_v12 = vrot.slane %v10983_v33, 6  ;;  %v10982_v11 = vadd.f32 %v16117_v26, %v14517_v21 }
 0x66f   : > { %v10984_v36 = vmax.f32 %v10980_v42, 0.0  ;;  %v23354_v21 = vsel %vm4877_vm10, %v23266_v30, %v11073_v22  ;;  %v11357_v33 = vrot.slane %v23266_v30, 4  ;;  %v16553_v22 = vld [vmem:[%s24338_s7 + $0x88] sm:$0xff]  }
 0x670   : > { %v10993_v20 = vcombine.high %v10985_v49, %v10985_v49  ;;  %v10999_v44 = vrot.slane %v10985_v49, 6  ;;  %v10996_v59 = vrot.slane %v10991_v10, 6  ;;  %v11012_v13 = vsel %vm11011_vm0, 0.0, %v10995_v12 }
 0x671   : > { %v11020_v58 = vsel %vm735_vm1, %v11012_v13, 0.0  ;;  %v10986_v60 = vmax.f32 %v10982_v11, 0.0  ;;  %v10992_v34 = vcombine.high %v10984_v36, %v10984_v36  ;;  %v10997_v8 = vrot.slane %v10984_v36, 6 }
 0x672   : > { %v11000_v28 = vrot.slane %v10993_v20, 6  ;;  %v11016_v38 = vsel %vm11011_vm0, 0.0, %v10999_v44  ;;  %v11013_v40 = vsel %vm11011_vm0, 0.0, %v10996_v59  ;;  %11029 = vst.msk [vmem:[#allocation4 + $0x10] sm:$0xff] %vm4877_vm10, %v11020_v58  ;;  %v11361_v10 = vrot.slane %v23274_v48, 4  ;;  %v16557_v20 = vld [vmem:[%s24338_s7 + $0xa0] sm:$0xff]  }
 0x673   : > { %v11024_v32 = vsel %vm735_vm1, %v11016_v38, 0.0  ;;  %v11021_v45 = vsel %vm735_vm1, %v11013_v40, 0.0  ;;  %v10994_v62 = vcombine.high %v10986_v60, %v10986_v60  ;;  %v11001_v1 = vrot.slane %v10986_v60, 6  ;;  %15460 = vmatpush3.bf16.msra.mxu1 %v16557_v20  ;;  %v16568_v20 = vld [vmem:[%s24338_s7 + $0x110] sm:$0xff]  }
 0x674   : > { %v11017_v29 = vsel %vm11011_vm0, 0.0, %v11000_v28  ;;  %11033 = vst.msk [vmem:[#allocation4 + $0x50] sm:$0xff] %vm4877_vm10, %v11024_v32  ;;  %11030 = vst.msk [vmem:[#allocation4 + $0x18] sm:$0xff] %vm4877_vm10, %v11021_v45  ;;  %v10998_v31 = vrot.slane %v10992_v34, 6  ;;  %v11014_v55 = vsel %vm11011_vm0, 0.0, %v10997_v8  ;;  %v11192_v59 = vcombine.low %v11142_v0, %v11357_v33  ;;  %v16558_v45 = vld [vmem:[%s24338_s7 + $0xe8] sm:$0xff]  }
 0x675   : > { %v11025_v27 = vsel %vm735_vm1, %v11017_v29, 0.0  ;;  %v11002_v6 = vrot.slane %v10994_v62, 6  ;;  %v11018_v57 = vsel %vm11011_vm0, 0.0, %v11001_v1  ;;  %v11022_v63 = vsel %vm735_vm1, %v11014_v55, 0.0  ;;  %v16559_v62 = vld [vmem:[%s24338_s7 + $0xa8] sm:$0xff]   ;;  %15461 = vmatprep.subr.bf16.mxu1 %v16558_v45  ;;  %v16561_v55 = vld [vmem:[%s24338_s7 + $0xb0] sm:$0xff]  }
 0x676   : > { %11034 = vst.msk [vmem:[#allocation4 + $0x58] sm:$0xff] %vm4877_vm10, %v11025_v27  ;;  %v11026_v61 = vsel %vm735_vm1, %v11018_v57, 0.0  ;;  %v11015_v43 = vsel %vm11011_vm0, 0.0, %v10998_v31  ;;  %11031 = vst.msk [vmem:[#allocation4 + $0x20] sm:$0xff] %vm4877_vm10, %v11022_v63  ;;  %v16560_v31 = vld [vmem:[%s24338_s7 + $0xf0] sm:$0xff]   ;;  %v16563_v57 = vld [vmem:[%s24338_s7 + $0xb8] sm:$0xff]  }
 0x677   : > { %v11019_v46 = vsel %vm11011_vm0, 0.0, %v11002_v6  ;;  %11035 = vst.msk [vmem:[#allocation4 + $0x60] sm:$0xff] %vm4877_vm10, %v11026_v61  ;;  %v11023_v37 = vsel %vm735_vm1, %v11015_v43, 0.0  ;;  %15462 = vmatpush3.bf16.msra.mxu1 %v16559_v62  ;;  %v16554_v6 = vld [vmem:[%s24338_s7 + $0x90] sm:$0xff]   ;;  %v16555_v43 = vld [vmem:[%s24338_s7 + $0x98] sm:$0xff]  }
 0x678   : > { %v11027_v53 = vsel %vm735_vm1, %v11019_v46, 0.0  ;;  %11032 = vst.msk [vmem:[#allocation4 + $0x28] sm:$0xff] %vm4877_vm10, %v11023_v37  ;;  %15463 = vmatprep.subr.bf16.mxu1 %v16560_v31  ;;  %v11146_v46 = vrot.slane %v23300_v5, 4  ;;  %v16564_v37 = vld [vmem:[%s24338_s7 + $0x100] sm:$0xff]   ;;  %v16571_v45 = vld [vmem:[%s24338_s7 + $0xd8] sm:$0xff]   ;;  %v16594_v31 = vld [vmem:[%s24338_s7 + $0x190] sm:$0xff]  }
 0x679   : > { %11036 = vst.msk [vmem:[#allocation4 + $0x68] sm:$0xff] %vm4877_vm10, %v11027_v53  ;;  %v23366_v47 = vld [vmem:[#allocation4 + $0x10] sm:$0xff] }
 0x67a   : > { %v11358_v26 = vrot.slane %v23366_v47, 4  ;;  %v23406_v58 = vrot.slane %v23366_v47, 3  ;;  %v23433_v50 = vrot.slane %v23366_v47, 1 }
 0x67b   : > { %v23370_v7 = vld [vmem:[#allocation4 + $0x50] sm:$0xff]  ;;  %v23372_v4 = vld [vmem:[#allocation4 + $0x18] sm:$0xff]  ;;  %15464 = vmatpush3.bf16.msra.mxu1 %v16561_v55 }
 0x67c   : > { %v23376_v24 = vrot.slane %v23370_v7, 3  ;;  %v11359_v42 = vrot.slane %v23372_v4, 4  ;;  %v11362_v12 = vrot.slane %v23370_v7, 4  ;;  %v23403_v13 = vrot.slane %v23370_v7, 1  ;;  %v16596_v55 = vld [vmem:[%s24338_s7 + $0x150] sm:$0xff]  }
 0x67d   : > { %v23381_v35 = vld [vmem:[#allocation4 + $0x20] sm:$0xff]  ;;  %v23383_v49 = vld [vmem:[#allocation4 + $0x58] sm:$0xff]  ;;  %v11407_v60 = vcombine.low %v11357_v33, %v11358_v26  ;;  %v23492_v0 = vrot.slane %v23372_v4, 3  ;;  %v11198_v33 = vcombine.low %v11146_v46, %v11361_v10 }
 0x67e   : > { %11343 = vrot.lane.b32.xlu1 %v23376_v24, %s16666_s12  ;;  %11130 = vrot.lane.b32.xlu0 %v23376_v24, %s16666_s12  ;;  %v24597_v23 = vrot.slane %v23381_v35, 4  ;;  %v23392_v11 = vld [vmem:[#allocation4 + $0x60] sm:$0xff]  ;;  %v11363_v36 = vrot.slane %v23383_v49, 4  ;;  %v11413_v8 = vcombine.low %v11361_v10, %v11362_v12  ;;  %v23416_v38 = vcombine.low %v11358_v26, %v11359_v42  ;;  %v16566_v26 = vld [vmem:[%s24338_s7 + $0x108] sm:$0xff]  }
 0x67f   : > { %v11364_v44 = vrot.slane %v23392_v11, 4  ;;  %v23453_v27 = vrot.slane %v23383_v49, 3  ;;  %v23469_v63 = vrot.slane %v23392_v11, 3  ;;  %v23472_v61 = vrot.slane %v23383_v49, 1  ;;  %v23640_v46 = vld [vmem:[#allocation4 + $0x28] sm:$0xff] }
 0x680   : > { %v23410_v34 = vcombine.low %v11359_v42, %v24597_v23  ;;  %v23418_v40 = vcombine.low %v11362_v12, %v11363_v36  ;;  %v11216_v29 = vpack.c.bf16 %v23416_v38, %v11192_v59  ;;  %v23489_v53 = vrot.slane %v23392_v11, 1  ;;  %v16567_v42 = vld [vmem:[%s24338_s7 + $0xc8] sm:$0xff]   ;;  %v16569_v59 = vld [vmem:[%s24338_s7 + $0xd0] sm:$0xff]  }
 0x681   : > { %v11416_v28 = vcombine.low %v11363_v36, %v11364_v44  ;;  %v23506_v12 = vld [vmem:[#allocation4 + $0x68] sm:$0xff]  ;;  %v23510_v36 = vrot.slane %v23372_v4, 1 }
 0x682   : > { %11295 = vrot.lane.b32.xlu1 %v23403_v13, %s16666_s12  ;;  %11122 = vrot.lane.b32.xlu0 %v23406_v58, %s16666_s12  ;;  %v11431_v32 = vpack.c.bf16 %v23410_v34, %v11407_v60  ;;  %v11219_v10 = vpack.c.bf16 %v23418_v40, %v11198_v33  ;;  %v23516_v2 = vrot.slane %v23506_v12, 4  ;;  %v11066_v60 = vrot.slane %v23300_v5, 1  ;;  %v16610_v33 = vld [vmem:[%s24338_s7 + $0x1b0] sm:$0xff]  }
 0x683   : > { %v11434_v1 = vpack.c.bf16 %v11416_v28, %v11413_v8  ;;  %v23528_v8 = vrot.slane %v23381_v35, 3 }
 0x684   : > { %15971 = vmatprep.mubr.msk.bf16.mxu0 %vm4877_vm10, %v11431_v32  ;;  %25449 = vst [vmem:[#allocation62_spill] sm:$0xff] %v23516_v2  ;;  %v23535_v28 = vcombine.low %v11364_v44, %v23516_v2  ;;  %v16570_v32 = vld [vmem:[%s24338_s7 + $0x118] sm:$0xff]   ;;  %v16572_v44 = vld [vmem:[%s24338_s7 + $0x40] sm:$0xff]  }
 0x685   : > { %15972 = vmatmul.mubr.msk.bf16.vlgmr.msra.gmra.mrb[164].mxu0 %vm4877_vm10, %v11434_v1  ;;  %v23561_v1 = vld [vmem:[#allocation4 + $0x30] sm:$0xff] }
 0x686   : > { %11335 = vrot.lane.b32.xlu1 %v23406_v58, %s16666_s12  ;;  %11074 = vrot.lane.b32.xlu0 %v23433_v50, %s16666_s12 }
 0x687   : > { %15976 = vmatpush3.bf16.msra.mxu0 %v23307_v54  ;;  %15983 = vmatprep.mubr.msk.bf16.mxu0 %vm4877_vm10, %v11216_v29  ;;  %v16562_v54 = vld [vmem:[%s24338_s7 + $0xf8] sm:$0xff]   ;;  %v12387_v29 = vrot.slane %v23561_v1, 1 }
 0x688   : > { %15977 = vmatprep.subr.bf16.mxu0 %v16553_v22  ;;  %15465 = vmatprep.subr.bf16.mxu1 %v16562_v54  ;;  %v12438_v54 = vrot.slane %v23506_v12, 3 }
 0x689   : > { %15466 = vmatpush3.bf16.msra.mxu1 %v16563_v57  ;;  %v16602_v57 = vld [vmem:[%s24338_s7 + $0x1a0] sm:$0xff]  }
 0x68a   : > { %11287 = vrot.lane.b32.xlu1 %v23433_v50, %s16666_s12  ;;  %11345 = vrot.lane.b32.xlu0 %v23453_v27, %s16666_s12 }
 0x68b   : > { %15978 = vmatpush3.bf16.msra.mxu0 %v16553_v22  ;;  %15467 = vmatprep.subr.bf16.mxu1 %v16564_v37  ;;  %v12435_v22 = vrot.slane %v23561_v1, 3  ;;  %v16606_v37 = vld [vmem:[%s24338_s7 + $0x1a8] sm:$0xff]  }
 0x68c   : > { %15979 = vmatprep.subr.bf16.mxu0 %v16554_v6 }
 0x68d   : > { %15468 = vmatpush3.bf16.msra.mxu1 %v16565_v19  ;;  %v16608_v19 = vld [vmem:[%s24338_s7 + $0x168] sm:$0xff]  }
 0x68e   : > { %11347 = vrot.lane.b32.xlu1 %v23469_v63, %s16666_s12  ;;  %11297 = vrot.lane.b32.xlu0 %v23472_v61, %s16666_s12 }
 0x68f   : > { %15980 = vmatpush3.bf16.msra.mxu0 %v16554_v6  ;;  %15469 = vmatprep.subr.bf16.mxu1 %v16566_v26  ;;  %v16600_v6 = vld [vmem:[%s24338_s7 + $0x158] sm:$0xff]   ;;  %v16612_v26 = vld [vmem:[%s24338_s7 + $0x170] sm:$0xff]  }
 0x690   : > { %15981 = vmatprep.subr.bf16.mxu0 %v16555_v43 }
 0x691   : > { %15470 = vmatpush3.bf16.msra.mxu1 %v16567_v42  ;;  %v12386_v42 = vrot.slane %v23640_v46, 1 }
 0x692   : > { %11299 = vrot.lane.b32.xlu1 %v23489_v53, %s16666_s12  ;;  %11337 = vrot.lane.b32.xlu0 %v23492_v0, %s16666_s12 }
 0x693   : > { %15982 = vmatpush3.bf16.msra.mxu0 %v16555_v43  ;;  %15471 = vmatprep.subr.bf16.mxu1 %v16568_v20  ;;  %v16604_v43 = vld [vmem:[%s24338_s7 + $0x160] sm:$0xff]   ;;  %v16616_v20 = vld [vmem:[%s24338_s7 + $0x178] sm:$0xff]  }
 0x695   : > { %15472 = vmatpush3.bf16.msra.mxu1 %v16569_v59  ;;  %v23673_v59 = vld [vmem:[%s24338_s7 + $0x1c0] sm:$0xff]  }
 0x696   : > { %15984 = vmatmul.mubr.msk.bf16.vlgmr.msra.gmra.mrb[164].mxu0 %vm4877_vm10, %v11219_v10  ;;  %11132 = vrot.lane.b32.xlu1 %v23453_v27, %s16666_s12  ;;  %v11947_v10 = vrot.slane %v23506_v12, 1 }
 0x697   : > { %11289 = vrot.lane.b32.xlu0 %v23510_v36, %s16666_s12  ;;  %15473 = vmatprep.subr.bf16.mxu1 %v16570_v32 }
 0x699   : > { %15474 = vmatpush3.bf16.msra.mxu1 %v16571_v45  ;;  %v23694_v45 = vpop.permute.xlu0 %11126 }
 0x69a   : > { %11339 = vrot.lane.b32.xlu1 %v23528_v8, %s16666_s12  ;;  %15493 = vmatprep.subr.bf16.mxu1 %v16572_v44 }
 0x69b   : > { %11078 = vrot.lane.b32.xlu0 %v11066_v60, %s16666_s12  ;;  %v23680_v60 = vld [vmem:[#allocation4 + $0x70] sm:$0xff] }
 0x69c   : > { %v12439_v32 = vrot.slane %v23680_v60, 3  ;;  %v12391_v44 = vrot.slane %v23680_v60, 1 }
 0x69e   : > { %11080 = vrot.lane.b32.xlu1 %v11281_v14, %s16666_s12  ;;  %v23559_v14 = vrot.slane %v23381_v35, 1 }
 0x69f   : > { %11082 = vrot.lane.b32.xlu0 %v23403_v13, %s16666_s12 }
 0x6a2   : > { %11084 = vrot.lane.b32.xlu1 %v23472_v61, %s16666_s12 }
 0x6a3   : > { %11996 = vrot.lane.b32.xlu0 %v23406_v58, %s16666_s12  ;;  %v16590_v58 = vld [vmem:[%s24338_s7 + $0x188] sm:$0xff]  }
 0x6a6   : > { %11291 = vrot.lane.b32.xlu1 %v23559_v14, %s16666_s12 }
 0x6a7   : > { %11948 = vrot.lane.b32.xlu0 %v23433_v50, %s16666_s12  ;;  %v16592_v50 = vld [vmem:[%s24338_s7 + $0x148] sm:$0xff]  }
 0x6aa   : > { %12446 = vrot.lane.b32.xlu1 %v12435_v22, %s16666_s12 }
 0x6ab   : > { %12004 = vrot.lane.b32.xlu0 %v23376_v24, %s16666_s12  ;;  %v16587_v24 = vld [vmem:[%s24338_s7 + $0x180] sm:$0xff]  }
 0x6ac   : > { %15527 = vmatprep.subr.bf16.mxu0 %v16587_v24  ;;  %v23699_v24 = vld [vmem:[#allocation4 + $0x38] sm:$0xff] }
 0x6ae   : > { %12398 = vrot.lane.b32.xlu1 %v12387_v29, %s16666_s12 }
 0x6af   : > { %12008 = vrot.lane.b32.xlu0 %v23469_v63, %s16666_s12 }
 0x6b2   : > { %12006 = vrot.lane.b32.xlu1 %v23453_v27, %s16666_s12 }
 0x6b3   : > { %11956 = vrot.lane.b32.xlu0 %v23403_v13, %s16666_s12  ;;  %v16589_v13 = vld [vmem:[%s24338_s7 + $0x140] sm:$0xff]  }
 0x6b4   : > { %15528 = vmatpush3.bf16.msra.mxu0 %v16589_v13 }
 0x6b5   : > { %15529 = vmatprep.subr.bf16.mxu0 %v16590_v58  ;;  %v12831_v58 = vrot.slane %v23699_v24, 1 }
 0x6b6   : > { %11958 = vrot.lane.b32.xlu1 %v23472_v61, %s16666_s12 }
 0x6b7   : > { %11960 = vrot.lane.b32.xlu0 %v23489_v53, %s16666_s12 }
 0x6b8   : > { %15530 = vmatpush3.bf16.msra.mxu0 %v16592_v50 }
 0x6b9   : > { %15531 = vmatprep.subr.bf16.mxu0 %v16594_v31 }
 0x6ba   : > { %12450 = vrot.lane.b32.xlu1 %v23469_v63, %s16666_s12 }
 0x6bb   : > { %12448 = vrot.lane.b32.xlu0 %v23453_v27, %s16666_s12  ;;  %v16598_v27 = vld [vmem:[%s24338_s7 + $0x198] sm:$0xff]  }
 0x6bc   : > { %15532 = vmatpush3.bf16.msra.mxu0 %v16596_v55  ;;  %v23720_v55 = vld [vmem:[#allocation4 + $0x78] sm:$0xff] }
 0x6bd   : > { %15533 = vmatprep.subr.bf16.mxu0 %v16598_v27  ;;  %v12883_v27 = vrot.slane %v23720_v55, 3 }
 0x6be   : > { %11124 = vrot.lane.b32.xlu1 %v23492_v0, %s16666_s12 }
 0x6bf   : > { %12000 = vrot.lane.b32.xlu0 %v23528_v8, %s16666_s12 }
 0x6c0   : > { %15534 = vmatpush3.bf16.msra.mxu0 %v16600_v6 }
 0x6c1   : > { %15535 = vmatprep.subr.bf16.mxu0 %v16602_v57 }
 0x6c2   : > { %11076 = vrot.lane.b32.xlu1 %v23510_v36, %s16666_s12 }
 0x6c3   : > { %11952 = vrot.lane.b32.xlu0 %v23559_v14, %s16666_s12 }
 0x6c4   : > { %15536 = vmatpush3.bf16.msra.mxu0 %v16604_v43 }
 0x6c5   : > { %15537 = vmatprep.subr.bf16.mxu0 %v16606_v37 }
 0x6c6   : > { %11998 = vrot.lane.b32.xlu1 %v23492_v0, %s16666_s12 }
 0x6c7   : > { %12440 = vrot.lane.b32.xlu0 %v23492_v0, %s16666_s12  ;;  %v12434_v0 = vrot.slane %v23640_v46, 3 }
 0x6c8   : > { %15538 = vmatpush3.bf16.msra.mxu0 %v16608_v19 }
 0x6c9   : > { %15539 = vmatprep.subr.bf16.mxu0 %v16610_v33  ;;  %v23733_v33 = vrot.slane %v23366_v47, 2 }
 0x6ca   : > { %11950 = vrot.lane.b32.xlu1 %v23510_v36, %s16666_s12 }
 0x6cb   : > { %12392 = vrot.lane.b32.xlu0 %v23510_v36, %s16666_s12  ;;  %v16614_v36 = vld [vmem:[%s24338_s7 + $0x1b8] sm:$0xff]  }
 0x6cc   : > { %15540 = vmatpush3.bf16.msra.mxu0 %v16612_v26  ;;  %v12835_v26 = vrot.slane %v23720_v55, 1 }
 0x6cd   : > { %15541 = vmatprep.subr.bf16.mxu0 %v16614_v36 }
 0x6ce   : > { %12442 = vrot.lane.b32.xlu1 %v23528_v8, %s16666_s12 }
 0x6cf   : > { %12452 = vrot.lane.b32.xlu0 %v12438_v54, %s16666_s12 }
 0x6d0   : > { %15542 = vmatpush3.bf16.msra.mxu0 %v16616_v20  ;;  %v23740_v20 = vrot.slane %v23372_v4, 2 }
 0x6d1   : > { %15987 = vmatprep.subr.bf16.mxu0 %v23673_v59 }
 0x6d2   : > { %12394 = vrot.lane.b32.xlu1 %v23559_v14, %s16666_s12 }
 0x6d3   : > { %12444 = vrot.lane.b32.xlu0 %v12434_v0, %s16666_s12 }
 0x6d6   : > { %12010 = vrot.lane.b32.xlu1 %v12438_v54, %s16666_s12 }
 0x6d7   : > { %12396 = vrot.lane.b32.xlu0 %v12386_v42, %s16666_s12 }
 0x6da   : > { %11962 = vrot.lane.b32.xlu1 %v11947_v10, %s16666_s12 }
 0x6db   : > { %12400 = vrot.lane.b32.xlu0 %v23472_v61, %s16666_s12  ;;  %v23692_v61 = vpop.permute.xlu1 %11128 }
 0x6de   : > { %12002 = vrot.lane.b32.xlu1 %v12434_v0, %s16666_s12 }
 0x6df   : > { %12404 = vrot.lane.b32.xlu0 %v11947_v10, %s16666_s12 }
 0x6e2   : > { %11954 = vrot.lane.b32.xlu1 %v12386_v42, %s16666_s12 }
 0x6e3   : > { %12884 = vrot.lane.b32.xlu0 %v23528_v8, %s16666_s12  ;;  %v12879_v8 = vrot.slane %v23699_v24, 3 }
 0x6e6   : > { %12454 = vrot.lane.b32.xlu1 %v12439_v32, %s16666_s12 }
 0x6e7   : > { %12888 = vrot.lane.b32.xlu0 %v12435_v22, %s16666_s12 }
 0x6ea   : > { %12402 = vrot.lane.b32.xlu1 %v23489_v53, %s16666_s12 }
 0x6eb   : > { %12836 = vrot.lane.b32.xlu0 %v23559_v14, %s16666_s12 }
 0x6ee   : > { %12406 = vrot.lane.b32.xlu1 %v12391_v44, %s16666_s12 }
 0x6ef   : > { %12840 = vrot.lane.b32.xlu0 %v12387_v29, %s16666_s12 }
 0x6f0   : > { %v11344_v22 = vpop.permute.xlu1 %11343  ;;  %v23706_v13 = vpop.permute.xlu0 %11130 }
 0x6f2   : > { %12890 = vrot.lane.b32.xlu1 %v12879_v8, %s16666_s12 }
 0x6f3   : > { %12892 = vrot.lane.b32.xlu0 %v23469_v63, %s16666_s12 }
 0x6f4   : > { %v23712_v14 = vpop.permute.xlu1 %11295  ;;  %v23714_v50 = vpop.permute.xlu0 %11122 }
 0x6f6   : > { %12842 = vrot.lane.b32.xlu1 %v12831_v58, %s16666_s12 }
 0x6f7   : > { %12896 = vrot.lane.b32.xlu0 %v12439_v32, %s16666_s12  ;;  %v11373_v32 = vsel %vm4877_vm10, %v11309_v39, %v23311_v15  ;;  %v23761_v15 = vrot.slane %v23392_v11, 2 }
 0x6f8   : > { %v11336_v31 = vpop.permute.xlu1 %11335  ;;  %v23718_v29 = vpop.permute.xlu0 %11074 }
 0x6f9   : > { %v11374_v36 = vsel %vm4877_vm10, %v23733_v33, %v11336_v31 }
 0x6fa   : > { %12894 = vrot.lane.b32.xlu1 %v12438_v54, %s16666_s12  ;;  %v14527_v58 = vcombine.low %v11373_v32, %v11374_v36  ;;  %v23769_v36 = vrot.slane %v23370_v7, 2 }
 0x6fb   : > { %12844 = vrot.lane.b32.xlu0 %v23489_v53, %s16666_s12 }
 0x6fc   : > { %v11288_v63 = vpop.permute.xlu1 %11287  ;;  %v11346_v6 = vpop.permute.xlu0 %11345 }
 0x6fe   : > { %12898 = vrot.lane.b32.xlu1 %v12883_v27, %s16666_s12 }
 0x6ff   : > { %12848 = vrot.lane.b32.xlu0 %v12391_v44, %s16666_s12 }
 0x700   : > { %v11348_v57 = vpop.permute.xlu1 %11347  ;;  %v11298_v43 = vpop.permute.xlu0 %11297 }
 0x701   : > { %v11380_v32 = vsel %vm4877_vm10, %v23761_v15, %v11348_v57 }
 0x702   : > { %12886 = vrot.lane.b32.xlu1 %v12434_v0, %s16666_s12  ;;  %v23743_v0 = vrot.slane %v23381_v35, 2 }
 0x704   : > { %v11300_v37 = vpop.permute.xlu1 %11299  ;;  %v11338_v19 = vpop.permute.xlu0 %11337 }
 0x706   : > { %12838 = vrot.lane.b32.xlu1 %v12386_v42, %s16666_s12 }
 0x708   : > { %v23730_v54 = vpop.permute.xlu1 %11132 }
 0x709   : > { %v11290_v53 = vpop.permute.xlu0 %11289 }
 0x70a   : > { %12846 = vrot.lane.b32.xlu1 %v11947_v10, %s16666_s12  ;;  %v11375_v10 = vsel %vm4877_vm10, %v23740_v20, %v11338_v19  ;;  %v11367_v18 = vsel %vm4877_vm10, %v23372_v4, %v11290_v53  ;;  %v16574_v53 = vld [vmem:[%s24338_s7 + $0x48] sm:$0xff]  }
 0x70c   : > { %v11340_v42 = vpop.permute.xlu1 %11339 }
 0x70d   : > { %v11376_v44 = vsel %vm4877_vm10, %v23743_v0, %v11340_v42  ;;  %v23753_v8 = vpop.permute.xlu0 %11078 }
 0x70e   : > { %v14529_v31 = vcombine.low %v11375_v10, %v11376_v44  ;;  %12850 = vrot.lane.b32.xlu1 %v12835_v26, %s16666_s12  ;;  %v23772_v26 = vrot.slane %v23383_v49, 2  ;;  %v11378_v10 = vsel %vm4877_vm10, %v23769_v36, %v11344_v22  ;;  %v25450_v22 = vrot.slane %v23274_v48, 2 }
 0x710   : > { %v23756_v27 = vpop.permute.xlu1 %11080  ;;  %v11430_v62 = vpack.c.bf16 %v14529_v31, %v14527_v58  ;;  %v11379_v44 = vsel %vm4877_vm10, %v23772_v26, %v11346_v6  ;;  %v11365_v31 = vsel %vm4877_vm10, %v23266_v30, %v23313_v56  ;;  %v16573_v30 = vld [vmem:[%s24338_s7] sm:$0xff]  }
 0x711   : > { %v23758_v23 = vpop.permute.xlu0 %11082  ;;  %v14533_v41 = vcombine.low %v11379_v44, %v11380_v32  ;;  %v11372_v44 = vsel %vm4877_vm10, %v23392_v11, %v11300_v37  ;;  %v16577_v37 = vld [vmem:[%s24338_s7 + $0x10] sm:$0xff]  }
 0x712   : > { %11634 = vmatprep.mubr.bf16.mxu1 %v11430_v62  ;;  %v11366_v62 = vsel %vm4877_vm10, %v23366_v47, %v11288_v63  ;;  %v11377_v63 = vsel %vm4877_vm10, %v25450_v22, %v23318_v9 }
 0x713   : > { %v14526_v6 = vcombine.low %v11365_v31, %v11366_v62  ;;  %v14531_v52 = vcombine.low %v11377_v63, %v11378_v10  ;;  %v16575_v62 = vld [vmem:[%s24338_s7 + $0x8] sm:$0xff]   ;;  %v16578_v63 = vld [vmem:[%s24338_s7 + $0x58] sm:$0xff]  }
 0x714   : > { %v23763_v39 = vpop.permute.xlu1 %11084 }
 0x715   : > { %v23765_v19 = vpop.permute.xlu0 %11996  ;;  %v11433_v9 = vpack.c.bf16 %v14533_v41, %v14531_v52  ;;  %v16576_v52 = vld [vmem:[%s24338_s7 + $0x50] sm:$0xff]   ;;  %v11369_v41 = vsel %vm4877_vm10, %v23274_v48, %v23321_v16  ;;  %v16579_v16 = vld [vmem:[%s24338_s7 + $0x18] sm:$0xff]  }
 0x718   : > { %v11292_v58 = vpop.permute.xlu1 %11291 }
 0x719   : > { %v11368_v57 = vsel %vm4877_vm10, %v23381_v35, %v11292_v58  ;;  %v23789_v42 = vpop.permute.xlu0 %11948 }
 0x71a   : > { %v14528_v3 = vcombine.low %v11367_v18, %v11368_v57  ;;  %v11370_v18 = vsel %vm4877_vm10, %v23370_v7, %v23712_v14 }
 0x71c   : > { %v11429_v56 = vpack.c.bf16 %v14528_v3, %v14526_v6  ;;  %v23798_v32 = vpop.permute.xlu1 %12446  ;;  %v11371_v3 = vsel %vm4877_vm10, %v23383_v49, %v11298_v43  ;;  %v14530_v43 = vcombine.low %v11369_v41, %v11370_v18  ;;  %v16582_v18 = vld [vmem:[%s24338_s7 + $0x68] sm:$0xff]   ;;  %v11160_v41 = vsel %vm4877_vm10, %v23733_v33, %v23714_v50  ;;  %v16586_v50 = vld [vmem:[%s24338_s7 + $0x78] sm:$0xff]  }
 0x71d   : > { %v23805_v58 = vpop.permute.xlu0 %12004  ;;  %v14532_v10 = vcombine.low %v11371_v3, %v11372_v44  ;;  %v16581_v44 = vld [vmem:[%s24338_s7 + $0x20] sm:$0xff]  }
 0x71e   : > { %11635 = vmatmul.mubr.bf16.vlgmr.msra.gmra.mrb[120].mxu1 %v11429_v56  ;;  %v16580_v56 = vld [vmem:[%s24338_s7 + $0x60] sm:$0xff]  }
 0x71f   : > { %15494 = vmatpush3.bf16.msra.mxu1 %v16573_v30  ;;  %11642 = vmatprep.mubr.bf16.mxu1 %v11433_v9  ;;  %v11432_v22 = vpack.c.bf16 %v14532_v10, %v14530_v43 }
 0x720   : > { %v23815_v31 = vpop.permute.xlu1 %12398  ;;  %15495 = vmatprep.subr.bf16.mxu1 %v16574_v53 }
 0x721   : > { %v23823_v14 = vpop.permute.xlu0 %12008 }
 0x723   : > { %15496 = vmatpush3.bf16.msra.mxu1 %v16575_v62  ;;  %v16583_v62 = vld [vmem:[%s24338_s7 + $0x28] sm:$0xff]  }
 0x724   : > { %v23828_v57 = vpop.permute.xlu1 %12006  ;;  %15497 = vmatprep.subr.bf16.mxu1 %v16576_v52  ;;  %v16584_v52 = vld [vmem:[%s24338_s7 + $0x70] sm:$0xff]  }
 0x725   : > { %v23833_v6 = vpop.permute.xlu0 %11956 }
 0x726   : > { %11643 = vmatmul.mubr.bf16.gmra.mrb[124].mxu1 %v11432_v22 }
 0x727   : > { %15498 = vmatpush3.bf16.msra.mxu1 %v16577_v37 }
 0x728   : > { %v23838_v30 = vpop.permute.xlu1 %11958  ;;  %15499 = vmatprep.subr.bf16.mxu1 %v16578_v63  ;;  %v16585_v63 = vld [vmem:[%s24338_s7 + $0x30] sm:$0xff]  }
 0x729   : > { %v23843_v53 = vpop.permute.xlu0 %11960 }
 0x72b   : > { %15500 = vmatpush3.bf16.msra.mxu1 %v16579_v16  ;;  %v11098_v16 = vrot.slane %v23300_v5, 2 }
 0x72c   : > { %v23848_v9 = vpop.permute.xlu1 %12450  ;;  %15501 = vmatprep.subr.bf16.mxu1 %v16580_v56 }
 0x72d   : > { %v23853_v3 = vpop.permute.xlu0 %12448 }
 0x72f   : > { %15502 = vmatpush3.bf16.msra.mxu1 %v16581_v44  ;;  %v25451_v44 = vcombine.low %v23341_v51, %v23332_v17  ;;  %v16588_v17 = vld [vmem:[%s24338_s7 + $0x38] sm:$0xff]   ;;  %v25452_v51 = vrot.slane %v23274_v48, 2  ;;  %v23906_v48 = vsel %vm4877_vm10, %v23733_v33, %v23765_v19  ;;  %v16595_v19 = vld [vmem:[%s24338_s7 + $0x228] sm:$0xff]  }
 0x730   : > { %v11125_v10 = vpop.permute.xlu1 %11124  ;;  %15503 = vmatprep.subr.bf16.mxu1 %v16582_v18 }
 0x731   : > { %v23864_v43 = vpop.permute.xlu0 %12000  ;;  %v11161_v37 = vsel %vm4877_vm10, %v23740_v20, %v11125_v10  ;;  %v11165_v10 = vsel %vm4877_vm10, %v23772_v26, %v23730_v54  ;;  %v11164_v54 = vsel %vm4877_vm10, %v23769_v36, %v23706_v13 }
 0x732   : > { %v14521_v22 = vcombine.low %v11160_v41, %v11161_v37  ;;  %v11163_v41 = vsel %vm4877_vm10, %v25452_v51, %v23692_v61  ;;  %v11162_v37 = vsel %vm4877_vm10, %v11098_v16, %v23694_v45  ;;  %v11156_v51 = vsel %vm4877_vm10, %v23370_v7, %v23758_v23  ;;  %v16601_v23 = vld [vmem:[%s24338_s7 + $0x1f0] sm:$0xff]  }
 0x733   : > { %15504 = vmatpush3.bf16.msra.mxu1 %v16583_v62  ;;  %v14523_v16 = vcombine.low %v11162_v37, %v11163_v41 }
 0x734   : > { %v11077_v56 = vpop.permute.xlu1 %11076  ;;  %15505 = vmatprep.subr.bf16.mxu1 %v16584_v52  ;;  %v11215_v18 = vpack.c.bf16 %v14521_v22, %v25451_v44  ;;  %v11152_v52 = vsel %vm4877_vm10, %v23366_v47, %v23718_v29  ;;  %v16591_v29 = vld [vmem:[%s24338_s7 + $0x220] sm:$0xff]  }
 0x735   : > { %v23878_v2 = vpop.permute.xlu0 %11952  ;;  %v11153_v62 = vsel %vm4877_vm10, %v23372_v4, %v11077_v56  ;;  %v16593_v44 = vld [vmem:[%s24338_s7 + $0x1e0] sm:$0xff]  }
 0x736   : > { %11858 = vmatprep.mubr.bf16.mxu1 %v11215_v18  ;;  %v14520_v22 = vcombine.low %v11152_v52, %v11153_v62  ;;  %v25453_v18 = vcombine.low %v23363_v25, %v23354_v21  ;;  %v11157_v62 = vsel %vm4877_vm10, %v23383_v49, %v23763_v39  ;;  %v16652_v21 = vld [vmem:[#allocation4 + $0x48] sm:$0xff] }
 0x737   : > { %15506 = vmatpush3.bf16.msra.mxu1 %v16585_v63  ;;  %v14525_v63 = vcombine.low %v11164_v54, %v11165_v10  ;;  %v11155_v25 = vsel %vm4877_vm10, %v16652_v21, %v23756_v27  ;;  %v16597_v39 = vld [vmem:[%s24338_s7 + $0x1e8] sm:$0xff]   ;;  %v14524_v41 = vcombine.low %v11156_v51, %v11157_v62  ;;  %v12419_v54 = vrot.slane %v23561_v1, 2 }
 0x738   : > { %v11999_v56 = vpop.permute.xlu1 %11998  ;;  %15507 = vmatprep.subr.bf16.mxu1 %v16586_v50  ;;  %v11214_v50 = vpack.c.bf16 %v14520_v22, %v25453_v18 }
 0x739   : > { %v12441_v61 = vpop.permute.xlu0 %12440  ;;  %v23910_v45 = vsel %vm4877_vm10, %v23740_v20, %v11999_v56  ;;  %v11218_v52 = vpack.c.bf16 %v14525_v63, %v14523_v16  ;;  %v23951_v56 = vrot.slane %v23640_v46, 2  ;;  %v16603_v16 = vld [vmem:[%s24338_s7 + $0x238] sm:$0xff]   ;;  %v12483_v18 = vsel %vm4877_vm10, %v12419_v54, %v23798_v32  ;;  %v16607_v32 = vld [vmem:[%s24338_s7 + $0x240] sm:$0xff]  }
 0x73a   : > { %v14619_v13 = vcombine.low %v23906_v48, %v23910_v45  ;;  %v12040_v45 = vsel %vm4877_vm10, %v23769_v36, %v23805_v58  ;;  %v16620_v36 = vld [vmem:[%s24338_s7 + $0x218] sm:$0xff]  }
 0x73b   : > { %15508 = vmatpush3.bf16.msra.mxu1 %v16588_v17  ;;  %v11154_v17 = vsel %vm4877_vm10, %v23300_v5, %v23753_v8  ;;  %v16599_v5 = vld [vmem:[%s24338_s7 + $0x230] sm:$0xff]  }
 0x73c   : > { %v11951_v33 = vpop.permute.xlu1 %11950  ;;  %15561 = vmatprep.subr.bf16.mxu1 %v16591_v29  ;;  %v14522_v27 = vcombine.low %v11154_v17, %v11155_v25  ;;  %v16605_v17 = vld [vmem:[%s24338_s7 + $0x1f8] sm:$0xff]  }
 0x73d   : > { %v23926_v10 = vpop.permute.xlu0 %12392 }
 0x73e   : > { %11859 = vmatmul.mubr.bf16.vlgmr.msra.gmra.mrb[128].mxu1 %v11214_v50  ;;  %v11217_v63 = vpack.c.bf16 %v14524_v41, %v14522_v27  ;;  %v12480_v50 = vsel %vm4877_vm10, %v23740_v20, %v12441_v61  ;;  %v16609_v20 = vld [vmem:[%s24338_s7 + $0x200] sm:$0xff]   ;;  %v16615_v27 = vld [vmem:[%s24338_s7 + $0x250] sm:$0xff]  }
 0x73f   : > { %11866 = vmatprep.mubr.bf16.mxu1 %v11218_v52  ;;  %15562 = vmatpush3.bf16.msra.mxu1 %v16593_v44 }
 0x740   : > { %v12443_v37 = vpop.permute.xlu1 %12442  ;;  %15563 = vmatprep.subr.bf16.mxu1 %v16595_v19 }
 0x741   : > { %v23942_v8 = vpop.permute.xlu0 %12452  ;;  %v12481_v22 = vsel %vm4877_vm10, %v23743_v0, %v12443_v37  ;;  %v16613_v37 = vld [vmem:[%s24338_s7 + $0x208] sm:$0xff]  }
 0x742   : > { %v14689_v62 = vcombine.low %v12480_v50, %v12481_v22  ;;  %v23988_v22 = vrot.slane %v23506_v12, 2 }
 0x743   : > { %15564 = vmatpush3.bf16.msra.mxu1 %v16597_v39  ;;  %v16611_v39 = vld [vmem:[%s24338_s7 + $0x248] sm:$0xff]  }
 0x744   : > { %v12395_v29 = vpop.permute.xlu1 %12394  ;;  %15565 = vmatprep.subr.bf16.mxu1 %v16599_v5 }
 0x745   : > { %v12445_v44 = vpop.permute.xlu0 %12444 }
 0x746   : > { %v12482_v19 = vsel %vm4877_vm10, %v23951_v56, %v12445_v44  ;;  %11867 = vmatmul.mubr.bf16.gmra.mrb[132].mxu1 %v11217_v63 }
 0x747   : > { %v14691_v52 = vcombine.low %v12482_v19, %v12483_v18  ;;  %15566 = vmatpush3.bf16.msra.mxu1 %v16601_v23  ;;  %v12038_v23 = vsel %vm4877_vm10, %v23743_v0, %v23864_v43  ;;  %v12029_v18 = vsel %vm4877_vm10, %v23372_v4, %v11951_v33  ;;  %v16617_v43 = vld [vmem:[%s24338_s7 + $0x210] sm:$0xff]   ;;  %v12028_v19 = vsel %vm4877_vm10, %v23366_v47, %v23789_v42 }
 0x748   : > { %v12011_v21 = vpop.permute.xlu1 %12010  ;;  %15567 = vmatprep.subr.bf16.mxu1 %v16603_v16  ;;  %v12041_v47 = vsel %vm4877_vm10, %v23772_v26, %v23828_v57  ;;  %v12030_v42 = vsel %vm4877_vm10, %v23381_v35, %v23878_v2  ;;  %v12475_v2 = vsel %vm4877_vm10, %v23561_v1, %v23815_v31  ;;  %v12485_v57 = vsel %vm4877_vm10, %v23761_v15, %v23848_v9  ;;  %v16621_v9 = vld [vmem:[%s24338_s7 + $0x1c8] sm:$0xff]  }
 0x749   : > { %v12397_v25 = vpop.permute.xlu0 %12396  ;;  %v12537_v51 = vpack.c.bf16 %v14691_v52, %v14689_v62  ;;  %v12043_v50 = vsel %vm4877_vm10, %v23988_v22, %v12011_v21  ;;  %v12042_v62 = vsel %vm4877_vm10, %v23761_v15, %v23823_v14  ;;  %v16619_v21 = vld [vmem:[%s24338_s7 + $0x258] sm:$0xff]   ;;  %v14623_v58 = vcombine.low %v12040_v45, %v12041_v47  ;;  %v16626_v45 = vld [vmem:[%s24338_s7 + $0x288] sm:$0xff]  }
 0x74a   : > { %v12474_v14 = vsel %vm4877_vm10, %v23640_v46, %v12397_v25  ;;  %v12484_v25 = vsel %vm4877_vm10, %v23772_v26, %v23853_v3  ;;  %v12472_v26 = vsel %vm4877_vm10, %v23372_v4, %v23926_v10  ;;  %v12486_v3 = vsel %vm4877_vm10, %v23988_v22, %v23942_v8 }
 0x74b   : > { %15568 = vmatpush3.bf16.msra.mxu1 %v16605_v17  ;;  %12741 = vmatprep.mubr.bf16.mxu1 %v12537_v51  ;;  %v12423_v17 = vrot.slane %v23680_v60, 2  ;;  %v14625_v51 = vcombine.low %v12042_v62, %v12043_v50  ;;  %v12033_v8 = vsel %vm4877_vm10, %v23383_v49, %v23838_v30  ;;  %v16624_v30 = vld [vmem:[%s24338_s7 + $0x1d0] sm:$0xff]  }
 0x74c   : > { %v11963_v61 = vpop.permute.xlu1 %11962  ;;  %15569 = vmatprep.subr.bf16.mxu1 %v16607_v32 }
 0x74d   : > { %v23976_v41 = vpop.permute.xlu0 %12400  ;;  %v12096_v10 = vpack.c.bf16 %v14625_v51, %v14623_v58 }
 0x74f   : > { %15570 = vmatpush3.bf16.msra.mxu1 %v16609_v20 }
 0x750   : > { %v12003_v5 = vpop.permute.xlu1 %12002  ;;  %15571 = vmatprep.subr.bf16.mxu1 %v16611_v39  ;;  %v12473_v39 = vsel %vm4877_vm10, %v23381_v35, %v12395_v29  ;;  %v12035_v29 = vsel %vm4877_vm10, %v23506_v12, %v11963_v61  ;;  %v12034_v61 = vsel %vm4877_vm10, %v23392_v11, %v23843_v53  ;;  %v12032_v53 = vsel %vm4877_vm10, %v23370_v7, %v23833_v6 }
 0x751   : > { %v23990_v63 = vpop.permute.xlu0 %12404  ;;  %v12039_v16 = vsel %vm4877_vm10, %v23951_v56, %v12003_v5 }
 0x752   : > { %v14621_v44 = vcombine.low %v12038_v23, %v12039_v16  ;;  %v16622_v16 = vld [vmem:[%s24338_s7 + $0x2c0] sm:$0xff]   ;;  %v12478_v51 = vsel %vm4877_vm10, %v23506_v12, %v23990_v63  ;;  %v16629_v63 = vld [vmem:[%s24338_s7 + $0x290] sm:$0xff]  }
 0x753   : > { %15572 = vmatpush3.bf16.msra.mxu1 %v16613_v37  ;;  %v14690_v37 = vcombine.low %v12474_v14, %v12475_v2 }
 0x754   : > { %v11955_v52 = vpop.permute.xlu1 %11954  ;;  %15573 = vmatprep.subr.bf16.mxu1 %v16615_v27  ;;  %v12093_v33 = vpack.c.bf16 %v14621_v44, %v14619_v13  ;;  %v14618_v13 = vcombine.low %v12028_v19, %v12029_v18  ;;  %v12023_v27 = vrot.slane %v23640_v46, 4  ;;  %v14693_v44 = vcombine.low %v12484_v25, %v12485_v57  ;;  %v16628_v57 = vld [vmem:[%s24338_s7 + $0x2d0] sm:$0xff]  }
 0x755   : > { %v24022_v32 = vpop.permute.xlu0 %12884  ;;  %v12031_v48 = vsel %vm4877_vm10, %v23640_v46, %v11955_v52  ;;  %v14688_v18 = vcombine.low %v12472_v26, %v12473_v39  ;;  %v14624_v19 = vcombine.low %v12034_v61, %v12035_v29  ;;  %v12911_v61 = vrot.slane %v23699_v24, 4 }
 0x756   : > { %v14620_v20 = vcombine.low %v12030_v42, %v12031_v48  ;;  %12297 = vmatprep.mubr.bf16.mxu0 %v12093_v33  ;;  %v16623_v33 = vld [vmem:[%s24338_s7 + $0x280] sm:$0xff]   ;;  %v14622_v42 = vcombine.low %v12032_v53, %v12033_v8  ;;  %v16640_v8 = vld [vmem:[%s24338_s7 + $0x2f0] sm:$0xff]  }
 0x757   : > { %15574 = vmatpush3.bf16.msra.mxu1 %v16617_v43  ;;  %v12536_v43 = vpack.c.bf16 %v14690_v37, %v14688_v18  ;;  %v16638_v18 = vld [vmem:[%s24338_s7 + $0x2a8] sm:$0xff]  }
 0x758   : > { %v12092_v5 = vpack.c.bf16 %v14620_v20, %v14618_v13  ;;  %v12455_v31 = vpop.permute.xlu1 %12454  ;;  %15575 = vmatprep.subr.bf16.mxu1 %v16619_v21  ;;  %v25454_v21 = vrot.slane %v23381_v35, 4  ;;  %v12095_v6 = vpack.c.bf16 %v14624_v19, %v14622_v42  ;;  %v16627_v35 = vld [vmem:[%s24338_s7 + $0x1d8] sm:$0xff]   ;;  %v12467_v13 = vrot.slane %v23561_v1, 4  ;;  %v16641_v42 = vld [vmem:[%s24338_s7 + $0x2b0] sm:$0xff]  }
 0x759   : > { %v12487_v23 = vsel %vm4877_vm10, %v12423_v17, %v12455_v31  ;;  %v24061_v50 = vpop.permute.xlu0 %12888  ;;  %v16632_v31 = vld [vmem:[%s24338_s7 + $0x298] sm:$0xff]  }
 0x75a   : > { %v14695_v4 = vcombine.low %v12486_v3, %v12487_v23  ;;  %12298 = vmatmul.mubr.bf16.vlgmr.msra.gmra.mrb[168].mxu0 %v12092_v5  ;;  %v24084_v47 = vcombine.low %v25454_v21, %v12023_v27  ;;  %v12517_v58 = vcombine.low %v12023_v27, %v12467_v13  ;;  %v16634_v27 = vld [vmem:[%s24338_s7 + $0x2e0] sm:$0xff]   ;;  %v25455_v3 = vpack.c.bf16 %v23535_v28, %v23418_v40  ;;  %v16637_v40 = vld [vmem:[%s24338_s7 + $0x2e8] sm:$0xff]   ;;  %v16653_v19 = vld [vmem:[#allocation4 + $0x58] sm:$0xff] }
 0x75b   : > { %15988 = vmatpush3.bf16.msra.mxu0 %v23673_v59  ;;  %15576 = vmatpush3.bf16.msra.mxu1 %v16620_v36  ;;  %v16625_v59 = vld [vmem:[%s24338_s7 + $0x2c8] sm:$0xff]   ;;  %v16631_v36 = vld [vmem:[%s24338_s7 + $0x2d8] sm:$0xff]   ;;  %v12863_v28 = vrot.slane %v23699_v24, 2 }
 0x75c   : > { %12305 = vmatprep.mubr.bf16.mxu0 %v12096_v10  ;;  %v12403_v62 = vpop.permute.xlu1 %12402  ;;  %15989 = vmatprep.subr.bf16.mxu0 %v16621_v9  ;;  %v12540_v52 = vpack.c.bf16 %v14695_v4, %v14693_v44  ;;  %v12094_v2 = vpack.c.bf16 %v24084_v47, %v23416_v38  ;;  %v16630_v38 = vld [vmem:[%s24338_s7 + $0x260] sm:$0xff]   ;;  %v12538_v26 = vpack.c.bf16 %v12517_v58, %v23410_v34  ;;  %v16639_v4 = vld [vmem:[%s24338_s7 + $0x278] sm:$0xff]   ;;  %v12471_v10 = vrot.slane %v23680_v60, 4 }
 0x75d   : > { %15595 = vmatprep.subr.bf16.mxu1 %v16622_v16  ;;  %v12477_v14 = vsel %vm4877_vm10, %v23392_v11, %v12403_v62  ;;  %v24088_v48 = vpop.permute.xlu0 %12836  ;;  %v12476_v11 = vsel %vm4877_vm10, %v23383_v49, %v23976_v41  ;;  %v16635_v34 = vld [vmem:[%s24338_s7 + $0x2a0] sm:$0xff]   ;;  %v16636_v16 = vld [vmem:[%s24338_s7 + $0x270] sm:$0xff]   ;;  %v12468_v62 = vrot.slane %v16653_v19, 4 }
 0x75e   : > { %12742 = vmatmul.mubr.bf16.vlgmr.msra.gmra.mrb[136].mxu1 %v12536_v43  ;;  %v14692_v25 = vcombine.low %v12476_v11, %v12477_v14  ;;  %v25456_v14 = vld [vmem:[#allocation62_spill] sm:$0xff] }
 0x75f   : > { %15990 = vmatpush3.bf16.msra.mxu0 %v16621_v9  ;;  %12749 = vmatprep.mubr.bf16.mxu1 %v12540_v52  ;;  %v16633_v9 = vld [vmem:[%s24338_s7 + $0x268] sm:$0xff]   ;;  %v24160_v52 = vld [vmem:[#allocation4 + $0x60] sm:$0xff] }
 0x760   : > { %15596 = vmatpush3.bf16.msra.mxu1 %v16623_v33  ;;  %v12407_v7 = vpop.permute.xlu1 %12406  ;;  %15991 = vmatprep.subr.bf16.mxu0 %v16624_v30  ;;  %v12469_v33 = vrot.slane %v24160_v52, 4 }
 0x761   : > { %v12479_v20 = vsel %vm4877_vm10, %v23680_v60, %v12407_v7  ;;  %15597 = vmatprep.subr.bf16.mxu1 %v16625_v59  ;;  %v12841_v37 = vpop.permute.xlu0 %12840  ;;  %v12867_v59 = vrot.slane %v23720_v55, 2  ;;  %v12523_v7 = vcombine.low %v25456_v14, %v12471_v10 }
 0x762   : > { %v14694_v39 = vcombine.low %v12478_v51, %v12479_v20  ;;  %12306 = vmatmul.mubr.bf16.gmra.mrb[172].mxu0 %v12095_v6  ;;  %v12520_v20 = vcombine.low %v12468_v62, %v12469_v33 }
 0x763   : > { %15992 = vmatpush3.bf16.msra.mxu0 %v16624_v30  ;;  %15995 = vmatprep.mubr.msk.bf16.mxu0 %vm4877_vm10, %v12094_v2  ;;  %v12926_v30 = vsel %vm4877_vm10, %v12419_v54, %v24061_v50  ;;  %v16642_v54 = vld [vmem:[%s24338_s7 + $0x300] sm:$0xff]   ;;  %v12924_v50 = vsel %vm4877_vm10, %v23743_v0, %v24022_v32  ;;  %v12918_v2 = vsel %vm4877_vm10, %v23561_v1, %v12841_v37  ;;  %v16644_v1 = vld [vmem:[%s24338_s7 + $0x2b8] sm:$0xff]  }
 0x764   : > { %15598 = vmatpush3.bf16.msra.mxu1 %v16626_v45  ;;  %v12891_v49 = vpop.permute.xlu1 %12890  ;;  %15993 = vmatprep.subr.bf16.mxu0 %v16627_v35  ;;  %v12539_v41 = vpack.c.bf16 %v14694_v39, %v14692_v25  ;;  %v16643_v45 = vld [vmem:[%s24338_s7 + $0x2f8] sm:$0xff]   ;;  %v12541_v25 = vpack.c.bf16 %v12523_v7, %v12520_v20 }
 0x765   : > { %15599 = vmatprep.subr.bf16.mxu1 %v16628_v57  ;;  %v24137_v29 = vpop.permute.xlu0 %12892  ;;  %v12927_v53 = vsel %vm4877_vm10, %v12863_v28, %v12891_v49  ;;  %v16655_v49 = vld [vmem:[#allocation4 + $0x20] sm:$0xff]  ;;  %v12964_v28 = vcombine.low %v12469_v33, %v25456_v14 }
 0x766   : > { %12750 = vmatmul.mubr.bf16.gmra.mrb[140].mxu1 %v12539_v41  ;;  %v14761_v11 = vcombine.low %v12926_v30, %v12927_v53 }
 0x767   : > { %15994 = vmatpush3.bf16.msra.mxu0 %v16627_v35  ;;  %v12961_v35 = vcombine.low %v12467_v13, %v12911_v61 }
 0x768   : > { %15600 = vmatpush3.bf16.msra.mxu1 %v16629_v63  ;;  %v12843_v5 = vpop.permute.xlu1 %12842  ;;  %15999 = vmatprep.subr.bf16.mxu0 %v16630_v38 }
 0x769   : > { %15601 = vmatprep.subr.bf16.mxu1 %v16631_v36  ;;  %v12897_v43 = vpop.permute.xlu0 %12896 }
 0x76a   : > { %15996 = vmatmul.mubr.msk.bf16.vlgmr.msra.gmra.mrb[164].mxu0 %vm4877_vm10, %v25455_v3  ;;  %v12930_v0 = vsel %vm4877_vm10, %v12423_v17, %v12897_v43  ;;  %v16645_v17 = vld [vmem:[%s24338_s7 + $0x308] sm:$0xff]   ;;  %v16647_v3 = vld [vmem:[%s24338_s7 + $0x318] sm:$0xff]  }
 0x76b   : > { %16000 = vmatpush3.bf16.msra.mxu0 %v16630_v38  ;;  %16007 = vmatprep.mubr.msk.bf16.mxu0 %vm4877_vm10, %v12538_v26  ;;  %v12982_v38 = vpack.c.bf16 %v12961_v35, %v24084_v47  ;;  %v16646_v47 = vld [vmem:[%s24338_s7 + $0x310] sm:$0xff]  }
 0x76c   : > { %15602 = vmatpush3.bf16.msra.mxu1 %v16632_v31  ;;  %v12895_v23 = vpop.permute.xlu1 %12894  ;;  %16001 = vmatprep.subr.bf16.mxu0 %v16633_v9 }
 0x76d   : > { %15603 = vmatprep.subr.bf16.mxu1 %v16634_v27  ;;  %v12845_v57 = vpop.permute.xlu0 %12844  ;;  %v12929_v41 = vsel %vm4877_vm10, %v23988_v22, %v12895_v23 }
 0x76e   : > { %v12920_v23 = vsel %vm4877_vm10, %v24160_v52, %v12845_v57 }
 0x76f   : > { %16002 = vmatpush3.bf16.msra.mxu0 %v16633_v9 }
 0x770   : > { %15604 = vmatpush3.bf16.msra.mxu1 %v16635_v34  ;;  %v12899_v44 = vpop.permute.xlu1 %12898  ;;  %16003 = vmatprep.subr.bf16.mxu0 %v16636_v16 }
 0x771   : > { %15605 = vmatprep.subr.bf16.mxu1 %v16637_v40  ;;  %v12931_v32 = vsel %vm4877_vm10, %v12867_v59, %v12899_v44  ;;  %v12849_v31 = vpop.permute.xlu0 %12848 }
 0x772   : > { %v14765_v58 = vcombine.low %v12930_v0, %v12931_v32 }
 0x773   : > { %16004 = vmatpush3.bf16.msra.mxu0 %v16636_v16 }
 0x774   : > { %15606 = vmatpush3.bf16.msra.mxu1 %v16638_v18  ;;  %v12887_v21 = vpop.permute.xlu1 %12886  ;;  %16005 = vmatprep.subr.bf16.mxu0 %v16639_v4 }
 0x775   : > { %v12925_v6 = vsel %vm4877_vm10, %v23951_v56, %v12887_v21  ;;  %15607 = vmatprep.subr.bf16.mxu1 %v16640_v8  ;;  %v12919_v56 = vsel %vm4877_vm10, %v23699_v24, %v12843_v5  ;;  %v12916_v24 = vsel %vm4877_vm10, %v16655_v49, %v24088_v48  ;;  %v12928_v5 = vsel %vm4877_vm10, %v23761_v15, %v24137_v29 }
 0x776   : > { %v14759_v51 = vcombine.low %v12924_v50, %v12925_v6  ;;  %v14760_v36 = vcombine.low %v12918_v2, %v12919_v56  ;;  %v14763_v22 = vcombine.low %v12928_v5, %v12929_v41  ;;  %v12922_v15 = vsel %vm4877_vm10, %v23680_v60, %v12849_v31 }
 0x777   : > { %16006 = vmatpush3.bf16.msra.mxu0 %v16639_v4  ;;  %v12915_v29 = vrot.slane %v23720_v55, 4 }
 0x778   : > { %15608 = vmatpush3.bf16.msra.mxu1 %v16641_v42  ;;  %v12839_v13 = vpop.permute.xlu1 %12838  ;;  %16011 = vmatprep.subr.bf16.mxu0 %v16642_v54  ;;  %v12981_v39 = vpack.c.bf16 %v14761_v11, %v14759_v51  ;;  %v12984_v9 = vpack.c.bf16 %v14765_v58, %v14763_v22 }
 0x779   : > { %v12917_v63 = vsel %vm4877_vm10, %v23640_v46, %v12839_v13  ;;  %15609 = vmatprep.subr.bf16.mxu1 %v16643_v45  ;;  %v12967_v44 = vcombine.low %v12471_v10, %v12915_v29 }
 0x77a   : > { %v14758_v37 = vcombine.low %v12916_v24, %v12917_v63  ;;  %16008 = vmatmul.mubr.msk.bf16.vlgmr.msra.gmra.mrb[164].mxu0 %vm4877_vm10, %v12541_v25  ;;  %13185 = vmatprep.mubr.bf16.mxu1 %v12981_v39 }
 0x77b   : > { %16012 = vmatpush3.bf16.msra.mxu0 %v16642_v54  ;;  %16019 = vmatprep.mubr.msk.bf16.mxu0 %vm4877_vm10, %v12982_v38  ;;  %v12985_v18 = vpack.c.bf16 %v12967_v44, %v12964_v28 }
 0x77c   : > { %v12980_v48 = vpack.c.bf16 %v14760_v36, %v14758_v37  ;;  %15610 = vmatpush3.bf16.msra.mxu1 %v16644_v1  ;;  %v12847_v46 = vpop.permute.xlu1 %12846  ;;  %16013 = vmatprep.subr.bf16.mxu0 %v16645_v17 }
 0x77d   : > { %v12921_v26 = vsel %vm4877_vm10, %v23506_v12, %v12847_v46 }
 0x77e   : > { %v14762_v34 = vcombine.low %v12920_v23, %v12921_v26 }
 0x77f   : > { %13186 = vmatmul.mubr.bf16.vlgmr.msra.gmra.mrb[144].mxu1 %v12980_v48  ;;  %16014 = vmatpush3.bf16.msra.mxu0 %v16645_v17 }
 0x780   : > { %13193 = vmatprep.mubr.bf16.mxu1 %v12984_v9  ;;  %v12851_v27 = vpop.permute.xlu1 %12850  ;;  %16015 = vmatprep.subr.bf16.mxu0 %v16646_v47 }
 0x781   : > { %v12923_v12 = vsel %vm4877_vm10, %v23720_v55, %v12851_v27 }
 0x782   : > { %v14764_v16 = vcombine.low %v12922_v15, %v12923_v12 }
 0x783   : > { %16016 = vmatpush3.bf16.msra.mxu0 %v16646_v47 }
 0x784   : > { %16017 = vmatprep.subr.bf16.mxu0 %v16647_v3  ;;  %v12983_v40 = vpack.c.bf16 %v14764_v16, %v14762_v34 }
 0x787   : > { %13194 = vmatmul.mubr.bf16.gmra.mrb[148].mxu1 %v12983_v40  ;;  %16018 = vmatpush3.bf16.msra.mxu0 %v16647_v3 }
 0x78a   : > { %16020 = vmatmul.mubr.msk.bf16.vlgmr.msra.gmra.mrb[164].mxu0 %vm4877_vm10, %v12985_v18 }
 0x7f1   : > { %v15475_v4 = vpop.f32.mrb[120].mxu1 }
 0x7f2   : > { %v15476_v8 = vpop.f32.mrb[121].mxu1 }
 0x7f3   : > { %v15477_v55 = vadd.f32 %v15476_v8, %v15475_v4  ;;  %v15478_v61 = vpop.f32.mrb[122].mxu1 }
 0x7f4   : > { %v15479_v43 = vpop.f32.mrb[123].mxu1 }
 0x7f5   : > { %v15480_v19 = vadd.f32 %v15479_v43, %v15478_v61 }
 0x7f9   : > { %v15481_v62 = vpop.f32.mrb[124].mxu1 }
 0x7fa   : > { %v15482_v30 = vpop.f32.mrb[125].mxu1 }
 0x7fb   : > { %v15483_v53 = vadd.f32 %v15482_v30, %v15481_v62  ;;  %v15484_v59 = vpop.f32.mrb[126].mxu1 }
 0x7fc   : > { %v15485_v52 = vpop.f32.mrb[127].mxu1 }
 0x7fd   : > { %v15486_v33 = vadd.f32 %v15485_v52, %v15484_v59 }
 0x811   : > { %v15509_v21 = vpop.f32.mrb[128].mxu1 }
 0x812   : > { %v15510_v60 = vpop.f32.mrb[129].mxu1 }
 0x813   : > { %v15511_v10 = vadd.f32 %v15510_v60, %v15509_v21  ;;  %v15512_v42 = vpop.f32.mrb[130].mxu1  ;;  %v14828_v21 = vld [vmem:[%s24339_s8] ss:$0 sm:$0xff] }
 0x814   : > { %v15513_v14 = vpop.f32.mrb[131].mxu1 }
 0x815   : > { %v16128_v7 = vadd.f32 %v15511_v10, %v15477_v55  ;;  %v15514_v54 = vadd.f32 %v15513_v14, %v15512_v42 }
 0x817   : > { %v16138_v50 = vadd.f32 %v15514_v54, %v15480_v19 }
 0x819   : > { %v15515_v6 = vpop.f32.mrb[132].mxu1 }
 0x81a   : > { %v15516_v45 = vpop.f32.mrb[133].mxu1 }
 0x81b   : > { %v15517_v35 = vadd.f32 %v15516_v45, %v15515_v6  ;;  %v15518_v11 = vpop.f32.mrb[134].mxu1 }
 0x81c   : > { %v15519_v51 = vpop.f32.mrb[135].mxu1 }
 0x81d   : > { %v16123_v20 = vadd.f32 %v15517_v35, %v15483_v53  ;;  %v15520_v2 = vadd.f32 %v15519_v51, %v15518_v11  ;;  %v13270_v35 = vld [vmem:[%s24340_s9] sm:$0xff] }
 0x81f   : > { %v16133_v0 = vadd.f32 %v15520_v2, %v15486_v33 }
 0x82d   : > { %v15543_v56 = vpop.f32.mrb[168].mxu0 }
 0x82e   : > { %v15544_v32 = vpop.f32.mrb[169].mxu0 }
 0x82f   : > { %v15545_v57 = vadd.f32 %v15544_v32, %v15543_v56  ;;  %v15546_v13 = vpop.f32.mrb[170].mxu0 }
 0x830   : > { %v15547_v25 = vpop.f32.mrb[171].mxu0 }
 0x831   : > { %v16129_v39 = vadd.f32 %v16128_v7, %v15545_v57  ;;  %v15548_v1 = vadd.f32 %v15547_v25, %v15546_v13  ;;  %v15577_v17 = vpop.f32.mrb[136].mxu1 }
 0x832   : > { %v15578_v49 = vpop.f32.mrb[137].mxu1 }
 0x833   : > { %v16139_v24 = vadd.f32 %v16138_v50, %v15548_v1  ;;  %v15579_v41 = vadd.f32 %v15578_v49, %v15577_v17  ;;  %v15580_v63 = vpop.f32.mrb[138].mxu1  ;;  %v13271_v17 = vld [vmem:[%s24340_s9 + $0x8] sm:$0xff] }
 0x834   : > { %v15581_v38 = vpop.f32.mrb[139].mxu1 }
 0x835   : > { %v16130_v36 = vadd.f32 %v16129_v39, %v15579_v41  ;;  %v15582_v58 = vadd.f32 %v15581_v38, %v15580_v63  ;;  %v15549_v37 = vpop.f32.mrb[172].mxu0  ;;  %v25457_v39 = vld [vmem:[#allocation5_spill] sm:$0xff] }
 0x836   : > { %v15550_v5 = vpop.f32.mrb[173].mxu0 }
 0x837   : > { %v16140_v22 = vadd.f32 %v16139_v24, %v15582_v58  ;;  %v15551_v48 = vadd.f32 %v15550_v5, %v15549_v37  ;;  %v15552_v46 = vpop.f32.mrb[174].mxu0 }
 0x838   : > { %v15553_v31 = vpop.f32.mrb[175].mxu0 }
 0x839   : > { %v16124_v47 = vadd.f32 %v16123_v20, %v15551_v48  ;;  %v15554_v9 = vadd.f32 %v15553_v31, %v15552_v46  ;;  %v15583_v26 = vpop.f32.mrb[140].mxu1  ;;  %v25459_v31 = vld [vmem:[#allocation7_spill] sm:$0xff] }
 0x83a   : > { %v15584_v15 = vpop.f32.mrb[141].mxu1 }
 0x83b   : > { %v16134_v27 = vadd.f32 %v16133_v0, %v15554_v9  ;;  %v15585_v3 = vadd.f32 %v15584_v15, %v15583_v26  ;;  %v15586_v29 = vpop.f32.mrb[142].mxu1 }
 0x83c   : > { %v15587_v23 = vpop.f32.mrb[143].mxu1 }
 0x83d   : > { %v16125_v12 = vadd.f32 %v16124_v47, %v15585_v3  ;;  %v15588_v34 = vadd.f32 %v15587_v23, %v15586_v29 }
 0x83f   : > { %v16135_v16 = vadd.f32 %v16134_v27, %v15588_v34 }
 0x852   : > { %v15611_v40 = vpop.f32.mrb[144].mxu1 }
 0x853   : > { %v15612_v28 = vpop.f32.mrb[145].mxu1 }
 0x854   : > { %v15613_v44 = vadd.f32 %v15612_v28, %v15611_v40  ;;  %v15614_v18 = vpop.f32.mrb[146].mxu1 }
 0x855   : > { %v15615_v4 = vpop.f32.mrb[147].mxu1 }
 0x856   : > { %v15616_v8 = vadd.f32 %v15615_v4, %v15614_v18  ;;  %v16131_v55 = vadd.f32 %v16130_v36, %v15613_v44 }
 0x858   : > { %v16141_v61 = vadd.f32 %v16140_v22, %v15616_v8  ;;  %v25458_v22 = vld [vmem:[#allocation6_spill] sm:$0xff] }
 0x85a   : > { %v15617_v43 = vpop.f32.mrb[148].mxu1 }
 0x85b   : > { %v15618_v19 = vpop.f32.mrb[149].mxu1 }
 0x85c   : > { %v15619_v62 = vadd.f32 %v15618_v19, %v15617_v43  ;;  %v15620_v30 = vpop.f32.mrb[150].mxu1 }
 0x85d   : > { %v15621_v53 = vpop.f32.mrb[151].mxu1  ;;  %v16021_v59 = vpop.f32.mrb[164].mxu0 }
 0x85e   : > { %v15622_v52 = vadd.f32 %v15621_v53, %v15620_v30  ;;  %v16126_v33 = vadd.f32 %v16125_v12, %v15619_v62  ;;  %v13236_v60 = vpop.f32.mrb[165].mxu0 }
 0x85f   : > { %v16132_v10 = vadd.f32 %v16131_v55, %v13236_v60  ;;  %v16022_v42 = vpop.f32.mrb[166].mxu0 }
 0x860   : > { %v16127_v14 = vadd.f32 %v16126_v33, %v16021_v59  ;;  %v16136_v7 = vadd.f32 %v16135_v16, %v15622_v52  ;;  %v13239_v54 = vpop.f32.mrb[167].mxu0 }
 0x861   : > { %v13262_v50 = vadd.f32 %v16132_v10, %v14828_v21  ;;  %v16142_v6 = vadd.f32 %v16141_v61, %v13239_v54 }
 0x862   : > { %v13264_v45 = vadd.f32 %v16127_v14, %v14828_v21  ;;  %v16137_v11 = vadd.f32 %v16136_v7, %v16022_v42 }
 0x863   : > { %v13266_v51 = vmax.f32 %v13262_v50, 0.0  ;;  %v13263_v20 = vadd.f32 %v16142_v6, %v14828_v21 }
 0x864   : > { %v13268_v2 = vmax.f32 %v13264_v45, 0.0  ;;  %v13265_v0 = vadd.f32 %v16137_v11, %v14828_v21 }
 0x865   : > { %v13272_v56 = vadd.f32 %v13270_v35, %v13266_v51  ;;  %v13267_v13 = vmax.f32 %v13263_v20, 0.0 }
 0x866   : > { %v13274_v32 = vadd.f32 %v13270_v35, %v13268_v2  ;;  %v13269_v57 = vmax.f32 %v13265_v0, 0.0 }
 0x867   : > { %v13280_v25 = vcombine.high %v13272_v56, %v13272_v56  ;;  %v13287_v1 = vrot.slane %v13272_v56, %v25457_v39  ;;  %v13273_v37 = vadd.f32 %v13271_v17, %v13267_v13 }
 0x868   : > { %v13314_v49 = vcombine.high %v13274_v32, %v13274_v32  ;;  %v13321_v24 = vrot.slane %v13274_v32, %v25457_v39  ;;  %v13275_v58 = vadd.f32 %v13271_v17, %v13269_v57 }
 0x869   : > { %v13294_v41 = vrot.slane %v13280_v25, %v25457_v39  ;;  %v13295_v63 = vcombine.high %v13287_v1, %v13287_v1  ;;  %v13351_v48 = vrot.slane %v13287_v1, %v25458_v22  ;;  %v13431_v23 = vrot.slane %v13287_v1, %v25459_v31 }
 0x86a   : > { %v24250_v38 = vrot.slane %v13314_v49, %v25457_v39  ;;  %v13329_v36 = vcombine.high %v13321_v24, %v13321_v24  ;;  %v13383_v9 = vrot.slane %v13321_v24, %v25458_v22  ;;  %v13463_v15 = vrot.slane %v13321_v24, %v25459_v31 }
 0x86b   : > { %v13296_v5 = vcombine.high %v13294_v41, %v13294_v41  ;;  %v13355_v46 = vrot.slane %v13295_v63, %v25458_v22  ;;  %v13435_v47 = vrot.slane %v13295_v63, %v25459_v31  ;;  %v13439_v12 = vrot.slane %v13294_v41, %v25459_v31 }
 0x86c   : > { %v13387_v26 = vrot.slane %v13329_v36, %v25458_v22  ;;  %v13467_v27 = vrot.slane %v13329_v36, %v25459_v31  ;;  %v13330_v3 = vcombine.high %v24250_v38, %v24250_v38  ;;  %v13471_v16 = vrot.slane %v24250_v38, %v25459_v31 }
 0x86d   : > { %v13412_v29 = vsel %vm3270_vm3, %v13355_v46, %v13351_v48  ;;  %v13359_v28 = vrot.slane %v13294_v41, %v25458_v22  ;;  %v13443_v44 = vrot.slane %v13296_v5, %v25459_v31  ;;  %v13492_v18 = vsel %vm3270_vm3, %v13435_v47, %v13431_v23 }
 0x86e   : > { %v13419_v34 = vsel %vm3270_vm3, %v13387_v26, %v13383_v9  ;;  %v13499_v40 = vsel %vm3270_vm3, %v13467_v27, %v13463_v15  ;;  %v13331_v4 = vcombine.high %v13275_v58, %v13275_v58  ;;  %v13338_v8 = vrot.slane %v13275_v58, %v25457_v39 }
 0x86f   : > { %v13391_v55 = vrot.slane %v24250_v38, %v25458_v22  ;;  %v13297_v61 = vcombine.high %v13273_v37, %v13273_v37  ;;  %v13304_v43 = vrot.slane %v13273_v37, %v25457_v39  ;;  %v13493_v19 = vsel %vm3272_vm4, %v13439_v12, %v13492_v18 }
 0x870   : > { %v13475_v62 = vrot.slane %v13330_v3, %v25459_v31  ;;  %v13363_v30 = vrot.slane %v13296_v5, %v25458_v22  ;;  %v13345_v53 = vrot.slane %v13331_v4, %v25457_v39  ;;  %v13346_v59 = vcombine.high %v13338_v8, %v13338_v8 }
 0x871   : > { %v13311_v52 = vrot.slane %v13297_v61, %v25457_v39  ;;  %v13312_v33 = vcombine.high %v13304_v43, %v13304_v43  ;;  %v13447_v21 = vrot.slane %v13304_v43, %v25459_v31  ;;  %v13500_v60 = vsel %vm3272_vm4, %v13471_v16, %v13499_v40 }
 0x872   : > { %v13395_v10 = vrot.slane %v13330_v3, %v25458_v22  ;;  %v13399_v42 = vrot.slane %v13338_v8, %v25458_v22  ;;  %v13494_v14 = vsel %vm3274_vm5, %v13443_v44, %v13493_v19  ;;  %v13347_v7 = vcombine.high %v13345_v53, %v13345_v53 }
 0x873   : > { %v13479_v54 = vrot.slane %v13338_v8, %v25459_v31  ;;  %v13313_v50 = vcombine.high %v13311_v52, %v13311_v52  ;;  %v13451_v6 = vrot.slane %v13312_v33, %v25459_v31  ;;  %v13495_v45 = vsel %vm3276_vm6, %v13447_v21, %v13494_v14 }
 0x874   : > { %v13367_v35 = vrot.slane %v13304_v43, %v25458_v22  ;;  %v13455_v11 = vrot.slane %v13311_v52, %v25459_v31  ;;  %v13483_v51 = vrot.slane %v13346_v59, %v25459_v31  ;;  %v13501_v20 = vsel %vm3274_vm5, %v13475_v62, %v13500_v60 }
 0x875   : > { %v13459_v2 = vrot.slane %v13313_v50, %v25459_v31  ;;  %v13496_v0 = vsel %vm3278_vm7, %v13451_v6, %v13495_v45  ;;  %v13487_v56 = vrot.slane %v13345_v53, %v25459_v31  ;;  %v13502_v32 = vsel %vm3276_vm6, %v13479_v54, %v13501_v20 }
 0x876   : > { %v13497_v57 = vsel %vm3280_vm8, %v13455_v11, %v13496_v0  ;;  %v13491_v13 = vrot.slane %v13347_v7, %v25459_v31  ;;  %v13503_v25 = vsel %vm3278_vm7, %v13483_v51, %v13502_v32  ;;  %v13413_v39 = vsel %vm3272_vm4, %v13359_v28, %v13412_v29 }
 0x877   : > { %v13498_v1 = vsel %vm3282_vm9, %v13459_v2, %v13497_v57  ;;  %v13504_v17 = vsel %vm3280_vm8, %v13487_v56, %v13503_v25  ;;  %v13371_v49 = vrot.slane %v13312_v33, %v25458_v22  ;;  %v13414_v24 = vsel %vm3274_vm5, %v13363_v30, %v13413_v39 }
 0x878   : > { %13506 = vrot.lane.b32.xlu0 %v13498_v1, %s16666_s12  ;;  %v13505_v41 = vsel %vm3282_vm9, %v13491_v13, %v13504_v17  ;;  %v13375_v63 = vrot.slane %v13311_v52, %v25458_v22  ;;  %v13415_v38 = vsel %vm3276_vm6, %v13367_v35, %v13414_v24  ;;  %v13420_v36 = vsel %vm3272_vm4, %v13391_v55, %v13419_v34 }
 0x879   : > { %13508 = vrot.lane.b32.xlu1 %v13505_v41, %s16666_s12  ;;  %v13379_v58 = vrot.slane %v13313_v50, %v25458_v22  ;;  %v13416_v37 = vsel %vm3278_vm7, %v13371_v49, %v13415_v38  ;;  %v13403_v5 = vrot.slane %v13346_v59, %v25458_v22  ;;  %v13421_v48 = vsel %vm3274_vm5, %v13395_v10, %v13420_v36  ;;  %s13581_s12 = sshll.u32 %s25461_s21, 3 }
 0x87a   : > { %v13417_v46 = vsel %vm3280_vm8, %v13375_v63, %v13416_v37  ;;  %v13407_v31 = vrot.slane %v13345_v53, %v25458_v22  ;;  %v13422_v47 = vsel %vm3276_vm6, %v13399_v42, %v13421_v48  ;;  %v13411_v26 = vrot.slane %v13347_v7, %v25458_v22  ;;  %s364_s11 = scalar_lea.vmem %s24341_s10, %s13581_s12 }
 0x87b   : > { %v13418_v9 = vsel %vm3282_vm9, %v13379_v58, %v13417_v46  ;;  %v13423_v15 = vsel %vm3278_vm7, %v13403_v5, %v13422_v47 }
 0x87c   : > { %v13424_v27 = vsel %vm3280_vm8, %v13407_v31, %v13423_v15 }
 0x87d   : > { %v13425_v3 = vsel %vm3282_vm9, %v13411_v26, %v13424_v27 }
 0x8ea   : > { %v13507_v29 = vpop.permute.xlu0 %13506 }
 0x8eb   : > { %v13512_v23 = vsel %vm4877_vm10, %v13418_v9, %v13507_v29  ;;  %v13509_v12 = vpop.permute.xlu1 %13508 }
 0x8ec   : > { %13514 = vst [vmem:[%s364_s11] sm:$0xff] %v13512_v23  ;;  %v13513_v34 = vsel %vm4877_vm10, %v13425_v3, %v13509_v12 }
 0x8ed   : > { %13515 = vst [vmem:[%s364_s11 + $0x8] sm:$0xff] %v13513_v34 }
 0x8ee PF: > { %s20_s13 = sadd.s32 1, %s16662_s13  }
 0x8ef   : > { %p17_p4 = scmp.ge.s32.totalorder %s20_s13, 4  }
 0x8f1   :  { %19 = sbr.rel (!%p17_p4) target bundleno = 1 (0x1), region = 113 }

</bundles_post_ra>
